<compile_context>
chip_gen: v6e
topology: v6e:2x2x1
jax: 0.10.0
libtpu: 0.0.40
codegen_flags: <defaults>
</compile_context>

<pallas_src>
import math
import functools
import numpy as np
import jax
import jax.numpy as jnp
from jax.experimental import pallas as pl
from jax.experimental.pallas import tpu as pltpu

# ------------- hyperparameters (consistent with the module's __init__) -------------
FEATURE_LEN = 64          # PositionalEncoding max_len
FEATURE_DIM_2 = 16        # input feature dim E_in
ENCODER_HIDDEN = 32       # d_model (divisible by nhead=8)
DECODER_HIDDEN = 16
NHEAD = 8
NUM_TX_LAYERS = 4
GRU_LAYERS = 2
DIM_FEEDFORWARD = 2048    # torch nn.TransformerEncoderLayer default
LN_EPS = 1e-5
NEG_INF = -1e30

E = ENCODER_HIDDEN
E3 = 3 * E
HD = E // NHEAD
H = E // 2                # GRU hidden per direction
H3 = 3 * H
DH = DECODER_HIDDEN

# ---- static bf16 weight slab layout (rows x 48 lanes) ----
SW_COLS = H3              # 48 lanes (widest static weight)
SW_FR = 0                 # feature_reduction w   rows [0,16)          lanes [0,E)
SW_WIH = 16               # GRU w_ih (4x32 rows)  rows [16+32*ld, ...) lanes [0,3H)
SW_WHH = 144              # GRU w_hh (4x16 rows)  rows [144+16*ld,...) lanes [0,3H)
SW_O1 = 208               # head conv1 w          rows [208,240)       lanes [0,DH)
SW_O2 = 240               # head conv2 w          rows [240,256)       lane 0
SW_ROWS = 256

SV_ROWS = 16              # static f32 vectors: GRU biases (rows 0..7) + head biases (8,9)
SV_COLS = H3


# ----------------------------------- fused kernel -----------------------------------
def _add_layernorm(x, delta, gamma, beta):
    """Post-norm residual: LayerNorm(x + delta), PyTorch eps=1e-5."""
    y = x + delta
    mu = jnp.mean(y, axis=-1, keepdims=True)
    var = jnp.mean(jnp.square(y - mu), axis=-1, keepdims=True)
    return (y - mu) * jax.lax.rsqrt(var + LN_EPS) * gamma + beta


def sjnet_kernel(x_ref, rb_ref, sw_ref, sv_ref, aw_ref, lv_ref, b1_ref,
                 ff1_ref, ff2_ref, o_ref, h_scr, *, nbatch, seqlen):
    B, L = nbatch, seqlen
    R = B * L                                   # token rows, l-major: r = t*B + b
    bf16 = jnp.bfloat16
    f32 = jnp.float32
    layer = pl.program_id(0)

    # ---- grid step 0: feature_reduction Conv1d(k=1) + positional encoding ----
    @pl.when(layer == 0)
    def _():
        fr_w = sw_ref[SW_FR:SW_FR + FEATURE_DIM_2, 0:E]          # bf16 [E_in, E]
        h_scr[...] = (jnp.dot(x_ref[...].astype(bf16), fr_w,
                              preferred_element_type=f32) + rb_ref[...])

    # ---- transformer encoder layer `layer` (post-norm, relu, eps=1e-5) ----
    aw = aw_ref[0]                                               # bf16 [E, 128]
    lv = lv_ref[0]                                               # f32  [8, 128]
    w_qkv = aw[:, 0:E3]                                          # q cols pre-scaled
    w_o = aw[:, E3:E3 + E]
    b_qkv = lv[0:1, 0:E3]
    b_o = lv[0:1, E3:E3 + E]
    g1, be1 = lv[1:2, 0:E], lv[1:2, E:2 * E]
    g2, be2 = lv[1:2, 2 * E:3 * E], lv[1:2, 3 * E:4 * E]
    b2 = lv[2:3, 0:E]
    b1 = b1_ref[0]                                               # f32 [1, 2048]

    h = h_scr[...]                                               # f32 [R, E]

    # additive cross-batch mask generated in-kernel (no O(R^2) HBM operand); div/mod
    # free: rows r and c belong to the same batch iff (r - c) is a multiple of B.
    rid = jax.lax.broadcasted_iota(jnp.int32, (R, R), 0)
    cid = jax.lax.broadcasted_iota(jnp.int32, (R, R), 1)
    diff = rid - cid
    same = functools.reduce(jnp.logical_or,
                            [diff == k * B for k in range(-(L - 1), L)])
    mask = jnp.where(same, 0.0, NEG_INF).astype(f32)

    # fused qkv projection (one MXU pass), single k transpose per layer
    qkv = jnp.dot(h.astype(bf16), w_qkv, preferred_element_type=f32) + b_qkv
    qb = qkv[:, 0:E].astype(bf16)
    vb = qkv[:, 2 * E:E3].astype(bf16)
    kTb = qkv[:, E:2 * E].T.astype(bf16)                         # [E, R]

    heads = []
    for hi in range(NHEAD):
        lo = hi * HD
        s = jnp.dot(qb[:, lo:lo + HD], kTb[lo:lo + HD, :],
                    preferred_element_type=f32) + mask
        s = s - jnp.max(s, axis=-1, keepdims=True)
        p = jnp.exp(s)
        p = p * pl.reciprocal(jnp.sum(p, axis=-1, keepdims=True), approx=True)
        heads.append(jnp.dot(p.astype(bf16), vb[:, lo:lo + HD],
                             preferred_element_type=f32))        # [R, HD]
    attn = jnp.concatenate(heads, axis=1)                        # head concat -> [R, E]
    attn = jnp.dot(attn.astype(bf16), w_o, preferred_element_type=f32) + b_o
    h = _add_layernorm(h, attn, g1, be1)

    # feed-forward: bf16 MXU operands (streamed per layer), f32 accumulation
    ff = jnp.dot(h.astype(bf16), ff1_ref[0], preferred_element_type=f32) + b1
    ff = jnp.maximum(ff, 0.0)
    ff = jnp.dot(ff.astype(bf16), ff2_ref[0], preferred_element_type=f32) + b2
    h = _add_layernorm(h, ff, g2, be2)
    h_scr[...] = h

    # ---- last grid step: 2-layer bidirectional GRU + 1x1-conv head ----
    @pl.when(layer == NUM_TX_LAYERS - 1)
    def _():
        act = h                                                  # [R, E]
        for gl in range(GRU_LAYERS):
            actb = act.astype(bf16)
            dir_out = []
            for d in range(2):                                   # 0: fwd, 1: bwd
                ld = gl * 2 + d
                w_ih = sw_ref[SW_WIH + ld * 32:SW_WIH + (ld + 1) * 32, 0:H3]  # [E, 3H]
                w_hh = sw_ref[SW_WHH + ld * 16:SW_WHH + (ld + 1) * 16, 0:H3]  # [H, 3H]
                b_ih = sv_ref[2 * ld:2 * ld + 1, 0:H3]
                b_hh = sv_ref[2 * ld + 1:2 * ld + 2, 0:H3]
                # hoisted, gate-fused input projection (r|z|n) for all timesteps
                gx = jnp.dot(actb, w_ih, preferred_element_type=f32) + b_ih   # [R, 3H]
                hs = jnp.zeros((B, H), f32)
                outs = [None] * L
                for step in range(L):
                    t = step if d == 0 else L - 1 - step
                    # ONE fused hidden matmul per serial step
                    gh = jnp.dot(hs.astype(bf16), w_hh,
                                 preferred_element_type=f32) + b_hh           # [B, 3H]
                    gxt = gx[t * B:(t + 1) * B, :]
                    rz = jax.nn.sigmoid(gxt[:, 0:2 * H] + gh[:, 0:2 * H])
                    r, z = rz[:, 0:H], rz[:, H:2 * H]
                    n = jnp.tanh(gxt[:, 2 * H:H3] + r * gh[:, 2 * H:H3])
                    hs = (1.0 - z) * n + z * hs
                    outs[t] = hs
                dir_out.append(jnp.concatenate(outs, axis=0))    # [R, H]
            act = jnp.concatenate(dir_out, axis=1)               # [R, 2H]; dropout = id
        # out head: Conv1d(E->DH,1) + ReLU + Dropout(id) + Conv1d(DH->1,1)
        w1h = sw_ref[SW_O1:SW_O1 + E, 0:DH]
        w2h = sw_ref[SW_O2:SW_O2 + DH, 0:1]
        b1h = sv_ref[8:9, 0:DH]
        b2h = sv_ref[9:10, 0:1]
        y = jnp.maximum(jnp.dot(act.astype(bf16), w1h,
                                preferred_element_type=f32) + b1h, 0.0)
        o_ref[...] = jnp.dot(y.astype(bf16), w2h, preferred_element_type=f32) + b2h


# ----------------------------------- param packing -----------------------------------
def pack_params(params, batch, seqlen):
    """One-time repack of SJNET parameters into the fused kernel's coalesced slabs."""
    scale = 1.0 / math.sqrt(HD)

    # per-row bias = Conv1d bias + positional encoding (rows r = t*B + b)
    pe_rows = np.repeat(np.asarray(params["pe"])[:seqlen, 0, :], batch, axis=0)
    row_bias = jnp.asarray(pe_rows + np.asarray(params["fr_b"])[None, :], jnp.float32)

    # static (non-transformer) weights -> one bf16 slab
    sw = np.zeros((SW_ROWS, SW_COLS), np.float32)
    sw[SW_FR:SW_FR + FEATURE_DIM_2, 0:E] = np.asarray(params["fr_w"])
    for gl in range(GRU_LAYERS):
        for d, suf in enumerate(("f", "b")):
            ld = gl * 2 + d
            sw[SW_WIH + ld * 32:SW_WIH + (ld + 1) * 32, 0:H3] = np.asarray(
                params["gru"][gl][f"w_ih_{suf}"])
            sw[SW_WHH + ld * 16:SW_WHH + (ld + 1) * 16, 0:H3] = np.asarray(
                params["gru"][gl][f"w_hh_{suf}"])
    sw[SW_O1:SW_O1 + E, 0:DH] = np.asarray(params["out1_w"])
    sw[SW_O2:SW_O2 + DH, 0:1] = np.asarray(params["out2_w"])
    stat_w = jnp.asarray(sw).astype(jnp.bfloat16)

    # static f32 vectors: GRU biases + head biases
    sv = np.zeros((SV_ROWS, SV_COLS), np.float32)
    for gl in range(GRU_LAYERS):
        for d, suf in enumerate(("f", "b")):
            ld = gl * 2 + d
            sv[2 * ld, 0:H3] = np.asarray(params["gru"][gl][f"b_ih_{suf}"])
            sv[2 * ld + 1, 0:H3] = np.asarray(params["gru"][gl][f"b_hh_{suf}"])
    sv[8, 0:DH] = np.asarray(params["out1_b"])
    sv[9, 0] = float(np.asarray(params["out2_b"]).reshape(-1)[0])
    stat_v = jnp.asarray(sv)

    # per-transformer-layer packed weights / vectors (streamed over the layer grid)
    aw_list, lv_list = [], []
    for p in params["tx"]:
        w = np.zeros((E, 128), np.float32)
        w[:, 0:E] = np.asarray(p["in_proj_w"])[:, 0:E] * scale   # q (1/sqrt(hd) folded)
        w[:, E:E3] = np.asarray(p["in_proj_w"])[:, E:]           # k, v
        w[:, E3:E3 + E] = np.asarray(p["out_proj_w"])
        aw_list.append(w)
        v = np.zeros((8, 128), np.float32)
        b_in = np.asarray(p["in_proj_b"]).copy()
        b_in[:E] *= scale
        v[0, 0:E3] = b_in
        v[0, E3:E3 + E] = np.asarray(p["out_proj_b"])
        v[1, 0:E] = np.asarray(p["ln1_g"])
        v[1, E:2 * E] = np.asarray(p["ln1_b"])
        v[1, 2 * E:3 * E] = np.asarray(p["ln2_g"])
        v[1, 3 * E:4 * E] = np.asarray(p["ln2_b"])
        v[2, 0:E] = np.asarray(p["ff2_b"])
        lv_list.append(v)
    attn_w = jnp.asarray(np.stack(aw_list)).astype(jnp.bfloat16)        # [4, 32, 128]
    layer_v = jnp.asarray(np.stack(lv_list))                            # [4, 8, 128]
    ff1_b = jnp.stack([p["ff1_b"].reshape(1, DIM_FEEDFORWARD)
                       for p in params["tx"]])                          # [4, 1, 2048]
    ff1_w = jnp.stack([p["ff1_w"] for p in params["tx"]]).astype(jnp.bfloat16)
    ff2_w = jnp.stack([p["ff2_w"] for p in params["tx"]]).astype(jnp.bfloat16)

    return [row_bias, stat_w, stat_v, attn_w, layer_v, ff1_b, ff1_w, ff2_w]


# ----------------------------------- forward wrapper -----------------------------------
@jax.jit
def sjnet_forward(ops, x_ble):
    """x: [B, L, FEATURE_DIM_2] -> [B, L].  `ops` from pack_params with matching B, L."""
    B, L, _ = x_ble.shape
    R = B * L
    x_rows = x_ble.transpose(1, 0, 2).reshape(R, FEATURE_DIM_2)   # l-major token rows
    y = pl.pallas_call(
        functools.partial(sjnet_kernel, nbatch=B, seqlen=L),
        out_shape=jax.ShapeDtypeStruct((R, 1), jnp.float32),
        grid=(NUM_TX_LAYERS,),
        in_specs=[
            pl.BlockSpec((R, FEATURE_DIM_2), lambda l: (0, 0)),            # x rows
            pl.BlockSpec((R, E), lambda l: (0, 0)),                        # fr_b + pe
            pl.BlockSpec((SW_ROWS, SW_COLS), lambda l: (0, 0)),            # static weights
            pl.BlockSpec((SV_ROWS, SV_COLS), lambda l: (0, 0)),            # static vectors
            pl.BlockSpec((1, E, 128), lambda l: (l, 0, 0)),                # qkv|wo (bf16)
            pl.BlockSpec((1, 8, 128), lambda l: (l, 0, 0)),                # layer vectors
            pl.BlockSpec((1, 1, DIM_FEEDFORWARD), lambda l: (l, 0, 0)),    # ff1 bias
            pl.BlockSpec((1, E, DIM_FEEDFORWARD), lambda l: (l, 0, 0)),    # ff1 w (bf16)
            pl.BlockSpec((1, DIM_FEEDFORWARD, E), lambda l: (l, 0, 0)),    # ff2 w (bf16)
        ],
        out_specs=pl.BlockSpec((R, 1), lambda l: (0, 0)),
        scratch_shapes=[pltpu.VMEM((R, E), jnp.float32)],                  # residual h
        compiler_params=pltpu.CompilerParams(
            dimension_semantics=("arbitrary",),
            vmem_limit_bytes=32 * 1024 * 1024),
    )(x_rows, *ops)
    # rows are l-major (r = t*B + b)  ->  [B, L]
    return y.reshape(L, B).transpose(1, 0)


# ----------------------------------- deterministic init -----------------------------------
def make_positional_encoding(max_len, d_model):
    position = np.arange(max_len, dtype=np.float32)[:, None]
    div_term = np.exp(np.arange(0, d_model, 2, dtype=np.float32) *
                      (-math.log(10000.0) / d_model))
    pe = np.zeros((max_len, d_model), dtype=np.float32)
    pe[:, 0::2] = np.sin(position * div_term)
    pe[:, 1::2] = np.cos(position * div_term)
    return jnp.asarray(pe)[:, None, :]                        # [max_len, 1, d_model]


def init_params(key):
    keys = iter(jax.random.split(key, 256))

    def w(shape, scale=0.05):
        return jax.random.normal(next(keys), shape, jnp.float32) * scale

    params = {
        "fr_w": w((FEATURE_DIM_2, E)), "fr_b": w((E,)),
        "pe": make_positional_encoding(FEATURE_LEN, E),
        "out1_w": w((E, DECODER_HIDDEN)), "out1_b": w((DECODER_HIDDEN,)),
        "out2_w": w((DECODER_HIDDEN, 1)), "out2_b": w((1,)),
    }
    params["tx"] = [
        dict(
            in_proj_w=w((E, 3 * E)), in_proj_b=w((3 * E,)),
            out_proj_w=w((E, E)), out_proj_b=w((E,)),
            ff1_w=w((E, DIM_FEEDFORWARD)), ff1_b=w((DIM_FEEDFORWARD,)),
            ff2_w=w((DIM_FEEDFORWARD, E)), ff2_b=w((E,)),
            ln1_g=jnp.ones((E,), jnp.float32), ln1_b=jnp.zeros((E,), jnp.float32),
            ln2_g=jnp.ones((E,), jnp.float32), ln2_b=jnp.zeros((E,), jnp.float32),
        )
        for _ in range(NUM_TX_LAYERS)
    ]
    gru_in = [E, 2 * H]
    params["gru"] = [
        dict(
            w_ih_f=w((gru_in[l], 3 * H)), w_hh_f=w((H, 3 * H)),
            b_ih_f=w((3 * H,)), b_hh_f=w((3 * H,)),
            w_ih_b=w((gru_in[l], 3 * H)), w_hh_b=w((H, 3 * H)),
            b_ih_b=w((3 * H,)), b_hh_b=w((3 * H,)),
        )
        for l in range(GRU_LAYERS)
    ]
    return params


if __name__ == "__main__":
    key = jax.random.PRNGKey(0)
    pkey, xkey = jax.random.split(key)
    params = init_params(pkey)
    # x: [B, L, FEATURE_DIM_2]
    B, L = 2, 8
    x = jax.random.normal(xkey, (B, L, FEATURE_DIM_2), jnp.float32)
    ops = pack_params(params, batch=B, seqlen=L)              # one-time weight repack
    out = sjnet_forward(ops, x)
    jax.block_until_ready(out)
    assert out.shape == (B, L), out.shape
    assert bool(jnp.all(jnp.isfinite(out)))
    print("KERNEL_OK")
</pallas_src>

<mosaic_0001>
module attributes {stable_mosaic.version = 11 : i64} {
  func.func @sjnet_kernel(%arg0: i32, %arg1: memref<16x16xf32, #tpu.memory_space<vmem>>, %arg2: memref<16x32xf32, #tpu.memory_space<vmem>>, %arg3: memref<256x48xbf16, #tpu.memory_space<vmem>>, %arg4: memref<16x48xf32, #tpu.memory_space<vmem>>, %arg5: memref<1x32x128xbf16, #tpu.memory_space<vmem>>, %arg6: memref<1x8x128xf32, #tpu.memory_space<vmem>>, %arg7: memref<1x1x2048xf32, #tpu.memory_space<vmem>>, %arg8: memref<1x32x2048xbf16, #tpu.memory_space<vmem>>, %arg9: memref<1x2048x32xbf16, #tpu.memory_space<vmem>>, %arg10: memref<16x1xf32, #tpu.memory_space<vmem>>, %arg11: memref<16x32xf32, #tpu.memory_space<vmem>>) attributes {dimension_semantics = [#tpu.dimension_semantics<arbitrary>], iteration_bounds = array<i64: 4>, scalar_prefetch = 0 : i64, scratch_operands = 1 : i64, tpu.core_type = #tpu.core_type<tc>, window_params = [{pipeline_mode = #tpu.pipeline_mode<synchronous>, transform_indices = @transform_0, window_bounds = array<i64: 16, 16>}, {pipeline_mode = #tpu.pipeline_mode<synchronous>, transform_indices = @transform_1, window_bounds = array<i64: 16, 32>}, {pipeline_mode = #tpu.pipeline_mode<synchronous>, transform_indices = @transform_2, window_bounds = array<i64: 256, 48>}, {pipeline_mode = #tpu.pipeline_mode<synchronous>, transform_indices = @transform_3, window_bounds = array<i64: 16, 48>}, {transform_indices = @transform_4, window_bounds = array<i64: 1, 32, 128>}, {transform_indices = @transform_5, window_bounds = array<i64: 1, 8, 128>}, {transform_indices = @transform_6, window_bounds = array<i64: 1, 1, 2048>}, {transform_indices = @transform_7, window_bounds = array<i64: 1, 32, 2048>}, {transform_indices = @transform_8, window_bounds = array<i64: 1, 2048, 32>}, {pipeline_mode = #tpu.pipeline_mode<synchronous>, transform_indices = @transform_9, window_bounds = array<i64: 16, 1>}]} {
    %c0_i32 = arith.constant 0 : i32
    %0 = arith.cmpi eq, %arg0, %c0_i32 : i32
    %1 = arith.extui %0 : i1 to i32
    %c0_i32_0 = arith.constant 0 : i32
    %2 = arith.cmpi ne, %1, %c0_i32_0 : i32
    scf.if %2 {
      %c0_69 = arith.constant 0 : index
      %c0_70 = arith.constant 0 : index
      %285 = vector.load %arg3[%c0_69, %c0_70] : memref<256x48xbf16, #tpu.memory_space<vmem>>, vector<16x32xbf16>
      %c0_71 = arith.constant 0 : index
      %c0_72 = arith.constant 0 : index
      %286 = vector.load %arg1[%c0_71, %c0_72] : memref<16x16xf32, #tpu.memory_space<vmem>>, vector<16x16xf32>
      %287 = arith.truncf %286 : vector<16x16xf32> to vector<16x16xbf16>
      %cst_73 = arith.constant dense<0.000000e+00> : vector<16x32xf32>
      %288 = tpu.matmul %287, %285, %cst_73 {dimension_numbers = #tpu.dot_dimension_numbers<[1], [0], [0], [1], [0, 0, 1, 1], [], []>} : vector<16x16xbf16>, vector<16x32xbf16>, vector<16x32xf32> -> vector<16x32xf32>
      %c0_74 = arith.constant 0 : index
      %c0_75 = arith.constant 0 : index
      %289 = vector.load %arg2[%c0_74, %c0_75] : memref<16x32xf32, #tpu.memory_space<vmem>>, vector<16x32xf32>
      %290 = arith.addf %288, %289 : vector<16x32xf32>
      %c0_76 = arith.constant 0 : index
      %c0_77 = arith.constant 0 : index
      %291 = vector.load %arg11[%c0_76, %c0_77] : memref<16x32xf32, #tpu.memory_space<vmem>>, vector<16x32xf32>
      tpu.vector_store %arg11[%c0_76, %c0_77], %290 {strides = array<i32>} : memref<16x32xf32, #tpu.memory_space<vmem>>, vector<16x32xf32>,
    } else {
    }
    %c0 = arith.constant 0 : index
    %c0_1 = arith.constant 0 : index
    %c0_2 = arith.constant 0 : index
    %3 = vector.load %arg5[%c0, %c0_1, %c0_2] : memref<1x32x128xbf16, #tpu.memory_space<vmem>>, vector<1x32x128xbf16>
    %4 = vector.shape_cast %3 : vector<1x32x128xbf16> to vector<32x128xbf16>
    %c0_3 = arith.constant 0 : index
    %c0_4 = arith.constant 0 : index
    %c0_5 = arith.constant 0 : index
    %5 = vector.load %arg6[%c0_3, %c0_4, %c0_5] : memref<1x8x128xf32, #tpu.memory_space<vmem>>, vector<1x8x128xf32>
    %6 = vector.shape_cast %5 : vector<1x8x128xf32> to vector<8x128xf32>
    %7 = vector.extract_strided_slice %4 {offsets = [0, 0], sizes = [32, 96], strides = [1, 1]} : vector<32x128xbf16> to vector<32x96xbf16>
    %8 = vector.extract_strided_slice %4 {offsets = [0, 96], sizes = [32, 32], strides = [1, 1]} : vector<32x128xbf16> to vector<32x32xbf16>
    %9 = vector.extract_strided_slice %6 {offsets = [0, 0], sizes = [1, 96], strides = [1, 1]} : vector<8x128xf32> to vector<1x96xf32>
    %10 = vector.extract_strided_slice %6 {offsets = [0, 96], sizes = [1, 32], strides = [1, 1]} : vector<8x128xf32> to vector<1x32xf32>
    %11 = vector.extract_strided_slice %6 {offsets = [1, 0], sizes = [1, 32], strides = [1, 1]} : vector<8x128xf32> to vector<1x32xf32>
    %12 = vector.extract_strided_slice %6 {offsets = [1, 32], sizes = [1, 32], strides = [1, 1]} : vector<8x128xf32> to vector<1x32xf32>
    %13 = vector.extract_strided_slice %6 {offsets = [1, 64], sizes = [1, 32], strides = [1, 1]} : vector<8x128xf32> to vector<1x32xf32>
    %14 = vector.extract_strided_slice %6 {offsets = [1, 96], sizes = [1, 32], strides = [1, 1]} : vector<8x128xf32> to vector<1x32xf32>
    %15 = vector.extract_strided_slice %6 {offsets = [2, 0], sizes = [1, 32], strides = [1, 1]} : vector<8x128xf32> to vector<1x32xf32>
    %c0_6 = arith.constant 0 : index
    %c0_7 = arith.constant 0 : index
    %c0_8 = arith.constant 0 : index
    %16 = vector.load %arg7[%c0_6, %c0_7, %c0_8] : memref<1x1x2048xf32, #tpu.memory_space<vmem>>, vector<1x1x2048xf32>
    %17 = vector.shape_cast %16 : vector<1x1x2048xf32> to vector<1x2048xf32>
    %c0_9 = arith.constant 0 : index
    %c0_10 = arith.constant 0 : index
    %18 = vector.load %arg11[%c0_9, %c0_10] : memref<16x32xf32, #tpu.memory_space<vmem>>, vector<16x32xf32>
    %19 = tpu.iota {dimensions = array<i32: 0>} : vector<16x16xi32>
    %20 = tpu.iota {dimensions = array<i32: 1>} : vector<16x16xi32>
    %21 = arith.subi %19, %20 : vector<16x16xi32>
    %c-14_i32 = arith.constant -14 : i32
    %22 = vector.broadcast %c-14_i32 : i32 to vector<16x16xi32>
    %23 = arith.cmpi eq, %21, %22 : vector<16x16xi32>
    %c-12_i32 = arith.constant -12 : i32
    %24 = vector.broadcast %c-12_i32 : i32 to vector<16x16xi32>
    %25 = arith.cmpi eq, %21, %24 : vector<16x16xi32>
    %c-10_i32 = arith.constant -10 : i32
    %26 = vector.broadcast %c-10_i32 : i32 to vector<16x16xi32>
    %27 = arith.cmpi eq, %21, %26 : vector<16x16xi32>
    %c-8_i32 = arith.constant -8 : i32
    %28 = vector.broadcast %c-8_i32 : i32 to vector<16x16xi32>
    %29 = arith.cmpi eq, %21, %28 : vector<16x16xi32>
    %c-6_i32 = arith.constant -6 : i32
    %30 = vector.broadcast %c-6_i32 : i32 to vector<16x16xi32>
    %31 = arith.cmpi eq, %21, %30 : vector<16x16xi32>
    %c-4_i32 = arith.constant -4 : i32
    %32 = vector.broadcast %c-4_i32 : i32 to vector<16x16xi32>
    %33 = arith.cmpi eq, %21, %32 : vector<16x16xi32>
    %c-2_i32 = arith.constant -2 : i32
    %34 = vector.broadcast %c-2_i32 : i32 to vector<16x16xi32>
    %35 = arith.cmpi eq, %21, %34 : vector<16x16xi32>
    %c0_i32_11 = arith.constant 0 : i32
    %36 = vector.broadcast %c0_i32_11 : i32 to vector<16x16xi32>
    %37 = arith.cmpi eq, %21, %36 : vector<16x16xi32>
    %c2_i32 = arith.constant 2 : i32
    %38 = vector.broadcast %c2_i32 : i32 to vector<16x16xi32>
    %39 = arith.cmpi eq, %21, %38 : vector<16x16xi32>
    %c4_i32 = arith.constant 4 : i32
    %40 = vector.broadcast %c4_i32 : i32 to vector<16x16xi32>
    %41 = arith.cmpi eq, %21, %40 : vector<16x16xi32>
    %c6_i32 = arith.constant 6 : i32
    %42 = vector.broadcast %c6_i32 : i32 to vector<16x16xi32>
    %43 = arith.cmpi eq, %21, %42 : vector<16x16xi32>
    %c8_i32 = arith.constant 8 : i32
    %44 = vector.broadcast %c8_i32 : i32 to vector<16x16xi32>
    %45 = arith.cmpi eq, %21, %44 : vector<16x16xi32>
    %c10_i32 = arith.constant 10 : i32
    %46 = vector.broadcast %c10_i32 : i32 to vector<16x16xi32>
    %47 = arith.cmpi eq, %21, %46 : vector<16x16xi32>
    %c12_i32 = arith.constant 12 : i32
    %48 = vector.broadcast %c12_i32 : i32 to vector<16x16xi32>
    %49 = arith.cmpi eq, %21, %48 : vector<16x16xi32>
    %c14_i32 = arith.constant 14 : i32
    %50 = vector.broadcast %c14_i32 : i32 to vector<16x16xi32>
    %51 = arith.cmpi eq, %21, %50 : vector<16x16xi32>
    %52 = arith.ori %23, %25 : vector<16x16xi1>
    %53 = arith.ori %52, %27 : vector<16x16xi1>
    %54 = arith.ori %53, %29 : vector<16x16xi1>
    %55 = arith.ori %54, %31 : vector<16x16xi1>
    %56 = arith.ori %55, %33 : vector<16x16xi1>
    %57 = arith.ori %56, %35 : vector<16x16xi1>
    %58 = arith.ori %57, %37 : vector<16x16xi1>
    %59 = arith.ori %58, %39 : vector<16x16xi1>
    %60 = arith.ori %59, %41 : vector<16x16xi1>
    %61 = arith.ori %60, %43 : vector<16x16xi1>
    %62 = arith.ori %61, %45 : vector<16x16xi1>
    %63 = arith.ori %62, %47 : vector<16x16xi1>
    %64 = arith.ori %63, %49 : vector<16x16xi1>
    %65 = arith.ori %64, %51 : vector<16x16xi1>
    %cst = arith.constant 0.000000e+00 : f32
    %cst_12 = arith.constant -1.000000e+30 : f32
    %66 = vector.broadcast %cst : f32 to vector<16x16xf32>
    %67 = vector.broadcast %cst_12 : f32 to vector<16x16xf32>
    %68 = arith.select %65, %66, %67 : vector<16x16xi1>, vector<16x16xf32>
    %69 = arith.truncf %18 : vector<16x32xf32> to vector<16x32xbf16>
    %cst_13 = arith.constant dense<0.000000e+00> : vector<16x96xf32>
    %70 = tpu.matmul %69, %7, %cst_13 {dimension_numbers = #tpu.dot_dimension_numbers<[1], [0], [0], [1], [0, 0, 1, 1], [], []>} : vector<16x32xbf16>, vector<32x96xbf16>, vector<16x96xf32> -> vector<16x96xf32>
    %71 = vector.broadcast %9 : vector<1x96xf32> to vector<16x96xf32>
    %72 = arith.addf %70, %71 : vector<16x96xf32>
    %73 = vector.extract_strided_slice %72 {offsets = [0, 0], sizes = [16, 32], strides = [1, 1]} : vector<16x96xf32> to vector<16x32xf32>
    %74 = arith.truncf %73 : vector<16x32xf32> to vector<16x32xbf16>
    %75 = vector.extract_strided_slice %72 {offsets = [0, 64], sizes = [16, 32], strides = [1, 1]} : vector<16x96xf32> to vector<16x32xf32>
    %76 = arith.truncf %75 : vector<16x32xf32> to vector<16x32xbf16>
    %77 = vector.extract_strided_slice %72 {offsets = [0, 32], sizes = [16, 32], strides = [1, 1]} : vector<16x96xf32> to vector<16x32xf32>
    %78 = tpu.transpose %77, [1, 0] : vector<16x32xf32> -> vector<32x16xf32>
    %79 = arith.truncf %78 : vector<32x16xf32> to vector<32x16xbf16>
    %80 = vector.extract_strided_slice %74 {offsets = [0, 0], sizes = [16, 4], strides = [1, 1]} : vector<16x32xbf16> to vector<16x4xbf16>
    %81 = vector.extract_strided_slice %79 {offsets = [0, 0], sizes = [4, 16], strides = [1, 1]} : vector<32x16xbf16> to vector<4x16xbf16>
    %cst_14 = arith.constant dense<0.000000e+00> : vector<16x16xf32>
    %82 = tpu.matmul %80, %81, %cst_14 {dimension_numbers = #tpu.dot_dimension_numbers<[1], [0], [0], [1], [0, 0, 1, 1], [], []>} : vector<16x4xbf16>, vector<4x16xbf16>, vector<16x16xf32> -> vector<16x16xf32>
    %83 = arith.addf %82, %68 : vector<16x16xf32>
    %cst_15 = arith.constant dense<0xFF800000> : vector<16xf32>
    %84 = vector.multi_reduction <maximumf>, %83, %cst_15 [1] : vector<16x16xf32> to vector<16xf32>
    %85 = vector.shape_cast %84 : vector<16xf32> to vector<16x1xf32>
    %86 = vector.broadcast %85 : vector<16x1xf32> to vector<16x16xf32>
    %87 = arith.subf %83, %86 : vector<16x16xf32>
    %88 = math.exp %87 : vector<16x16xf32>
    %cst_16 = arith.constant dense<0.000000e+00> : vector<16xf32>
    %89 = vector.multi_reduction <add>, %88, %cst_16 [1] : vector<16x16xf32> to vector<16xf32>
    %90 = vector.shape_cast %89 : vector<16xf32> to vector<16x1xf32>
    %91 = tpu.reciprocal %90 {approx = true} : vector<16x1xf32> -> vector<16x1xf32>
    %92 = vector.broadcast %91 : vector<16x1xf32> to vector<16x16xf32>
    %93 = arith.mulf %88, %92 : vector<16x16xf32>
    %94 = arith.truncf %93 : vector<16x16xf32> to vector<16x16xbf16>
    %95 = vector.extract_strided_slice %76 {offsets = [0, 0], sizes = [16, 4], strides = [1, 1]} : vector<16x32xbf16> to vector<16x4xbf16>
    %cst_17 = arith.constant dense<0.000000e+00> : vector<16x4xf32>
    %96 = tpu.matmul %94, %95, %cst_17 {dimension_numbers = #tpu.dot_dimension_numbers<[1], [0], [0], [1], [0, 0, 1, 1], [], []>} : vector<16x16xbf16>, vector<16x4xbf16>, vector<16x4xf32> -> vector<16x4xf32>
    %97 = vector.extract_strided_slice %74 {offsets = [0, 4], sizes = [16, 4], strides = [1, 1]} : vector<16x32xbf16> to vector<16x4xbf16>
    %98 = vector.extract_strided_slice %79 {offsets = [4, 0], sizes = [4, 16], strides = [1, 1]} : vector<32x16xbf16> to vector<4x16xbf16>
    %cst_18 = arith.constant dense<0.000000e+00> : vector<16x16xf32>
    %99 = tpu.matmul %97, %98, %cst_18 {dimension_numbers = #tpu.dot_dimension_numbers<[1], [0], [0], [1], [0, 0, 1, 1], [], []>} : vector<16x4xbf16>, vector<4x16xbf16>, vector<16x16xf32> -> vector<16x16xf32>
    %100 = arith.addf %99, %68 : vector<16x16xf32>
    %cst_19 = arith.constant dense<0xFF800000> : vector<16xf32>
    %101 = vector.multi_reduction <maximumf>, %100, %cst_19 [1] : vector<16x16xf32> to vector<16xf32>
    %102 = vector.shape_cast %101 : vector<16xf32> to vector<16x1xf32>
    %103 = vector.broadcast %102 : vector<16x1xf32> to vector<16x16xf32>
    %104 = arith.subf %100, %103 : vector<16x16xf32>
    %105 = math.exp %104 : vector<16x16xf32>
    %cst_20 = arith.constant dense<0.000000e+00> : vector<16xf32>
    %106 = vector.multi_reduction <add>, %105, %cst_20 [1] : vector<16x16xf32> to vector<16xf32>
    %107 = vector.shape_cast %106 : vector<16xf32> to vector<16x1xf32>
    %108 = tpu.reciprocal %107 {approx = true} : vector<16x1xf32> -> vector<16x1xf32>
    %109 = vector.broadcast %108 : vector<16x1xf32> to vector<16x16xf32>
    %110 = arith.mulf %105, %109 : vector<16x16xf32>
    %111 = arith.truncf %110 : vector<16x16xf32> to vector<16x16xbf16>
    %112 = vector.extract_strided_slice %76 {offsets = [0, 4], sizes = [16, 4], strides = [1, 1]} : vector<16x32xbf16> to vector<16x4xbf16>
    %cst_21 = arith.constant dense<0.000000e+00> : vector<16x4xf32>
    %113 = tpu.matmul %111, %112, %cst_21 {dimension_numbers = #tpu.dot_dimension_numbers<[1], [0], [0], [1], [0, 0, 1, 1], [], []>} : vector<16x16xbf16>, vector<16x4xbf16>, vector<16x4xf32> -> vector<16x4xf32>
    %114 = vector.extract_strided_slice %74 {offsets = [0, 8], sizes = [16, 4], strides = [1, 1]} : vector<16x32xbf16> to vector<16x4xbf16>
    %115 = vector.extract_strided_slice %79 {offsets = [8, 0], sizes = [4, 16], strides = [1, 1]} : vector<32x16xbf16> to vector<4x16xbf16>
    %cst_22 = arith.constant dense<0.000000e+00> : vector<16x16xf32>
    %116 = tpu.matmul %114, %115, %cst_22 {dimension_numbers = #tpu.dot_dimension_numbers<[1], [0], [0], [1], [0, 0, 1, 1], [], []>} : vector<16x4xbf16>, vector<4x16xbf16>, vector<16x16xf32> -> vector<16x16xf32>
    %117 = arith.addf %116, %68 : vector<16x16xf32>
    %cst_23 = arith.constant dense<0xFF800000> : vector<16xf32>
    %118 = vector.multi_reduction <maximumf>, %117, %cst_23 [1] : vector<16x16xf32> to vector<16xf32>
    %119 = vector.shape_cast %118 : vector<16xf32> to vector<16x1xf32>
    %120 = vector.broadcast %119 : vector<16x1xf32> to vector<16x16xf32>
    %121 = arith.subf %117, %120 : vector<16x16xf32>
    %122 = math.exp %121 : vector<16x16xf32>
    %cst_24 = arith.constant dense<0.000000e+00> : vector<16xf32>
    %123 = vector.multi_reduction <add>, %122, %cst_24 [1] : vector<16x16xf32> to vector<16xf32>
    %124 = vector.shape_cast %123 : vector<16xf32> to vector<16x1xf32>
    %125 = tpu.reciprocal %124 {approx = true} : vector<16x1xf32> -> vector<16x1xf32>
    %126 = vector.broadcast %125 : vector<16x1xf32> to vector<16x16xf32>
    %127 = arith.mulf %122, %126 : vector<16x16xf32>
    %128 = arith.truncf %127 : vector<16x16xf32> to vector<16x16xbf16>
    %129 = vector.extract_strided_slice %76 {offsets = [0, 8], sizes = [16, 4], strides = [1, 1]} : vector<16x32xbf16> to vector<16x4xbf16>
    %cst_25 = arith.constant dense<0.000000e+00> : vector<16x4xf32>
    %130 = tpu.matmul %128, %129, %cst_25 {dimension_numbers = #tpu.dot_dimension_numbers<[1], [0], [0], [1], [0, 0, 1, 1], [], []>} : vector<16x16xbf16>, vector<16x4xbf16>, vector<16x4xf32> -> vector<16x4xf32>
    %131 = vector.extract_strided_slice %74 {offsets = [0, 12], sizes = [16, 4], strides = [1, 1]} : vector<16x32xbf16> to vector<16x4xbf16>
    %132 = vector.extract_strided_slice %79 {offsets = [12, 0], sizes = [4, 16], strides = [1, 1]} : vector<32x16xbf16> to vector<4x16xbf16>
    %cst_26 = arith.constant dense<0.000000e+00> : vector<16x16xf32>
    %133 = tpu.matmul %131, %132, %cst_26 {dimension_numbers = #tpu.dot_dimension_numbers<[1], [0], [0], [1], [0, 0, 1, 1], [], []>} : vector<16x4xbf16>, vector<4x16xbf16>, vector<16x16xf32> -> vector<16x16xf32>
    %134 = arith.addf %133, %68 : vector<16x16xf32>
    %cst_27 = arith.constant dense<0xFF800000> : vector<16xf32>
    %135 = vector.multi_reduction <maximumf>, %134, %cst_27 [1] : vector<16x16xf32> to vector<16xf32>
    %136 = vector.shape_cast %135 : vector<16xf32> to vector<16x1xf32>
    %137 = vector.broadcast %136 : vector<16x1xf32> to vector<16x16xf32>
    %138 = arith.subf %134, %137 : vector<16x16xf32>
    %139 = math.exp %138 : vector<16x16xf32>
    %cst_28 = arith.constant dense<0.000000e+00> : vector<16xf32>
    %140 = vector.multi_reduction <add>, %139, %cst_28 [1] : vector<16x16xf32> to vector<16xf32>
    %141 = vector.shape_cast %140 : vector<16xf32> to vector<16x1xf32>
    %142 = tpu.reciprocal %141 {approx = true} : vector<16x1xf32> -> vector<16x1xf32>
    %143 = vector.broadcast %142 : vector<16x1xf32> to vector<16x16xf32>
    %144 = arith.mulf %139, %143 : vector<16x16xf32>
    %145 = arith.truncf %144 : vector<16x16xf32> to vector<16x16xbf16>
    %146 = vector.extract_strided_slice %76 {offsets = [0, 12], sizes = [16, 4], strides = [1, 1]} : vector<16x32xbf16> to vector<16x4xbf16>
    %cst_29 = arith.constant dense<0.000000e+00> : vector<16x4xf32>
    %147 = tpu.matmul %145, %146, %cst_29 {dimension_numbers = #tpu.dot_dimension_numbers<[1], [0], [0], [1], [0, 0, 1, 1], [], []>} : vector<16x16xbf16>, vector<16x4xbf16>, vector<16x4xf32> -> vector<16x4xf32>
    %148 = vector.extract_strided_slice %74 {offsets = [0, 16], sizes = [16, 4], strides = [1, 1]} : vector<16x32xbf16> to vector<16x4xbf16>
    %149 = vector.extract_strided_slice %79 {offsets = [16, 0], sizes = [4, 16], strides = [1, 1]} : vector<32x16xbf16> to vector<4x16xbf16>
    %cst_30 = arith.constant dense<0.000000e+00> : vector<16x16xf32>
    %150 = tpu.matmul %148, %149, %cst_30 {dimension_numbers = #tpu.dot_dimension_numbers<[1], [0], [0], [1], [0, 0, 1, 1], [], []>} : vector<16x4xbf16>, vector<4x16xbf16>, vector<16x16xf32> -> vector<16x16xf32>
    %151 = arith.addf %150, %68 : vector<16x16xf32>
    %cst_31 = arith.constant dense<0xFF800000> : vector<16xf32>
    %152 = vector.multi_reduction <maximumf>, %151, %cst_31 [1] : vector<16x16xf32> to vector<16xf32>
    %153 = vector.shape_cast %152 : vector<16xf32> to vector<16x1xf32>
    %154 = vector.broadcast %153 : vector<16x1xf32> to vector<16x16xf32>
    %155 = arith.subf %151, %154 : vector<16x16xf32>
    %156 = math.exp %155 : vector<16x16xf32>
    %cst_32 = arith.constant dense<0.000000e+00> : vector<16xf32>
    %157 = vector.multi_reduction <add>, %156, %cst_32 [1] : vector<16x16xf32> to vector<16xf32>
    %158 = vector.shape_cast %157 : vector<16xf32> to vector<16x1xf32>
    %159 = tpu.reciprocal %158 {approx = true} : vector<16x1xf32> -> vector<16x1xf32>
    %160 = vector.broadcast %159 : vector<16x1xf32> to vector<16x16xf32>
    %161 = arith.mulf %156, %160 : vector<16x16xf32>
    %162 = arith.truncf %161 : vector<16x16xf32> to vector<16x16xbf16>
    %163 = vector.extract_strided_slice %76 {offsets = [0, 16], sizes = [16, 4], strides = [1, 1]} : vector<16x32xbf16> to vector<16x4xbf16>
    %cst_33 = arith.constant dense<0.000000e+00> : vector<16x4xf32>
    %164 = tpu.matmul %162, %163, %cst_33 {dimension_numbers = #tpu.dot_dimension_numbers<[1], [0], [0], [1], [0, 0, 1, 1], [], []>} : vector<16x16xbf16>, vector<16x4xbf16>, vector<16x4xf32> -> vector<16x4xf32>
    %165 = vector.extract_strided_slice %74 {offsets = [0, 20], sizes = [16, 4], strides = [1, 1]} : vector<16x32xbf16> to vector<16x4xbf16>
    %166 = vector.extract_strided_slice %79 {offsets = [20, 0], sizes = [4, 16], strides = [1, 1]} : vector<32x16xbf16> to vector<4x16xbf16>
    %cst_34 = arith.constant dense<0.000000e+00> : vector<16x16xf32>
    %167 = tpu.matmul %165, %166, %cst_34 {dimension_numbers = #tpu.dot_dimension_numbers<[1], [0], [0], [1], [0, 0, 1, 1], [], []>} : vector<16x4xbf16>, vector<4x16xbf16>, vector<16x16xf32> -> vector<16x16xf32>
    %168 = arith.addf %167, %68 : vector<16x16xf32>
    %cst_35 = arith.constant dense<0xFF800000> : vector<16xf32>
    %169 = vector.multi_reduction <maximumf>, %168, %cst_35 [1] : vector<16x16xf32> to vector<16xf32>
    %170 = vector.shape_cast %169 : vector<16xf32> to vector<16x1xf32>
    %171 = vector.broadcast %170 : vector<16x1xf32> to vector<16x16xf32>
    %172 = arith.subf %168, %171 : vector<16x16xf32>
    %173 = math.exp %172 : vector<16x16xf32>
    %cst_36 = arith.constant dense<0.000000e+00> : vector<16xf32>
    %174 = vector.multi_reduction <add>, %173, %cst_36 [1] : vector<16x16xf32> to vector<16xf32>
    %175 = vector.shape_cast %174 : vector<16xf32> to vector<16x1xf32>
    %176 = tpu.reciprocal %175 {approx = true} : vector<16x1xf32> -> vector<16x1xf32>
    %177 = vector.broadcast %176 : vector<16x1xf32> to vector<16x16xf32>
    %178 = arith.mulf %173, %177 : vector<16x16xf32>
    %179 = arith.truncf %178 : vector<16x16xf32> to vector<16x16xbf16>
    %180 = vector.extract_strided_slice %76 {offsets = [0, 20], sizes = [16, 4], strides = [1, 1]} : vector<16x32xbf16> to vector<16x4xbf16>
    %cst_37 = arith.constant dense<0.000000e+00> : vector<16x4xf32>
    %181 = tpu.matmul %179, %180, %cst_37 {dimension_numbers = #tpu.dot_dimension_numbers<[1], [0], [0], [1], [0, 0, 1, 1], [], []>} : vector<16x16xbf16>, vector<16x4xbf16>, vector<16x4xf32> -> vector<16x4xf32>
    %182 = vector.extract_strided_slice %74 {offsets = [0, 24], sizes = [16, 4], strides = [1, 1]} : vector<16x32xbf16> to vector<16x4xbf16>
    %183 = vector.extract_strided_slice %79 {offsets = [24, 0], sizes = [4, 16], strides = [1, 1]} : vector<32x16xbf16> to vector<4x16xbf16>
    %cst_38 = arith.constant dense<0.000000e+00> : vector<16x16xf32>
    %184 = tpu.matmul %182, %183, %cst_38 {dimension_numbers = #tpu.dot_dimension_numbers<[1], [0], [0], [1], [0, 0, 1, 1], [], []>} : vector<16x4xbf16>, vector<4x16xbf16>, vector<16x16xf32> -> vector<16x16xf32>
    %185 = arith.addf %184, %68 : vector<16x16xf32>
    %cst_39 = arith.constant dense<0xFF800000> : vector<16xf32>
    %186 = vector.multi_reduction <maximumf>, %185, %cst_39 [1] : vector<16x16xf32> to vector<16xf32>
    %187 = vector.shape_cast %186 : vector<16xf32> to vector<16x1xf32>
    %188 = vector.broadcast %187 : vector<16x1xf32> to vector<16x16xf32>
    %189 = arith.subf %185, %188 : vector<16x16xf32>
    %190 = math.exp %189 : vector<16x16xf32>
    %cst_40 = arith.constant dense<0.000000e+00> : vector<16xf32>
    %191 = vector.multi_reduction <add>, %190, %cst_40 [1] : vector<16x16xf32> to vector<16xf32>
    %192 = vector.shape_cast %191 : vector<16xf32> to vector<16x1xf32>
    %193 = tpu.reciprocal %192 {approx = true} : vector<16x1xf32> -> vector<16x1xf32>
    %194 = vector.broadcast %193 : vector<16x1xf32> to vector<16x16xf32>
    %195 = arith.mulf %190, %194 : vector<16x16xf32>
    %196 = arith.truncf %195 : vector<16x16xf32> to vector<16x16xbf16>
    %197 = vector.extract_strided_slice %76 {offsets = [0, 24], sizes = [16, 4], strides = [1, 1]} : vector<16x32xbf16> to vector<16x4xbf16>
    %cst_41 = arith.constant dense<0.000000e+00> : vector<16x4xf32>
    %198 = tpu.matmul %196, %197, %cst_41 {dimension_numbers = #tpu.dot_dimension_numbers<[1], [0], [0], [1], [0, 0, 1, 1], [], []>} : vector<16x16xbf16>, vector<16x4xbf16>, vector<16x4xf32> -> vector<16x4xf32>
    %199 = vector.extract_strided_slice %74 {offsets = [0, 28], sizes = [16, 4], strides = [1, 1]} : vector<16x32xbf16> to vector<16x4xbf16>
    %200 = vector.extract_strided_slice %79 {offsets = [28, 0], sizes = [4, 16], strides = [1, 1]} : vector<32x16xbf16> to vector<4x16xbf16>
    %cst_42 = arith.constant dense<0.000000e+00> : vector<16x16xf32>
    %201 = tpu.matmul %199, %200, %cst_42 {dimension_numbers = #tpu.dot_dimension_numbers<[1], [0], [0], [1], [0, 0, 1, 1], [], []>} : vector<16x4xbf16>, vector<4x16xbf16>, vector<16x16xf32> -> vector<16x16xf32>
    %202 = arith.addf %201, %68 : vector<16x16xf32>
    %cst_43 = arith.constant dense<0xFF800000> : vector<16xf32>
    %203 = vector.multi_reduction <maximumf>, %202, %cst_43 [1] : vector<16x16xf32> to vector<16xf32>
    %204 = vector.shape_cast %203 : vector<16xf32> to vector<16x1xf32>
    %205 = vector.broadcast %204 : vector<16x1xf32> to vector<16x16xf32>
    %206 = arith.subf %202, %205 : vector<16x16xf32>
    %207 = math.exp %206 : vector<16x16xf32>
    %cst_44 = arith.constant dense<0.000000e+00> : vector<16xf32>
    %208 = vector.multi_reduction <add>, %207, %cst_44 [1] : vector<16x16xf32> to vector<16xf32>
    %209 = vector.shape_cast %208 : vector<16xf32> to vector<16x1xf32>
    %210 = tpu.reciprocal %209 {approx = true} : vector<16x1xf32> -> vector<16x1xf32>
    %211 = vector.broadcast %210 : vector<16x1xf32> to vector<16x16xf32>
    %212 = arith.mulf %207, %211 : vector<16x16xf32>
    %213 = arith.truncf %212 : vector<16x16xf32> to vector<16x16xbf16>
    %214 = vector.extract_strided_slice %76 {offsets = [0, 28], sizes = [16, 4], strides = [1, 1]} : vector<16x32xbf16> to vector<16x4xbf16>
    %cst_45 = arith.constant dense<0.000000e+00> : vector<16x4xf32>
    %215 = tpu.matmul %213, %214, %cst_45 {dimension_numbers = #tpu.dot_dimension_numbers<[1], [0], [0], [1], [0, 0, 1, 1], [], []>} : vector<16x16xbf16>, vector<16x4xbf16>, vector<16x4xf32> -> vector<16x4xf32>
    %216 = tpu.concatenate %96, %113, %130, %147, %164, %181, %198, %215 in 1 : vector<16x4xf32>, vector<16x4xf32>, vector<16x4xf32>, vector<16x4xf32>, vector<16x4xf32>, vector<16x4xf32>, vector<16x4xf32>, vector<16x4xf32> -> vector<16x32xf32>
    %217 = arith.truncf %216 : vector<16x32xf32> to vector<16x32xbf16>
    %cst_46 = arith.constant dense<0.000000e+00> : vector<16x32xf32>
    %218 = tpu.matmul %217, %8, %cst_46 {dimension_numbers = #tpu.dot_dimension_numbers<[1], [0], [0], [1], [0, 0, 1, 1], [], []>} : vector<16x32xbf16>, vector<32x32xbf16>, vector<16x32xf32> -> vector<16x32xf32>
    %219 = vector.broadcast %10 : vector<1x32xf32> to vector<16x32xf32>
    %220 = arith.addf %218, %219 : vector<16x32xf32>
    %221 = arith.addf %18, %220 : vector<16x32xf32>
    %cst_47 = arith.constant dense<0.000000e+00> : vector<16xf32>
    %222 = vector.multi_reduction <add>, %221, %cst_47 [1] : vector<16x32xf32> to vector<16xf32>
    %223 = vector.shape_cast %222 : vector<16xf32> to vector<16x1xf32>
    %cst_48 = arith.constant 3.200000e+01 : f32
    %224 = vector.broadcast %cst_48 : f32 to vector<16x1xf32>
    %225 = arith.divf %223, %224 : vector<16x1xf32>
    %226 = vector.broadcast %225 : vector<16x1xf32> to vector<16x32xf32>
    %227 = arith.subf %221, %226 : vector<16x32xf32>
    %228 = arith.mulf %227, %227 : vector<16x32xf32>
    %cst_49 = arith.constant dense<0.000000e+00> : vector<16xf32>
    %229 = vector.multi_reduction <add>, %228, %cst_49 [1] : vector<16x32xf32> to vector<16xf32>
    %230 = vector.shape_cast %229 : vector<16xf32> to vector<16x1xf32>
    %cst_50 = arith.constant 3.200000e+01 : f32
    %231 = vector.broadcast %cst_50 : f32 to vector<16x1xf32>
    %232 = arith.divf %230, %231 : vector<16x1xf32>
    %233 = vector.broadcast %225 : vector<16x1xf32> to vector<16x32xf32>
    %234 = arith.subf %221, %233 : vector<16x32xf32>
    %cst_51 = arith.constant 9.99999974E-6 : f32
    %235 = vector.broadcast %cst_51 : f32 to vector<16x1xf32>
    %236 = arith.addf %232, %235 : vector<16x1xf32>
    %237 = math.rsqrt %236 : vector<16x1xf32>
    %238 = vector.broadcast %237 : vector<16x1xf32> to vector<16x32xf32>
    %239 = arith.mulf %234, %238 : vector<16x32xf32>
    %240 = vector.broadcast %11 : vector<1x32xf32> to vector<16x32xf32>
    %241 = arith.mulf %239, %240 : vector<16x32xf32>
    %242 = vector.broadcast %12 : vector<1x32xf32> to vector<16x32xf32>
    %243 = arith.addf %241, %242 : vector<16x32xf32>
    %244 = arith.truncf %243 : vector<16x32xf32> to vector<16x32xbf16>
    %c0_52 = arith.constant 0 : index
    %c0_53 = arith.constant 0 : index
    %c0_54 = arith.constant 0 : index
    %245 = vector.load %arg8[%c0_52, %c0_53, %c0_54] : memref<1x32x2048xbf16, #tpu.memory_space<vmem>>, vector<1x32x2048xbf16>
    %246 = vector.shape_cast %245 : vector<1x32x2048xbf16> to vector<32x2048xbf16>
    %cst_55 = arith.constant dense<0.000000e+00> : vector<16x2048xf32>
    %247 = tpu.matmul %244, %246, %cst_55 {dimension_numbers = #tpu.dot_dimension_numbers<[1], [0], [0], [1], [0, 0, 1, 1], [], []>} : vector<16x32xbf16>, vector<32x2048xbf16>, vector<16x2048xf32> -> vector<16x2048xf32>
    %248 = vector.broadcast %17 : vector<1x2048xf32> to vector<16x2048xf32>
    %249 = arith.addf %247, %248 : vector<16x2048xf32>
    %cst_56 = arith.constant 0.000000e+00 : f32
    %250 = vector.broadcast %cst_56 : f32 to vector<16x2048xf32>
    %251 = arith.maximumf %249, %250 : vector<16x2048xf32>
    %252 = arith.truncf %251 : vector<16x2048xf32> to vector<16x2048xbf16>
    %c0_57 = arith.constant 0 : index
    %c0_58 = arith.constant 0 : index
    %c0_59 = arith.constant 0 : index
    %253 = vector.load %arg9[%c0_57, %c0_58, %c0_59] : memref<1x2048x32xbf16, #tpu.memory_space<vmem>>, vector<1x2048x32xbf16>
    %254 = vector.shape_cast %253 : vector<1x2048x32xbf16> to vector<2048x32xbf16>
    %cst_60 = arith.constant dense<0.000000e+00> : vector<16x32xf32>
    %255 = tpu.matmul %252, %254, %cst_60 {dimension_numbers = #tpu.dot_dimension_numbers<[1], [0], [0], [1], [0, 0, 1, 1], [], []>} : vector<16x2048xbf16>, vector<2048x32xbf16>, vector<16x32xf32> -> vector<16x32xf32>
    %256 = vector.broadcast %15 : vector<1x32xf32> to vector<16x32xf32>
    %257 = arith.addf %255, %256 : vector<16x32xf32>
    %258 = arith.addf %243, %257 : vector<16x32xf32>
    %cst_61 = arith.constant dense<0.000000e+00> : vector<16xf32>
    %259 = vector.multi_reduction <add>, %258, %cst_61 [1] : vector<16x32xf32> to vector<16xf32>
    %260 = vector.shape_cast %259 : vector<16xf32> to vector<16x1xf32>
    %cst_62 = arith.constant 3.200000e+01 : f32
    %261 = vector.broadcast %cst_62 : f32 to vector<16x1xf32>
    %262 = arith.divf %260, %261 : vector<16x1xf32>
    %263 = vector.broadcast %262 : vector<16x1xf32> to vector<16x32xf32>
    %264 = arith.subf %258, %263 : vector<16x32xf32>
    %265 = arith.mulf %264, %264 : vector<16x32xf32>
    %cst_63 = arith.constant dense<0.000000e+00> : vector<16xf32>
    %266 = vector.multi_reduction <add>, %265, %cst_63 [1] : vector<16x32xf32> to vector<16xf32>
    %267 = vector.shape_cast %266 : vector<16xf32> to vector<16x1xf32>
    %cst_64 = arith.constant 3.200000e+01 : f32
    %268 = vector.broadcast %cst_64 : f32 to vector<16x1xf32>
    %269 = arith.divf %267, %268 : vector<16x1xf32>
    %270 = vector.broadcast %262 : vector<16x1xf32> to vector<16x32xf32>
    %271 = arith.subf %258, %270 : vector<16x32xf32>
    %cst_65 = arith.constant 9.99999974E-6 : f32
    %272 = vector.broadcast %cst_65 : f32 to vector<16x1xf32>
    %273 = arith.addf %269, %272 : vector<16x1xf32>
    %274 = math.rsqrt %273 : vector<16x1xf32>
    %275 = vector.broadcast %274 : vector<16x1xf32> to vector<16x32xf32>
    %276 = arith.mulf %271, %275 : vector<16x32xf32>
    %277 = vector.broadcast %13 : vector<1x32xf32> to vector<16x32xf32>
    %278 = arith.mulf %276, %277 : vector<16x32xf32>
    %279 = vector.broadcast %14 : vector<1x32xf32> to vector<16x32xf32>
    %280 = arith.addf %278, %279 : vector<16x32xf32>
    %c0_66 = arith.constant 0 : index
    %c0_67 = arith.constant 0 : index
    %281 = vector.load %arg11[%c0_66, %c0_67] : memref<16x32xf32, #tpu.memory_space<vmem>>, vector<16x32xf32>
    tpu.vector_store %arg11[%c0_66, %c0_67], %280 {strides = array<i32>} : memref<16x32xf32, #tpu.memory_space<vmem>>, vector<16x32xf32>,
    %c3_i32 = arith.constant 3 : i32
    %282 = arith.cmpi eq, %arg0, %c3_i32 : i32
    %283 = arith.extui %282 : i1 to i32
    %c0_i32_68 = arith.constant 0 : i32
    %284 = arith.cmpi ne, %283, %c0_i32_68 : i32
    scf.if %284 {
      %285 = arith.truncf %280 : vector<16x32xf32> to vector<16x32xbf16>
      %c16 = arith.constant 16 : index
      %c0_69 = arith.constant 0 : index
      %286 = vector.load %arg3[%c16, %c0_69] : memref<256x48xbf16, #tpu.memory_space<vmem>>, vector<32x48xbf16>
      %c144 = arith.constant 144 : index
      %c0_70 = arith.constant 0 : index
      %287 = vector.load %arg3[%c144, %c0_70] : memref<256x48xbf16, #tpu.memory_space<vmem>>, vector<16x48xbf16>
      %c0_71 = arith.constant 0 : index
      %c0_72 = arith.constant 0 : index
      %288 = vector.load %arg4[%c0_71, %c0_72] : memref<16x48xf32, #tpu.memory_space<vmem>>, vector<1x48xf32>
      %c1 = arith.constant 1 : index
      %c0_73 = arith.constant 0 : index
      %289 = vector.load %arg4[%c1, %c0_73] : memref<16x48xf32, #tpu.memory_space<vmem>>, vector<1x48xf32>
      %cst_74 = arith.constant dense<0.000000e+00> : vector<16x48xf32>
      %290 = tpu.matmul %285, %286, %cst_74 {dimension_numbers = #tpu.dot_dimension_numbers<[1], [0], [0], [1], [0, 0, 1, 1], [], []>} : vector<16x32xbf16>, vector<32x48xbf16>, vector<16x48xf32> -> vector<16x48xf32>
      %291 = vector.broadcast %288 : vector<1x48xf32> to vector<16x48xf32>
      %292 = arith.addf %290, %291 : vector<16x48xf32>
      %cst_75 = arith.constant 0.000000e+00 : f32
      %293 = vector.broadcast %cst_75 : f32 to vector<2x16xf32>
      %294 = arith.truncf %293 : vector<2x16xf32> to vector<2x16xbf16>
      %cst_76 = arith.constant dense<0.000000e+00> : vector<2x48xf32>
      %295 = tpu.matmul %294, %287, %cst_76 {dimension_numbers = #tpu.dot_dimension_numbers<[1], [0], [0], [1], [0, 0, 1, 1], [], []>} : vector<2x16xbf16>, vector<16x48xbf16>, vector<2x48xf32> -> vector<2x48xf32>
      %296 = vector.broadcast %289 : vector<1x48xf32> to vector<2x48xf32>
      %297 = arith.addf %295, %296 : vector<2x48xf32>
      %298 = vector.extract_strided_slice %292 {offsets = [0, 0], sizes = [2, 48], strides = [1, 1]} : vector<16x48xf32> to vector<2x48xf32>
      %299 = vector.extract_strided_slice %298 {offsets = [0, 0], sizes = [2, 32], strides = [1, 1]} : vector<2x48xf32> to vector<2x32xf32>
      %300 = vector.extract_strided_slice %297 {offsets = [0, 0], sizes = [2, 32], strides = [1, 1]} : vector<2x48xf32> to vector<2x32xf32>
      %301 = arith.addf %299, %300 : vector<2x32xf32>
      %302 = arith.negf %301 : vector<2x32xf32>
      %303 = math.exp %302 : vector<2x32xf32>
      %cst_77 = arith.constant 1.000000e+00 : f32
      %304 = vector.broadcast %cst_77 : f32 to vector<2x32xf32>
      %305 = arith.addf %304, %303 : vector<2x32xf32>
      %306 = arith.divf %304, %305 : vector<2x32xf32>
      %307 = vector.extract_strided_slice %306 {offsets = [0, 0], sizes = [2, 16], strides = [1, 1]} : vector<2x32xf32> to vector<2x16xf32>
      %308 = vector.extract_strided_slice %306 {offsets = [0, 16], sizes = [2, 16], strides = [1, 1]} : vector<2x32xf32> to vector<2x16xf32>
      %309 = vector.extract_strided_slice %298 {offsets = [0, 32], sizes = [2, 16], strides = [1, 1]} : vector<2x48xf32> to vector<2x16xf32>
      %310 = vector.extract_strided_slice %297 {offsets = [0, 32], sizes = [2, 16], strides = [1, 1]} : vector<2x48xf32> to vector<2x16xf32>
      %311 = arith.mulf %307, %310 : vector<2x16xf32>
      %312 = arith.addf %309, %311 : vector<2x16xf32>
      %313 = math.tanh %312 : vector<2x16xf32>
      %cst_78 = arith.constant 1.000000e+00 : f32
      %314 = vector.broadcast %cst_78 : f32 to vector<2x16xf32>
      %315 = arith.subf %314, %308 : vector<2x16xf32>
      %316 = arith.mulf %315, %313 : vector<2x16xf32>
      %317 = arith.mulf %308, %293 : vector<2x16xf32>
      %318 = arith.addf %316, %317 : vector<2x16xf32>
      %319 = arith.truncf %318 : vector<2x16xf32> to vector<2x16xbf16>
      %cst_79 = arith.constant dense<0.000000e+00> : vector<2x48xf32>
      %320 = tpu.matmul %319, %287, %cst_79 {dimension_numbers = #tpu.dot_dimension_numbers<[1], [0], [0], [1], [0, 0, 1, 1], [], []>} : vector<2x16xbf16>, vector<16x48xbf16>, vector<2x48xf32> -> vector<2x48xf32>
      %321 = vector.broadcast %289 : vector<1x48xf32> to vector<2x48xf32>
      %322 = arith.addf %320, %321 : vector<2x48xf32>
      %323 = vector.extract_strided_slice %292 {offsets = [2, 0], sizes = [2, 48], strides = [1, 1]} : vector<16x48xf32> to vector<2x48xf32>
      %324 = vector.extract_strided_slice %323 {offsets = [0, 0], sizes = [2, 32], strides = [1, 1]} : vector<2x48xf32> to vector<2x32xf32>
      %325 = vector.extract_strided_slice %322 {offsets = [0, 0], sizes = [2, 32], strides = [1, 1]} : vector<2x48xf32> to vector<2x32xf32>
      %326 = arith.addf %324, %325 : vector<2x32xf32>
      %327 = arith.negf %326 : vector<2x32xf32>
      %328 = math.exp %327 : vector<2x32xf32>
      %cst_80 = arith.constant 1.000000e+00 : f32
      %329 = vector.broadcast %cst_80 : f32 to vector<2x32xf32>
      %330 = arith.addf %329, %328 : vector<2x32xf32>
      %331 = arith.divf %329, %330 : vector<2x32xf32>
      %332 = vector.extract_strided_slice %331 {offsets = [0, 0], sizes = [2, 16], strides = [1, 1]} : vector<2x32xf32> to vector<2x16xf32>
      %333 = vector.extract_strided_slice %331 {offsets = [0, 16], sizes = [2, 16], strides = [1, 1]} : vector<2x32xf32> to vector<2x16xf32>
      %334 = vector.extract_strided_slice %323 {offsets = [0, 32], sizes = [2, 16], strides = [1, 1]} : vector<2x48xf32> to vector<2x16xf32>
      %335 = vector.extract_strided_slice %322 {offsets = [0, 32], sizes = [2, 16], strides = [1, 1]} : vector<2x48xf32> to vector<2x16xf32>
      %336 = arith.mulf %332, %335 : vector<2x16xf32>
      %337 = arith.addf %334, %336 : vector<2x16xf32>
      %338 = math.tanh %337 : vector<2x16xf32>
      %cst_81 = arith.constant 1.000000e+00 : f32
      %339 = vector.broadcast %cst_81 : f32 to vector<2x16xf32>
      %340 = arith.subf %339, %333 : vector<2x16xf32>
      %341 = arith.mulf %340, %338 : vector<2x16xf32>
      %342 = arith.mulf %333, %318 : vector<2x16xf32>
      %343 = arith.addf %341, %342 : vector<2x16xf32>
      %344 = arith.truncf %343 : vector<2x16xf32> to vector<2x16xbf16>
      %cst_82 = arith.constant dense<0.000000e+00> : vector<2x48xf32>
      %345 = tpu.matmul %344, %287, %cst_82 {dimension_numbers = #tpu.dot_dimension_numbers<[1], [0], [0], [1], [0, 0, 1, 1], [], []>} : vector<2x16xbf16>, vector<16x48xbf16>, vector<2x48xf32> -> vector<2x48xf32>
      %346 = vector.broadcast %289 : vector<1x48xf32> to vector<2x48xf32>
      %347 = arith.addf %345, %346 : vector<2x48xf32>
      %348 = vector.extract_strided_slice %292 {offsets = [4, 0], sizes = [2, 48], strides = [1, 1]} : vector<16x48xf32> to vector<2x48xf32>
      %349 = vector.extract_strided_slice %348 {offsets = [0, 0], sizes = [2, 32], strides = [1, 1]} : vector<2x48xf32> to vector<2x32xf32>
      %350 = vector.extract_strided_slice %347 {offsets = [0, 0], sizes = [2, 32], strides = [1, 1]} : vector<2x48xf32> to vector<2x32xf32>
      %351 = arith.addf %349, %350 : vector<2x32xf32>
      %352 = arith.negf %351 : vector<2x32xf32>
      %353 = math.exp %352 : vector<2x32xf32>
      %cst_83 = arith.constant 1.000000e+00 : f32
      %354 = vector.broadcast %cst_83 : f32 to vector<2x32xf32>
      %355 = arith.addf %354, %353 : vector<2x32xf32>
      %356 = arith.divf %354, %355 : vector<2x32xf32>
      %357 = vector.extract_strided_slice %356 {offsets = [0, 0], sizes = [2, 16], strides = [1, 1]} : vector<2x32xf32> to vector<2x16xf32>
      %358 = vector.extract_strided_slice %356 {offsets = [0, 16], sizes = [2, 16], strides = [1, 1]} : vector<2x32xf32> to vector<2x16xf32>
      %359 = vector.extract_strided_slice %348 {offsets = [0, 32], sizes = [2, 16], strides = [1, 1]} : vector<2x48xf32> to vector<2x16xf32>
      %360 = vector.extract_strided_slice %347 {offsets = [0, 32], sizes = [2, 16], strides = [1, 1]} : vector<2x48xf32> to vector<2x16xf32>
      %361 = arith.mulf %357, %360 : vector<2x16xf32>
      %362 = arith.addf %359, %361 : vector<2x16xf32>
      %363 = math.tanh %362 : vector<2x16xf32>
      %cst_84 = arith.constant 1.000000e+00 : f32
      %364 = vector.broadcast %cst_84 : f32 to vector<2x16xf32>
      %365 = arith.subf %364, %358 : vector<2x16xf32>
      %366 = arith.mulf %365, %363 : vector<2x16xf32>
      %367 = arith.mulf %358, %343 : vector<2x16xf32>
      %368 = arith.addf %366, %367 : vector<2x16xf32>
      %369 = arith.truncf %368 : vector<2x16xf32> to vector<2x16xbf16>
      %cst_85 = arith.constant dense<0.000000e+00> : vector<2x48xf32>
      %370 = tpu.matmul %369, %287, %cst_85 {dimension_numbers = #tpu.dot_dimension_numbers<[1], [0], [0], [1], [0, 0, 1, 1], [], []>} : vector<2x16xbf16>, vector<16x48xbf16>, vector<2x48xf32> -> vector<2x48xf32>
      %371 = vector.broadcast %289 : vector<1x48xf32> to vector<2x48xf32>
      %372 = arith.addf %370, %371 : vector<2x48xf32>
      %373 = vector.extract_strided_slice %292 {offsets = [6, 0], sizes = [2, 48], strides = [1, 1]} : vector<16x48xf32> to vector<2x48xf32>
      %374 = vector.extract_strided_slice %373 {offsets = [0, 0], sizes = [2, 32], strides = [1, 1]} : vector<2x48xf32> to vector<2x32xf32>
      %375 = vector.extract_strided_slice %372 {offsets = [0, 0], sizes = [2, 32], strides = [1, 1]} : vector<2x48xf32> to vector<2x32xf32>
      %376 = arith.addf %374, %375 : vector<2x32xf32>
      %377 = arith.negf %376 : vector<2x32xf32>
      %378 = math.exp %377 : vector<2x32xf32>
      %cst_86 = arith.constant 1.000000e+00 : f32
      %379 = vector.broadcast %cst_86 : f32 to vector<2x32xf32>
      %380 = arith.addf %379, %378 : vector<2x32xf32>
      %381 = arith.divf %379, %380 : vector<2x32xf32>
      %382 = vector.extract_strided_slice %381 {offsets = [0, 0], sizes = [2, 16], strides = [1, 1]} : vector<2x32xf32> to vector<2x16xf32>
      %383 = vector.extract_strided_slice %381 {offsets = [0, 16], sizes = [2, 16], strides = [1, 1]} : vector<2x32xf32> to vector<2x16xf32>
      %384 = vector.extract_strided_slice %373 {offsets = [0, 32], sizes = [2, 16], strides = [1, 1]} : vector<2x48xf32> to vector<2x16xf32>
      %385 = vector.extract_strided_slice %372 {offsets = [0, 32], sizes = [2, 16], strides = [1, 1]} : vector<2x48xf32> to vector<2x16xf32>
      %386 = arith.mulf %382, %385 : vector<2x16xf32>
      %387 = arith.addf %384, %386 : vector<2x16xf32>
      %388 = math.tanh %387 : vector<2x16xf32>
      %cst_87 = arith.constant 1.000000e+00 : f32
      %389 = vector.broadcast %cst_87 : f32 to vector<2x16xf32>
      %390 = arith.subf %389, %383 : vector<2x16xf32>
      %391 = arith.mulf %390, %388 : vector<2x16xf32>
      %392 = arith.mulf %383, %368 : vector<2x16xf32>
      %393 = arith.addf %391, %392 : vector<2x16xf32>
      %394 = arith.truncf %393 : vector<2x16xf32> to vector<2x16xbf16>
      %cst_88 = arith.constant dense<0.000000e+00> : vector<2x48xf32>
      %395 = tpu.matmul %394, %287, %cst_88 {dimension_numbers = #tpu.dot_dimension_numbers<[1], [0], [0], [1], [0, 0, 1, 1], [], []>} : vector<2x16xbf16>, vector<16x48xbf16>, vector<2x48xf32> -> vector<2x48xf32>
      %396 = vector.broadcast %289 : vector<1x48xf32> to vector<2x48xf32>
      %397 = arith.addf %395, %396 : vector<2x48xf32>
      %398 = vector.extract_strided_slice %292 {offsets = [8, 0], sizes = [2, 48], strides = [1, 1]} : vector<16x48xf32> to vector<2x48xf32>
      %399 = vector.extract_strided_slice %398 {offsets = [0, 0], sizes = [2, 32], strides = [1, 1]} : vector<2x48xf32> to vector<2x32xf32>
      %400 = vector.extract_strided_slice %397 {offsets = [0, 0], sizes = [2, 32], strides = [1, 1]} : vector<2x48xf32> to vector<2x32xf32>
      %401 = arith.addf %399, %400 : vector<2x32xf32>
      %402 = arith.negf %401 : vector<2x32xf32>
      %403 = math.exp %402 : vector<2x32xf32>
      %cst_89 = arith.constant 1.000000e+00 : f32
      %404 = vector.broadcast %cst_89 : f32 to vector<2x32xf32>
      %405 = arith.addf %404, %403 : vector<2x32xf32>
      %406 = arith.divf %404, %405 : vector<2x32xf32>
      %407 = vector.extract_strided_slice %406 {offsets = [0, 0], sizes = [2, 16], strides = [1, 1]} : vector<2x32xf32> to vector<2x16xf32>
      %408 = vector.extract_strided_slice %406 {offsets = [0, 16], sizes = [2, 16], strides = [1, 1]} : vector<2x32xf32> to vector<2x16xf32>
      %409 = vector.extract_strided_slice %398 {offsets = [0, 32], sizes = [2, 16], strides = [1, 1]} : vector<2x48xf32> to vector<2x16xf32>
      %410 = vector.extract_strided_slice %397 {offsets = [0, 32], sizes = [2, 16], strides = [1, 1]} : vector<2x48xf32> to vector<2x16xf32>
      %411 = arith.mulf %407, %410 : vector<2x16xf32>
      %412 = arith.addf %409, %411 : vector<2x16xf32>
      %413 = math.tanh %412 : vector<2x16xf32>
      %cst_90 = arith.constant 1.000000e+00 : f32
      %414 = vector.broadcast %cst_90 : f32 to vector<2x16xf32>
      %415 = arith.subf %414, %408 : vector<2x16xf32>
      %416 = arith.mulf %415, %413 : vector<2x16xf32>
      %417 = arith.mulf %408, %393 : vector<2x16xf32>
      %418 = arith.addf %416, %417 : vector<2x16xf32>
      %419 = arith.truncf %418 : vector<2x16xf32> to vector<2x16xbf16>
      %cst_91 = arith.constant dense<0.000000e+00> : vector<2x48xf32>
      %420 = tpu.matmul %419, %287, %cst_91 {dimension_numbers = #tpu.dot_dimension_numbers<[1], [0], [0], [1], [0, 0, 1, 1], [], []>} : vector<2x16xbf16>, vector<16x48xbf16>, vector<2x48xf32> -> vector<2x48xf32>
      %421 = vector.broadcast %289 : vector<1x48xf32> to vector<2x48xf32>
      %422 = arith.addf %420, %421 : vector<2x48xf32>
      %423 = vector.extract_strided_slice %292 {offsets = [10, 0], sizes = [2, 48], strides = [1, 1]} : vector<16x48xf32> to vector<2x48xf32>
      %424 = vector.extract_strided_slice %423 {offsets = [0, 0], sizes = [2, 32], strides = [1, 1]} : vector<2x48xf32> to vector<2x32xf32>
      %425 = vector.extract_strided_slice %422 {offsets = [0, 0], sizes = [2, 32], strides = [1, 1]} : vector<2x48xf32> to vector<2x32xf32>
      %426 = arith.addf %424, %425 : vector<2x32xf32>
      %427 = arith.negf %426 : vector<2x32xf32>
      %428 = math.exp %427 : vector<2x32xf32>
      %cst_92 = arith.constant 1.000000e+00 : f32
      %429 = vector.broadcast %cst_92 : f32 to vector<2x32xf32>
      %430 = arith.addf %429, %428 : vector<2x32xf32>
      %431 = arith.divf %429, %430 : vector<2x32xf32>
      %432 = vector.extract_strided_slice %431 {offsets = [0, 0], sizes = [2, 16], strides = [1, 1]} : vector<2x32xf32> to vector<2x16xf32>
      %433 = vector.extract_strided_slice %431 {offsets = [0, 16], sizes = [2, 16], strides = [1, 1]} : vector<2x32xf32> to vector<2x16xf32>
      %434 = vector.extract_strided_slice %423 {offsets = [0, 32], sizes = [2, 16], strides = [1, 1]} : vector<2x48xf32> to vector<2x16xf32>
      %435 = vector.extract_strided_slice %422 {offsets = [0, 32], sizes = [2, 16], strides = [1, 1]} : vector<2x48xf32> to vector<2x16xf32>
      %436 = arith.mulf %432, %435 : vector<2x16xf32>
      %437 = arith.addf %434, %436 : vector<2x16xf32>
      %438 = math.tanh %437 : vector<2x16xf32>
      %cst_93 = arith.constant 1.000000e+00 : f32
      %439 = vector.broadcast %cst_93 : f32 to vector<2x16xf32>
      %440 = arith.subf %439, %433 : vector<2x16xf32>
      %441 = arith.mulf %440, %438 : vector<2x16xf32>
      %442 = arith.mulf %433, %418 : vector<2x16xf32>
      %443 = arith.addf %441, %442 : vector<2x16xf32>
      %444 = arith.truncf %443 : vector<2x16xf32> to vector<2x16xbf16>
      %cst_94 = arith.constant dense<0.000000e+00> : vector<2x48xf32>
      %445 = tpu.matmul %444, %287, %cst_94 {dimension_numbers = #tpu.dot_dimension_numbers<[1], [0], [0], [1], [0, 0, 1, 1], [], []>} : vector<2x16xbf16>, vector<16x48xbf16>, vector<2x48xf32> -> vector<2x48xf32>
      %446 = vector.broadcast %289 : vector<1x48xf32> to vector<2x48xf32>
      %447 = arith.addf %445, %446 : vector<2x48xf32>
      %448 = vector.extract_strided_slice %292 {offsets = [12, 0], sizes = [2, 48], strides = [1, 1]} : vector<16x48xf32> to vector<2x48xf32>
      %449 = vector.extract_strided_slice %448 {offsets = [0, 0], sizes = [2, 32], strides = [1, 1]} : vector<2x48xf32> to vector<2x32xf32>
      %450 = vector.extract_strided_slice %447 {offsets = [0, 0], sizes = [2, 32], strides = [1, 1]} : vector<2x48xf32> to vector<2x32xf32>
      %451 = arith.addf %449, %450 : vector<2x32xf32>
      %452 = arith.negf %451 : vector<2x32xf32>
      %453 = math.exp %452 : vector<2x32xf32>
      %cst_95 = arith.constant 1.000000e+00 : f32
      %454 = vector.broadcast %cst_95 : f32 to vector<2x32xf32>
      %455 = arith.addf %454, %453 : vector<2x32xf32>
      %456 = arith.divf %454, %455 : vector<2x32xf32>
      %457 = vector.extract_strided_slice %456 {offsets = [0, 0], sizes = [2, 16], strides = [1, 1]} : vector<2x32xf32> to vector<2x16xf32>
      %458 = vector.extract_strided_slice %456 {offsets = [0, 16], sizes = [2, 16], strides = [1, 1]} : vector<2x32xf32> to vector<2x16xf32>
      %459 = vector.extract_strided_slice %448 {offsets = [0, 32], sizes = [2, 16], strides = [1, 1]} : vector<2x48xf32> to vector<2x16xf32>
      %460 = vector.extract_strided_slice %447 {offsets = [0, 32], sizes = [2, 16], strides = [1, 1]} : vector<2x48xf32> to vector<2x16xf32>
      %461 = arith.mulf %457, %460 : vector<2x16xf32>
      %462 = arith.addf %459, %461 : vector<2x16xf32>
      %463 = math.tanh %462 : vector<2x16xf32>
      %cst_96 = arith.constant 1.000000e+00 : f32
      %464 = vector.broadcast %cst_96 : f32 to vector<2x16xf32>
      %465 = arith.subf %464, %458 : vector<2x16xf32>
      %466 = arith.mulf %465, %463 : vector<2x16xf32>
      %467 = arith.mulf %458, %443 : vector<2x16xf32>
      %468 = arith.addf %466, %467 : vector<2x16xf32>
      %469 = arith.truncf %468 : vector<2x16xf32> to vector<2x16xbf16>
      %cst_97 = arith.constant dense<0.000000e+00> : vector<2x48xf32>
      %470 = tpu.matmul %469, %287, %cst_97 {dimension_numbers = #tpu.dot_dimension_numbers<[1], [0], [0], [1], [0, 0, 1, 1], [], []>} : vector<2x16xbf16>, vector<16x48xbf16>, vector<2x48xf32> -> vector<2x48xf32>
      %471 = vector.broadcast %289 : vector<1x48xf32> to vector<2x48xf32>
      %472 = arith.addf %470, %471 : vector<2x48xf32>
      %473 = vector.extract_strided_slice %292 {offsets = [14, 0], sizes = [2, 48], strides = [1, 1]} : vector<16x48xf32> to vector<2x48xf32>
      %474 = vector.extract_strided_slice %473 {offsets = [0, 0], sizes = [2, 32], strides = [1, 1]} : vector<2x48xf32> to vector<2x32xf32>
      %475 = vector.extract_strided_slice %472 {offsets = [0, 0], sizes = [2, 32], strides = [1, 1]} : vector<2x48xf32> to vector<2x32xf32>
      %476 = arith.addf %474, %475 : vector<2x32xf32>
      %477 = arith.negf %476 : vector<2x32xf32>
      %478 = math.exp %477 : vector<2x32xf32>
      %cst_98 = arith.constant 1.000000e+00 : f32
      %479 = vector.broadcast %cst_98 : f32 to vector<2x32xf32>
      %480 = arith.addf %479, %478 : vector<2x32xf32>
      %481 = arith.divf %479, %480 : vector<2x32xf32>
      %482 = vector.extract_strided_slice %481 {offsets = [0, 0], sizes = [2, 16], strides = [1, 1]} : vector<2x32xf32> to vector<2x16xf32>
      %483 = vector.extract_strided_slice %481 {offsets = [0, 16], sizes = [2, 16], strides = [1, 1]} : vector<2x32xf32> to vector<2x16xf32>
      %484 = vector.extract_strided_slice %473 {offsets = [0, 32], sizes = [2, 16], strides = [1, 1]} : vector<2x48xf32> to vector<2x16xf32>
      %485 = vector.extract_strided_slice %472 {offsets = [0, 32], sizes = [2, 16], strides = [1, 1]} : vector<2x48xf32> to vector<2x16xf32>
      %486 = arith.mulf %482, %485 : vector<2x16xf32>
      %487 = arith.addf %484, %486 : vector<2x16xf32>
      %488 = math.tanh %487 : vector<2x16xf32>
      %cst_99 = arith.constant 1.000000e+00 : f32
      %489 = vector.broadcast %cst_99 : f32 to vector<2x16xf32>
      %490 = arith.subf %489, %483 : vector<2x16xf32>
      %491 = arith.mulf %490, %488 : vector<2x16xf32>
      %492 = arith.mulf %483, %468 : vector<2x16xf32>
      %493 = arith.addf %491, %492 : vector<2x16xf32>
      %494 = tpu.concatenate %318, %343, %368, %393, %418, %443, %468, %493 in 0 : vector<2x16xf32>, vector<2x16xf32>, vector<2x16xf32>, vector<2x16xf32>, vector<2x16xf32>, vector<2x16xf32>, vector<2x16xf32>, vector<2x16xf32> -> vector<16x16xf32>
      %c48 = arith.constant 48 : index
      %c0_100 = arith.constant 0 : index
      %495 = vector.load %arg3[%c48, %c0_100] : memref<256x48xbf16, #tpu.memory_space<vmem>>, vector<32x48xbf16>
      %c160 = arith.constant 160 : index
      %c0_101 = arith.constant 0 : index
      %496 = vector.load %arg3[%c160, %c0_101] : memref<256x48xbf16, #tpu.memory_space<vmem>>, vector<16x48xbf16>
      %c2 = arith.constant 2 : index
      %c0_102 = arith.constant 0 : index
      %497 = vector.load %arg4[%c2, %c0_102] : memref<16x48xf32, #tpu.memory_space<vmem>>, vector<1x48xf32>
      %c3 = arith.constant 3 : index
      %c0_103 = arith.constant 0 : index
      %498 = vector.load %arg4[%c3, %c0_103] : memref<16x48xf32, #tpu.memory_space<vmem>>, vector<1x48xf32>
      %cst_104 = arith.constant dense<0.000000e+00> : vector<16x48xf32>
      %499 = tpu.matmul %285, %495, %cst_104 {dimension_numbers = #tpu.dot_dimension_numbers<[1], [0], [0], [1], [0, 0, 1, 1], [], []>} : vector<16x32xbf16>, vector<32x48xbf16>, vector<16x48xf32> -> vector<16x48xf32>
      %500 = vector.broadcast %497 : vector<1x48xf32> to vector<16x48xf32>
      %501 = arith.addf %499, %500 : vector<16x48xf32>
      %cst_105 = arith.constant 0.000000e+00 : f32
      %502 = vector.broadcast %cst_105 : f32 to vector<2x16xf32>
      %503 = arith.truncf %502 : vector<2x16xf32> to vector<2x16xbf16>
      %cst_106 = arith.constant dense<0.000000e+00> : vector<2x48xf32>
      %504 = tpu.matmul %503, %496, %cst_106 {dimension_numbers = #tpu.dot_dimension_numbers<[1], [0], [0], [1], [0, 0, 1, 1], [], []>} : vector<2x16xbf16>, vector<16x48xbf16>, vector<2x48xf32> -> vector<2x48xf32>
      %505 = vector.broadcast %498 : vector<1x48xf32> to vector<2x48xf32>
      %506 = arith.addf %504, %505 : vector<2x48xf32>
      %507 = vector.extract_strided_slice %501 {offsets = [14, 0], sizes = [2, 48], strides = [1, 1]} : vector<16x48xf32> to vector<2x48xf32>
      %508 = vector.extract_strided_slice %507 {offsets = [0, 0], sizes = [2, 32], strides = [1, 1]} : vector<2x48xf32> to vector<2x32xf32>
      %509 = vector.extract_strided_slice %506 {offsets = [0, 0], sizes = [2, 32], strides = [1, 1]} : vector<2x48xf32> to vector<2x32xf32>
      %510 = arith.addf %508, %509 : vector<2x32xf32>
      %511 = arith.negf %510 : vector<2x32xf32>
      %512 = math.exp %511 : vector<2x32xf32>
      %cst_107 = arith.constant 1.000000e+00 : f32
      %513 = vector.broadcast %cst_107 : f32 to vector<2x32xf32>
      %514 = arith.addf %513, %512 : vector<2x32xf32>
      %515 = arith.divf %513, %514 : vector<2x32xf32>
      %516 = vector.extract_strided_slice %515 {offsets = [0, 0], sizes = [2, 16], strides = [1, 1]} : vector<2x32xf32> to vector<2x16xf32>
      %517 = vector.extract_strided_slice %515 {offsets = [0, 16], sizes = [2, 16], strides = [1, 1]} : vector<2x32xf32> to vector<2x16xf32>
      %518 = vector.extract_strided_slice %507 {offsets = [0, 32], sizes = [2, 16], strides = [1, 1]} : vector<2x48xf32> to vector<2x16xf32>
      %519 = vector.extract_strided_slice %506 {offsets = [0, 32], sizes = [2, 16], strides = [1, 1]} : vector<2x48xf32> to vector<2x16xf32>
      %520 = arith.mulf %516, %519 : vector<2x16xf32>
      %521 = arith.addf %518, %520 : vector<2x16xf32>
      %522 = math.tanh %521 : vector<2x16xf32>
      %cst_108 = arith.constant 1.000000e+00 : f32
      %523 = vector.broadcast %cst_108 : f32 to vector<2x16xf32>
      %524 = arith.subf %523, %517 : vector<2x16xf32>
      %525 = arith.mulf %524, %522 : vector<2x16xf32>
      %526 = arith.mulf %517, %502 : vector<2x16xf32>
      %527 = arith.addf %525, %526 : vector<2x16xf32>
      %528 = arith.truncf %527 : vector<2x16xf32> to vector<2x16xbf16>
      %cst_109 = arith.constant dense<0.000000e+00> : vector<2x48xf32>
      %529 = tpu.matmul %528, %496, %cst_109 {dimension_numbers = #tpu.dot_dimension_numbers<[1], [0], [0], [1], [0, 0, 1, 1], [], []>} : vector<2x16xbf16>, vector<16x48xbf16>, vector<2x48xf32> -> vector<2x48xf32>
      %530 = vector.broadcast %498 : vector<1x48xf32> to vector<2x48xf32>
      %531 = arith.addf %529, %530 : vector<2x48xf32>
      %532 = vector.extract_strided_slice %501 {offsets = [12, 0], sizes = [2, 48], strides = [1, 1]} : vector<16x48xf32> to vector<2x48xf32>
      %533 = vector.extract_strided_slice %532 {offsets = [0, 0], sizes = [2, 32], strides = [1, 1]} : vector<2x48xf32> to vector<2x32xf32>
      %534 = vector.extract_strided_slice %531 {offsets = [0, 0], sizes = [2, 32], strides = [1, 1]} : vector<2x48xf32> to vector<2x32xf32>
      %535 = arith.addf %533, %534 : vector<2x32xf32>
      %536 = arith.negf %535 : vector<2x32xf32>
      %537 = math.exp %536 : vector<2x32xf32>
      %cst_110 = arith.constant 1.000000e+00 : f32
      %538 = vector.broadcast %cst_110 : f32 to vector<2x32xf32>
      %539 = arith.addf %538, %537 : vector<2x32xf32>
      %540 = arith.divf %538, %539 : vector<2x32xf32>
      %541 = vector.extract_strided_slice %540 {offsets = [0, 0], sizes = [2, 16], strides = [1, 1]} : vector<2x32xf32> to vector<2x16xf32>
      %542 = vector.extract_strided_slice %540 {offsets = [0, 16], sizes = [2, 16], strides = [1, 1]} : vector<2x32xf32> to vector<2x16xf32>
      %543 = vector.extract_strided_slice %532 {offsets = [0, 32], sizes = [2, 16], strides = [1, 1]} : vector<2x48xf32> to vector<2x16xf32>
      %544 = vector.extract_strided_slice %531 {offsets = [0, 32], sizes = [2, 16], strides = [1, 1]} : vector<2x48xf32> to vector<2x16xf32>
      %545 = arith.mulf %541, %544 : vector<2x16xf32>
      %546 = arith.addf %543, %545 : vector<2x16xf32>
      %547 = math.tanh %546 : vector<2x16xf32>
      %cst_111 = arith.constant 1.000000e+00 : f32
      %548 = vector.broadcast %cst_111 : f32 to vector<2x16xf32>
      %549 = arith.subf %548, %542 : vector<2x16xf32>
      %550 = arith.mulf %549, %547 : vector<2x16xf32>
      %551 = arith.mulf %542, %527 : vector<2x16xf32>
      %552 = arith.addf %550, %551 : vector<2x16xf32>
      %553 = arith.truncf %552 : vector<2x16xf32> to vector<2x16xbf16>
      %cst_112 = arith.constant dense<0.000000e+00> : vector<2x48xf32>
      %554 = tpu.matmul %553, %496, %cst_112 {dimension_numbers = #tpu.dot_dimension_numbers<[1], [0], [0], [1], [0, 0, 1, 1], [], []>} : vector<2x16xbf16>, vector<16x48xbf16>, vector<2x48xf32> -> vector<2x48xf32>
      %555 = vector.broadcast %498 : vector<1x48xf32> to vector<2x48xf32>
      %556 = arith.addf %554, %555 : vector<2x48xf32>
      %557 = vector.extract_strided_slice %501 {offsets = [10, 0], sizes = [2, 48], strides = [1, 1]} : vector<16x48xf32> to vector<2x48xf32>
      %558 = vector.extract_strided_slice %557 {offsets = [0, 0], sizes = [2, 32], strides = [1, 1]} : vector<2x48xf32> to vector<2x32xf32>
      %559 = vector.extract_strided_slice %556 {offsets = [0, 0], sizes = [2, 32], strides = [1, 1]} : vector<2x48xf32> to vector<2x32xf32>
      %560 = arith.addf %558, %559 : vector<2x32xf32>
      %561 = arith.negf %560 : vector<2x32xf32>
      %562 = math.exp %561 : vector<2x32xf32>
      %cst_113 = arith.constant 1.000000e+00 : f32
      %563 = vector.broadcast %cst_113 : f32 to vector<2x32xf32>
      %564 = arith.addf %563, %562 : vector<2x32xf32>
      %565 = arith.divf %563, %564 : vector<2x32xf32>
      %566 = vector.extract_strided_slice %565 {offsets = [0, 0], sizes = [2, 16], strides = [1, 1]} : vector<2x32xf32> to vector<2x16xf32>
      %567 = vector.extract_strided_slice %565 {offsets = [0, 16], sizes = [2, 16], strides = [1, 1]} : vector<2x32xf32> to vector<2x16xf32>
      %568 = vector.extract_strided_slice %557 {offsets = [0, 32], sizes = [2, 16], strides = [1, 1]} : vector<2x48xf32> to vector<2x16xf32>
      %569 = vector.extract_strided_slice %556 {offsets = [0, 32], sizes = [2, 16], strides = [1, 1]} : vector<2x48xf32> to vector<2x16xf32>
      %570 = arith.mulf %566, %569 : vector<2x16xf32>
      %571 = arith.addf %568, %570 : vector<2x16xf32>
      %572 = math.tanh %571 : vector<2x16xf32>
      %cst_114 = arith.constant 1.000000e+00 : f32
      %573 = vector.broadcast %cst_114 : f32 to vector<2x16xf32>
      %574 = arith.subf %573, %567 : vector<2x16xf32>
      %575 = arith.mulf %574, %572 : vector<2x16xf32>
      %576 = arith.mulf %567, %552 : vector<2x16xf32>
      %577 = arith.addf %575, %576 : vector<2x16xf32>
      %578 = arith.truncf %577 : vector<2x16xf32> to vector<2x16xbf16>
      %cst_115 = arith.constant dense<0.000000e+00> : vector<2x48xf32>
      %579 = tpu.matmul %578, %496, %cst_115 {dimension_numbers = #tpu.dot_dimension_numbers<[1], [0], [0], [1], [0, 0, 1, 1], [], []>} : vector<2x16xbf16>, vector<16x48xbf16>, vector<2x48xf32> -> vector<2x48xf32>
      %580 = vector.broadcast %498 : vector<1x48xf32> to vector<2x48xf32>
      %581 = arith.addf %579, %580 : vector<2x48xf32>
      %582 = vector.extract_strided_slice %501 {offsets = [8, 0], sizes = [2, 48], strides = [1, 1]} : vector<16x48xf32> to vector<2x48xf32>
      %583 = vector.extract_strided_slice %582 {offsets = [0, 0], sizes = [2, 32], strides = [1, 1]} : vector<2x48xf32> to vector<2x32xf32>
      %584 = vector.extract_strided_slice %581 {offsets = [0, 0], sizes = [2, 32], strides = [1, 1]} : vector<2x48xf32> to vector<2x32xf32>
      %585 = arith.addf %583, %584 : vector<2x32xf32>
      %586 = arith.negf %585 : vector<2x32xf32>
      %587 = math.exp %586 : vector<2x32xf32>
      %cst_116 = arith.constant 1.000000e+00 : f32
      %588 = vector.broadcast %cst_116 : f32 to vector<2x32xf32>
      %589 = arith.addf %588, %587 : vector<2x32xf32>
      %590 = arith.divf %588, %589 : vector<2x32xf32>
      %591 = vector.extract_strided_slice %590 {offsets = [0, 0], sizes = [2, 16], strides = [1, 1]} : vector<2x32xf32> to vector<2x16xf32>
      %592 = vector.extract_strided_slice %590 {offsets = [0, 16], sizes = [2, 16], strides = [1, 1]} : vector<2x32xf32> to vector<2x16xf32>
      %593 = vector.extract_strided_slice %582 {offsets = [0, 32], sizes = [2, 16], strides = [1, 1]} : vector<2x48xf32> to vector<2x16xf32>
      %594 = vector.extract_strided_slice %581 {offsets = [0, 32], sizes = [2, 16], strides = [1, 1]} : vector<2x48xf32> to vector<2x16xf32>
      %595 = arith.mulf %591, %594 : vector<2x16xf32>
      %596 = arith.addf %593, %595 : vector<2x16xf32>
      %597 = math.tanh %596 : vector<2x16xf32>
      %cst_117 = arith.constant 1.000000e+00 : f32
      %598 = vector.broadcast %cst_117 : f32 to vector<2x16xf32>
      %599 = arith.subf %598, %592 : vector<2x16xf32>
      %600 = arith.mulf %599, %597 : vector<2x16xf32>
      %601 = arith.mulf %592, %577 : vector<2x16xf32>
      %602 = arith.addf %600, %601 : vector<2x16xf32>
      %603 = arith.truncf %602 : vector<2x16xf32> to vector<2x16xbf16>
      %cst_118 = arith.constant dense<0.000000e+00> : vector<2x48xf32>
      %604 = tpu.matmul %603, %496, %cst_118 {dimension_numbers = #tpu.dot_dimension_numbers<[1], [0], [0], [1], [0, 0, 1, 1], [], []>} : vector<2x16xbf16>, vector<16x48xbf16>, vector<2x48xf32> -> vector<2x48xf32>
      %605 = vector.broadcast %498 : vector<1x48xf32> to vector<2x48xf32>
      %606 = arith.addf %604, %605 : vector<2x48xf32>
      %607 = vector.extract_strided_slice %501 {offsets = [6, 0], sizes = [2, 48], strides = [1, 1]} : vector<16x48xf32> to vector<2x48xf32>
      %608 = vector.extract_strided_slice %607 {offsets = [0, 0], sizes = [2, 32], strides = [1, 1]} : vector<2x48xf32> to vector<2x32xf32>
      %609 = vector.extract_strided_slice %606 {offsets = [0, 0], sizes = [2, 32], strides = [1, 1]} : vector<2x48xf32> to vector<2x32xf32>
      %610 = arith.addf %608, %609 : vector<2x32xf32>
      %611 = arith.negf %610 : vector<2x32xf32>
      %612 = math.exp %611 : vector<2x32xf32>
      %cst_119 = arith.constant 1.000000e+00 : f32
      %613 = vector.broadcast %cst_119 : f32 to vector<2x32xf32>
      %614 = arith.addf %613, %612 : vector<2x32xf32>
      %615 = arith.divf %613, %614 : vector<2x32xf32>
      %616 = vector.extract_strided_slice %615 {offsets = [0, 0], sizes = [2, 16], strides = [1, 1]} : vector<2x32xf32> to vector<2x16xf32>
      %617 = vector.extract_strided_slice %615 {offsets = [0, 16], sizes = [2, 16], strides = [1, 1]} : vector<2x32xf32> to vector<2x16xf32>
      %618 = vector.extract_strided_slice %607 {offsets = [0, 32], sizes = [2, 16], strides = [1, 1]} : vector<2x48xf32> to vector<2x16xf32>
      %619 = vector.extract_strided_slice %606 {offsets = [0, 32], sizes = [2, 16], strides = [1, 1]} : vector<2x48xf32> to vector<2x16xf32>
      %620 = arith.mulf %616, %619 : vector<2x16xf32>
      %621 = arith.addf %618, %620 : vector<2x16xf32>
      %622 = math.tanh %621 : vector<2x16xf32>
      %cst_120 = arith.constant 1.000000e+00 : f32
      %623 = vector.broadcast %cst_120 : f32 to vector<2x16xf32>
      %624 = arith.subf %623, %617 : vector<2x16xf32>
      %625 = arith.mulf %624, %622 : vector<2x16xf32>
      %626 = arith.mulf %617, %602 : vector<2x16xf32>
      %627 = arith.addf %625, %626 : vector<2x16xf32>
      %628 = arith.truncf %627 : vector<2x16xf32> to vector<2x16xbf16>
      %cst_121 = arith.constant dense<0.000000e+00> : vector<2x48xf32>
      %629 = tpu.matmul %628, %496, %cst_121 {dimension_numbers = #tpu.dot_dimension_numbers<[1], [0], [0], [1], [0, 0, 1, 1], [], []>} : vector<2x16xbf16>, vector<16x48xbf16>, vector<2x48xf32> -> vector<2x48xf32>
      %630 = vector.broadcast %498 : vector<1x48xf32> to vector<2x48xf32>
      %631 = arith.addf %629, %630 : vector<2x48xf32>
      %632 = vector.extract_strided_slice %501 {offsets = [4, 0], sizes = [2, 48], strides = [1, 1]} : vector<16x48xf32> to vector<2x48xf32>
      %633 = vector.extract_strided_slice %632 {offsets = [0, 0], sizes = [2, 32], strides = [1, 1]} : vector<2x48xf32> to vector<2x32xf32>
      %634 = vector.extract_strided_slice %631 {offsets = [0, 0], sizes = [2, 32], strides = [1, 1]} : vector<2x48xf32> to vector<2x32xf32>
      %635 = arith.addf %633, %634 : vector<2x32xf32>
      %636 = arith.negf %635 : vector<2x32xf32>
      %637 = math.exp %636 : vector<2x32xf32>
      %cst_122 = arith.constant 1.000000e+00 : f32
      %638 = vector.broadcast %cst_122 : f32 to vector<2x32xf32>
      %639 = arith.addf %638, %637 : vector<2x32xf32>
      %640 = arith.divf %638, %639 : vector<2x32xf32>
      %641 = vector.extract_strided_slice %640 {offsets = [0, 0], sizes = [2, 16], strides = [1, 1]} : vector<2x32xf32> to vector<2x16xf32>
      %642 = vector.extract_strided_slice %640 {offsets = [0, 16], sizes = [2, 16], strides = [1, 1]} : vector<2x32xf32> to vector<2x16xf32>
      %643 = vector.extract_strided_slice %632 {offsets = [0, 32], sizes = [2, 16], strides = [1, 1]} : vector<2x48xf32> to vector<2x16xf32>
      %644 = vector.extract_strided_slice %631 {offsets = [0, 32], sizes = [2, 16], strides = [1, 1]} : vector<2x48xf32> to vector<2x16xf32>
      %645 = arith.mulf %641, %644 : vector<2x16xf32>
      %646 = arith.addf %643, %645 : vector<2x16xf32>
      %647 = math.tanh %646 : vector<2x16xf32>
      %cst_123 = arith.constant 1.000000e+00 : f32
      %648 = vector.broadcast %cst_123 : f32 to vector<2x16xf32>
      %649 = arith.subf %648, %642 : vector<2x16xf32>
      %650 = arith.mulf %649, %647 : vector<2x16xf32>
      %651 = arith.mulf %642, %627 : vector<2x16xf32>
      %652 = arith.addf %650, %651 : vector<2x16xf32>
      %653 = arith.truncf %652 : vector<2x16xf32> to vector<2x16xbf16>
      %cst_124 = arith.constant dense<0.000000e+00> : vector<2x48xf32>
      %654 = tpu.matmul %653, %496, %cst_124 {dimension_numbers = #tpu.dot_dimension_numbers<[1], [0], [0], [1], [0, 0, 1, 1], [], []>} : vector<2x16xbf16>, vector<16x48xbf16>, vector<2x48xf32> -> vector<2x48xf32>
      %655 = vector.broadcast %498 : vector<1x48xf32> to vector<2x48xf32>
      %656 = arith.addf %654, %655 : vector<2x48xf32>
      %657 = vector.extract_strided_slice %501 {offsets = [2, 0], sizes = [2, 48], strides = [1, 1]} : vector<16x48xf32> to vector<2x48xf32>
      %658 = vector.extract_strided_slice %657 {offsets = [0, 0], sizes = [2, 32], strides = [1, 1]} : vector<2x48xf32> to vector<2x32xf32>
      %659 = vector.extract_strided_slice %656 {offsets = [0, 0], sizes = [2, 32], strides = [1, 1]} : vector<2x48xf32> to vector<2x32xf32>
      %660 = arith.addf %658, %659 : vector<2x32xf32>
      %661 = arith.negf %660 : vector<2x32xf32>
      %662 = math.exp %661 : vector<2x32xf32>
      %cst_125 = arith.constant 1.000000e+00 : f32
      %663 = vector.broadcast %cst_125 : f32 to vector<2x32xf32>
      %664 = arith.addf %663, %662 : vector<2x32xf32>
      %665 = arith.divf %663, %664 : vector<2x32xf32>
      %666 = vector.extract_strided_slice %665 {offsets = [0, 0], sizes = [2, 16], strides = [1, 1]} : vector<2x32xf32> to vector<2x16xf32>
      %667 = vector.extract_strided_slice %665 {offsets = [0, 16], sizes = [2, 16], strides = [1, 1]} : vector<2x32xf32> to vector<2x16xf32>
      %668 = vector.extract_strided_slice %657 {offsets = [0, 32], sizes = [2, 16], strides = [1, 1]} : vector<2x48xf32> to vector<2x16xf32>
      %669 = vector.extract_strided_slice %656 {offsets = [0, 32], sizes = [2, 16], strides = [1, 1]} : vector<2x48xf32> to vector<2x16xf32>
      %670 = arith.mulf %666, %669 : vector<2x16xf32>
      %671 = arith.addf %668, %670 : vector<2x16xf32>
      %672 = math.tanh %671 : vector<2x16xf32>
      %cst_126 = arith.constant 1.000000e+00 : f32
      %673 = vector.broadcast %cst_126 : f32 to vector<2x16xf32>
      %674 = arith.subf %673, %667 : vector<2x16xf32>
      %675 = arith.mulf %674, %672 : vector<2x16xf32>
      %676 = arith.mulf %667, %652 : vector<2x16xf32>
      %677 = arith.addf %675, %676 : vector<2x16xf32>
      %678 = arith.truncf %677 : vector<2x16xf32> to vector<2x16xbf16>
      %cst_127 = arith.constant dense<0.000000e+00> : vector<2x48xf32>
      %679 = tpu.matmul %678, %496, %cst_127 {dimension_numbers = #tpu.dot_dimension_numbers<[1], [0], [0], [1], [0, 0, 1, 1], [], []>} : vector<2x16xbf16>, vector<16x48xbf16>, vector<2x48xf32> -> vector<2x48xf32>
      %680 = vector.broadcast %498 : vector<1x48xf32> to vector<2x48xf32>
      %681 = arith.addf %679, %680 : vector<2x48xf32>
      %682 = vector.extract_strided_slice %501 {offsets = [0, 0], sizes = [2, 48], strides = [1, 1]} : vector<16x48xf32> to vector<2x48xf32>
      %683 = vector.extract_strided_slice %682 {offsets = [0, 0], sizes = [2, 32], strides = [1, 1]} : vector<2x48xf32> to vector<2x32xf32>
      %684 = vector.extract_strided_slice %681 {offsets = [0, 0], sizes = [2, 32], strides = [1, 1]} : vector<2x48xf32> to vector<2x32xf32>
      %685 = arith.addf %683, %684 : vector<2x32xf32>
      %686 = arith.negf %685 : vector<2x32xf32>
      %687 = math.exp %686 : vector<2x32xf32>
      %cst_128 = arith.constant 1.000000e+00 : f32
      %688 = vector.broadcast %cst_128 : f32 to vector<2x32xf32>
      %689 = arith.addf %688, %687 : vector<2x32xf32>
      %690 = arith.divf %688, %689 : vector<2x32xf32>
      %691 = vector.extract_strided_slice %690 {offsets = [0, 0], sizes = [2, 16], strides = [1, 1]} : vector<2x32xf32> to vector<2x16xf32>
      %692 = vector.extract_strided_slice %690 {offsets = [0, 16], sizes = [2, 16], strides = [1, 1]} : vector<2x32xf32> to vector<2x16xf32>
      %693 = vector.extract_strided_slice %682 {offsets = [0, 32], sizes = [2, 16], strides = [1, 1]} : vector<2x48xf32> to vector<2x16xf32>
      %694 = vector.extract_strided_slice %681 {offsets = [0, 32], sizes = [2, 16], strides = [1, 1]} : vector<2x48xf32> to vector<2x16xf32>
      %695 = arith.mulf %691, %694 : vector<2x16xf32>
      %696 = arith.addf %693, %695 : vector<2x16xf32>
      %697 = math.tanh %696 : vector<2x16xf32>
      %cst_129 = arith.constant 1.000000e+00 : f32
      %698 = vector.broadcast %cst_129 : f32 to vector<2x16xf32>
      %699 = arith.subf %698, %692 : vector<2x16xf32>
      %700 = arith.mulf %699, %697 : vector<2x16xf32>
      %701 = arith.mulf %692, %677 : vector<2x16xf32>
      %702 = arith.addf %700, %701 : vector<2x16xf32>
      %703 = tpu.concatenate %702, %677, %652, %627, %602, %577, %552, %527 in 0 : vector<2x16xf32>, vector<2x16xf32>, vector<2x16xf32>, vector<2x16xf32>, vector<2x16xf32>, vector<2x16xf32>, vector<2x16xf32>, vector<2x16xf32> -> vector<16x16xf32>
      %704 = tpu.concatenate %494, %703 in 1 : vector<16x16xf32>, vector<16x16xf32> -> vector<16x32xf32>
      %705 = arith.truncf %704 : vector<16x32xf32> to vector<16x32xbf16>
      %c80 = arith.constant 80 : index
      %c0_130 = arith.constant 0 : index
      %706 = vector.load %arg3[%c80, %c0_130] : memref<256x48xbf16, #tpu.memory_space<vmem>>, vector<32x48xbf16>
      %c176 = arith.constant 176 : index
      %c0_131 = arith.constant 0 : index
      %707 = vector.load %arg3[%c176, %c0_131] : memref<256x48xbf16, #tpu.memory_space<vmem>>, vector<16x48xbf16>
      %c4 = arith.constant 4 : index
      %c0_132 = arith.constant 0 : index
      %708 = vector.load %arg4[%c4, %c0_132] : memref<16x48xf32, #tpu.memory_space<vmem>>, vector<1x48xf32>
      %c5 = arith.constant 5 : index
      %c0_133 = arith.constant 0 : index
      %709 = vector.load %arg4[%c5, %c0_133] : memref<16x48xf32, #tpu.memory_space<vmem>>, vector<1x48xf32>
      %cst_134 = arith.constant dense<0.000000e+00> : vector<16x48xf32>
      %710 = tpu.matmul %705, %706, %cst_134 {dimension_numbers = #tpu.dot_dimension_numbers<[1], [0], [0], [1], [0, 0, 1, 1], [], []>} : vector<16x32xbf16>, vector<32x48xbf16>, vector<16x48xf32> -> vector<16x48xf32>
      %711 = vector.broadcast %708 : vector<1x48xf32> to vector<16x48xf32>
      %712 = arith.addf %710, %711 : vector<16x48xf32>
      %cst_135 = arith.constant 0.000000e+00 : f32
      %713 = vector.broadcast %cst_135 : f32 to vector<2x16xf32>
      %714 = arith.truncf %713 : vector<2x16xf32> to vector<2x16xbf16>
      %cst_136 = arith.constant dense<0.000000e+00> : vector<2x48xf32>
      %715 = tpu.matmul %714, %707, %cst_136 {dimension_numbers = #tpu.dot_dimension_numbers<[1], [0], [0], [1], [0, 0, 1, 1], [], []>} : vector<2x16xbf16>, vector<16x48xbf16>, vector<2x48xf32> -> vector<2x48xf32>
      %716 = vector.broadcast %709 : vector<1x48xf32> to vector<2x48xf32>
      %717 = arith.addf %715, %716 : vector<2x48xf32>
      %718 = vector.extract_strided_slice %712 {offsets = [0, 0], sizes = [2, 48], strides = [1, 1]} : vector<16x48xf32> to vector<2x48xf32>
      %719 = vector.extract_strided_slice %718 {offsets = [0, 0], sizes = [2, 32], strides = [1, 1]} : vector<2x48xf32> to vector<2x32xf32>
      %720 = vector.extract_strided_slice %717 {offsets = [0, 0], sizes = [2, 32], strides = [1, 1]} : vector<2x48xf32> to vector<2x32xf32>
      %721 = arith.addf %719, %720 : vector<2x32xf32>
      %722 = arith.negf %721 : vector<2x32xf32>
      %723 = math.exp %722 : vector<2x32xf32>
      %cst_137 = arith.constant 1.000000e+00 : f32
      %724 = vector.broadcast %cst_137 : f32 to vector<2x32xf32>
      %725 = arith.addf %724, %723 : vector<2x32xf32>
      %726 = arith.divf %724, %725 : vector<2x32xf32>
      %727 = vector.extract_strided_slice %726 {offsets = [0, 0], sizes = [2, 16], strides = [1, 1]} : vector<2x32xf32> to vector<2x16xf32>
      %728 = vector.extract_strided_slice %726 {offsets = [0, 16], sizes = [2, 16], strides = [1, 1]} : vector<2x32xf32> to vector<2x16xf32>
      %729 = vector.extract_strided_slice %718 {offsets = [0, 32], sizes = [2, 16], strides = [1, 1]} : vector<2x48xf32> to vector<2x16xf32>
      %730 = vector.extract_strided_slice %717 {offsets = [0, 32], sizes = [2, 16], strides = [1, 1]} : vector<2x48xf32> to vector<2x16xf32>
      %731 = arith.mulf %727, %730 : vector<2x16xf32>
      %732 = arith.addf %729, %731 : vector<2x16xf32>
      %733 = math.tanh %732 : vector<2x16xf32>
      %cst_138 = arith.constant 1.000000e+00 : f32
      %734 = vector.broadcast %cst_138 : f32 to vector<2x16xf32>
      %735 = arith.subf %734, %728 : vector<2x16xf32>
      %736 = arith.mulf %735, %733 : vector<2x16xf32>
      %737 = arith.mulf %728, %713 : vector<2x16xf32>
      %738 = arith.addf %736, %737 : vector<2x16xf32>
      %739 = arith.truncf %738 : vector<2x16xf32> to vector<2x16xbf16>
      %cst_139 = arith.constant dense<0.000000e+00> : vector<2x48xf32>
      %740 = tpu.matmul %739, %707, %cst_139 {dimension_numbers = #tpu.dot_dimension_numbers<[1], [0], [0], [1], [0, 0, 1, 1], [], []>} : vector<2x16xbf16>, vector<16x48xbf16>, vector<2x48xf32> -> vector<2x48xf32>
      %741 = vector.broadcast %709 : vector<1x48xf32> to vector<2x48xf32>
      %742 = arith.addf %740, %741 : vector<2x48xf32>
      %743 = vector.extract_strided_slice %712 {offsets = [2, 0], sizes = [2, 48], strides = [1, 1]} : vector<16x48xf32> to vector<2x48xf32>
      %744 = vector.extract_strided_slice %743 {offsets = [0, 0], sizes = [2, 32], strides = [1, 1]} : vector<2x48xf32> to vector<2x32xf32>
      %745 = vector.extract_strided_slice %742 {offsets = [0, 0], sizes = [2, 32], strides = [1, 1]} : vector<2x48xf32> to vector<2x32xf32>
      %746 = arith.addf %744, %745 : vector<2x32xf32>
      %747 = arith.negf %746 : vector<2x32xf32>
      %748 = math.exp %747 : vector<2x32xf32>
      %cst_140 = arith.constant 1.000000e+00 : f32
      %749 = vector.broadcast %cst_140 : f32 to vector<2x32xf32>
      %750 = arith.addf %749, %748 : vector<2x32xf32>
      %751 = arith.divf %749, %750 : vector<2x32xf32>
      %752 = vector.extract_strided_slice %751 {offsets = [0, 0], sizes = [2, 16], strides = [1, 1]} : vector<2x32xf32> to vector<2x16xf32>
      %753 = vector.extract_strided_slice %751 {offsets = [0, 16], sizes = [2, 16], strides = [1, 1]} : vector<2x32xf32> to vector<2x16xf32>
      %754 = vector.extract_strided_slice %743 {offsets = [0, 32], sizes = [2, 16], strides = [1, 1]} : vector<2x48xf32> to vector<2x16xf32>
      %755 = vector.extract_strided_slice %742 {offsets = [0, 32], sizes = [2, 16], strides = [1, 1]} : vector<2x48xf32> to vector<2x16xf32>
      %756 = arith.mulf %752, %755 : vector<2x16xf32>
      %757 = arith.addf %754, %756 : vector<2x16xf32>
      %758 = math.tanh %757 : vector<2x16xf32>
      %cst_141 = arith.constant 1.000000e+00 : f32
      %759 = vector.broadcast %cst_141 : f32 to vector<2x16xf32>
      %760 = arith.subf %759, %753 : vector<2x16xf32>
      %761 = arith.mulf %760, %758 : vector<2x16xf32>
      %762 = arith.mulf %753, %738 : vector<2x16xf32>
      %763 = arith.addf %761, %762 : vector<2x16xf32>
      %764 = arith.truncf %763 : vector<2x16xf32> to vector<2x16xbf16>
      %cst_142 = arith.constant dense<0.000000e+00> : vector<2x48xf32>
      %765 = tpu.matmul %764, %707, %cst_142 {dimension_numbers = #tpu.dot_dimension_numbers<[1], [0], [0], [1], [0, 0, 1, 1], [], []>} : vector<2x16xbf16>, vector<16x48xbf16>, vector<2x48xf32> -> vector<2x48xf32>
      %766 = vector.broadcast %709 : vector<1x48xf32> to vector<2x48xf32>
      %767 = arith.addf %765, %766 : vector<2x48xf32>
      %768 = vector.extract_strided_slice %712 {offsets = [4, 0], sizes = [2, 48], strides = [1, 1]} : vector<16x48xf32> to vector<2x48xf32>
      %769 = vector.extract_strided_slice %768 {offsets = [0, 0], sizes = [2, 32], strides = [1, 1]} : vector<2x48xf32> to vector<2x32xf32>
      %770 = vector.extract_strided_slice %767 {offsets = [0, 0], sizes = [2, 32], strides = [1, 1]} : vector<2x48xf32> to vector<2x32xf32>
      %771 = arith.addf %769, %770 : vector<2x32xf32>
      %772 = arith.negf %771 : vector<2x32xf32>
      %773 = math.exp %772 : vector<2x32xf32>
      %cst_143 = arith.constant 1.000000e+00 : f32
      %774 = vector.broadcast %cst_143 : f32 to vector<2x32xf32>
      %775 = arith.addf %774, %773 : vector<2x32xf32>
      %776 = arith.divf %774, %775 : vector<2x32xf32>
      %777 = vector.extract_strided_slice %776 {offsets = [0, 0], sizes = [2, 16], strides = [1, 1]} : vector<2x32xf32> to vector<2x16xf32>
      %778 = vector.extract_strided_slice %776 {offsets = [0, 16], sizes = [2, 16], strides = [1, 1]} : vector<2x32xf32> to vector<2x16xf32>
      %779 = vector.extract_strided_slice %768 {offsets = [0, 32], sizes = [2, 16], strides = [1, 1]} : vector<2x48xf32> to vector<2x16xf32>
      %780 = vector.extract_strided_slice %767 {offsets = [0, 32], sizes = [2, 16], strides = [1, 1]} : vector<2x48xf32> to vector<2x16xf32>
      %781 = arith.mulf %777, %780 : vector<2x16xf32>
      %782 = arith.addf %779, %781 : vector<2x16xf32>
      %783 = math.tanh %782 : vector<2x16xf32>
      %cst_144 = arith.constant 1.000000e+00 : f32
      %784 = vector.broadcast %cst_144 : f32 to vector<2x16xf32>
      %785 = arith.subf %784, %778 : vector<2x16xf32>
      %786 = arith.mulf %785, %783 : vector<2x16xf32>
      %787 = arith.mulf %778, %763 : vector<2x16xf32>
      %788 = arith.addf %786, %787 : vector<2x16xf32>
      %789 = arith.truncf %788 : vector<2x16xf32> to vector<2x16xbf16>
      %cst_145 = arith.constant dense<0.000000e+00> : vector<2x48xf32>
      %790 = tpu.matmul %789, %707, %cst_145 {dimension_numbers = #tpu.dot_dimension_numbers<[1], [0], [0], [1], [0, 0, 1, 1], [], []>} : vector<2x16xbf16>, vector<16x48xbf16>, vector<2x48xf32> -> vector<2x48xf32>
      %791 = vector.broadcast %709 : vector<1x48xf32> to vector<2x48xf32>
      %792 = arith.addf %790, %791 : vector<2x48xf32>
      %793 = vector.extract_strided_slice %712 {offsets = [6, 0], sizes = [2, 48], strides = [1, 1]} : vector<16x48xf32> to vector<2x48xf32>
      %794 = vector.extract_strided_slice %793 {offsets = [0, 0], sizes = [2, 32], strides = [1, 1]} : vector<2x48xf32> to vector<2x32xf32>
      %795 = vector.extract_strided_slice %792 {offsets = [0, 0], sizes = [2, 32], strides = [1, 1]} : vector<2x48xf32> to vector<2x32xf32>
      %796 = arith.addf %794, %795 : vector<2x32xf32>
      %797 = arith.negf %796 : vector<2x32xf32>
      %798 = math.exp %797 : vector<2x32xf32>
      %cst_146 = arith.constant 1.000000e+00 : f32
      %799 = vector.broadcast %cst_146 : f32 to vector<2x32xf32>
      %800 = arith.addf %799, %798 : vector<2x32xf32>
      %801 = arith.divf %799, %800 : vector<2x32xf32>
      %802 = vector.extract_strided_slice %801 {offsets = [0, 0], sizes = [2, 16], strides = [1, 1]} : vector<2x32xf32> to vector<2x16xf32>
      %803 = vector.extract_strided_slice %801 {offsets = [0, 16], sizes = [2, 16], strides = [1, 1]} : vector<2x32xf32> to vector<2x16xf32>
      %804 = vector.extract_strided_slice %793 {offsets = [0, 32], sizes = [2, 16], strides = [1, 1]} : vector<2x48xf32> to vector<2x16xf32>
      %805 = vector.extract_strided_slice %792 {offsets = [0, 32], sizes = [2, 16], strides = [1, 1]} : vector<2x48xf32> to vector<2x16xf32>
      %806 = arith.mulf %802, %805 : vector<2x16xf32>
      %807 = arith.addf %804, %806 : vector<2x16xf32>
      %808 = math.tanh %807 : vector<2x16xf32>
      %cst_147 = arith.constant 1.000000e+00 : f32
      %809 = vector.broadcast %cst_147 : f32 to vector<2x16xf32>
      %810 = arith.subf %809, %803 : vector<2x16xf32>
      %811 = arith.mulf %810, %808 : vector<2x16xf32>
      %812 = arith.mulf %803, %788 : vector<2x16xf32>
      %813 = arith.addf %811, %812 : vector<2x16xf32>
      %814 = arith.truncf %813 : vector<2x16xf32> to vector<2x16xbf16>
      %cst_148 = arith.constant dense<0.000000e+00> : vector<2x48xf32>
      %815 = tpu.matmul %814, %707, %cst_148 {dimension_numbers = #tpu.dot_dimension_numbers<[1], [0], [0], [1], [0, 0, 1, 1], [], []>} : vector<2x16xbf16>, vector<16x48xbf16>, vector<2x48xf32> -> vector<2x48xf32>
      %816 = vector.broadcast %709 : vector<1x48xf32> to vector<2x48xf32>
      %817 = arith.addf %815, %816 : vector<2x48xf32>
      %818 = vector.extract_strided_slice %712 {offsets = [8, 0], sizes = [2, 48], strides = [1, 1]} : vector<16x48xf32> to vector<2x48xf32>
      %819 = vector.extract_strided_slice %818 {offsets = [0, 0], sizes = [2, 32], strides = [1, 1]} : vector<2x48xf32> to vector<2x32xf32>
      %820 = vector.extract_strided_slice %817 {offsets = [0, 0], sizes = [2, 32], strides = [1, 1]} : vector<2x48xf32> to vector<2x32xf32>
      %821 = arith.addf %819, %820 : vector<2x32xf32>
      %822 = arith.negf %821 : vector<2x32xf32>
      %823 = math.exp %822 : vector<2x32xf32>
      %cst_149 = arith.constant 1.000000e+00 : f32
      %824 = vector.broadcast %cst_149 : f32 to vector<2x32xf32>
      %825 = arith.addf %824, %823 : vector<2x32xf32>
      %826 = arith.divf %824, %825 : vector<2x32xf32>
      %827 = vector.extract_strided_slice %826 {offsets = [0, 0], sizes = [2, 16], strides = [1, 1]} : vector<2x32xf32> to vector<2x16xf32>
      %828 = vector.extract_strided_slice %826 {offsets = [0, 16], sizes = [2, 16], strides = [1, 1]} : vector<2x32xf32> to vector<2x16xf32>
      %829 = vector.extract_strided_slice %818 {offsets = [0, 32], sizes = [2, 16], strides = [1, 1]} : vector<2x48xf32> to vector<2x16xf32>
      %830 = vector.extract_strided_slice %817 {offsets = [0, 32], sizes = [2, 16], strides = [1, 1]} : vector<2x48xf32> to vector<2x16xf32>
      %831 = arith.mulf %827, %830 : vector<2x16xf32>
      %832 = arith.addf %829, %831 : vector<2x16xf32>
      %833 = math.tanh %832 : vector<2x16xf32>
      %cst_150 = arith.constant 1.000000e+00 : f32
      %834 = vector.broadcast %cst_150 : f32 to vector<2x16xf32>
      %835 = arith.subf %834, %828 : vector<2x16xf32>
      %836 = arith.mulf %835, %833 : vector<2x16xf32>
      %837 = arith.mulf %828, %813 : vector<2x16xf32>
      %838 = arith.addf %836, %837 : vector<2x16xf32>
      %839 = arith.truncf %838 : vector<2x16xf32> to vector<2x16xbf16>
      %cst_151 = arith.constant dense<0.000000e+00> : vector<2x48xf32>
      %840 = tpu.matmul %839, %707, %cst_151 {dimension_numbers = #tpu.dot_dimension_numbers<[1], [0], [0], [1], [0, 0, 1, 1], [], []>} : vector<2x16xbf16>, vector<16x48xbf16>, vector<2x48xf32> -> vector<2x48xf32>
      %841 = vector.broadcast %709 : vector<1x48xf32> to vector<2x48xf32>
      %842 = arith.addf %840, %841 : vector<2x48xf32>
      %843 = vector.extract_strided_slice %712 {offsets = [10, 0], sizes = [2, 48], strides = [1, 1]} : vector<16x48xf32> to vector<2x48xf32>
      %844 = vector.extract_strided_slice %843 {offsets = [0, 0], sizes = [2, 32], strides = [1, 1]} : vector<2x48xf32> to vector<2x32xf32>
      %845 = vector.extract_strided_slice %842 {offsets = [0, 0], sizes = [2, 32], strides = [1, 1]} : vector<2x48xf32> to vector<2x32xf32>
      %846 = arith.addf %844, %845 : vector<2x32xf32>
      %847 = arith.negf %846 : vector<2x32xf32>
      %848 = math.exp %847 : vector<2x32xf32>
      %cst_152 = arith.constant 1.000000e+00 : f32
      %849 = vector.broadcast %cst_152 : f32 to vector<2x32xf32>
      %850 = arith.addf %849, %848 : vector<2x32xf32>
      %851 = arith.divf %849, %850 : vector<2x32xf32>
      %852 = vector.extract_strided_slice %851 {offsets = [0, 0], sizes = [2, 16], strides = [1, 1]} : vector<2x32xf32> to vector<2x16xf32>
      %853 = vector.extract_strided_slice %851 {offsets = [0, 16], sizes = [2, 16], strides = [1, 1]} : vector<2x32xf32> to vector<2x16xf32>
      %854 = vector.extract_strided_slice %843 {offsets = [0, 32], sizes = [2, 16], strides = [1, 1]} : vector<2x48xf32> to vector<2x16xf32>
      %855 = vector.extract_strided_slice %842 {offsets = [0, 32], sizes = [2, 16], strides = [1, 1]} : vector<2x48xf32> to vector<2x16xf32>
      %856 = arith.mulf %852, %855 : vector<2x16xf32>
      %857 = arith.addf %854, %856 : vector<2x16xf32>
      %858 = math.tanh %857 : vector<2x16xf32>
      %cst_153 = arith.constant 1.000000e+00 : f32
      %859 = vector.broadcast %cst_153 : f32 to vector<2x16xf32>
      %860 = arith.subf %859, %853 : vector<2x16xf32>
      %861 = arith.mulf %860, %858 : vector<2x16xf32>
      %862 = arith.mulf %853, %838 : vector<2x16xf32>
      %863 = arith.addf %861, %862 : vector<2x16xf32>
      %864 = arith.truncf %863 : vector<2x16xf32> to vector<2x16xbf16>
      %cst_154 = arith.constant dense<0.000000e+00> : vector<2x48xf32>
      %865 = tpu.matmul %864, %707, %cst_154 {dimension_numbers = #tpu.dot_dimension_numbers<[1], [0], [0], [1], [0, 0, 1, 1], [], []>} : vector<2x16xbf16>, vector<16x48xbf16>, vector<2x48xf32> -> vector<2x48xf32>
      %866 = vector.broadcast %709 : vector<1x48xf32> to vector<2x48xf32>
      %867 = arith.addf %865, %866 : vector<2x48xf32>
      %868 = vector.extract_strided_slice %712 {offsets = [12, 0], sizes = [2, 48], strides = [1, 1]} : vector<16x48xf32> to vector<2x48xf32>
      %869 = vector.extract_strided_slice %868 {offsets = [0, 0], sizes = [2, 32], strides = [1, 1]} : vector<2x48xf32> to vector<2x32xf32>
      %870 = vector.extract_strided_slice %867 {offsets = [0, 0], sizes = [2, 32], strides = [1, 1]} : vector<2x48xf32> to vector<2x32xf32>
      %871 = arith.addf %869, %870 : vector<2x32xf32>
      %872 = arith.negf %871 : vector<2x32xf32>
      %873 = math.exp %872 : vector<2x32xf32>
      %cst_155 = arith.constant 1.000000e+00 : f32
      %874 = vector.broadcast %cst_155 : f32 to vector<2x32xf32>
      %875 = arith.addf %874, %873 : vector<2x32xf32>
      %876 = arith.divf %874, %875 : vector<2x32xf32>
      %877 = vector.extract_strided_slice %876 {offsets = [0, 0], sizes = [2, 16], strides = [1, 1]} : vector<2x32xf32> to vector<2x16xf32>
      %878 = vector.extract_strided_slice %876 {offsets = [0, 16], sizes = [2, 16], strides = [1, 1]} : vector<2x32xf32> to vector<2x16xf32>
      %879 = vector.extract_strided_slice %868 {offsets = [0, 32], sizes = [2, 16], strides = [1, 1]} : vector<2x48xf32> to vector<2x16xf32>
      %880 = vector.extract_strided_slice %867 {offsets = [0, 32], sizes = [2, 16], strides = [1, 1]} : vector<2x48xf32> to vector<2x16xf32>
      %881 = arith.mulf %877, %880 : vector<2x16xf32>
      %882 = arith.addf %879, %881 : vector<2x16xf32>
      %883 = math.tanh %882 : vector<2x16xf32>
      %cst_156 = arith.constant 1.000000e+00 : f32
      %884 = vector.broadcast %cst_156 : f32 to vector<2x16xf32>
      %885 = arith.subf %884, %878 : vector<2x16xf32>
      %886 = arith.mulf %885, %883 : vector<2x16xf32>
      %887 = arith.mulf %878, %863 : vector<2x16xf32>
      %888 = arith.addf %886, %887 : vector<2x16xf32>
      %889 = arith.truncf %888 : vector<2x16xf32> to vector<2x16xbf16>
      %cst_157 = arith.constant dense<0.000000e+00> : vector<2x48xf32>
      %890 = tpu.matmul %889, %707, %cst_157 {dimension_numbers = #tpu.dot_dimension_numbers<[1], [0], [0], [1], [0, 0, 1, 1], [], []>} : vector<2x16xbf16>, vector<16x48xbf16>, vector<2x48xf32> -> vector<2x48xf32>
      %891 = vector.broadcast %709 : vector<1x48xf32> to vector<2x48xf32>
      %892 = arith.addf %890, %891 : vector<2x48xf32>
      %893 = vector.extract_strided_slice %712 {offsets = [14, 0], sizes = [2, 48], strides = [1, 1]} : vector<16x48xf32> to vector<2x48xf32>
      %894 = vector.extract_strided_slice %893 {offsets = [0, 0], sizes = [2, 32], strides = [1, 1]} : vector<2x48xf32> to vector<2x32xf32>
      %895 = vector.extract_strided_slice %892 {offsets = [0, 0], sizes = [2, 32], strides = [1, 1]} : vector<2x48xf32> to vector<2x32xf32>
      %896 = arith.addf %894, %895 : vector<2x32xf32>
      %897 = arith.negf %896 : vector<2x32xf32>
      %898 = math.exp %897 : vector<2x32xf32>
      %cst_158 = arith.constant 1.000000e+00 : f32
      %899 = vector.broadcast %cst_158 : f32 to vector<2x32xf32>
      %900 = arith.addf %899, %898 : vector<2x32xf32>
      %901 = arith.divf %899, %900 : vector<2x32xf32>
      %902 = vector.extract_strided_slice %901 {offsets = [0, 0], sizes = [2, 16], strides = [1, 1]} : vector<2x32xf32> to vector<2x16xf32>
      %903 = vector.extract_strided_slice %901 {offsets = [0, 16], sizes = [2, 16], strides = [1, 1]} : vector<2x32xf32> to vector<2x16xf32>
      %904 = vector.extract_strided_slice %893 {offsets = [0, 32], sizes = [2, 16], strides = [1, 1]} : vector<2x48xf32> to vector<2x16xf32>
      %905 = vector.extract_strided_slice %892 {offsets = [0, 32], sizes = [2, 16], strides = [1, 1]} : vector<2x48xf32> to vector<2x16xf32>
      %906 = arith.mulf %902, %905 : vector<2x16xf32>
      %907 = arith.addf %904, %906 : vector<2x16xf32>
      %908 = math.tanh %907 : vector<2x16xf32>
      %cst_159 = arith.constant 1.000000e+00 : f32
      %909 = vector.broadcast %cst_159 : f32 to vector<2x16xf32>
      %910 = arith.subf %909, %903 : vector<2x16xf32>
      %911 = arith.mulf %910, %908 : vector<2x16xf32>
      %912 = arith.mulf %903, %888 : vector<2x16xf32>
      %913 = arith.addf %911, %912 : vector<2x16xf32>
      %914 = tpu.concatenate %738, %763, %788, %813, %838, %863, %888, %913 in 0 : vector<2x16xf32>, vector<2x16xf32>, vector<2x16xf32>, vector<2x16xf32>, vector<2x16xf32>, vector<2x16xf32>, vector<2x16xf32>, vector<2x16xf32> -> vector<16x16xf32>
      %c112 = arith.constant 112 : index
      %c0_160 = arith.constant 0 : index
      %915 = vector.load %arg3[%c112, %c0_160] : memref<256x48xbf16, #tpu.memory_space<vmem>>, vector<32x48xbf16>
      %c192 = arith.constant 192 : index
      %c0_161 = arith.constant 0 : index
      %916 = vector.load %arg3[%c192, %c0_161] : memref<256x48xbf16, #tpu.memory_space<vmem>>, vector<16x48xbf16>
      %c6 = arith.constant 6 : index
      %c0_162 = arith.constant 0 : index
      %917 = vector.load %arg4[%c6, %c0_162] : memref<16x48xf32, #tpu.memory_space<vmem>>, vector<1x48xf32>
      %c7 = arith.constant 7 : index
      %c0_163 = arith.constant 0 : index
      %918 = vector.load %arg4[%c7, %c0_163] : memref<16x48xf32, #tpu.memory_space<vmem>>, vector<1x48xf32>
      %cst_164 = arith.constant dense<0.000000e+00> : vector<16x48xf32>
      %919 = tpu.matmul %705, %915, %cst_164 {dimension_numbers = #tpu.dot_dimension_numbers<[1], [0], [0], [1], [0, 0, 1, 1], [], []>} : vector<16x32xbf16>, vector<32x48xbf16>, vector<16x48xf32> -> vector<16x48xf32>
      %920 = vector.broadcast %917 : vector<1x48xf32> to vector<16x48xf32>
      %921 = arith.addf %919, %920 : vector<16x48xf32>
      %cst_165 = arith.constant 0.000000e+00 : f32
      %922 = vector.broadcast %cst_165 : f32 to vector<2x16xf32>
      %923 = arith.truncf %922 : vector<2x16xf32> to vector<2x16xbf16>
      %cst_166 = arith.constant dense<0.000000e+00> : vector<2x48xf32>
      %924 = tpu.matmul %923, %916, %cst_166 {dimension_numbers = #tpu.dot_dimension_numbers<[1], [0], [0], [1], [0, 0, 1, 1], [], []>} : vector<2x16xbf16>, vector<16x48xbf16>, vector<2x48xf32> -> vector<2x48xf32>
      %925 = vector.broadcast %918 : vector<1x48xf32> to vector<2x48xf32>
      %926 = arith.addf %924, %925 : vector<2x48xf32>
      %927 = vector.extract_strided_slice %921 {offsets = [14, 0], sizes = [2, 48], strides = [1, 1]} : vector<16x48xf32> to vector<2x48xf32>
      %928 = vector.extract_strided_slice %927 {offsets = [0, 0], sizes = [2, 32], strides = [1, 1]} : vector<2x48xf32> to vector<2x32xf32>
      %929 = vector.extract_strided_slice %926 {offsets = [0, 0], sizes = [2, 32], strides = [1, 1]} : vector<2x48xf32> to vector<2x32xf32>
      %930 = arith.addf %928, %929 : vector<2x32xf32>
      %931 = arith.negf %930 : vector<2x32xf32>
      %932 = math.exp %931 : vector<2x32xf32>
      %cst_167 = arith.constant 1.000000e+00 : f32
      %933 = vector.broadcast %cst_167 : f32 to vector<2x32xf32>
      %934 = arith.addf %933, %932 : vector<2x32xf32>
      %935 = arith.divf %933, %934 : vector<2x32xf32>
      %936 = vector.extract_strided_slice %935 {offsets = [0, 0], sizes = [2, 16], strides = [1, 1]} : vector<2x32xf32> to vector<2x16xf32>
      %937 = vector.extract_strided_slice %935 {offsets = [0, 16], sizes = [2, 16], strides = [1, 1]} : vector<2x32xf32> to vector<2x16xf32>
      %938 = vector.extract_strided_slice %927 {offsets = [0, 32], sizes = [2, 16], strides = [1, 1]} : vector<2x48xf32> to vector<2x16xf32>
      %939 = vector.extract_strided_slice %926 {offsets = [0, 32], sizes = [2, 16], strides = [1, 1]} : vector<2x48xf32> to vector<2x16xf32>
      %940 = arith.mulf %936, %939 : vector<2x16xf32>
      %941 = arith.addf %938, %940 : vector<2x16xf32>
      %942 = math.tanh %941 : vector<2x16xf32>
      %cst_168 = arith.constant 1.000000e+00 : f32
      %943 = vector.broadcast %cst_168 : f32 to vector<2x16xf32>
      %944 = arith.subf %943, %937 : vector<2x16xf32>
      %945 = arith.mulf %944, %942 : vector<2x16xf32>
      %946 = arith.mulf %937, %922 : vector<2x16xf32>
      %947 = arith.addf %945, %946 : vector<2x16xf32>
      %948 = arith.truncf %947 : vector<2x16xf32> to vector<2x16xbf16>
      %cst_169 = arith.constant dense<0.000000e+00> : vector<2x48xf32>
      %949 = tpu.matmul %948, %916, %cst_169 {dimension_numbers = #tpu.dot_dimension_numbers<[1], [0], [0], [1], [0, 0, 1, 1], [], []>} : vector<2x16xbf16>, vector<16x48xbf16>, vector<2x48xf32> -> vector<2x48xf32>
      %950 = vector.broadcast %918 : vector<1x48xf32> to vector<2x48xf32>
      %951 = arith.addf %949, %950 : vector<2x48xf32>
      %952 = vector.extract_strided_slice %921 {offsets = [12, 0], sizes = [2, 48], strides = [1, 1]} : vector<16x48xf32> to vector<2x48xf32>
      %953 = vector.extract_strided_slice %952 {offsets = [0, 0], sizes = [2, 32], strides = [1, 1]} : vector<2x48xf32> to vector<2x32xf32>
      %954 = vector.extract_strided_slice %951 {offsets = [0, 0], sizes = [2, 32], strides = [1, 1]} : vector<2x48xf32> to vector<2x32xf32>
      %955 = arith.addf %953, %954 : vector<2x32xf32>
      %956 = arith.negf %955 : vector<2x32xf32>
      %957 = math.exp %956 : vector<2x32xf32>
      %cst_170 = arith.constant 1.000000e+00 : f32
      %958 = vector.broadcast %cst_170 : f32 to vector<2x32xf32>
      %959 = arith.addf %958, %957 : vector<2x32xf32>
      %960 = arith.divf %958, %959 : vector<2x32xf32>
      %961 = vector.extract_strided_slice %960 {offsets = [0, 0], sizes = [2, 16], strides = [1, 1]} : vector<2x32xf32> to vector<2x16xf32>
      %962 = vector.extract_strided_slice %960 {offsets = [0, 16], sizes = [2, 16], strides = [1, 1]} : vector<2x32xf32> to vector<2x16xf32>
      %963 = vector.extract_strided_slice %952 {offsets = [0, 32], sizes = [2, 16], strides = [1, 1]} : vector<2x48xf32> to vector<2x16xf32>
      %964 = vector.extract_strided_slice %951 {offsets = [0, 32], sizes = [2, 16], strides = [1, 1]} : vector<2x48xf32> to vector<2x16xf32>
      %965 = arith.mulf %961, %964 : vector<2x16xf32>
      %966 = arith.addf %963, %965 : vector<2x16xf32>
      %967 = math.tanh %966 : vector<2x16xf32>
      %cst_171 = arith.constant 1.000000e+00 : f32
      %968 = vector.broadcast %cst_171 : f32 to vector<2x16xf32>
      %969 = arith.subf %968, %962 : vector<2x16xf32>
      %970 = arith.mulf %969, %967 : vector<2x16xf32>
      %971 = arith.mulf %962, %947 : vector<2x16xf32>
      %972 = arith.addf %970, %971 : vector<2x16xf32>
      %973 = arith.truncf %972 : vector<2x16xf32> to vector<2x16xbf16>
      %cst_172 = arith.constant dense<0.000000e+00> : vector<2x48xf32>
      %974 = tpu.matmul %973, %916, %cst_172 {dimension_numbers = #tpu.dot_dimension_numbers<[1], [0], [0], [1], [0, 0, 1, 1], [], []>} : vector<2x16xbf16>, vector<16x48xbf16>, vector<2x48xf32> -> vector<2x48xf32>
      %975 = vector.broadcast %918 : vector<1x48xf32> to vector<2x48xf32>
      %976 = arith.addf %974, %975 : vector<2x48xf32>
      %977 = vector.extract_strided_slice %921 {offsets = [10, 0], sizes = [2, 48], strides = [1, 1]} : vector<16x48xf32> to vector<2x48xf32>
      %978 = vector.extract_strided_slice %977 {offsets = [0, 0], sizes = [2, 32], strides = [1, 1]} : vector<2x48xf32> to vector<2x32xf32>
      %979 = vector.extract_strided_slice %976 {offsets = [0, 0], sizes = [2, 32], strides = [1, 1]} : vector<2x48xf32> to vector<2x32xf32>
      %980 = arith.addf %978, %979 : vector<2x32xf32>
      %981 = arith.negf %980 : vector<2x32xf32>
      %982 = math.exp %981 : vector<2x32xf32>
      %cst_173 = arith.constant 1.000000e+00 : f32
      %983 = vector.broadcast %cst_173 : f32 to vector<2x32xf32>
      %984 = arith.addf %983, %982 : vector<2x32xf32>
      %985 = arith.divf %983, %984 : vector<2x32xf32>
      %986 = vector.extract_strided_slice %985 {offsets = [0, 0], sizes = [2, 16], strides = [1, 1]} : vector<2x32xf32> to vector<2x16xf32>
      %987 = vector.extract_strided_slice %985 {offsets = [0, 16], sizes = [2, 16], strides = [1, 1]} : vector<2x32xf32> to vector<2x16xf32>
      %988 = vector.extract_strided_slice %977 {offsets = [0, 32], sizes = [2, 16], strides = [1, 1]} : vector<2x48xf32> to vector<2x16xf32>
      %989 = vector.extract_strided_slice %976 {offsets = [0, 32], sizes = [2, 16], strides = [1, 1]} : vector<2x48xf32> to vector<2x16xf32>
      %990 = arith.mulf %986, %989 : vector<2x16xf32>
      %991 = arith.addf %988, %990 : vector<2x16xf32>
      %992 = math.tanh %991 : vector<2x16xf32>
      %cst_174 = arith.constant 1.000000e+00 : f32
      %993 = vector.broadcast %cst_174 : f32 to vector<2x16xf32>
      %994 = arith.subf %993, %987 : vector<2x16xf32>
      %995 = arith.mulf %994, %992 : vector<2x16xf32>
      %996 = arith.mulf %987, %972 : vector<2x16xf32>
      %997 = arith.addf %995, %996 : vector<2x16xf32>
      %998 = arith.truncf %997 : vector<2x16xf32> to vector<2x16xbf16>
      %cst_175 = arith.constant dense<0.000000e+00> : vector<2x48xf32>
      %999 = tpu.matmul %998, %916, %cst_175 {dimension_numbers = #tpu.dot_dimension_numbers<[1], [0], [0], [1], [0, 0, 1, 1], [], []>} : vector<2x16xbf16>, vector<16x48xbf16>, vector<2x48xf32> -> vector<2x48xf32>
      %1000 = vector.broadcast %918 : vector<1x48xf32> to vector<2x48xf32>
      %1001 = arith.addf %999, %1000 : vector<2x48xf32>
      %1002 = vector.extract_strided_slice %921 {offsets = [8, 0], sizes = [2, 48], strides = [1, 1]} : vector<16x48xf32> to vector<2x48xf32>
      %1003 = vector.extract_strided_slice %1002 {offsets = [0, 0], sizes = [2, 32], strides = [1, 1]} : vector<2x48xf32> to vector<2x32xf32>
      %1004 = vector.extract_strided_slice %1001 {offsets = [0, 0], sizes = [2, 32], strides = [1, 1]} : vector<2x48xf32> to vector<2x32xf32>
      %1005 = arith.addf %1003, %1004 : vector<2x32xf32>
      %1006 = arith.negf %1005 : vector<2x32xf32>
      %1007 = math.exp %1006 : vector<2x32xf32>
      %cst_176 = arith.constant 1.000000e+00 : f32
      %1008 = vector.broadcast %cst_176 : f32 to vector<2x32xf32>
      %1009 = arith.addf %1008, %1007 : vector<2x32xf32>
      %1010 = arith.divf %1008, %1009 : vector<2x32xf32>
      %1011 = vector.extract_strided_slice %1010 {offsets = [0, 0], sizes = [2, 16], strides = [1, 1]} : vector<2x32xf32> to vector<2x16xf32>
      %1012 = vector.extract_strided_slice %1010 {offsets = [0, 16], sizes = [2, 16], strides = [1, 1]} : vector<2x32xf32> to vector<2x16xf32>
      %1013 = vector.extract_strided_slice %1002 {offsets = [0, 32], sizes = [2, 16], strides = [1, 1]} : vector<2x48xf32> to vector<2x16xf32>
      %1014 = vector.extract_strided_slice %1001 {offsets = [0, 32], sizes = [2, 16], strides = [1, 1]} : vector<2x48xf32> to vector<2x16xf32>
      %1015 = arith.mulf %1011, %1014 : vector<2x16xf32>
      %1016 = arith.addf %1013, %1015 : vector<2x16xf32>
      %1017 = math.tanh %1016 : vector<2x16xf32>
      %cst_177 = arith.constant 1.000000e+00 : f32
      %1018 = vector.broadcast %cst_177 : f32 to vector<2x16xf32>
      %1019 = arith.subf %1018, %1012 : vector<2x16xf32>
      %1020 = arith.mulf %1019, %1017 : vector<2x16xf32>
      %1021 = arith.mulf %1012, %997 : vector<2x16xf32>
      %1022 = arith.addf %1020, %1021 : vector<2x16xf32>
      %1023 = arith.truncf %1022 : vector<2x16xf32> to vector<2x16xbf16>
      %cst_178 = arith.constant dense<0.000000e+00> : vector<2x48xf32>
      %1024 = tpu.matmul %1023, %916, %cst_178 {dimension_numbers = #tpu.dot_dimension_numbers<[1], [0], [0], [1], [0, 0, 1, 1], [], []>} : vector<2x16xbf16>, vector<16x48xbf16>, vector<2x48xf32> -> vector<2x48xf32>
      %1025 = vector.broadcast %918 : vector<1x48xf32> to vector<2x48xf32>
      %1026 = arith.addf %1024, %1025 : vector<2x48xf32>
      %1027 = vector.extract_strided_slice %921 {offsets = [6, 0], sizes = [2, 48], strides = [1, 1]} : vector<16x48xf32> to vector<2x48xf32>
      %1028 = vector.extract_strided_slice %1027 {offsets = [0, 0], sizes = [2, 32], strides = [1, 1]} : vector<2x48xf32> to vector<2x32xf32>
      %1029 = vector.extract_strided_slice %1026 {offsets = [0, 0], sizes = [2, 32], strides = [1, 1]} : vector<2x48xf32> to vector<2x32xf32>
      %1030 = arith.addf %1028, %1029 : vector<2x32xf32>
      %1031 = arith.negf %1030 : vector<2x32xf32>
      %1032 = math.exp %1031 : vector<2x32xf32>
      %cst_179 = arith.constant 1.000000e+00 : f32
      %1033 = vector.broadcast %cst_179 : f32 to vector<2x32xf32>
      %1034 = arith.addf %1033, %1032 : vector<2x32xf32>
      %1035 = arith.divf %1033, %1034 : vector<2x32xf32>
      %1036 = vector.extract_strided_slice %1035 {offsets = [0, 0], sizes = [2, 16], strides = [1, 1]} : vector<2x32xf32> to vector<2x16xf32>
      %1037 = vector.extract_strided_slice %1035 {offsets = [0, 16], sizes = [2, 16], strides = [1, 1]} : vector<2x32xf32> to vector<2x16xf32>
      %1038 = vector.extract_strided_slice %1027 {offsets = [0, 32], sizes = [2, 16], strides = [1, 1]} : vector<2x48xf32> to vector<2x16xf32>
      %1039 = vector.extract_strided_slice %1026 {offsets = [0, 32], sizes = [2, 16], strides = [1, 1]} : vector<2x48xf32> to vector<2x16xf32>
      %1040 = arith.mulf %1036, %1039 : vector<2x16xf32>
      %1041 = arith.addf %1038, %1040 : vector<2x16xf32>
      %1042 = math.tanh %1041 : vector<2x16xf32>
      %cst_180 = arith.constant 1.000000e+00 : f32
      %1043 = vector.broadcast %cst_180 : f32 to vector<2x16xf32>
      %1044 = arith.subf %1043, %1037 : vector<2x16xf32>
      %1045 = arith.mulf %1044, %1042 : vector<2x16xf32>
      %1046 = arith.mulf %1037, %1022 : vector<2x16xf32>
      %1047 = arith.addf %1045, %1046 : vector<2x16xf32>
      %1048 = arith.truncf %1047 : vector<2x16xf32> to vector<2x16xbf16>
      %cst_181 = arith.constant dense<0.000000e+00> : vector<2x48xf32>
      %1049 = tpu.matmul %1048, %916, %cst_181 {dimension_numbers = #tpu.dot_dimension_numbers<[1], [0], [0], [1], [0, 0, 1, 1], [], []>} : vector<2x16xbf16>, vector<16x48xbf16>, vector<2x48xf32> -> vector<2x48xf32>
      %1050 = vector.broadcast %918 : vector<1x48xf32> to vector<2x48xf32>
      %1051 = arith.addf %1049, %1050 : vector<2x48xf32>
      %1052 = vector.extract_strided_slice %921 {offsets = [4, 0], sizes = [2, 48], strides = [1, 1]} : vector<16x48xf32> to vector<2x48xf32>
      %1053 = vector.extract_strided_slice %1052 {offsets = [0, 0], sizes = [2, 32], strides = [1, 1]} : vector<2x48xf32> to vector<2x32xf32>
      %1054 = vector.extract_strided_slice %1051 {offsets = [0, 0], sizes = [2, 32], strides = [1, 1]} : vector<2x48xf32> to vector<2x32xf32>
      %1055 = arith.addf %1053, %1054 : vector<2x32xf32>
      %1056 = arith.negf %1055 : vector<2x32xf32>
      %1057 = math.exp %1056 : vector<2x32xf32>
      %cst_182 = arith.constant 1.000000e+00 : f32
      %1058 = vector.broadcast %cst_182 : f32 to vector<2x32xf32>
      %1059 = arith.addf %1058, %1057 : vector<2x32xf32>
      %1060 = arith.divf %1058, %1059 : vector<2x32xf32>
      %1061 = vector.extract_strided_slice %1060 {offsets = [0, 0], sizes = [2, 16], strides = [1, 1]} : vector<2x32xf32> to vector<2x16xf32>
      %1062 = vector.extract_strided_slice %1060 {offsets = [0, 16], sizes = [2, 16], strides = [1, 1]} : vector<2x32xf32> to vector<2x16xf32>
      %1063 = vector.extract_strided_slice %1052 {offsets = [0, 32], sizes = [2, 16], strides = [1, 1]} : vector<2x48xf32> to vector<2x16xf32>
      %1064 = vector.extract_strided_slice %1051 {offsets = [0, 32], sizes = [2, 16], strides = [1, 1]} : vector<2x48xf32> to vector<2x16xf32>
      %1065 = arith.mulf %1061, %1064 : vector<2x16xf32>
      %1066 = arith.addf %1063, %1065 : vector<2x16xf32>
      %1067 = math.tanh %1066 : vector<2x16xf32>
      %cst_183 = arith.constant 1.000000e+00 : f32
      %1068 = vector.broadcast %cst_183 : f32 to vector<2x16xf32>
      %1069 = arith.subf %1068, %1062 : vector<2x16xf32>
      %1070 = arith.mulf %1069, %1067 : vector<2x16xf32>
      %1071 = arith.mulf %1062, %1047 : vector<2x16xf32>
      %1072 = arith.addf %1070, %1071 : vector<2x16xf32>
      %1073 = arith.truncf %1072 : vector<2x16xf32> to vector<2x16xbf16>
      %cst_184 = arith.constant dense<0.000000e+00> : vector<2x48xf32>
      %1074 = tpu.matmul %1073, %916, %cst_184 {dimension_numbers = #tpu.dot_dimension_numbers<[1], [0], [0], [1], [0, 0, 1, 1], [], []>} : vector<2x16xbf16>, vector<16x48xbf16>, vector<2x48xf32> -> vector<2x48xf32>
      %1075 = vector.broadcast %918 : vector<1x48xf32> to vector<2x48xf32>
      %1076 = arith.addf %1074, %1075 : vector<2x48xf32>
      %1077 = vector.extract_strided_slice %921 {offsets = [2, 0], sizes = [2, 48], strides = [1, 1]} : vector<16x48xf32> to vector<2x48xf32>
      %1078 = vector.extract_strided_slice %1077 {offsets = [0, 0], sizes = [2, 32], strides = [1, 1]} : vector<2x48xf32> to vector<2x32xf32>
      %1079 = vector.extract_strided_slice %1076 {offsets = [0, 0], sizes = [2, 32], strides = [1, 1]} : vector<2x48xf32> to vector<2x32xf32>
      %1080 = arith.addf %1078, %1079 : vector<2x32xf32>
      %1081 = arith.negf %1080 : vector<2x32xf32>
      %1082 = math.exp %1081 : vector<2x32xf32>
      %cst_185 = arith.constant 1.000000e+00 : f32
      %1083 = vector.broadcast %cst_185 : f32 to vector<2x32xf32>
      %1084 = arith.addf %1083, %1082 : vector<2x32xf32>
      %1085 = arith.divf %1083, %1084 : vector<2x32xf32>
      %1086 = vector.extract_strided_slice %1085 {offsets = [0, 0], sizes = [2, 16], strides = [1, 1]} : vector<2x32xf32> to vector<2x16xf32>
      %1087 = vector.extract_strided_slice %1085 {offsets = [0, 16], sizes = [2, 16], strides = [1, 1]} : vector<2x32xf32> to vector<2x16xf32>
      %1088 = vector.extract_strided_slice %1077 {offsets = [0, 32], sizes = [2, 16], strides = [1, 1]} : vector<2x48xf32> to vector<2x16xf32>
      %1089 = vector.extract_strided_slice %1076 {offsets = [0, 32], sizes = [2, 16], strides = [1, 1]} : vector<2x48xf32> to vector<2x16xf32>
      %1090 = arith.mulf %1086, %1089 : vector<2x16xf32>
      %1091 = arith.addf %1088, %1090 : vector<2x16xf32>
      %1092 = math.tanh %1091 : vector<2x16xf32>
      %cst_186 = arith.constant 1.000000e+00 : f32
      %1093 = vector.broadcast %cst_186 : f32 to vector<2x16xf32>
      %1094 = arith.subf %1093, %1087 : vector<2x16xf32>
      %1095 = arith.mulf %1094, %1092 : vector<2x16xf32>
      %1096 = arith.mulf %1087, %1072 : vector<2x16xf32>
      %1097 = arith.addf %1095, %1096 : vector<2x16xf32>
      %1098 = arith.truncf %1097 : vector<2x16xf32> to vector<2x16xbf16>
      %cst_187 = arith.constant dense<0.000000e+00> : vector<2x48xf32>
      %1099 = tpu.matmul %1098, %916, %cst_187 {dimension_numbers = #tpu.dot_dimension_numbers<[1], [0], [0], [1], [0, 0, 1, 1], [], []>} : vector<2x16xbf16>, vector<16x48xbf16>, vector<2x48xf32> -> vector<2x48xf32>
      %1100 = vector.broadcast %918 : vector<1x48xf32> to vector<2x48xf32>
      %1101 = arith.addf %1099, %1100 : vector<2x48xf32>
      %1102 = vector.extract_strided_slice %921 {offsets = [0, 0], sizes = [2, 48], strides = [1, 1]} : vector<16x48xf32> to vector<2x48xf32>
      %1103 = vector.extract_strided_slice %1102 {offsets = [0, 0], sizes = [2, 32], strides = [1, 1]} : vector<2x48xf32> to vector<2x32xf32>
      %1104 = vector.extract_strided_slice %1101 {offsets = [0, 0], sizes = [2, 32], strides = [1, 1]} : vector<2x48xf32> to vector<2x32xf32>
      %1105 = arith.addf %1103, %1104 : vector<2x32xf32>
      %1106 = arith.negf %1105 : vector<2x32xf32>
      %1107 = math.exp %1106 : vector<2x32xf32>
      %cst_188 = arith.constant 1.000000e+00 : f32
      %1108 = vector.broadcast %cst_188 : f32 to vector<2x32xf32>
      %1109 = arith.addf %1108, %1107 : vector<2x32xf32>
      %1110 = arith.divf %1108, %1109 : vector<2x32xf32>
      %1111 = vector.extract_strided_slice %1110 {offsets = [0, 0], sizes = [2, 16], strides = [1, 1]} : vector<2x32xf32> to vector<2x16xf32>
      %1112 = vector.extract_strided_slice %1110 {offsets = [0, 16], sizes = [2, 16], strides = [1, 1]} : vector<2x32xf32> to vector<2x16xf32>
      %1113 = vector.extract_strided_slice %1102 {offsets = [0, 32], sizes = [2, 16], strides = [1, 1]} : vector<2x48xf32> to vector<2x16xf32>
      %1114 = vector.extract_strided_slice %1101 {offsets = [0, 32], sizes = [2, 16], strides = [1, 1]} : vector<2x48xf32> to vector<2x16xf32>
      %1115 = arith.mulf %1111, %1114 : vector<2x16xf32>
      %1116 = arith.addf %1113, %1115 : vector<2x16xf32>
      %1117 = math.tanh %1116 : vector<2x16xf32>
      %cst_189 = arith.constant 1.000000e+00 : f32
      %1118 = vector.broadcast %cst_189 : f32 to vector<2x16xf32>
      %1119 = arith.subf %1118, %1112 : vector<2x16xf32>
      %1120 = arith.mulf %1119, %1117 : vector<2x16xf32>
      %1121 = arith.mulf %1112, %1097 : vector<2x16xf32>
      %1122 = arith.addf %1120, %1121 : vector<2x16xf32>
      %1123 = tpu.concatenate %1122, %1097, %1072, %1047, %1022, %997, %972, %947 in 0 : vector<2x16xf32>, vector<2x16xf32>, vector<2x16xf32>, vector<2x16xf32>, vector<2x16xf32>, vector<2x16xf32>, vector<2x16xf32>, vector<2x16xf32> -> vector<16x16xf32>
      %1124 = tpu.concatenate %914, %1123 in 1 : vector<16x16xf32>, vector<16x16xf32> -> vector<16x32xf32>
      %c208 = arith.constant 208 : index
      %c0_190 = arith.constant 0 : index
      %1125 = vector.load %arg3[%c208, %c0_190] : memref<256x48xbf16, #tpu.memory_space<vmem>>, vector<32x16xbf16>
      %c240 = arith.constant 240 : index
      %c0_191 = arith.constant 0 : index
      %1126 = vector.load %arg3[%c240, %c0_191] : memref<256x48xbf16, #tpu.memory_space<vmem>>, vector<16x1xbf16>
      %c8 = arith.constant 8 : index
      %c0_192 = arith.constant 0 : index
      %1127 = vector.load %arg4[%c8, %c0_192] : memref<16x48xf32, #tpu.memory_space<vmem>>, vector<1x16xf32>
      %c9 = arith.constant 9 : index
      %c0_193 = arith.constant 0 : index
      %1128 = vector.load %arg4[%c9, %c0_193] : memref<16x48xf32, #tpu.memory_space<vmem>>, vector<1x1xf32>
      %1129 = arith.truncf %1124 : vector<16x32xf32> to vector<16x32xbf16>
      %cst_194 = arith.constant dense<0.000000e+00> : vector<16x16xf32>
      %1130 = tpu.matmul %1129, %1125, %cst_194 {dimension_numbers = #tpu.dot_dimension_numbers<[1], [0], [0], [1], [0, 0, 1, 1], [], []>} : vector<16x32xbf16>, vector<32x16xbf16>, vector<16x16xf32> -> vector<16x16xf32>
      %1131 = vector.broadcast %1127 : vector<1x16xf32> to vector<16x16xf32>
      %1132 = arith.addf %1130, %1131 : vector<16x16xf32>
      %cst_195 = arith.constant 0.000000e+00 : f32
      %1133 = vector.broadcast %cst_195 : f32 to vector<16x16xf32>
      %1134 = arith.maximumf %1132, %1133 : vector<16x16xf32>
      %1135 = arith.truncf %1134 : vector<16x16xf32> to vector<16x16xbf16>
      %cst_196 = arith.constant dense<0.000000e+00> : vector<16x1xf32>
      %1136 = tpu.matmul %1135, %1126, %cst_196 {dimension_numbers = #tpu.dot_dimension_numbers<[1], [0], [0], [1], [0, 0, 1, 1], [], []>} : vector<16x16xbf16>, vector<16x1xbf16>, vector<16x1xf32> -> vector<16x1xf32>
      %1137 = vector.broadcast %1128 : vector<1x1xf32> to vector<16x1xf32>
      %1138 = arith.addf %1136, %1137 : vector<16x1xf32>
      %c0_197 = arith.constant 0 : index
      %c0_198 = arith.constant 0 : index
      %1139 = vector.load %arg10[%c0_197, %c0_198] : memref<16x1xf32, #tpu.memory_space<vmem>>, vector<16x1xf32>
      tpu.vector_store %arg10[%c0_197, %c0_198], %1138 {strides = array<i32>} : memref<16x1xf32, #tpu.memory_space<vmem>>, vector<16x1xf32>,
    } else {
    }
    return
  }
  func.func @transform_0(%arg0: i32) -> (i32, i32) {
    %c0_i32 = arith.constant 0 : i32
    %c0_i32_0 = arith.constant 0 : i32
    %c0_i32_1 = arith.constant 0 : i32
    return %c0_i32, %c0_i32_0 : i32, i32
  }
  func.func @transform_1(%arg0: i32) -> (i32, i32) {
    %c0_i32 = arith.constant 0 : i32
    %c0_i32_0 = arith.constant 0 : i32
    %c0_i32_1 = arith.constant 0 : i32
    return %c0_i32, %c0_i32_0 : i32, i32
  }
  func.func @transform_2(%arg0: i32) -> (i32, i32) {
    %c0_i32 = arith.constant 0 : i32
    %c0_i32_0 = arith.constant 0 : i32
    %c0_i32_1 = arith.constant 0 : i32
    return %c0_i32, %c0_i32_0 : i32, i32
  }
  func.func @transform_3(%arg0: i32) -> (i32, i32) {
    %c0_i32 = arith.constant 0 : i32
    %c0_i32_0 = arith.constant 0 : i32
    %c0_i32_1 = arith.constant 0 : i32
    return %c0_i32, %c0_i32_0 : i32, i32
  }
  func.func @transform_4(%arg0: i32) -> (i32, i32, i32) {
    %c0_i32 = arith.constant 0 : i32
    %c0_i32_0 = arith.constant 0 : i32
    %c0_i32_1 = arith.constant 0 : i32
    return %arg0, %c0_i32, %c0_i32_0 : i32, i32, i32
  }
  func.func @transform_5(%arg0: i32) -> (i32, i32, i32) {
    %c0_i32 = arith.constant 0 : i32
    %c0_i32_0 = arith.constant 0 : i32
    %c0_i32_1 = arith.constant 0 : i32
    return %arg0, %c0_i32, %c0_i32_0 : i32, i32, i32
  }
  func.func @transform_6(%arg0: i32) -> (i32, i32, i32) {
    %c0_i32 = arith.constant 0 : i32
    %c0_i32_0 = arith.constant 0 : i32
    %c0_i32_1 = arith.constant 0 : i32
    return %arg0, %c0_i32, %c0_i32_0 : i32, i32, i32
  }
  func.func @transform_7(%arg0: i32) -> (i32, i32, i32) {
    %c0_i32 = arith.constant 0 : i32
    %c0_i32_0 = arith.constant 0 : i32
    %c0_i32_1 = arith.constant 0 : i32
    return %arg0, %c0_i32, %c0_i32_0 : i32, i32, i32
  }
  func.func @transform_8(%arg0: i32) -> (i32, i32, i32) {
    %c0_i32 = arith.constant 0 : i32
    %c0_i32_0 = arith.constant 0 : i32
    %c0_i32_1 = arith.constant 0 : i32
    return %arg0, %c0_i32, %c0_i32_0 : i32, i32, i32
  }
  func.func @transform_9(%arg0: i32) -> (i32, i32) {
    %c0_i32 = arith.constant 0 : i32
    %c0_i32_0 = arith.constant 0 : i32
    %c0_i32_1 = arith.constant 0 : i32
    return %c0_i32, %c0_i32_0 : i32, i32
  }
}

</mosaic_0001>

<bundles_post_ra>
// kernel: sjnet_forward.1
= control target key start
LH: loop header
LB: loop body
LE: loop exit
PB: predicated region body
PF: predicated region fallthrough
CT: control target
= control target key end

     0   :  { %s8420_s30 = smov 0   ;;  %s9807_s0 = inlined_call_operand.vmem [shape: f32[16,16], index: 0, kind: input, shape index: {}]   ;;  %s9808_s1 = inlined_call_operand.vmem [shape: f32[16,32], index: 1, kind: input, shape index: {}]   ;;  %s9809_s2 = inlined_call_operand.vmem [shape: bf16[256,48], index: 2, kind: input, shape index: {}]   ;;  %s9810_s3 = inlined_call_operand.vmem [shape: f32[16,48], index: 3, kind: input, shape index: {}]   ;;  %s9811_s4 = inlined_call_operand.vmem [shape: bf16[4,32,128], index: 4, kind: input, shape index: {}]   ;;  %s9812_s5 = inlined_call_operand.vmem [shape: f32[4,8,128], index: 5, kind: input, shape index: {}]   ;;  %s9813_s6 = inlined_call_operand.vmem [shape: f32[4,1,2048], index: 6, kind: input, shape index: {}]   ;;  %s9814_s7 = inlined_call_operand.vmem [shape: bf16[4,32,2048], index: 7, kind: input, shape index: {}]   ;;  %s9815_s8 = inlined_call_operand.vmem [shape: bf16[4,2048,32], index: 8, kind: input, shape index: {}]   ;;  %s9816_s9 = inlined_call_operand.vmem [shape: f32[16,1], index: 9, kind: output, shape index: {}]  }
   0x1 LB: > { %s8426_s10 = sadd.s32 4294967295, %s8332_s30   ;;  %p6869_p0 = scmp.ge.s32.totalorder %s8332_s30, 1  ;;  %s8332_s30 = sphi %s8420_s30, %s19_s30  }
   0x2   : > { %p320_p1 = scmp.lt.s32.totalorder %s8332_s30, 5 }
   0x4   : > { %p321_p2 = pnand %p6869_p0, %p320_p1 }
   0x5   : > { %p369_p3 = scmp.lt.s32.totalorder (!%p321_p2), %s8426_s10, 3  ;;  %p6878_p4 = scmp.ne.s32.totalorder (!%p321_p2), %s8426_s10, 0 }
   0x6   : > { %324 = sbr.rel (%p321_p2) target bundleno = 23507 (0x5bd3), region = 56 }
   0xb   : > { %s370_s11 = scalar_select %p369_p3, %s8426_s10, 3 }
   0xd   : > { %s7163_s12 = sshll.u32 %s370_s11, 4  ;;  %s6872_s13 = sshll.u32 %s370_s11, 3 }
   0xe   : > { %s8435_s16 = scalar_lea.vmem %s9811_s4, %s7163_s12  ;;  %s8440_s19 = scalar_lea.vmem %s9812_s5, %s6872_s13 }
   0xf   : > { %s8445_s22 = scalar_lea.vmem %s9813_s6, %s7163_s12  ;;  %s7164_s23 = sshll.u32 %s370_s11, 8 }
  0x10   : > { %s8450_s26 = scalar_lea.vmem %s9814_s7, %s7164_s23  ;;  %s7165_s27 = sshll.u32 %s370_s11, 10 }
  0x11   : > { %s8455_s14 = scalar_lea.vmem %s9815_s8, %s7165_s27  ;;  %396 = sbr.rel (%p6878_p4) target bundleno = 227 (0xe3), region = 60 }
  0x16   : > { %v7863_v0 = vld [vmem:[%s9809_s2] sm:$0xff]   ;;  %v8334_v1 = vmov 0.0   ;;  %v400_v3 = vld [vmem:[%s9807_s0 + $0x8] sm:$0xff]  ;;  %vm8335_vm0 = vmmov 0   ;;  %vm410_vm1 = vcmask 130048   ;;  %vm455_vm2 = vcmask 261120  }
  0x17   : > { %7463 = vmatprep.subr.bf16.mxu0 %v8334_v1  ;;  %v399_v2 = vld [vmem:[%s9807_s0] sm:$0xff]  ;;  %7465 = vmatprep.mubr.msk.bf16.mxu0 %vm8335_vm0, %v8334_v1  ;;  %v403_v9 = vld [vmem:[%s9808_s1 + $0x8] sm:$0xff] }
  0x18   : > { %7464 = vmatpush3.bf16.msra.mxu0 %v7863_v0  ;;  %v401_v4 = vpack.c.bf16 %v400_v3, %v399_v2  ;;  %v402_v5 = vld [vmem:[%s9808_s1] sm:$0xff] }
  0x1b   : > { %7466 = vmatmul.mubr.msk.bf16.vlgmr.msra.gmra.mxu0 %vm410_vm1, %v401_v4 }
  0xdb   : > { %v448_v6 = vpop.f32.mrf.mxu0 }
  0xdc   : > { %v449_v7 = vadd.f32 %v448_v6, %v402_v5 }
  0xdd   : > { %v7467_v8 = vpop.f32.mrf.mxu0 }
  0xde   : > { %456 = vst.msk [vmem:[#allocation2] sm:$0xff] %vm455_vm2, %v449_v7 }
  0xdf   : > { %v451_v10 = vpop.f32.mrf.mxu0 }
  0xe0   : > { %v452_v11 = vadd.f32 %v451_v10, %v403_v9 }
  0xe1   : > { %v7468_v12 = vpop.f32.mrf.mxu0 }
  0xe2   : > { %457 = vst.msk [vmem:[#allocation2 + $0x8] sm:$0xff] %vm455_vm2, %v452_v11 }
  0xe3 PF: > { %v7899_v13 = vld [vmem:[%s8435_s16 + $0x8] sm:$0xff]   ;;  %v8336_v14 = vmov 0.0   ;;  %v7900_v15 = vld [vmem:[%s8435_s16] sm:$0xff]   ;;  %vm9820_vm3 = vmmov 0   ;;  %vm9818_vm4 = vcmask 261120   ;;  %v467_v19 = vlaneseq  ;;  %s8338_s25 = smov 96  }
  0xe4   : > { %7469 = vmatprep.subr.bf16.mxu0 %v8336_v14  ;;  %7477 = vmatprep.subr.bf16.mxu1 %v8336_v14  ;;  %v462_v22 = vld [vmem:[%s8440_s19] sm:$0xff]  ;;  %s8339_s27 = smov 124   ;;  %s8340_s28 = smov 120   ;;  %vm9817_vm5 = vcmask 1041408   ;;  %vm9819_vm6 = vcmask 31744  }
  0xe5   : > { %7470 = vmatpush3.bf16.msra.mxu0 %v7899_v13  ;;  %7473 = vmatprep.mubr.msk.bf16.mxu0 %vm9820_vm3, %v8336_v14  ;;  %v465_v16 = vld [vmem:[#allocation2] sm:$0xff]  ;;  %v8487_v20 = vshrl.u32 %v467_v19, 7  ;;  %s8341_s29 = smov 116   ;;  %s8342_s13 = smov 112   ;;  %v471_v62 = vand.u32 127, %v467_v19 }
  0xe6   : > { %7471 = vmatprep.subr.bf16.mxu0 %v8336_v14  ;;  %7479 = vmatprep.mubr.msk.bf16.mxu1 %vm9820_vm3, %v8336_v14  ;;  %s8343_s15 = smov 108   ;;  %s8344_s12 = smov 104   ;;  %v8348_v1 = vmov -1e+30  }
  0xe7   : > { %v8490_v21 = vsub.s32 0, %v8487_v20  ;;  %s8345_s17 = smov 100   ;;  %s8346_s18 = smov 60   ;;  %v469_v61 = vadd.s32 8, %v8487_v20  ;;  %v472_v0 = vsub.s32 %v8487_v20, %v471_v62 }
  0xe8   : > { %s8347_s11 = smov 64   ;;  %s8349_s20 = smov 52  }
  0xe9   : > { %v466_v17 = vld [vmem:[#allocation2 + $0x8] sm:$0xff]  ;;  %7472 = vmatpush3.bf16.msra.mxu0 %v7900_v15  ;;  %v8494_v23 = vrot.slane %v462_v22, %v8490_v21  ;;  %v473_v63 = vsub.s32 %v469_v61, %v471_v62  ;;  %vm474_vm13 = vcmp.eq.s32.totalorder %v472_v0, 4294967282  ;;  %vm476_vm14 = vcmp.eq.s32.totalorder %v472_v0, 4294967284  ;;  %s8350_s21 = smov 56   ;;  %s8351_s23 = smov 48  }
  0xea   : > { %v534_v18 = vpack.c.bf16 %v466_v17, %v465_v16  ;;  %7489 = vmatprep.subr.bf16.mxu0 %v8336_v14  ;;  %vm478_vm1 = vcmp.eq.s32.totalorder %v472_v0, 4294967286  ;;  %vm504_vm2 = vmor %vm474_vm13, %vm476_vm14  ;;  %vm484_vm13 = vcmp.eq.s32.totalorder %v472_v0, 4294967292  ;;  %s8352_s24 = smov 44   ;;  %p7069_p5 = scmp.ne.s32.totalorder %s8426_s10, 3 }
  0xeb   : > { %vm475_vm7 = vcmp.eq.s32.totalorder %v473_v63, 4294967282  ;;  %vm477_vm8 = vcmp.eq.s32.totalorder %v473_v63, 4294967284  ;;  %vm479_vm9 = vcmp.eq.s32.totalorder %v473_v63, 4294967286  ;;  %vm481_vm11 = vcmp.eq.s32.totalorder %v473_v63, 4294967288 }
  0xec   : > { %7474 = vmatmul.mubr.msk.bf16.vlgmr.msra.gmra.mxu0 %vm9818_vm4, %v534_v18  ;;  %vm505_vm10 = vmor %vm475_vm7, %vm477_vm8  ;;  %vm483_vm15 = vcmp.eq.s32.totalorder %v473_v63, 4294967290  ;;  %vm487_vm7 = vcmp.eq.s32.totalorder %v473_v63, 4294967294 }
  0xed   : > { %7491 = vmatprep.mubr.msk.bf16.mxu0 %vm9820_vm3, %v8336_v14  ;;  %vm507_vm12 = vmor %vm505_vm10, %vm479_vm9  ;;  %vm482_vm9 = vcmp.eq.s32.totalorder %v472_v0, 4294967290 }
  0xee   : > { %vm509_vm0 = vmor %vm507_vm12, %vm481_vm11  ;;  %vm489_vm11 = vcmp.eq.s32.totalorder %v473_v63, 0 }
  0xef   : > { %vm511_vm4 = vmor %vm509_vm0, %vm483_vm15  ;;  %vm491_vm0 = vcmp.eq.s32.totalorder %v473_v63, 2 }
 0x1ac   : > { %v589_v24 = vpop.f32.mrf.mxu0 }
 0x1ad   : > { %v590_v25 = vadd.f32 %v589_v24, %v8494_v23 }
 0x1ae   : > { %v7475_v26 = vpop.f32.mrf.mxu0 }
 0x1af   : > { %599 = vrot.lane.b32.xlu0 %v590_v25, %s8338_s25 }
 0x1b0   : > { %v592_v27 = vpop.f32.mrf.mxu0 }
 0x1b1   : > { %v593_v28 = vadd.f32 %v592_v27, %v8494_v23 }
 0x1b2   : > { %v7476_v29 = vpop.f32.mrf.mxu0 }
 0x1b3   : > { %v8499_v30 = vpack.c.bf16 %v593_v28, %v590_v25  ;;  %601 = vrot.lane.b32.xlu0 %v593_v28, %s8338_s25 }
 0x1b5   : > { %760 = vrot.lane.b32.xlu1 %v8499_v30, %s8339_s27  ;;  %s8353_s27 = smov 40  }
 0x1b9   : > { %881 = vrot.lane.b32.xlu1 %v8499_v30, %s8340_s28  ;;  %s8354_s28 = smov 36  }
 0x1bd   : > { %1001 = vrot.lane.b32.xlu1 %v8499_v30, %s8341_s29  ;;  %s8355_s29 = smov 32  }
 0x1c1   : > { %1121 = vrot.lane.b32.xlu1 %v8499_v30, %s8342_s13  ;;  %s8356_s13 = smov 4  }
 0x1c5   : > { %1240 = vrot.lane.b32.xlu1 %v8499_v30, %s8343_s15  ;;  %s8357_s15 = smov 8  }
 0x1c9   : > { %1361 = vrot.lane.b32.xlu1 %v8499_v30, %s8344_s12  ;;  %s8358_s12 = smov 12  }
 0x1cd   : > { %1481 = vrot.lane.b32.xlu1 %v8499_v30, %s8345_s17  ;;  %s8359_s17 = smov 16  }
 0x1d1   : > { %834 = vrot.lane.b32.xlu1 %v8499_v30, %s8346_s18  ;;  %s8360_s18 = smov 20  }
 0x221   : > { %v600_v31 = vpop.permute.xlu0 %599 }
 0x222   : > { %605 = vxpose.xlu0.b32.start [1/2] (short) (narrow) %v600_v31, 32 }
 0x225   : > { %v602_v32 = vpop.permute.xlu0 %601 }
 0x226   : > { %606 = vxpose.xlu0.b32.end [2/2] (short) (narrow) %v602_v32, 32 }
 0x227   : > { %v761_v40 = vpop.permute.xlu1 %760 }
 0x22b   : > { %v882_v44 = vpop.permute.xlu1 %881 }
 0x22f   : > { %v1002_v49 = vpop.permute.xlu1 %1001 }
 0x233   : > { %v1122_v52 = vpop.permute.xlu1 %1121 }
 0x237   : > { %v1241_v56 = vpop.permute.xlu1 %1240 }
 0x23b   : > { %v1362_v59 = vpop.permute.xlu1 %1361 }
 0x23f   : > { %v1482_v60 = vpop.permute.xlu1 %1481 }
 0x257   : > { %713 = vrot.lane.b32.xlu0 %v8499_v30, %s8347_s11 }
 0x29e   : > { %v621_v33 = vpop.trf.xlu0 }
 0x2a2   : > { %v622_v34 = vpop.trf.xlu0 }
 0x2a3   : > { %v637_v35 = vpack.c.bf16 %v622_v34, %v621_v33 }
 0x2a5   : > { %v645_v36 = vsel %vm9817_vm5, %v637_v35, 0  ;;  %v763_v37 = vrot.slane %v637_v35, 2  ;;  %v883_v39 = vrot.slane %v637_v35, 4  ;;  %v1003_v43 = vrot.slane %v637_v35, 6 }
 0x2a6   : > { %7478 = vmatpush3.bf16.msra.mxu1 %v645_v36  ;;  %v623_v42 = vpop.trf.xlu0 }
 0x2a7   : > { %v768_v38 = vsel %vm9817_vm5, %v763_v37, 0  ;;  %7483 = vmatprep.subr.bf16.mxu1 %v8336_v14  ;;  %v888_v41 = vsel %vm9817_vm5, %v883_v39, 0  ;;  %v1008_v46 = vsel %vm9817_vm5, %v1003_v43, 0 }
 0x2a8   : > { %7490 = vmatpush3.bf16.msra.mxu0 %v768_v38 }
 0x2a9   : > { %7480 = vmatmul.mubr.msk.bf16.vlgmr.msra.gmra.mxu1 %vm9819_vm6, %v8499_v30  ;;  %7501 = vmatprep.subr.bf16.mxu0 %v8336_v14 }
 0x2aa   : > { %7485 = vmatprep.mubr.msk.bf16.mxu1 %vm9820_vm3, %v8336_v14  ;;  %v624_v45 = vpop.trf.xlu0 }
 0x2ab   : > { %7492 = vmatmul.mubr.msk.bf16.vlgmr.msra.gmra.mxu0 %vm9819_vm6, %v761_v40  ;;  %v638_v47 = vpack.c.bf16 %v624_v45, %v623_v42 }
 0x2ac   : > { %7502 = vmatpush3.bf16.msra.mxu0 %v888_v41  ;;  %7503 = vmatprep.mubr.msk.bf16.mxu0 %vm9820_vm3, %v8336_v14 }
 0x2ad   : > { %7513 = vmatprep.subr.bf16.mxu0 %v8336_v14  ;;  %v1127_v48 = vsel %vm9817_vm5, %v638_v47, 0  ;;  %v1243_v50 = vrot.slane %v638_v47, 2  ;;  %v1363_v53 = vrot.slane %v638_v47, 4  ;;  %v1483_v57 = vrot.slane %v638_v47, 6 }
 0x2af   : > { %v1248_v51 = vsel %vm9817_vm5, %v1243_v50, 0  ;;  %v1368_v55 = vsel %vm9817_vm5, %v1363_v53, 0  ;;  %v1488_v58 = vsel %vm9817_vm5, %v1483_v57, 0  ;;  %vm485_vm5 = vcmp.eq.s32.totalorder %v473_v63, 4294967292 }
 0x2b0   : > { %vm513_vm8 = vmor %vm511_vm4, %vm485_vm5  ;;  %vm493_vm4 = vcmp.eq.s32.totalorder %v473_v63, 4 }
 0x2b1   : > { %vm515_vm12 = vmor %vm513_vm8, %vm487_vm7  ;;  %vm495_vm7 = vcmp.eq.s32.totalorder %v473_v63, 6 }
 0x2b2   : > { %vm517_vm15 = vmor %vm515_vm12, %vm489_vm11  ;;  %vm497_vm11 = vcmp.eq.s32.totalorder %v473_v63, 8 }
 0x2b3   : > { %7504 = vmatmul.mubr.msk.bf16.vlgmr.msra.gmra.mxu0 %vm9819_vm6, %v882_v44  ;;  %vm519_vm5 = vmor %vm517_vm15, %vm491_vm0  ;;  %vm499_vm0 = vcmp.eq.s32.totalorder %v473_v63, 10 }
 0x2b4   : > { %7514 = vmatpush3.bf16.msra.mxu0 %v1008_v46  ;;  %7515 = vmatprep.mubr.msk.bf16.mxu0 %vm9820_vm3, %v8336_v14  ;;  %vm521_vm8 = vmor %vm519_vm5, %vm493_vm4  ;;  %vm501_vm4 = vcmp.eq.s32.totalorder %v473_v63, 12 }
 0x2b5   : > { %7525 = vmatprep.subr.bf16.mxu0 %v8336_v14  ;;  %vm523_vm12 = vmor %vm521_vm8, %vm495_vm7 }
 0x2b6   : > { %vm525_vm15 = vmor %vm523_vm12, %vm497_vm11  ;;  %vm1659_vm11 = vcmask 64512   ;;  %vm1662_vm12 = vcmask 97280  }
 0x2b7   : > { %vm527_vm5 = vmor %vm525_vm15, %vm499_vm0  ;;  %vm1670_vm15 = vcmask 195584  }
 0x2b8   : > { %vm529_vm7 = vmor %vm527_vm5, %vm501_vm4 }
 0x2bb   : > { %7516 = vmatmul.mubr.msk.bf16.vlgmr.msra.gmra.mxu0 %vm9819_vm6, %v1002_v49 }
 0x2bc   : > { %7526 = vmatpush3.bf16.msra.mxu0 %v1127_v48  ;;  %7527 = vmatprep.mubr.msk.bf16.mxu0 %vm9820_vm3, %v8336_v14 }
 0x2bd   : > { %7537 = vmatprep.subr.bf16.mxu0 %v8336_v14 }
 0x2c3   : > { %7528 = vmatmul.mubr.msk.bf16.vlgmr.msra.gmra.mxu0 %vm9819_vm6, %v1122_v52 }
 0x2c4   : > { %7538 = vmatpush3.bf16.msra.mxu0 %v1248_v51  ;;  %7539 = vmatprep.mubr.msk.bf16.mxu0 %vm9820_vm3, %v8336_v14 }
 0x2c5   : > { %7549 = vmatprep.subr.bf16.mxu0 %v8336_v14 }
 0x2c9   : > { %v714_v54 = vpop.permute.xlu0 %713 }
 0x2ca   : > { %7484 = vmatpush3.bf16.msra.mxu1 %v714_v54 }
 0x2cb   : > { %7540 = vmatmul.mubr.msk.bf16.vlgmr.msra.gmra.mxu0 %vm9819_vm6, %v1241_v56  ;;  %7495 = vmatprep.subr.bf16.mxu1 %v8336_v14 }
 0x2cc   : > { %7550 = vmatpush3.bf16.msra.mxu0 %v1368_v55  ;;  %7551 = vmatprep.mubr.msk.bf16.mxu0 %vm9820_vm3, %v8336_v14 }
 0x2cd   : > { %7561 = vmatprep.subr.bf16.mxu0 %v8336_v14 }
 0x2d3   : > { %7552 = vmatmul.mubr.msk.bf16.vlgmr.msra.gmra.mxu0 %vm9819_vm6, %v1362_v59 }
 0x2d4   : > { %7562 = vmatpush3.bf16.msra.mxu0 %v1488_v58  ;;  %7563 = vmatprep.mubr.msk.bf16.mxu0 %vm9820_vm3, %v8336_v14 }
 0x2d5   : > { %7573 = vmatprep.subr.bf16.mxu0 %v8336_v14 }
 0x2db   : > { %7564 = vmatmul.mubr.msk.bf16.vlgmr.msra.gmra.mxu0 %vm9819_vm6, %v1482_v60  ;;  %vm480_vm6 = vcmp.eq.s32.totalorder %v472_v0, 4294967288 }
 0x2dc   : > { %7577 = vmatprep.mubr.msk.bf16.mxu0 %vm9820_vm3, %v8336_v14  ;;  %vm506_vm3 = vmor %vm504_vm2, %vm478_vm1  ;;  %vm486_vm1 = vcmp.eq.s32.totalorder %v472_v0, 4294967294 }
 0x2dd   : > { %vm508_vm10 = vmor %vm506_vm3, %vm480_vm6  ;;  %vm488_vm3 = vcmp.eq.s32.totalorder %v472_v0, 0 }
 0x2de   : > { %vm510_vm14 = vmor %vm508_vm10, %vm482_vm9  ;;  %vm490_vm9 = vcmp.eq.s32.totalorder %v472_v0, 2 }
 0x2df   : > { %vm512_vm2 = vmor %vm510_vm14, %vm484_vm13  ;;  %vm492_vm13 = vcmp.eq.s32.totalorder %v472_v0, 4 }
 0x2e0   : > { %vm514_vm6 = vmor %vm512_vm2, %vm486_vm1  ;;  %vm494_vm1 = vcmp.eq.s32.totalorder %v472_v0, 6 }
 0x2e1   : > { %vm516_vm10 = vmor %vm514_vm6, %vm488_vm3  ;;  %vm503_vm6 = vcmp.eq.s32.totalorder %v473_v63, 14 }
 0x2e2   : > { %vm518_vm14 = vmor %vm516_vm10, %vm490_vm9  ;;  %vm688_vm9 = vcmask 130048   ;;  %vm9822_vm10 = vmmov 0  }
 0x2e3   : > { %vm520_vm2 = vmor %vm518_vm14, %vm492_vm13  ;;  %vm1667_vm13 = vcmask 162816   ;;  %vm9823_vm14 = vcmask 31744  }
 0x2e4   : > { %vm522_vm3 = vmor %vm520_vm2, %vm494_vm1  ;;  %vm1673_vm1 = vcmask 228352   ;;  %vm9825_vm2 = vcmask 261120  }
 0x2e5   : > { %v8557_v2 = vsel %vm522_vm3, 0.0, %v8348_v1  ;;  %vm531_vm8 = vmor %vm529_vm7, %vm503_vm6 }
 0x2e6   : > { %v8562_v7 = vsel %vm531_vm8, 0.0, %v8348_v1  ;;  %vm9824_vm0 = vmmov %vm9823_vm14 }
 0x2e7   : > { %vm9826_vm4 = vmmov %vm9825_vm2 }
 0x2e8   : > { %vm9827_vm5 = vmmov %vm9825_vm2 }
 0x2e9   : > { %vm9828_vm3 = vmmov %vm9825_vm2 }
 0x2ea   : > { %vm9829_vm6 = vmmov %vm9825_vm2 }
 0x2eb   : > { %vm9830_vm7 = vmmov %vm9825_vm2 }
 0x2ec   : > { %vm9831_vm8 = vmmov %vm9825_vm2 }
 0x369   : > { %v681_v3 = vpop.f32.mrf.mxu1 }
 0x36a   : > { %v8560_v4 = vadd.f32 %v681_v3, %v8557_v2 }
 0x36b   : > { %v7481_v5 = vpop.f32.mrf.mxu1  ;;  %v804_v6 = vpop.f32.mrf.mxu0 }
 0x36c   : > { %v8565_v8 = vadd.f32 %v804_v6, %v8557_v2  ;;  %v689_v9 = vsel %vm688_vm9, %v8560_v4, -inf }
 0x36d   : > { %690 = vmax.xlane.f32.xlu1 %v689_v9  ;;  %v684_v10 = vpop.f32.mrf.mxu1  ;;  %v7493_v11 = vpop.f32.mrf.mxu0 }
 0x36e   : > { %v8570_v12 = vadd.f32 %v684_v10, %v8562_v7  ;;  %v811_v18 = vsel %vm688_vm9, %v8565_v8, -inf }
 0x36f   : > { %v7482_v13 = vpop.f32.mrf.mxu1  ;;  %v807_v15 = vpop.f32.mrf.mxu0 }
 0x370   : > { %v8573_v16 = vadd.f32 %v807_v15, %v8562_v7  ;;  %v692_v17 = vsel %vm688_vm9, %v8570_v12, -inf }
 0x371   : > { %693 = vmax.xlane.f32.xlu0 %v692_v17  ;;  %812 = vmax.xlane.f32.xlu1 %v811_v18  ;;  %v7494_v19 = vpop.f32.mrf.mxu0 }
 0x372   : > { %v814_v25 = vsel %vm688_vm9, %v8573_v16, -inf }
 0x373   : > { %v924_v22 = vpop.f32.mrf.mxu0 }
 0x374   : > { %v8580_v24 = vadd.f32 %v924_v22, %v8557_v2 }
 0x375   : > { %815 = vmax.xlane.f32.xlu1 %v814_v25  ;;  %v7505_v26 = vpop.f32.mrf.mxu0 }
 0x376   : > { %v931_v29 = vsel %vm688_vm9, %v8580_v24, -inf }
 0x377   : > { %v927_v27 = vpop.f32.mrf.mxu0 }
 0x378   : > { %v8585_v28 = vadd.f32 %v927_v27, %v8562_v7 }
 0x379   : > { %932 = vmax.xlane.f32.xlu1 %v931_v29  ;;  %v7506_v31 = vpop.f32.mrf.mxu0 }
 0x37a   : > { %v934_v34 = vsel %vm688_vm9, %v8585_v28, -inf }
 0x37b   : > { %v1044_v32 = vpop.f32.mrf.mxu0 }
 0x37c   : > { %v8590_v33 = vadd.f32 %v1044_v32, %v8557_v2 }
 0x37d   : > { %935 = vmax.xlane.f32.xlu1 %v934_v34  ;;  %v7517_v35 = vpop.f32.mrf.mxu0 }
 0x37e   : > { %v1051_v38 = vsel %vm688_vm9, %v8590_v33, -inf }
 0x37f   : > { %v1047_v36 = vpop.f32.mrf.mxu0 }
 0x380   : > { %v8595_v37 = vadd.f32 %v1047_v36, %v8562_v7 }
 0x381   : > { %1052 = vmax.xlane.f32.xlu1 %v1051_v38  ;;  %v7518_v39 = vpop.f32.mrf.mxu0 }
 0x382   : > { %v1054_v42 = vsel %vm688_vm9, %v8595_v37, -inf }
 0x383   : > { %v1163_v40 = vpop.f32.mrf.mxu0 }
 0x384   : > { %v8600_v41 = vadd.f32 %v1163_v40, %v8557_v2 }
 0x385   : > { %1055 = vmax.xlane.f32.xlu1 %v1054_v42  ;;  %v7529_v43 = vpop.f32.mrf.mxu0 }
 0x386   : > { %v1170_v46 = vsel %vm688_vm9, %v8600_v41, -inf }
 0x387   : > { %v1166_v44 = vpop.f32.mrf.mxu0 }
 0x388   : > { %v8605_v45 = vadd.f32 %v1166_v44, %v8562_v7 }
 0x389   : > { %1171 = vmax.xlane.f32.xlu1 %v1170_v46  ;;  %v7530_v47 = vpop.f32.mrf.mxu0 }
 0x38a   : > { %v1173_v50 = vsel %vm688_vm9, %v8605_v45, -inf }
 0x38b   : > { %v1284_v48 = vpop.f32.mrf.mxu0 }
 0x38c   : > { %v8610_v49 = vadd.f32 %v1284_v48, %v8557_v2 }
 0x38d   : > { %1174 = vmax.xlane.f32.xlu1 %v1173_v50  ;;  %v7541_v51 = vpop.f32.mrf.mxu0 }
 0x38e   : > { %v1291_v52 = vsel %vm688_vm9, %v8610_v49, -inf }
 0x38f   : > { %1292 = vmax.xlane.f32.xlu0 %v1291_v52  ;;  %v1287_v53 = vpop.f32.mrf.mxu0 }
 0x390   : > { %v8617_v54 = vadd.f32 %v1287_v53, %v8562_v7 }
 0x391   : > { %v7542_v55 = vpop.f32.mrf.mxu0 }
 0x392   : > { %v1294_v56 = vsel %vm688_vm9, %v8617_v54, -inf }
 0x393   : > { %1295 = vmax.xlane.f32.xlu1 %v1294_v56  ;;  %v1404_v57 = vpop.f32.mrf.mxu0 }
 0x394   : > { %v8622_v58 = vadd.f32 %v1404_v57, %v8557_v2 }
 0x395   : > { %v7553_v59 = vpop.f32.mrf.mxu0 }
 0x396   : > { %v1411_v60 = vsel %vm688_vm9, %v8622_v58, -inf }
 0x397   : > { %1412 = vmax.xlane.f32.xlu0 %v1411_v60  ;;  %v1407_v61 = vpop.f32.mrf.mxu0 }
 0x398   : > { %v8627_v62 = vadd.f32 %v1407_v61, %v8562_v7 }
 0x399   : > { %v7554_v63 = vpop.f32.mrf.mxu0 }
 0x39a   : > { %v1414_v0 = vsel %vm688_vm9, %v8627_v62, -inf }
 0x39b   : > { %1415 = vmax.xlane.f32.xlu1 %v1414_v0  ;;  %v1524_v1 = vpop.f32.mrf.mxu0 }
 0x39c   : > { %v8632_v3 = vadd.f32 %v1524_v1, %v8557_v2  ;;  %v8643_v2 = vpop.permute.xlu1 %834 }
 0x39d   : > { %v7565_v5 = vpop.f32.mrf.mxu0 }
 0x39e   : > { %v1531_v6 = vsel %vm688_vm9, %v8632_v3, -inf }
 0x39f   : > { %1532 = vmax.xlane.f32.xlu0 %v1531_v6  ;;  %v1527_v9 = vpop.f32.mrf.mxu0 }
 0x3a0   : > { %v8637_v10 = vadd.f32 %v1527_v9, %v8562_v7 }
 0x3a1   : > { %v7566_v11 = vpop.f32.mrf.mxu0 }
 0x3a2   : > { %v1534_v13 = vsel %vm688_vm9, %v8637_v10, -inf }
 0x3a3   : > { %1535 = vmax.xlane.f32.xlu1 %v1534_v13 }
 0x3b4   : > { %1074 = vrot.lane.b32.xlu1 %v8499_v30, %s8349_s20  ;;  %s8361_s20 = smov 24  }
 0x3b5   : > { %954 = vrot.lane.b32.xlu0 %v8499_v30, %s8350_s21  ;;  %s8362_s21 = smov 28  }
 0x3f6   : > { %v691_v15 = vpop.xlane.xlu1 %690 }
 0x3f7   : > { %v695_v17 = vsub.f32 %v8560_v4, %v691_v15 }
 0x3f9   : > { %v697_v18 = vmul.f32 1.442695, %v695_v17 }
 0x3fa   : > { %v694_v19 = vpop.xlane.xlu0 %693  ;;  %v813_v7 = vpop.xlane.xlu1 %812 }
 0x3fb   : > { %8029 = vpow2.f32 %v697_v18  ;;  %v696_v22 = vsub.f32 %v8570_v12, %v694_v19  ;;  %v817_v25 = vsub.f32 %v8565_v8, %v813_v7 }
 0x3fd   : > { %v699_v26 = vmul.f32 1.442695, %v696_v22  ;;  %v819_v27 = vmul.f32 1.442695, %v817_v25 }
 0x3fe   : > { %v816_v29 = vpop.xlane.xlu1 %815 }
 0x3ff   : > { %8031 = vpow2.f32 %v699_v26  ;;  %v818_v31 = vsub.f32 %v8573_v16, %v816_v29 }
 0x400   : > { %8033 = vpow2.f32 %v819_v27 }
 0x401   : > { %v821_v32 = vmul.f32 1.442695, %v818_v31 }
 0x402   : > { %v933_v34 = vpop.xlane.xlu1 %932 }
 0x403   : > { %8035 = vpow2.f32 %v821_v32  ;;  %v937_v4 = vsub.f32 %v8580_v24, %v933_v34 }
 0x405   : > { %v939_v35 = vmul.f32 1.442695, %v937_v4 }
 0x406   : > { %v936_v36 = vpop.xlane.xlu1 %935 }
 0x407   : > { %8037 = vpow2.f32 %v939_v35  ;;  %v938_v38 = vsub.f32 %v8585_v28, %v936_v36 }
 0x408   : > { %v8651_v12 = vpop.eup %8029 }
 0x409   : > { %v941_v8 = vmul.f32 1.442695, %v938_v38  ;;  %v701_v39 = vsel %vm688_vm9, %v8651_v12, 0.0 }
 0x40a   : > { %v1053_v40 = vpop.xlane.xlu1 %1052  ;;  %702 = vadd.xlane.f32.xlu0 %v701_v39 }
 0x40b   : > { %8039 = vpow2.f32 %v941_v8  ;;  %v1057_v16 = vsub.f32 %v8590_v33, %v1053_v40 }
 0x40c   : > { %v8656_v42 = vpop.eup %8031 }
 0x40d   : > { %v8658_v43 = vpop.eup %8033  ;;  %v1059_v24 = vmul.f32 1.442695, %v1057_v16  ;;  %v704_v44 = vsel %vm688_vm9, %v8656_v42, 0.0 }
 0x40e   : > { %v1056_v28 = vpop.xlane.xlu1 %1055  ;;  %v823_v46 = vsel %vm688_vm9, %v8658_v43, 0.0  ;;  %705 = vadd.xlane.f32.xlu1 %v704_v44 }
 0x40f   : > { %8041 = vpow2.f32 %v1059_v24  ;;  %v1058_v47 = vsub.f32 %v8595_v37, %v1056_v28  ;;  %824 = vadd.xlane.f32.xlu0 %v823_v46 }
 0x410   : > { %v8665_v48 = vpop.eup %8035 }
 0x411   : > { %v1061_v33 = vmul.f32 1.442695, %v1058_v47  ;;  %v826_v50 = vsel %vm688_vm9, %v8665_v48, 0.0 }
 0x412   : > { %v1172_v51 = vpop.xlane.xlu1 %1171  ;;  %827 = vadd.xlane.f32.xlu1 %v826_v50 }
 0x413   : > { %8043 = vpow2.f32 %v1061_v33  ;;  %v1176_v52 = vsub.f32 %v8600_v41, %v1172_v51 }
 0x414   : > { %v8670_v53 = vpop.eup %8037 }
 0x415   : > { %v1178_v55 = vmul.f32 1.442695, %v1176_v52  ;;  %v943_v56 = vsel %vm688_vm9, %v8670_v53, 0.0 }
 0x416   : > { %v1175_v57 = vpop.xlane.xlu1 %1174  ;;  %944 = vadd.xlane.f32.xlu0 %v943_v56 }
 0x417   : > { %8045 = vpow2.f32 %v1178_v55  ;;  %v1177_v37 = vsub.f32 %v8605_v45, %v1175_v57 }
 0x418   : > { %v8675_v59 = vpop.eup %8039  ;;  %v1293_v63 = vpop.xlane.xlu0 %1292 }
 0x419   : > { %v1180_v60 = vmul.f32 1.442695, %v1177_v37  ;;  %v946_v61 = vsel %vm688_vm9, %v8675_v59, 0.0  ;;  %v1297_v4 = vsub.f32 %v8610_v49, %v1293_v63 }
 0x41a   : > { %947 = vadd.xlane.f32.xlu1 %v946_v61 }
 0x41b   : > { %8047 = vpow2.f32 %v1180_v60  ;;  %v1299_v38 = vmul.f32 1.442695, %v1297_v4 }
 0x41c   : > { %v8679_v41 = vpop.eup %8041  ;;  %v1296_v0 = vpop.xlane.xlu1 %1295 }
 0x41d   : > { %v1298_v1 = vsub.f32 %v8617_v54, %v1296_v0  ;;  %v1063_v5 = vsel %vm688_vm9, %v8679_v41, 0.0 }
 0x41e   : > { %1064 = vadd.xlane.f32.xlu0 %v1063_v5 }
 0x41f   : > { %v1301_v6 = vmul.f32 1.442695, %v1298_v1 }
 0x420   : > { %v8684_v45 = vpop.eup %8043  ;;  %v1413_v9 = vpop.xlane.xlu0 %1412 }
 0x421   : > { %8049 = vpow2.f32 %v1301_v6  ;;  %v1417_v11 = vsub.f32 %v8622_v58, %v1413_v9  ;;  %v1066_v13 = vsel %vm688_vm9, %v8684_v45, 0.0 }
 0x422   : > { %1067 = vadd.xlane.f32.xlu1 %v1066_v13 }
 0x423   : > { %v1419_v15 = vmul.f32 1.442695, %v1417_v11 }
 0x424   : > { %v8689_v17 = vpop.eup %8045  ;;  %v1416_v18 = vpop.xlane.xlu1 %1415 }
 0x425   : > { %8051 = vpow2.f32 %v1419_v15  ;;  %v1418_v54 = vsub.f32 %v8627_v62, %v1416_v18  ;;  %v1182_v19 = vsel %vm688_vm9, %v8689_v17, 0.0 }
 0x426   : > { %1183 = vadd.xlane.f32.xlu1 %v1182_v19 }
 0x427   : > { %v1421_v7 = vmul.f32 1.442695, %v1418_v54 }
 0x428   : > { %v8694_v22 = vpop.eup %8047  ;;  %v1533_v35 = vpop.xlane.xlu0 %1532 }
 0x429   : > { %8053 = vpow2.f32 %v1421_v7  ;;  %v1185_v58 = vsel %vm688_vm9, %v8694_v22, 0.0  ;;  %v1537_v8 = vsub.f32 %v8632_v3, %v1533_v35 }
 0x42a   : > { %1186 = vadd.xlane.f32.xlu1 %v1185_v58 }
 0x42b   : > { %v1539_v40 = vmul.f32 1.442695, %v1537_v8 }
 0x42c   : > { %v1536_v25 = vpop.xlane.xlu1 %1535  ;;  %v955_v44 = vpop.permute.xlu0 %954 }
 0x42d   : > { %v1538_v26 = vsub.f32 %v8637_v10, %v1536_v25 }
 0x42e   : > { %v8699_v27 = vpop.eup %8049 }
 0x42f   : > { %v1541_v29 = vmul.f32 1.442695, %v1538_v26  ;;  %v1306_v62 = vsel %vm688_vm9, %v8699_v27, 0.0 }
 0x430   : > { %1307 = vadd.xlane.f32.xlu1 %v1306_v62  ;;  %v1075_v28 = vpop.permute.xlu1 %1074 }
 0x431   : > { %8055 = vpow2.f32 %v1541_v29 }
 0x432   : > { %v8703_v31 = vpop.eup %8051  ;;  %8057 = vpow2.f32 %v1299_v38 }
 0x433   : > { %v1423_v32 = vsel %vm688_vm9, %v8703_v31, 0.0  ;;  %8059 = vpow2.f32 %v1539_v40 }
 0x434   : > { %1193 = vrot.lane.b32.xlu0 %v8499_v30, %s8351_s23  ;;  %1424 = vadd.xlane.f32.xlu1 %v1423_v32  ;;  %s8367_s23 = smov (!%p7069_p5), 96  }
 0x436   : > { %v8708_v34 = vpop.eup %8053 }
 0x437   : > { %v1426_v10 = vsel %vm688_vm9, %v8708_v34, 0.0 }
 0x438   : > { %1427 = vadd.xlane.f32.xlu1 %v1426_v10 }
 0x43e   : > { %v8713_v36 = vpop.eup %8055 }
 0x43f   : > { %v1546_v39 = vsel %vm688_vm9, %v8713_v36, 0.0  ;;  %v8718_v16 = vpop.eup %8057 }
 0x440   : > { %1547 = vadd.xlane.f32.xlu1 %v1546_v39  ;;  %v1303_v49 = vsel %vm688_vm9, %v8718_v16, 0.0  ;;  %v8723_v24 = vpop.eup %8059 }
 0x441   : > { %v1543_v3 = vsel %vm688_vm9, %v8723_v24, 0.0 }
 0x451   : > { %1314 = vrot.lane.b32.xlu1 %v8499_v30, %s8352_s24 }
 0x453   : > { %1304 = vadd.xlane.f32.xlu0 %v1303_v49 }
 0x457   : > { %1544 = vadd.xlane.f32.xlu0 %v1543_v3 }
 0x46d   : > { %1434 = vrot.lane.b32.xlu0 %v8499_v30, %s8353_s27 }
 0x471   : > { %1554 = vrot.lane.b32.xlu0 %v8499_v30, %s8354_s28  ;;  %s8368_s28 = smov (!%p7069_p5), 32  }
 0x493   : > { %v703_v46 = vpop.xlane.xlu0 %702 }
 0x494   : > { %8061 = vrcp.f32 %v703_v46 }
 0x497   : > { %v706_v47 = vpop.xlane.xlu1 %705 }
 0x498   : > { %8063 = vrcp.f32 %v706_v47  ;;  %v825_v33 = vpop.xlane.xlu0 %824 }
 0x49b   : > { %v828_v50 = vpop.xlane.xlu1 %827 }
 0x49c   : > { %8065 = vrcp.f32 %v828_v50 }
 0x49d   : > { %8067 = vrcp.f32 %v825_v33 }
 0x49f   : > { %v945_v52 = vpop.xlane.xlu0 %944 }
 0x4a1   : > { %v8062_v51 = vpop.eup %8061 }
 0x4a2   : > { %v709_v57 = vmul.f32 %v8062_v51, %v8651_v12 }
 0x4a3   : > { %v948_v55 = vpop.xlane.xlu1 %947 }
 0x4a4   : > { %8069 = vrcp.f32 %v948_v55 }
 0x4a5   : > { %v8064_v56 = vpop.eup %8063  ;;  %8071 = vrcp.f32 %v945_v52 }
 0x4a6   : > { %v710_v30 = vmul.f32 %v8064_v56, %v8656_v42 }
 0x4a7   : > { %v1065_v63 = vpop.xlane.xlu0 %1064 }
 0x4a8   : > { %v711_v37 = vpack.c.bf16 %v710_v30, %v709_v57 }
 0x4a9   : > { %v8066_v60 = vpop.eup %8065 }
 0x4aa   : > { %7486 = vmatmul.mubr.msk.bf16.vlgmr.msra.gmra.mxu1 %vm688_vm9, %v711_v37  ;;  %v8068_v61 = vpop.eup %8067  ;;  %v832_v1 = vmul.f32 %v8066_v60, %v8665_v48 }
 0x4ab   : > { %7496 = vmatpush3.bf16.msra.mxu1 %v8643_v2  ;;  %v1068_v0 = vpop.xlane.xlu1 %1067  ;;  %7497 = vmatprep.mubr.msk.bf16.mxu1 %vm9822_vm10, %v8336_v14  ;;  %v831_v12 = vmul.f32 %v8068_v61, %v8658_v43 }
 0x4ac   : > { %8073 = vrcp.f32 %v1068_v0  ;;  %7507 = vmatprep.subr.bf16.mxu1 %v8336_v14 }
 0x4ad   : > { %8075 = vrcp.f32 %v1065_v63  ;;  %v833_v5 = vpack.c.bf16 %v832_v1, %v831_v12 }
 0x4af   : > { %v1184_v42 = vpop.xlane.xlu1 %1183 }
 0x4b1   : > { %v8070_v6 = vpop.eup %8069 }
 0x4b2   : > { %7498 = vmatmul.mubr.msk.bf16.vlgmr.msra.gmra.mxu1 %vm688_vm9, %v833_v5  ;;  %v8072_v9 = vpop.eup %8071  ;;  %v952_v11 = vmul.f32 %v8070_v6, %v8675_v59 }
 0x4b3   : > { %7508 = vmatpush3.bf16.msra.mxu1 %v955_v44  ;;  %v1187_v2 = vpop.xlane.xlu1 %1186  ;;  %7509 = vmatprep.mubr.msk.bf16.mxu1 %vm9822_vm10, %v8336_v14  ;;  %v951_v48 = vmul.f32 %v8072_v9, %v8670_v53  ;;  %v1194_v53 = vpop.permute.xlu0 %1193 }
 0x4b4   : > { %8077 = vrcp.f32 %v1187_v2  ;;  %7519 = vmatprep.subr.bf16.mxu1 %v8336_v14 }
 0x4b5   : > { %8079 = vrcp.f32 %v1184_v42  ;;  %v953_v43 = vpack.c.bf16 %v952_v11, %v951_v48 }
 0x4b9   : > { %v8074_v13 = vpop.eup %8073  ;;  %v1308_v15 = vpop.xlane.xlu1 %1307 }
 0x4ba   : > { %7510 = vmatmul.mubr.msk.bf16.vlgmr.msra.gmra.mxu1 %vm688_vm9, %v953_v43  ;;  %v8076_v18 = vpop.eup %8075  ;;  %v1072_v54 = vmul.f32 %v8074_v13, %v8684_v45  ;;  %8081 = vrcp.f32 %v1308_v15 }
 0x4bb   : > { %7520 = vmatpush3.bf16.msra.mxu1 %v1075_v28  ;;  %7521 = vmatprep.mubr.msk.bf16.mxu1 %vm9822_vm10, %v8336_v14  ;;  %v1071_v19 = vmul.f32 %v8076_v18, %v8679_v41 }
 0x4bc   : > { %7531 = vmatprep.subr.bf16.mxu1 %v8336_v14 }
 0x4bd   : > { %v1425_v59 = vpop.xlane.xlu1 %1424  ;;  %v1073_v7 = vpack.c.bf16 %v1072_v54, %v1071_v19 }
 0x4c1   : > { %v8078_v58 = vpop.eup %8077  ;;  %v1428_v29 = vpop.xlane.xlu1 %1427 }
 0x4c2   : > { %7522 = vmatmul.mubr.msk.bf16.vlgmr.msra.gmra.mxu1 %vm688_vm9, %v1073_v7  ;;  %v8080_v25 = vpop.eup %8079  ;;  %v1191_v26 = vmul.f32 %v8078_v58, %v8694_v22 }
 0x4c3   : > { %7532 = vmatpush3.bf16.msra.mxu1 %v1194_v53  ;;  %7533 = vmatprep.mubr.msk.bf16.mxu1 %vm9822_vm10, %v8336_v14  ;;  %v1190_v45 = vmul.f32 %v8080_v25, %v8689_v17 }
 0x4c4   : > { %7543 = vmatprep.subr.bf16.mxu1 %v8336_v14 }
 0x4c5   : > { %v1192_v62 = vpack.c.bf16 %v1191_v26, %v1190_v45  ;;  %v8102_v45 = vld [vmem:[%s8435_s16] sm:$0xff]  }
 0x4c7   : > { %v8082_v4 = vpop.eup %8081 }
 0x4c8   : > { %v1312_v38 = vmul.f32 %v8082_v4, %v8699_v27 }
 0x4c9   : > { %v1548_v41 = vpop.xlane.xlu1 %1547 }
 0x4ca   : > { %7534 = vmatmul.mubr.msk.bf16.vlgmr.msra.gmra.mxu1 %vm688_vm9, %v1192_v62 }
 0x4cb   : > { %7545 = vmatprep.mubr.msk.bf16.mxu1 %vm9822_vm10, %v8336_v14 }
 0x4cd   : > { %v1315_v32 = vpop.permute.xlu1 %1314 }
 0x4ce   : > { %7544 = vmatpush3.bf16.msra.mxu1 %v1315_v32 }
 0x4cf   : > { %7555 = vmatprep.subr.bf16.mxu1 %v8336_v14 }
 0x4dc   : > { %v1305_v10 = vpop.xlane.xlu0 %1304 }
 0x4dd   : > { %8083 = vrcp.f32 %v1305_v10 }
 0x4de   : > { %8085 = vrcp.f32 %v1428_v29 }
 0x4df   : > { %8087 = vrcp.f32 %v1425_v59 }
 0x4e0   : > { %v1545_v22 = vpop.xlane.xlu0 %1544 }
 0x4e1   : > { %8089 = vrcp.f32 %v1545_v22 }
 0x4e2   : > { %8091 = vrcp.f32 %v1548_v41 }
 0x4e4   : > { %v1435_v40 = vpop.permute.xlu0 %1434 }
 0x4e8   : > { %v1555_v46 = vpop.permute.xlu0 %1554 }
 0x4ea   : > { %v8084_v17 = vpop.eup %8083 }
 0x4eb   : > { %v1311_v35 = vmul.f32 %v8084_v17, %v8718_v16  ;;  %v8086_v39 = vpop.eup %8085  ;;  %v8101_v16 = vld [vmem:[%s8435_s16 + $0x8] sm:$0xff]  }
 0x4ec   : > { %v8088_v49 = vpop.eup %8087  ;;  %v1432_v3 = vmul.f32 %v8086_v39, %v8708_v34  ;;  %1679 = vrot.lane.b32.xlu0 %v8101_v16, %s8355_s29 }
 0x4ed   : > { %v1313_v8 = vpack.c.bf16 %v1312_v38, %v1311_v35  ;;  %v1431_v44 = vmul.f32 %v8088_v49, %v8703_v31 }
 0x4ee   : > { %v8090_v27 = vpop.eup %8089 }
 0x4ef   : > { %7546 = vmatmul.mubr.msk.bf16.vlgmr.msra.gmra.mxu1 %vm688_vm9, %v1313_v8  ;;  %v1433_v28 = vpack.c.bf16 %v1432_v3, %v1431_v44  ;;  %v8092_v47 = vpop.eup %8091  ;;  %v1551_v33 = vmul.f32 %v8090_v27, %v8723_v24 }
 0x4f0   : > { %7556 = vmatpush3.bf16.msra.mxu1 %v1435_v40  ;;  %7557 = vmatprep.mubr.msk.bf16.mxu1 %vm9822_vm10, %v8336_v14  ;;  %v1552_v34 = vmul.f32 %v8092_v47, %v8713_v36 }
 0x4f1   : > { %7567 = vmatprep.subr.bf16.mxu1 %v8336_v14 }
 0x4f2   : > { %v1553_v50 = vpack.c.bf16 %v1552_v34, %v1551_v33 }
 0x4f7   : > { %7558 = vmatmul.mubr.msk.bf16.vlgmr.msra.gmra.mxu1 %vm688_vm9, %v1433_v28 }
 0x4f8   : > { %7568 = vmatpush3.bf16.msra.mxu1 %v1555_v46  ;;  %7569 = vmatprep.mubr.msk.bf16.mxu1 %vm9822_vm10, %v8336_v14  ;;  %vm9832_vm10 = vmmov %vm9825_vm2 }
 0x4ff   : > { %7570 = vmatmul.mubr.msk.bf16.vlgmr.msra.gmra.mxu1 %vm688_vm9, %v1553_v50 }
 0x55e   : > { %v1680_v31 = vpop.permute.xlu0 %1679 }
 0x55f   : > { %7574 = vmatpush3.bf16.msra.mxu0 %v1680_v31 }
 0x560   : > { %7575 = vmatprep.subr.bf16.mxu0 %v8336_v14 }
 0x56a   : > { %v8777_v51 = vpop.f32.mrf.mxu1 }
 0x56c   : > { %v7487_v52 = vpop.f32.mrf.mxu1 }
 0x56e   : > { %v8779_v55 = vpop.f32.mrf.mxu1 }
 0x570   : > { %v7488_v56 = vpop.f32.mrf.mxu1 }
 0x572   : > { %v874_v57 = vpop.f32.mrf.mxu1 }
 0x574   : > { %v7499_v30 = vpop.f32.mrf.mxu1 }
 0x576   : > { %v877_v37 = vpop.f32.mrf.mxu1 }
 0x577   : > { %v7864_v60 = vpack.i.bf16 %v877_v37, %v874_v57 }
 0x578   : > { %v7500_v24 = vpop.f32.mrf.mxu1 }
 0x579   : > { %7865 = vrot.lane.b32.xlu0 %v7864_v60, %s8356_s13 }
 0x57a   : > { %v994_v36 = vpop.f32.mrf.mxu1 }
 0x57c   : > { %v7511_v61 = vpop.f32.mrf.mxu1 }
 0x57e   : > { %v997_v63 = vpop.f32.mrf.mxu1 }
 0x57f   : > { %v7869_v0 = vpack.i.bf16 %v997_v63, %v994_v36 }
 0x580   : > { %v7512_v1 = vpop.f32.mrf.mxu1 }
 0x581   : > { %7870 = vrot.lane.b32.xlu0 %v7869_v0, %s8357_s15 }
 0x582   : > { %v1114_v14 = vpop.f32.mrf.mxu1 }
 0x584   : > { %v7523_v12 = vpop.f32.mrf.mxu1 }
 0x586   : > { %v1117_v42 = vpop.f32.mrf.mxu1 }
 0x587   : > { %v7874_v5 = vpack.i.bf16 %v1117_v42, %v1114_v14 }
 0x588   : > { %v7524_v6 = vpop.f32.mrf.mxu1 }
 0x589   : > { %7875 = vrot.lane.b32.xlu1 %v7874_v5, %s8358_s12 }
 0x58a   : > { %v1233_v9 = vpop.f32.mrf.mxu1 }
 0x58c   : > { %v7535_v2 = vpop.f32.mrf.mxu1 }
 0x58e   : > { %v1236_v11 = vpop.f32.mrf.mxu1 }
 0x58f   : > { %v7879_v48 = vpack.i.bf16 %v1236_v11, %v1233_v9  ;;  %v8103_v9 = vld [vmem:[#allocation2] sm:$0xff] }
 0x590   : > { %v7536_v43 = vpop.f32.mrf.mxu1 }
 0x591   : > { %7880 = vrot.lane.b32.xlu1 %v7879_v48, %s8359_s17 }
 0x5af   : > { %v1354_v13 = vpop.f32.mrf.mxu1 }
 0x5b1   : > { %v7547_v15 = vpop.f32.mrf.mxu1 }
 0x5b2   : > { %v8104_v15 = vld [vmem:[#allocation2 + $0x8] sm:$0xff] }
 0x5b3   : > { %v1357_v18 = vpop.f32.mrf.mxu1 }
 0x5b4   : > { %v7884_v54 = vpack.i.bf16 %v1357_v18, %v1354_v13 }
 0x5b5   : > { %v7548_v19 = vpop.f32.mrf.mxu1 }
 0x5b6   : > { %7885 = vrot.lane.b32.xlu0 %v7884_v54, %s8360_s18 }
 0x5b7   : > { %v1474_v59 = vpop.f32.mrf.mxu1 }
 0x5b9   : > { %v7559_v7 = vpop.f32.mrf.mxu1 }
 0x5bb   : > { %v1477_v58 = vpop.f32.mrf.mxu1 }
 0x5bc   : > { %v7889_v53 = vpack.i.bf16 %v1477_v58, %v1474_v59 }
 0x5bd   : > { %v7560_v25 = vpop.f32.mrf.mxu1 }
 0x5be   : > { %7890 = vrot.lane.b32.xlu1 %v7889_v53, %s8361_s20 }
 0x5bf   : > { %v1594_v26 = vpop.f32.mrf.mxu1 }
 0x5c1   : > { %v7571_v29 = vpop.f32.mrf.mxu1 }
 0x5c2   : > { %1677 = vrot.lane.b32.xlu1 %v8102_v45, %s8355_s29 }
 0x5c3   : > { %v1597_v62 = vpop.f32.mrf.mxu1 }
 0x5c4   : > { %v7894_v41 = vpack.i.bf16 %v1597_v62, %v1594_v26 }
 0x5c5   : > { %v7572_v32 = vpop.f32.mrf.mxu1 }
 0x5c6   : > { %7895 = vrot.lane.b32.xlu0 %v7894_v41, %s8362_s21  ;;  %v8799_v41 = vsub.s32 1, %v8487_v20  ;;  %v8105_v32 = vld [vmem:[%s8440_s19] sm:$0xff] }
 0x5ca   : > { %1684 = vrot.lane.b32.xlu0 %v8494_v23, %s8355_s29 }
 0x5eb   : > { %v7866_v22 = vpop.permute.xlu0 %7865 }
 0x5ec   : > { %v7868_v38 = vunpack.i.h.bf16 %v7866_v22  ;;  %v7867_v8 = vunpack.i.l.bf16 %v7866_v22  ;;  %v1789_v22 = vld [vmem:[%s8450_s26 + $0x80] sm:$0xff] }
 0x5ee   : > { %v1658_v23 = vsel %vm9823_vm14, %v8779_v55, %v7868_v38  ;;  %v1657_v46 = vsel %vm9824_vm0, %v8777_v51, %v7867_v8  ;;  %v1798_v38 = vld [vmem:[%s8450_s26 + $0xc8] sm:$0xff]  ;;  %vm9836_vm14 = vmmov %vm9825_vm2 }
 0x5ef   : > { %vm9837_vm0 = vmmov %vm9825_vm2 }
 0x5f3   : > { %v7871_v17 = vpop.permute.xlu0 %7870 }
 0x5f4   : > { %v7873_v39 = vunpack.i.h.bf16 %v7871_v17  ;;  %v7872_v40 = vunpack.i.l.bf16 %v7871_v17  ;;  %v1790_v17 = vld [vmem:[%s8450_s26 + $0x88] sm:$0xff] }
 0x5f6   : > { %v1661_v34 = vsel %vm1659_vm11, %v1658_v23, %v7873_v39  ;;  %v1660_v50 = vsel %vm1659_vm11, %v1657_v46, %v7872_v40  ;;  %v6919_v39 = vcombine.low %v1790_v17, %v1798_v38  ;;  %v6920_v40 = vcombine.high %v1790_v17, %v1798_v38  ;;  %v1803_v38 = vld [vmem:[%s8450_s26 + $0xf0] sm:$0xff]  ;;  %vm9833_vm11 = vmmov %vm9825_vm2 }
 0x5fb   : > { %v7876_v10 = vpop.permute.xlu1 %7875 }
 0x5fc   : > { %v7878_v3 = vunpack.i.h.bf16 %v7876_v10  ;;  %v7877_v44 = vunpack.i.l.bf16 %v7876_v10  ;;  %v8803_v10 = vrot.slane %v8105_v32, %v8799_v41 }
 0x5fe   : > { %v1664_v56 = vsel %vm1662_vm12, %v1661_v34, %v7878_v3  ;;  %v1663_v57 = vsel %vm1662_vm12, %v1660_v50, %v7877_v44  ;;  %v1781_v3 = vld [vmem:[%s8450_s26 + $0x40] sm:$0xff]  ;;  %v1774_v44 = vld [vmem:[%s8450_s26 + $0x8] sm:$0xff]  ;;  %v1792_v34 = vld [vmem:[%s8450_s26 + $0x98] sm:$0xff]  ;;  %v8363_v50 = vmov 0  }
 0x5ff   : > { %2082 = vmatprep.mubr.bf16.mxu1 %v8363_v50  ;;  %vm9834_vm12 = vmmov %vm9825_vm2 }
 0x603   : > { %v7881_v4 = vpop.permute.xlu1 %7880 }
 0x604   : > { %v7883_v28 = vunpack.i.h.bf16 %v7881_v4  ;;  %v7882_v16 = vunpack.i.l.bf16 %v7881_v4  ;;  %v1797_v4 = vld [vmem:[%s8450_s26 + $0xc0] sm:$0xff] }
 0x605   : > { %v6917_v8 = vcombine.low %v1789_v22, %v1797_v4 }
 0x606   : > { %v1665_v30 = vsel %vm688_vm9, %v1663_v57, %v7882_v16  ;;  %v1666_v37 = vsel %vm688_vm9, %v1664_v56, %v7883_v28  ;;  %v1782_v16 = vld [vmem:[%s8450_s26 + $0x48] sm:$0xff] }
 0x607   : > { %v6903_v23 = vcombine.low %v1774_v44, %v1782_v16  ;;  %v6904_v46 = vcombine.high %v1774_v44, %v1782_v16  ;;  %v1787_v16 = vld [vmem:[%s8450_s26 + $0x70] sm:$0xff] }
 0x628   : > { %v7886_v49 = vpop.permute.xlu0 %7885 }
 0x629   : > { %v7888_v47 = vunpack.i.h.bf16 %v7886_v49  ;;  %v7887_v33 = vunpack.i.l.bf16 %v7886_v49  ;;  %v1773_v49 = vld [vmem:[%s8450_s26] sm:$0xff] }
 0x62a   : > { %v6902_v28 = vcombine.high %v1773_v49, %v1781_v3 }
 0x62b   : > { %v1668_v55 = vsel %vm1667_vm13, %v1665_v30, %v7887_v33  ;;  %v1669_v51 = vsel %vm1667_vm13, %v1666_v37, %v7888_v47  ;;  %v1791_v47 = vld [vmem:[%s8450_s26 + $0x90] sm:$0xff]  ;;  %vm9835_vm13 = vmmov %vm9825_vm2 }
 0x62c   : > { %v1799_v33 = vld [vmem:[%s8450_s26 + $0xd0] sm:$0xff] }
 0x62d   : > { %v6921_v56 = vcombine.low %v1791_v47, %v1799_v33 }
 0x630   : > { %v7891_v35 = vpop.permute.xlu1 %7890 }
 0x631   : > { %v7893_v31 = vunpack.i.h.bf16 %v7891_v35  ;;  %v7892_v52 = vunpack.i.l.bf16 %v7891_v35  ;;  %v6918_v35 = vcombine.high %v1789_v22, %v1797_v4 }
 0x633   : > { %v1671_v61 = vsel %vm1670_vm15, %v1668_v55, %v7892_v52  ;;  %v1672_v63 = vsel %vm1670_vm15, %v1669_v51, %v7893_v31  ;;  %2062 = vmatprep.subr.bf16.mxu1 %v6918_v35  ;;  %v6922_v31 = vcombine.high %v1791_v47, %v1799_v33  ;;  %v1800_v52 = vld [vmem:[%s8450_s26 + $0xd8] sm:$0xff]  ;;  %v1795_v35 = vld [vmem:[%s8450_s26 + $0xb0] sm:$0xff]  ;;  %vm9838_vm15 = vmmov %vm9837_vm0 }
 0x634   : > { %v1678_v27 = vpop.permute.xlu1 %1677  ;;  %2063 = vmatpush1.bf16.msra.mxu1 %v6917_v8  ;;  %v6923_v57 = vcombine.low %v1792_v34, %v1800_v52  ;;  %v6924_v30 = vcombine.high %v1792_v34, %v1800_v52  ;;  %v1796_v8 = vld [vmem:[%s8450_s26 + $0xb8] sm:$0xff] }
 0x635   : > { %7576 = vmatpush3.bf16.msra.mxu0 %v1678_v27  ;;  %v6901_v27 = vcombine.low %v1773_v49, %v1781_v3  ;;  %2064 = vmatprep.subr.bf16.mxu1 %v6902_v28  ;;  %v6930_v3 = vcombine.high %v1795_v35, %v1803_v38  ;;  %v1779_v28 = vld [vmem:[%s8450_s26 + $0x30] sm:$0xff] }
 0x636   : > { %2105 = vmatprep.subr.bf16.mxu0 %v6920_v40  ;;  %v6914_v33 = vcombine.high %v1779_v28, %v1787_v16 }
 0x638   : > { %v7896_v60 = vpop.permute.xlu0 %7895  ;;  %2065 = vmatpush1.bf16.msra.mxu1 %v6901_v27  ;;  %v1780_v27 = vld [vmem:[%s8450_s26 + $0x38] sm:$0xff] }
 0x639   : > { %v7898_v24 = vunpack.i.h.bf16 %v7896_v60  ;;  %v7897_v36 = vunpack.i.l.bf16 %v7896_v60  ;;  %2148 = vmatprep.subr.bf16.mxu1 %v6922_v31  ;;  %v6913_v31 = vcombine.low %v1779_v28, %v1787_v16  ;;  %v1837_v28 = vsub.s32 7, %v8487_v20 }
 0x63b   : > { %v1674_v0 = vsel %vm1673_vm1, %v1671_v61, %v7897_v36  ;;  %v1675_v1 = vsel %vm1673_vm1, %v1672_v63, %v7898_v24  ;;  %vm9839_vm1 = vmmov %vm9837_vm0 }
 0x63c   : > { %v1676_v14 = vpack.c.bf16 %v1675_v1, %v1674_v0  ;;  %v1685_v12 = vpop.permute.xlu0 %1684 }
 0x63e   : > { %7578 = vmatmul.mubr.msk.bf16.vlgmr.msra.gmra.mxu0 %vm9825_vm2, %v1676_v14  ;;  %vm9840_vm2 = vmmov %vm9837_vm0 }
 0x63f   : > { %2106 = vmatpush1.bf16.msra.mxu0 %v6919_v39  ;;  %2125 = vmatprep.mubr.bf16.mxu0 %v8363_v50  ;;  %v1804_v39 = vld [vmem:[%s8450_s26 + $0xf8] sm:$0xff] }
 0x640   : > { %2107 = vmatprep.subr.bf16.mxu0 %v6904_v46  ;;  %v6932_v44 = vcombine.high %v1796_v8, %v1804_v39  ;;  %v6929_v46 = vcombine.low %v1795_v35, %v1803_v38  ;;  %v6931_v47 = vcombine.low %v1796_v8, %v1804_v39 }
 0x643   : > { %2108 = vmatpush1.bf16.msra.mxu0 %v6903_v23  ;;  %v1788_v23 = vld [vmem:[%s8450_s26 + $0x78] sm:$0xff] }
 0x644   : > { %2191 = vmatprep.subr.bf16.mxu0 %v6924_v30  ;;  %v6916_v34 = vcombine.high %v1780_v27, %v1788_v23  ;;  %v6915_v52 = vcombine.low %v1780_v27, %v1788_v23  ;;  %v7903_v30 = vld [vmem:[%s8455_s14 + $0x38] sm:$0xff]  }
 0x6fe   : > { %v1724_v42 = vpop.f32.mrf.mxu0 }
 0x6ff   : > { %v1725_v5 = vadd.f32 %v1724_v42, %v1685_v12 }
 0x700   : > { %v7579_v6 = vpop.f32.mrf.mxu0 }
 0x701   : > { %v1731_v2 = vadd.f32 %v8103_v9, %v1725_v5  ;;  %v1775_v5 = vld [vmem:[%s8450_s26 + $0x10] sm:$0xff]  ;;  %v1776_v9 = vld [vmem:[%s8450_s26 + $0x18] sm:$0xff] }
 0x702   : > { %v1727_v11 = vpop.f32.mrf.mxu0  ;;  %v1783_v6 = vld [vmem:[%s8450_s26 + $0x50] sm:$0xff] }
 0x703   : > { %v1728_v48 = vadd.f32 %v1727_v11, %v1685_v12  ;;  %v1733_v43 = vsel %vm9826_vm4, %v1731_v2, 0.0  ;;  %vm9841_vm4 = vmmov %vm9837_vm0 }
 0x704   : > { %1734 = vadd.xlane.f32.xlu1 %v1733_v43  ;;  %v7580_v13 = vpop.f32.mrf.mxu0 }
 0x705   : > { %v1732_v18 = vadd.f32 %v8104_v15, %v1728_v48  ;;  %v6906_v13 = vcombine.high %v1775_v5, %v1783_v6 }
 0x707   : > { %v1736_v54 = vsel %vm9827_vm5, %v1732_v18, 0.0  ;;  %vm9842_vm5 = vmmov %vm9837_vm0 }
 0x708   : > { %1737 = vadd.xlane.f32.xlu0 %v1736_v54  ;;  %v1801_v54 = vld [vmem:[%s8450_s26 + $0xe0] sm:$0xff] }
 0x78d   : > { %v1735_v19 = vpop.xlane.xlu1 %1734 }
 0x78e   : > { %v1740_v59 = vmul.f32 0.03125, %v1735_v19  ;;  %v1794_v19 = vld [vmem:[%s8450_s26 + $0xa8] sm:$0xff] }
 0x790   : > { %v1742_v7 = vsub.f32 %v1731_v2, %v1740_v59  ;;  %v1784_v2 = vld [vmem:[%s8450_s26 + $0x58] sm:$0xff]  ;;  %v1802_v59 = vld [vmem:[%s8450_s26 + $0xe8] sm:$0xff] }
 0x791   : > { %v1738_v58 = vpop.xlane.xlu0 %1737  ;;  %v6908_v15 = vcombine.high %v1776_v9, %v1784_v2  ;;  %v6927_v22 = vcombine.low %v1794_v19, %v1802_v59 }
 0x792   : > { %v1741_v53 = vmul.f32 0.03125, %v1738_v58  ;;  %v1744_v25 = vmul.f32 %v1742_v7, %v1742_v7  ;;  %v6907_v58 = vcombine.low %v1776_v9, %v1784_v2  ;;  %v7920_v9 = vld [vmem:[%s8455_s14 + $0x98] sm:$0xff]   ;;  %v7921_v2 = vld [vmem:[%s8455_s14 + $0x50] sm:$0xff]  }
 0x794   : > { %v1743_v26 = vsub.f32 %v1732_v18, %v1741_v53  ;;  %v1746_v29 = vsel %vm9828_vm3, %v1744_v25, 0.0  ;;  %v1793_v18 = vld [vmem:[%s8450_s26 + $0xa0] sm:$0xff]  ;;  %v6928_v25 = vcombine.high %v1794_v19, %v1802_v59  ;;  %v7927_v19 = vld [vmem:[%s8455_s14 + $0x8] sm:$0xff]   ;;  %vm9843_vm3 = vmmov %vm9837_vm0 }
 0x795   : > { %1747 = vadd.xlane.f32.xlu0 %v1746_v29  ;;  %v6926_v53 = vcombine.high %v1793_v18, %v1801_v54  ;;  %v1785_v29 = vld [vmem:[%s8450_s26 + $0x60] sm:$0xff]  ;;  %v6925_v32 = vcombine.low %v1793_v18, %v1801_v54  ;;  %v7925_v18 = vld [vmem:[%s8455_s14 + $0x48] sm:$0xff]  }
 0x796   : > { %v1745_v45 = vmul.f32 %v1743_v26, %v1743_v26  ;;  %v7926_v54 = vld [vmem:[%s8455_s14 + $0xc8] sm:$0xff]  }
 0x797   : > { %v7928_v59 = vld [vmem:[%s8455_s14 + $0x88] sm:$0xff]  }
 0x798   : > { %v1749_v62 = vsel %vm9829_vm6, %v1745_v45, 0.0  ;;  %v1778_v45 = vld [vmem:[%s8450_s26 + $0x28] sm:$0xff] }
 0x799   : > { %1750 = vadd.xlane.f32.xlu1 %v1749_v62  ;;  %v1786_v62 = vld [vmem:[%s8450_s26 + $0x68] sm:$0xff] }
 0x79a   : > { %v6912_v17 = vcombine.high %v1778_v45, %v1786_v62  ;;  %v6911_v49 = vcombine.low %v1778_v45, %v1786_v62  ;;  %v1821_v45 = vsub.s32 3, %v8487_v20  ;;  %v8911_v62 = vsub.s32 2, %v8487_v20 }
 0x7ab   : > { %1767 = vrot.lane.b32.xlu0 %v8803_v10, %s8338_s25 }
 0x7af   : > { %3831 = vrot.lane.b32.xlu0 %v8803_v10, %s8355_s29  ;;  %s8369_s29 = smov (!%p7069_p5), 112  }
 0x81e   : > { %v1748_v37 = vpop.xlane.xlu0 %1747 }
 0x81f   : > { %v1752_v60 = vmul.f32 0.03125, %v1748_v37  ;;  %v7904_v37 = vld [vmem:[%s8455_s14 + $0xb8] sm:$0xff]  }
 0x821   : > { %v1754_v55 = vadd.f32 1e-05, %v1752_v60  ;;  %v7905_v60 = vld [vmem:[%s8455_s14 + $0x70] sm:$0xff]  }
 0x822   : > { %v1751_v51 = vpop.xlane.xlu1 %1750  ;;  %v1768_v12 = vpop.permute.xlu0 %1767 }
 0x823   : > { %8093 = vrsqrt.f32 %v1754_v55  ;;  %v1753_v24 = vmul.f32 0.03125, %v1751_v51  ;;  %v7906_v55 = vld [vmem:[%s8455_s14 + $0xf0] sm:$0xff]  }
 0x824   : > { %v7908_v51 = vld [vmem:[%s8455_s14 + $0xb0] sm:$0xff]  }
 0x825   : > { %v1755_v36 = vadd.f32 1e-05, %v1753_v24  ;;  %v7909_v24 = vld [vmem:[%s8455_s14 + $0x68] sm:$0xff]  }
 0x827   : > { %8095 = vrsqrt.f32 %v1755_v36  ;;  %v7910_v36 = vld [vmem:[%s8455_s14 + $0xe8] sm:$0xff]  }
 0x830   : > { %v8094_v61 = vpop.eup %8093 }
 0x831   : > { %v1758_v63 = vmul.f32 %v8094_v61, %v1742_v7  ;;  %v6905_v7 = vcombine.low %v1775_v5, %v1783_v6  ;;  %v7911_v61 = vld [vmem:[%s8455_s14 + $0x28] sm:$0xff]   ;;  %v7918_v5 = vld [vmem:[%s8455_s14 + $0xd8] sm:$0xff]  }
 0x832   : > { %v7919_v6 = vld [vmem:[%s8455_s14 + $0x18] sm:$0xff]  }
 0x833   : > { %v1764_v14 = vmul.f32 %v8803_v10, %v1758_v63  ;;  %v7912_v63 = vld [vmem:[%s8455_s14 + $0xa8] sm:$0xff]  }
 0x834   : > { %v8096_v0 = vpop.eup %8095 }
 0x835   : > { %v1759_v1 = vmul.f32 %v8096_v0, %v1743_v26  ;;  %v8829_v11 = vadd.f32 %v1768_v12, %v1764_v14  ;;  %v1777_v26 = vld [vmem:[%s8450_s26 + $0x20] sm:$0xff] }
 0x836   : > { %v6910_v4 = vcombine.high %v1777_v26, %v1785_v29  ;;  %v6909_v40 = vcombine.low %v1777_v26, %v1785_v29  ;;  %v7913_v0 = vld [vmem:[%s8455_s14 + $0x60] sm:$0xff]   ;;  %v7933_v26 = vld [vmem:[%s8455_s14 + $0x178] sm:$0xff]  }
 0x837   : > { %v1765_v42 = vmul.f32 %v8803_v10, %v1759_v1  ;;  %v7914_v1 = vld [vmem:[%s8455_s14 + $0xe0] sm:$0xff]   ;;  %v7934_v29 = vld [vmem:[%s8455_s14 + $0x1f8] sm:$0xff]  }
 0x838   : > { %v7915_v14 = vld [vmem:[%s8455_s14 + $0x20] sm:$0xff]  }
 0x839   : > { %v8831_v48 = vadd.f32 %v1768_v12, %v1765_v42  ;;  %v7916_v12 = vld [vmem:[%s8455_s14 + $0xa0] sm:$0xff]   ;;  %v7917_v42 = vld [vmem:[%s8455_s14 + $0x58] sm:$0xff]  }
 0x83b   : > { %v8835_v43 = vpack.c.bf16 %v8831_v48, %v8829_v11 }
 0x83d   : > { %6933 = vmatmul.mubr.msk.bf16.vlgmr.msra.gmra.mxu1 %vm9830_vm7, %v8835_v43  ;;  %6934 = vmatmul.mubr.msk.bf16.vlgmr.msra.gmra.mxu0 %vm9831_vm8, %v8835_v43 }
 0x83e   : > { %2149 = vmatpush1.bf16.msra.mxu1 %v6921_v56  ;;  %2192 = vmatpush1.bf16.msra.mxu0 %v6923_v57  ;;  %v7901_v56 = vld [vmem:[%s8455_s14 + $0x78] sm:$0xff]  }
 0x83f   : > { %2150 = vmatprep.subr.bf16.mxu1 %v6906_v13  ;;  %2193 = vmatprep.subr.bf16.mxu0 %v6908_v15  ;;  %v7902_v57 = vld [vmem:[%s8455_s14 + $0xf8] sm:$0xff]   ;;  %v7923_v13 = vld [vmem:[%s8455_s14 + $0x10] sm:$0xff]  }
 0x840   : > { %2168 = vmatprep.mubr.bf16.mxu1 %v8363_v50  ;;  %2211 = vmatprep.mubr.bf16.mxu0 %v8363_v50  ;;  %v7924_v15 = vld [vmem:[%s8455_s14 + $0x90] sm:$0xff]  }
 0x842   : > { %2151 = vmatpush1.bf16.msra.mxu1 %v6905_v7  ;;  %2194 = vmatpush1.bf16.msra.mxu0 %v6907_v58  ;;  %v7929_v7 = vld [vmem:[%s8455_s14 + $0x40] sm:$0xff]  }
 0x843   : > { %2234 = vmatprep.subr.bf16.mxu1 %v6926_v53  ;;  %2277 = vmatprep.subr.bf16.mxu0 %v6928_v25  ;;  %v7930_v58 = vld [vmem:[%s8455_s14 + $0xc0] sm:$0xff]  }
 0x844   : > { %v7931_v53 = vld [vmem:[%s8455_s14] sm:$0xff]  }
 0x845   : > { %6935 = vmatmul.mubr.msk.bf16.vlgmr.msra.gmra.mxu1 %vm9832_vm10, %v8835_v43  ;;  %6936 = vmatmul.mubr.msk.bf16.vlgmr.msra.gmra.mxu0 %vm9833_vm11, %v8835_v43  ;;  %v7932_v25 = vld [vmem:[%s8455_s14 + $0x80] sm:$0xff]  }
 0x846   : > { %2235 = vmatpush1.bf16.msra.mxu1 %v6925_v32  ;;  %2278 = vmatpush1.bf16.msra.mxu0 %v6927_v22  ;;  %v8914_v32 = vld [vmem:[%s8445_s22] sm:$0xff] }
 0x847   : > { %2236 = vmatprep.subr.bf16.mxu1 %v6910_v4  ;;  %2279 = vmatprep.subr.bf16.mxu0 %v6912_v17  ;;  %v1814_v17 = vrot.slane %v8914_v32, %v8799_v41  ;;  %v1822_v35 = vrot.slane %v8914_v32, %v1821_v45  ;;  %v1810_v38 = vrot.slane %v8914_v32, %v8490_v21 }
 0x848   : > { %2254 = vmatprep.mubr.bf16.mxu1 %v8363_v50  ;;  %2297 = vmatprep.mubr.bf16.mxu0 %v8363_v50  ;;  %v1818_v8 = vrot.slane %v8914_v32, %v8911_v62 }
 0x84a   : > { %2237 = vmatpush1.bf16.msra.mxu1 %v6909_v40  ;;  %2280 = vmatpush1.bf16.msra.mxu0 %v6911_v49 }
 0x84b   : > { %2320 = vmatprep.subr.bf16.mxu1 %v6930_v3  ;;  %2363 = vmatprep.subr.bf16.mxu0 %v6932_v44  ;;  %v1829_v44 = vsub.s32 5, %v8487_v20 }
 0x84d   : > { %6937 = vmatmul.mubr.msk.bf16.vlgmr.msra.gmra.mxu1 %vm9834_vm12, %v8835_v43  ;;  %6938 = vmatmul.mubr.msk.bf16.vlgmr.msra.gmra.mxu0 %vm9835_vm13, %v8835_v43 }
 0x84e   : > { %2321 = vmatpush1.bf16.msra.mxu1 %v6929_v46  ;;  %2364 = vmatpush1.bf16.msra.mxu0 %v6931_v47 }
 0x84f   : > { %2322 = vmatprep.subr.bf16.mxu1 %v6914_v33  ;;  %2365 = vmatprep.subr.bf16.mxu0 %v6916_v34 }
 0x850   : > { %2340 = vmatprep.mubr.bf16.mxu1 %v8363_v50  ;;  %2383 = vmatprep.mubr.bf16.mxu0 %v8363_v50  ;;  %v7907_v50 = vld [vmem:[%s8455_s14 + $0x30] sm:$0xff]  }
 0x852   : > { %2323 = vmatpush1.bf16.msra.mxu1 %v6913_v31  ;;  %2366 = vmatpush1.bf16.msra.mxu0 %v6915_v52 }
 0x853   : > { %7206 = vmatprep.subr.bf16.mxu1 %v7901_v56  ;;  %7228 = vmatprep.subr.bf16.mxu0 %v7902_v57 }
 0x855   : > { %6939 = vmatmul.mubr.msk.bf16.vlgmr.msra.gmra.mxu1 %vm9836_vm14, %v8835_v43  ;;  %6940 = vmatmul.mubr.msk.bf16.vlgmr.msra.gmra.mxu0 %vm9837_vm0, %v8835_v43  ;;  %v7922_v43 = vld [vmem:[%s8455_s14 + $0xd0] sm:$0xff]  }
 0x856   : > { %7207 = vmatpush3.bf16.msra.mxu1 %v7903_v30  ;;  %7229 = vmatpush3.bf16.msra.mxu0 %v7904_v37 }
 0x857   : > { %7208 = vmatprep.subr.bf16.mxu1 %v7905_v60  ;;  %7230 = vmatprep.subr.bf16.mxu0 %v7906_v55  ;;  %v1830_v55 = vrot.slane %v8914_v32, %v1829_v44 }
 0x85a   : > { %7209 = vmatpush3.bf16.msra.mxu1 %v7907_v50  ;;  %7231 = vmatpush3.bf16.msra.mxu0 %v7908_v51  ;;  %v1838_v50 = vrot.slane %v8914_v32, %v1837_v28 }
 0x85b   : > { %7210 = vmatprep.subr.bf16.mxu1 %v7909_v24  ;;  %7232 = vmatprep.subr.bf16.mxu0 %v7910_v36 }
 0x85e   : > { %7211 = vmatpush3.bf16.msra.mxu1 %v7911_v61  ;;  %7233 = vmatpush3.bf16.msra.mxu0 %v7912_v63 }
 0x85f   : > { %7212 = vmatprep.subr.bf16.mxu1 %v7913_v0  ;;  %7234 = vmatprep.subr.bf16.mxu0 %v7914_v1 }
 0x862   : > { %7213 = vmatpush3.bf16.msra.mxu1 %v7915_v14  ;;  %7235 = vmatpush3.bf16.msra.mxu0 %v7916_v12 }
 0x863   : > { %7214 = vmatprep.subr.bf16.mxu1 %v7917_v42  ;;  %7236 = vmatprep.subr.bf16.mxu0 %v7918_v5  ;;  %v7935_v5 = vld [vmem:[%s8455_s14 + $0x138] sm:$0xff]  }
 0x866   : > { %7215 = vmatpush3.bf16.msra.mxu1 %v7919_v6  ;;  %7237 = vmatpush3.bf16.msra.mxu0 %v7920_v9  ;;  %v7936_v6 = vld [vmem:[%s8455_s14 + $0x1b8] sm:$0xff]  }
 0x867   : > { %7216 = vmatprep.subr.bf16.mxu1 %v7921_v2  ;;  %7238 = vmatprep.subr.bf16.mxu0 %v7922_v43 }
 0x86a   : > { %7217 = vmatpush3.bf16.msra.mxu1 %v7923_v13  ;;  %7239 = vmatpush3.bf16.msra.mxu0 %v7924_v15  ;;  %v7937_v15 = vld [vmem:[%s8455_s14 + $0x170] sm:$0xff]  }
 0x86b   : > { %7218 = vmatprep.subr.bf16.mxu1 %v7925_v18  ;;  %7240 = vmatprep.subr.bf16.mxu0 %v7926_v54  ;;  %v7938_v18 = vld [vmem:[%s8455_s14 + $0x1f0] sm:$0xff]  }
 0x86e   : > { %7219 = vmatpush3.bf16.msra.mxu1 %v7927_v19  ;;  %7241 = vmatpush3.bf16.msra.mxu0 %v7928_v59 }
 0x86f   : > { %7220 = vmatprep.subr.bf16.mxu1 %v7929_v7  ;;  %7242 = vmatprep.subr.bf16.mxu0 %v7930_v58 }
 0x872   : > { %7221 = vmatpush3.bf16.msra.mxu1 %v7931_v53  ;;  %7243 = vmatpush3.bf16.msra.mxu0 %v7932_v25  ;;  %v7939_v25 = vld [vmem:[%s8455_s14 + $0x130] sm:$0xff]  }
 0x873   : > { %7250 = vmatprep.subr.bf16.mxu1 %v7933_v26  ;;  %7272 = vmatprep.subr.bf16.mxu0 %v7934_v29  ;;  %v7940_v26 = vld [vmem:[%s8455_s14 + $0x1b0] sm:$0xff]   ;;  %v7941_v29 = vld [vmem:[%s8455_s14 + $0x168] sm:$0xff]  }
 0x8fd   : > { %v2084_v22 = vpop.f32.mrf.mxu1  ;;  %v2127_v4 = vpop.f32.mrf.mxu0 }
 0x8fe   : > { %v2085_v47 = vadd.f32 %v2084_v22, %v1810_v38  ;;  %v2128_v33 = vadd.f32 %v2127_v4, %v1818_v8 }
 0x8ff   : > { %v2086_v39 = vpop.f32.mrf.mxu1  ;;  %v2129_v40 = vpop.f32.mrf.mxu0 }
 0x900   : > { %v2087_v16 = vadd.f32 %v2086_v39, %v1814_v17  ;;  %v2130_v27 = vadd.f32 %v2129_v40, %v1822_v35  ;;  %v2394_v63 = vmax.f32 %v2085_v47, 0.0  ;;  %v2396_v0 = vmax.f32 %v2128_v33, 0.0  ;;  %v7943_v40 = vld [vmem:[%s8455_s14 + $0x128] sm:$0xff]   ;;  %v7948_v47 = vld [vmem:[%s8455_s14 + $0x1a0] sm:$0xff]   ;;  %v7949_v33 = vld [vmem:[%s8455_s14 + $0x158] sm:$0xff]  }
 0x901   : > { %v2088_v49 = vpop.f32.mrf.mxu1  ;;  %v2131_v3 = vpop.f32.mrf.mxu0 }
 0x902   : > { %v2089_v23 = vadd.f32 %v2088_v49, %v1810_v38  ;;  %v2132_v46 = vadd.f32 %v2131_v3, %v1818_v8  ;;  %v2395_v51 = vmax.f32 %v2087_v16, 0.0  ;;  %v2397_v24 = vmax.f32 %v2130_v27, 0.0  ;;  %v7942_v38 = vld [vmem:[%s8455_s14 + $0x1e8] sm:$0xff]   ;;  %v7945_v3 = vld [vmem:[%s8455_s14 + $0x160] sm:$0xff]  }
 0x903   : > { %v2090_v34 = vpop.f32.mrf.mxu1  ;;  %v2133_v31 = vpop.f32.mrf.mxu0  ;;  %v7944_v49 = vld [vmem:[%s8455_s14 + $0x1a8] sm:$0xff]   ;;  %v7946_v16 = vld [vmem:[%s8455_s14 + $0x1e0] sm:$0xff]  }
 0x904   : > { %v2091_v52 = vadd.f32 %v2090_v34, %v1814_v17  ;;  %v2134_v56 = vadd.f32 %v2133_v31, %v1822_v35  ;;  %v2410_v57 = vmax.f32 %v2089_v23, 0.0  ;;  %v2412_v30 = vmax.f32 %v2132_v46, 0.0  ;;  %v7947_v23 = vld [vmem:[%s8455_s14 + $0x120] sm:$0xff]   ;;  %v7950_v34 = vld [vmem:[%s8455_s14 + $0x1d8] sm:$0xff]  }
 0x905   : > { %v8927_v37 = vpop.f32.mrf.mxu1  ;;  %v8929_v60 = vpop.f32.mrf.mxu0 }
 0x906   : > { %v2411_v36 = vmax.f32 %v2091_v52, 0.0  ;;  %v2413_v61 = vmax.f32 %v2134_v56, 0.0  ;;  %v2426_v9 = vpack.c.bf16 %v2410_v57, %v2394_v63  ;;  %v2428_v2 = vpack.c.bf16 %v2412_v30, %v2396_v0  ;;  %v7951_v52 = vld [vmem:[%s8455_s14 + $0x118] sm:$0xff]   ;;  %v7953_v30 = vld [vmem:[%s8455_s14 + $0x150] sm:$0xff]   ;;  %v7957_v0 = vld [vmem:[%s8455_s14 + $0x148] sm:$0xff]  }
 0x907   : > { %v2172_v1 = vpop.f32.mrf.mxu1  ;;  %v2215_v14 = vpop.f32.mrf.mxu0  ;;  %v7952_v57 = vld [vmem:[%s8455_s14 + $0x198] sm:$0xff]   ;;  %v7956_v63 = vld [vmem:[%s8455_s14 + $0x190] sm:$0xff]  }
 0x908   : > { %v2427_v12 = vpack.c.bf16 %v2411_v36, %v2395_v51  ;;  %v2429_v42 = vpack.c.bf16 %v2413_v61, %v2397_v24  ;;  %v2173_v54 = vadd.f32 %v2172_v1, %v1830_v55  ;;  %v2216_v19 = vadd.f32 %v2215_v14, %v1838_v50  ;;  %v7955_v36 = vld [vmem:[%s8455_s14 + $0x110] sm:$0xff]   ;;  %v7958_v1 = vld [vmem:[%s8455_s14 + $0x1c8] sm:$0xff]  }
 0x909   : > { %v8939_v43 = vpop.f32.mrf.mxu1  ;;  %v8941_v13 = vpop.f32.mrf.mxu0  ;;  %v1833_v51 = vsub.s32 6, %v8487_v20 }
 0x90a   : > { %3502 = vmatprep.mubr.bf16.mxu1 %v2427_v12  ;;  %3543 = vmatprep.mubr.bf16.mxu0 %v2429_v42  ;;  %v2399_v22 = vmax.f32 %v2173_v54, 0.0  ;;  %v2401_v4 = vmax.f32 %v2216_v19, 0.0  ;;  %v8982_v42 = vld [vmem:[%s8445_s22 + $0x8] sm:$0xff]  ;;  %v7961_v54 = vld [vmem:[%s8455_s14 + $0x140] sm:$0xff]  }
 0x90b   : > { %v2176_v59 = vpop.f32.mrf.mxu1  ;;  %v2219_v7 = vpop.f32.mrf.mxu0  ;;  %3503 = vmatmul.mubr.bf16.vlgmr.msra.gmra.mxu1 %v2426_v9  ;;  %3544 = vmatmul.mubr.bf16.vlgmr.msra.gmra.mxu0 %v2428_v2  ;;  %v1834_v12 = vrot.slane %v8914_v32, %v1833_v51  ;;  %v1846_v2 = vrot.slane %v8982_v42, %v8799_v41  ;;  %v1854_v19 = vrot.slane %v8982_v42, %v1821_v45 }
 0x90c   : > { %v2177_v58 = vadd.f32 %v2176_v59, %v1830_v55  ;;  %v2220_v53 = vadd.f32 %v2219_v7, %v1838_v50  ;;  %7251 = vmatpush3.bf16.msra.mxu1 %v7935_v5  ;;  %7273 = vmatpush3.bf16.msra.mxu0 %v7936_v6  ;;  %v7954_v55 = vld [vmem:[%s8455_s14 + $0x1d0] sm:$0xff]   ;;  %v1825_v50 = vsub.s32 4, %v8487_v20  ;;  %v7959_v6 = vld [vmem:[%s8455_s14 + $0x108] sm:$0xff]   ;;  %v7962_v59 = vld [vmem:[%s8455_s14 + $0x1c0] sm:$0xff]  }
 0x90d   : > { %7252 = vmatprep.subr.bf16.mxu1 %v7937_v15  ;;  %7274 = vmatprep.subr.bf16.mxu0 %v7938_v18  ;;  %v8953_v27 = vpop.f32.mrf.mxu1  ;;  %v8956_v46 = vpop.f32.mrf.mxu0  ;;  %v7960_v18 = vld [vmem:[%s8455_s14 + $0x188] sm:$0xff]   ;;  %v2214_v41 = vadd.f32 %v8929_v60, %v1834_v12  ;;  %v8027_v20 = vld [vmem:[%s8455_s14 + $0x300] sm:$0xff]  }
 0x90e   : > { %v2415_v17 = vmax.f32 %v2177_v58, 0.0  ;;  %v2417_v35 = vmax.f32 %v2220_v53, 0.0  ;;  %v1826_v14 = vrot.slane %v8914_v32, %v1825_v50  ;;  %v2218_v32 = vadd.f32 %v8941_v13, %v1834_v12  ;;  %v7963_v53 = vld [vmem:[%s8455_s14 + $0x100] sm:$0xff]   ;;  %v7981_v12 = vld [vmem:[%s8455_s14 + $0x258] sm:$0xff]  }
 0x90f   : > { %v2258_v31 = vpop.f32.mrf.mxu1  ;;  %v2301_v56 = vpop.f32.mrf.mxu0  ;;  %v7964_v13 = vld [vmem:[%s8455_s14 + $0x180] sm:$0xff]   ;;  %v2400_v60 = vmax.f32 %v2214_v41, 0.0  ;;  %v7990_v41 = vld [vmem:[%s8455_s14 + $0x2c8] sm:$0xff]  }
 0x910   : > { %v2431_v8 = vpack.c.bf16 %v2415_v17, %v2399_v22  ;;  %v2433_v39 = vpack.c.bf16 %v2417_v35, %v2401_v4  ;;  %7253 = vmatpush3.bf16.msra.mxu1 %v7939_v25  ;;  %7275 = vmatpush3.bf16.msra.mxu0 %v7940_v26  ;;  %v2175_v9 = vadd.f32 %v8939_v43, %v1826_v14  ;;  %v2416_v45 = vmax.f32 %v2218_v32, 0.0  ;;  %v7966_v4 = vld [vmem:[%s8455_s14 + $0x2f8] sm:$0xff]  }
 0x911   : > { %7254 = vmatprep.subr.bf16.mxu1 %v7941_v29  ;;  %7276 = vmatprep.subr.bf16.mxu0 %v7942_v38  ;;  %v8967_v24 = vpop.f32.mrf.mxu1  ;;  %v8970_v61 = vpop.f32.mrf.mxu0  ;;  %v2171_v43 = vadd.f32 %v8927_v37, %v1826_v14  ;;  %v2259_v26 = vadd.f32 %v2258_v31, %v1846_v2  ;;  %v7965_v29 = vld [vmem:[%s8455_s14 + $0x278] sm:$0xff]   ;;  %v2302_v22 = vadd.f32 %v2301_v56, %v1854_v19  ;;  %v7972_v31 = vld [vmem:[%s8455_s14 + $0x2b0] sm:$0xff]   ;;  %v7974_v56 = vld [vmem:[%s8455_s14 + $0x2e8] sm:$0xff]  }
 0x912   : > { %3584 = vmatprep.mubr.bf16.mxu1 %v2431_v8  ;;  %3625 = vmatprep.mubr.bf16.mxu0 %v2433_v39  ;;  %v2414_v25 = vmax.f32 %v2175_v9, 0.0  ;;  %v7967_v38 = vld [vmem:[%s8455_s14 + $0x238] sm:$0xff]   ;;  %v7980_v14 = vld [vmem:[%s8455_s14 + $0x2a0] sm:$0xff]  }
 0x913   : > { %v2262_v5 = vpop.f32.mrf.mxu1  ;;  %v2305_v15 = vpop.f32.mrf.mxu0  ;;  %v2398_v37 = vmax.f32 %v2171_v43, 0.0  ;;  %v2403_v39 = vmax.f32 %v2259_v26, 0.0  ;;  %v7983_v9 = vld [vmem:[%s8455_s14 + $0x218] sm:$0xff]   ;;  %v7988_v43 = vld [vmem:[%s8455_s14 + $0x290] sm:$0xff]   ;;  %v7991_v26 = vld [vmem:[%s8455_s14 + $0x208] sm:$0xff]  }
 0x914   : > { %7255 = vmatpush3.bf16.msra.mxu1 %v7943_v40  ;;  %7277 = vmatpush3.bf16.msra.mxu0 %v7944_v49  ;;  %v2263_v7 = vadd.f32 %v2262_v5, %v1846_v2  ;;  %v2306_v58 = vadd.f32 %v2305_v15, %v1854_v19  ;;  %v7968_v40 = vld [vmem:[%s8455_s14 + $0x2b8] sm:$0xff]   ;;  %v2432_v49 = vpack.c.bf16 %v2416_v45, %v2400_v60  ;;  %v7987_v19 = vld [vmem:[%s8455_s14 + $0x210] sm:$0xff]  }
 0x915   : > { %7256 = vmatprep.subr.bf16.mxu1 %v7945_v3  ;;  %7278 = vmatprep.subr.bf16.mxu0 %v7946_v16  ;;  %v2430_v8 = vpack.c.bf16 %v2414_v25, %v2398_v37  ;;  %v2405_v3 = vmax.f32 %v2302_v22, 0.0  ;;  %v7969_v16 = vld [vmem:[%s8455_s14 + $0x270] sm:$0xff]   ;;  %v7982_v5 = vld [vmem:[%s8455_s14 + $0x2d8] sm:$0xff]   ;;  %v7992_v22 = vld [vmem:[%s8455_s14 + $0x288] sm:$0xff]   ;;  %v1870_v37 = vrot.slane %v8982_v42, %v1837_v28 }
 0x916   : > { %v2419_v17 = vmax.f32 %v2263_v7, 0.0  ;;  %v2421_v35 = vmax.f32 %v2306_v58, 0.0  ;;  %v7984_v15 = vld [vmem:[%s8455_s14 + $0x298] sm:$0xff]   ;;  %v7989_v7 = vld [vmem:[%s8455_s14 + $0x248] sm:$0xff]   ;;  %v1842_v58 = vrot.slane %v8982_v42, %v8490_v21 }
 0x918   : > { %7257 = vmatpush3.bf16.msra.mxu1 %v7947_v23  ;;  %7279 = vmatpush3.bf16.msra.mxu0 %v7948_v47  ;;  %v2435_v23 = vpack.c.bf16 %v2419_v17, %v2403_v39  ;;  %v7970_v47 = vld [vmem:[%s8455_s14 + $0x2f0] sm:$0xff]   ;;  %v2257_v17 = vadd.f32 %v8953_v27, %v1842_v58 }
 0x919   : > { %7258 = vmatprep.subr.bf16.mxu1 %v7949_v33  ;;  %7280 = vmatprep.subr.bf16.mxu0 %v7950_v34  ;;  %v2437_v33 = vpack.c.bf16 %v2421_v35, %v2405_v3  ;;  %v7971_v34 = vld [vmem:[%s8455_s14 + $0x230] sm:$0xff]   ;;  %v7998_v3 = vld [vmem:[%s8455_s14 + $0x3f8] sm:$0xff]  }
 0x91a   : > { %v2402_v27 = vmax.f32 %v2257_v17, 0.0 }
 0x91c   : > { %7259 = vmatpush3.bf16.msra.mxu1 %v7951_v52  ;;  %7281 = vmatpush3.bf16.msra.mxu0 %v7952_v57  ;;  %v7973_v52 = vld [vmem:[%s8455_s14 + $0x268] sm:$0xff]  }
 0x91d   : > { %7260 = vmatprep.subr.bf16.mxu1 %v7953_v30  ;;  %7282 = vmatprep.subr.bf16.mxu0 %v7954_v55  ;;  %v7975_v57 = vld [vmem:[%s8455_s14 + $0x228] sm:$0xff]   ;;  %v7977_v55 = vld [vmem:[%s8455_s14 + $0x260] sm:$0xff]  }
 0x91e   : > { %v7976_v30 = vld [vmem:[%s8455_s14 + $0x2a8] sm:$0xff]  }
 0x920   : > { %7261 = vmatpush3.bf16.msra.mxu1 %v7955_v36  ;;  %7283 = vmatpush3.bf16.msra.mxu0 %v7956_v63  ;;  %v7978_v36 = vld [vmem:[%s8455_s14 + $0x2e0] sm:$0xff]   ;;  %v9013_v63 = vpop.f32.mrf.mxu1 }
 0x921   : > { %7262 = vmatprep.subr.bf16.mxu1 %v7957_v0  ;;  %7284 = vmatprep.subr.bf16.mxu0 %v7958_v1  ;;  %v7979_v0 = vld [vmem:[%s8455_s14 + $0x220] sm:$0xff]   ;;  %v9016_v1 = vpop.f32.mrf.mxu0 }
 0x923   : > { %v2387_v2 = vpop.f32.mrf.mxu0 }
 0x924   : > { %7263 = vmatpush3.bf16.msra.mxu1 %v7959_v6  ;;  %7285 = vmatpush3.bf16.msra.mxu0 %v7960_v18  ;;  %v2344_v6 = vpop.f32.mrf.mxu1  ;;  %v7985_v18 = vld [vmem:[%s8455_s14 + $0x250] sm:$0xff]  }
 0x925   : > { %7264 = vmatprep.subr.bf16.mxu1 %v7961_v54  ;;  %7286 = vmatprep.subr.bf16.mxu0 %v7962_v59  ;;  %v7986_v54 = vld [vmem:[%s8455_s14 + $0x2d0] sm:$0xff]   ;;  %v9028_v59 = vpop.f32.mrf.mxu0 }
 0x926   : > { %v9025_v32 = vpop.f32.mrf.mxu1 }
 0x927   : > { %v2391_v45 = vpop.f32.mrf.mxu0 }
 0x928   : > { %7265 = vmatpush3.bf16.msra.mxu1 %v7963_v53  ;;  %7287 = vmatpush3.bf16.msra.mxu0 %v7964_v13  ;;  %v1850_v53 = vrot.slane %v8982_v42, %v8911_v62  ;;  %v2348_v25 = vpop.f32.mrf.mxu1  ;;  %v2261_v13 = vadd.f32 %v8967_v24, %v1842_v58  ;;  %v7994_v24 = vld [vmem:[%s8455_s14 + $0x2c0] sm:$0xff]   ;;  %v2392_v35 = vadd.f32 %v2391_v45, %v1870_v37  ;;  %v8017_v58 = vld [vmem:[%s8455_s14 + $0x350] sm:$0xff]  }
 0x929   : > { %7294 = vmatprep.subr.bf16.mxu1 %v7965_v29  ;;  %7316 = vmatprep.subr.bf16.mxu0 %v7966_v4  ;;  %v1862_v29 = vrot.slane %v8982_v42, %v1829_v44  ;;  %v7993_v4 = vld [vmem:[%s8455_s14 + $0x240] sm:$0xff]   ;;  %v1858_v45 = vrot.slane %v8982_v42, %v1825_v50 }
 0x92a   : > { %v2304_v21 = vadd.f32 %v8970_v61, %v1850_v53  ;;  %v2300_v44 = vadd.f32 %v8956_v46, %v1850_v53  ;;  %v7996_v61 = vld [vmem:[%s8455_s14 + $0x280] sm:$0xff]   ;;  %v8018_v53 = vld [vmem:[%s8455_s14 + $0x3d0] sm:$0xff]  }
 0x92b   : > { %3585 = vmatmul.mubr.bf16.vlgmr.msra.gmra.mxu1 %v2430_v8  ;;  %3626 = vmatmul.mubr.bf16.vlgmr.msra.gmra.mxu0 %v2432_v49  ;;  %v2349_v60 = vadd.f32 %v2348_v25, %v1862_v29  ;;  %v2418_v8 = vmax.f32 %v2261_v13, 0.0  ;;  %v2345_v39 = vadd.f32 %v2344_v6, %v1862_v29  ;;  %v2388_v49 = vadd.f32 %v2387_v2, %v1870_v37  ;;  %v8007_v6 = vld [vmem:[%s8455_s14 + $0x328] sm:$0xff]   ;;  %v8009_v2 = vld [vmem:[%s8455_s14 + $0x360] sm:$0xff]   ;;  %v8019_v25 = vld [vmem:[%s8455_s14 + $0x310] sm:$0xff]  }
 0x92c   : > { %7295 = vmatpush3.bf16.msra.mxu1 %v7967_v38  ;;  %3666 = vmatprep.mubr.bf16.mxu1 %v2435_v23  ;;  %v7995_v38 = vld [vmem:[%s8455_s14 + $0x200] sm:$0xff]   ;;  %v2420_v28 = vmax.f32 %v2304_v21, 0.0  ;;  %v2404_v46 = vmax.f32 %v2300_v44, 0.0  ;;  %v2425_v23 = vmax.f32 %v2392_v35, 0.0  ;;  %v8021_v13 = vld [vmem:[%s8455_s14 + $0x348] sm:$0xff]   ;;  %v2347_v21 = vadd.f32 %v9025_v32, %v1858_v45 }
 0x92d   : > { %7317 = vmatpush3.bf16.msra.mxu0 %v7968_v40  ;;  %3707 = vmatprep.mubr.bf16.mxu0 %v2437_v33  ;;  %v7997_v40 = vld [vmem:[%s8455_s14 + $0x378] sm:$0xff]   ;;  %v2434_v33 = vpack.c.bf16 %v2418_v8, %v2402_v27  ;;  %v8022_v29 = vld [vmem:[%s8455_s14 + $0x3c8] sm:$0xff]   ;;  %v2343_v44 = vadd.f32 %v9013_v63, %v1858_v45 }
 0x92e   : > { %7296 = vmatprep.subr.bf16.mxu1 %v7969_v16  ;;  %7318 = vmatprep.subr.bf16.mxu0 %v7970_v47  ;;  %v2423_v16 = vmax.f32 %v2349_v60, 0.0  ;;  %v7999_v47 = vld [vmem:[%s8455_s14 + $0x338] sm:$0xff]   ;;  %v8024_v37 = vld [vmem:[%s8455_s14 + $0x388] sm:$0xff]   ;;  %v8026_v60 = vld [vmem:[%s8455_s14 + $0x3c0] sm:$0xff]  }
 0x92f   : > { %v2406_v32 = vmax.f32 %v2343_v44, 0.0 }
 0x930   : > { %7297 = vmatpush3.bf16.msra.mxu1 %v7971_v34  ;;  %v2407_v34 = vmax.f32 %v2345_v39, 0.0 }
 0x931   : > { %7319 = vmatpush3.bf16.msra.mxu0 %v7972_v31  ;;  %7298 = vmatprep.subr.bf16.mxu1 %v7973_v52  ;;  %v8000_v31 = vld [vmem:[%s8455_s14 + $0x3b8] sm:$0xff]   ;;  %v2436_v52 = vpack.c.bf16 %v2420_v28, %v2404_v46 }
 0x932   : > { %7320 = vmatprep.subr.bf16.mxu0 %v7974_v56  ;;  %v2409_v56 = vmax.f32 %v2388_v49, 0.0 }
 0x934   : > { %7299 = vmatpush3.bf16.msra.mxu1 %v7975_v57  ;;  %v8001_v57 = vld [vmem:[%s8455_s14 + $0x370] sm:$0xff]  }
 0x935   : > { %7321 = vmatpush3.bf16.msra.mxu0 %v7976_v30  ;;  %7300 = vmatprep.subr.bf16.mxu1 %v7977_v55  ;;  %v2439_v30 = vpack.c.bf16 %v2423_v16, %v2407_v34  ;;  %v8002_v55 = vld [vmem:[%s8455_s14 + $0x3f0] sm:$0xff]  }
 0x936   : > { %7322 = vmatprep.subr.bf16.mxu0 %v7978_v36  ;;  %v2441_v36 = vpack.c.bf16 %v2425_v23, %v2409_v56 }
 0x938   : > { %7301 = vmatpush3.bf16.msra.mxu1 %v7979_v0  ;;  %v8003_v0 = vld [vmem:[%s8455_s14 + $0x330] sm:$0xff]  }
 0x939   : > { %7323 = vmatpush3.bf16.msra.mxu0 %v7980_v14  ;;  %7302 = vmatprep.subr.bf16.mxu1 %v7981_v12  ;;  %v8004_v14 = vld [vmem:[%s8455_s14 + $0x3b0] sm:$0xff]   ;;  %v8005_v12 = vld [vmem:[%s8455_s14 + $0x368] sm:$0xff]  }
 0x93a   : > { %7324 = vmatprep.subr.bf16.mxu0 %v7982_v5  ;;  %v8006_v5 = vld [vmem:[%s8455_s14 + $0x3e8] sm:$0xff]  }
 0x93c   : > { %7303 = vmatpush3.bf16.msra.mxu1 %v7983_v9  ;;  %v8008_v9 = vld [vmem:[%s8455_s14 + $0x3a8] sm:$0xff]  }
 0x93d   : > { %7325 = vmatpush3.bf16.msra.mxu0 %v7984_v15  ;;  %7304 = vmatprep.subr.bf16.mxu1 %v7985_v18  ;;  %v8010_v15 = vld [vmem:[%s8455_s14 + $0x3e0] sm:$0xff]  }
 0x93e   : > { %7326 = vmatprep.subr.bf16.mxu0 %v7986_v54  ;;  %v8011_v18 = vld [vmem:[%s8455_s14 + $0x320] sm:$0xff]  }
 0x93f   : > { %v8012_v54 = vld [vmem:[%s8455_s14 + $0x3a0] sm:$0xff]  }
 0x940   : > { %7305 = vmatpush3.bf16.msra.mxu1 %v7987_v19  ;;  %v8013_v19 = vld [vmem:[%s8455_s14 + $0x358] sm:$0xff]  }
 0x941   : > { %7327 = vmatpush3.bf16.msra.mxu0 %v7988_v43  ;;  %7306 = vmatprep.subr.bf16.mxu1 %v7989_v7  ;;  %v8014_v43 = vld [vmem:[%s8455_s14 + $0x3d8] sm:$0xff]  }
 0x942   : > { %7328 = vmatprep.subr.bf16.mxu0 %v7990_v41  ;;  %v8015_v7 = vld [vmem:[%s8455_s14 + $0x318] sm:$0xff]  }
 0x943   : > { %v8016_v41 = vld [vmem:[%s8455_s14 + $0x398] sm:$0xff]  }
 0x944   : > { %7307 = vmatpush3.bf16.msra.mxu1 %v7991_v26  ;;  %v8020_v26 = vld [vmem:[%s8455_s14 + $0x390] sm:$0xff]  }
 0x945   : > { %7329 = vmatpush3.bf16.msra.mxu0 %v7992_v22  ;;  %7308 = vmatprep.subr.bf16.mxu1 %v7993_v4  ;;  %v1866_v22 = vrot.slane %v8982_v42, %v1833_v51  ;;  %v8023_v4 = vld [vmem:[%s8455_s14 + $0x308] sm:$0xff]   ;;  %v2422_v51 = vmax.f32 %v2347_v21, 0.0  ;;  %v8028_v42 = vld [vmem:[%s8455_s14 + $0x380] sm:$0xff]  }
 0x946   : > { %7330 = vmatprep.subr.bf16.mxu0 %v7994_v24  ;;  %v8025_v24 = vld [vmem:[%s8455_s14 + $0x340] sm:$0xff]  }
 0x947   : > { %v2390_v17 = vadd.f32 %v9028_v59, %v1866_v22  ;;  %v2386_v50 = vadd.f32 %v9016_v1, %v1866_v22  ;;  %v2438_v8 = vpack.c.bf16 %v2422_v51, %v2406_v32 }
 0x948   : > { %7309 = vmatpush3.bf16.msra.mxu1 %v7995_v38 }
 0x949   : > { %7331 = vmatpush3.bf16.msra.mxu0 %v7996_v61  ;;  %7338 = vmatprep.subr.bf16.mxu1 %v7997_v40  ;;  %v2424_v35 = vmax.f32 %v2390_v17, 0.0  ;;  %v2408_v38 = vmax.f32 %v2386_v50, 0.0 }
 0x94a   : > { %7360 = vmatprep.subr.bf16.mxu0 %v7998_v3 }
 0x94b   : > { %3667 = vmatmul.mubr.bf16.vlgmr.msra.gmra.mxu1 %v2434_v33  ;;  %v2440_v59 = vpack.c.bf16 %v2424_v35, %v2408_v38 }
 0x94c   : > { %3708 = vmatmul.mubr.bf16.vlgmr.msra.gmra.mxu0 %v2436_v52  ;;  %7339 = vmatpush3.bf16.msra.mxu1 %v7999_v47 }
 0x94d   : > { %3748 = vmatprep.mubr.bf16.mxu1 %v2439_v30  ;;  %7361 = vmatpush3.bf16.msra.mxu0 %v8000_v31  ;;  %v8106_v31 = vld [vmem:[%s8440_s19] sm:$0xff] }
 0x94e   : > { %3789 = vmatprep.mubr.bf16.mxu0 %v2441_v36  ;;  %7340 = vmatprep.subr.bf16.mxu1 %v8001_v57  ;;  %v2701_v52 = vrot.slane %v8106_v31, %v8911_v62 }
 0x94f   : > { %7362 = vmatprep.subr.bf16.mxu0 %v8002_v55 }
 0x950   : > { %7341 = vmatpush3.bf16.msra.mxu1 %v8003_v0 }
 0x951   : > { %7363 = vmatpush3.bf16.msra.mxu0 %v8004_v14  ;;  %7342 = vmatprep.subr.bf16.mxu1 %v8005_v12 }
 0x952   : > { %7364 = vmatprep.subr.bf16.mxu0 %v8006_v5 }
 0x954   : > { %7343 = vmatpush3.bf16.msra.mxu1 %v8007_v6 }
 0x955   : > { %7365 = vmatpush3.bf16.msra.mxu0 %v8008_v9  ;;  %7344 = vmatprep.subr.bf16.mxu1 %v8009_v2 }
 0x956   : > { %7366 = vmatprep.subr.bf16.mxu0 %v8010_v15 }
 0x958   : > { %7345 = vmatpush3.bf16.msra.mxu1 %v8011_v18 }
 0x959   : > { %7367 = vmatpush3.bf16.msra.mxu0 %v8012_v54  ;;  %7346 = vmatprep.subr.bf16.mxu1 %v8013_v19 }
 0x95a   : > { %7368 = vmatprep.subr.bf16.mxu0 %v8014_v43 }
 0x95c   : > { %7347 = vmatpush3.bf16.msra.mxu1 %v8015_v7 }
 0x95d   : > { %7369 = vmatpush3.bf16.msra.mxu0 %v8016_v41  ;;  %7348 = vmatprep.subr.bf16.mxu1 %v8017_v58 }
 0x95e   : > { %7370 = vmatprep.subr.bf16.mxu0 %v8018_v53 }
 0x960   : > { %7349 = vmatpush3.bf16.msra.mxu1 %v8019_v25 }
 0x961   : > { %7371 = vmatpush3.bf16.msra.mxu0 %v8020_v26  ;;  %7350 = vmatprep.subr.bf16.mxu1 %v8021_v13 }
 0x962   : > { %7372 = vmatprep.subr.bf16.mxu0 %v8022_v29 }
 0x964   : > { %7351 = vmatpush3.bf16.msra.mxu1 %v8023_v4 }
 0x965   : > { %7373 = vmatpush3.bf16.msra.mxu0 %v8024_v37  ;;  %7352 = vmatprep.subr.bf16.mxu1 %v8025_v24 }
 0x966   : > { %7374 = vmatprep.subr.bf16.mxu0 %v8026_v60 }
 0x968   : > { %7353 = vmatpush3.bf16.msra.mxu1 %v8027_v20 }
 0x969   : > { %7375 = vmatpush3.bf16.msra.mxu0 %v8028_v42 }
 0x96b   : > { %3749 = vmatmul.mubr.bf16.vlgmr.msra.gmra.mxu1 %v2438_v8 }
 0x96c   : > { %3790 = vmatmul.mubr.bf16.vlgmr.msra.gmra.mxu0 %v2440_v59 }
 0x9cb   : > { %v7222_v63 = vpop.f32.mrf.mxu1  ;;  %v7244_v39 = vpop.f32.mrf.mxu0 }
 0x9cd   : > { %v7223_v1 = vpop.f32.mrf.mxu1  ;;  %v7245_v61 = vpop.f32.mrf.mxu0 }
 0x9ce   : > { %v7224_v56 = vadd.f32 %v7223_v1, %v7222_v63  ;;  %v7246_v12 = vadd.f32 %v7245_v61, %v7244_v39 }
 0x9cf   : > { %v7225_v40 = vpop.f32.mrf.mxu1  ;;  %v7247_v28 = vpop.f32.mrf.mxu0 }
 0x9d0   : > { %v3505_v55 = vadd.f32 %v7224_v56, %v2701_v52 }
 0x9d1   : > { %v7226_v49 = vpop.f32.mrf.mxu1  ;;  %v7248_v27 = vpop.f32.mrf.mxu0 }
 0x9d2   : > { %v7227_v36 = vadd.f32 %v7226_v49, %v7225_v40  ;;  %v3546_v6 = vadd.f32 %v7246_v12, %v3505_v55  ;;  %v7249_v18 = vadd.f32 %v7248_v27, %v7247_v28 }
 0x9d4   : > { %v3508_v9 = vadd.f32 %v7227_v36, %v2701_v52 }
 0x9d6   : > { %v3549_v43 = vadd.f32 %v7249_v18, %v3508_v9 }
 0x9eb   : > { %v7266_v3 = vpop.f32.mrf.mxu1  ;;  %v7288_v16 = vpop.f32.mrf.mxu0 }
 0x9ed   : > { %v7267_v46 = vpop.f32.mrf.mxu1  ;;  %v7289_v23 = vpop.f32.mrf.mxu0 }
 0x9ee   : > { %v7268_v5 = vadd.f32 %v7267_v46, %v7266_v3  ;;  %v7290_v7 = vadd.f32 %v7289_v23, %v7288_v16 }
 0x9ef   : > { %v7269_v47 = vpop.f32.mrf.mxu1  ;;  %v7291_v33 = vpop.f32.mrf.mxu0 }
 0x9f0   : > { %v3587_v54 = vadd.f32 %v7268_v5, %v3546_v6  ;;  %v3832_v6 = vpop.permute.xlu0 %3831 }
 0x9f1   : > { %v7270_v34 = vpop.f32.mrf.mxu1  ;;  %v7292_v30 = vpop.f32.mrf.mxu0 }
 0x9f2   : > { %v7271_v19 = vadd.f32 %v7270_v34, %v7269_v47  ;;  %v3628_v53 = vadd.f32 %v7290_v7, %v3587_v54  ;;  %v7293_v26 = vadd.f32 %v7292_v30, %v7291_v33 }
 0x9f4   : > { %v3590_v25 = vadd.f32 %v7271_v19, %v3549_v43 }
 0x9f6   : > { %v3631_v4 = vadd.f32 %v7293_v26, %v3590_v25 }
 0xa0b   : > { %v7310_v57 = vpop.f32.mrf.mxu1 }
 0xa0c   : > { %v7332_v0 = vpop.f32.mrf.mxu0 }
 0xa0d   : > { %v7311_v14 = vpop.f32.mrf.mxu1 }
 0xa0e   : > { %v7333_v2 = vpop.f32.mrf.mxu0  ;;  %v7312_v41 = vadd.f32 %v7311_v14, %v7310_v57 }
 0xa0f   : > { %v7313_v15 = vpop.f32.mrf.mxu1  ;;  %v7334_v21 = vadd.f32 %v7333_v2, %v7332_v0 }
 0xa10   : > { %v7335_v62 = vpop.f32.mrf.mxu0  ;;  %v3669_v13 = vadd.f32 %v7312_v41, %v3628_v53 }
 0xa11   : > { %v7314_v58 = vpop.f32.mrf.mxu1 }
 0xa12   : > { %v7315_v29 = vadd.f32 %v7314_v58, %v7313_v15  ;;  %v7336_v45 = vpop.f32.mrf.mxu0  ;;  %v3710_v17 = vadd.f32 %v7334_v21, %v3669_v13 }
 0xa13   : > { %v7337_v51 = vadd.f32 %v7336_v45, %v7335_v62 }
 0xa14   : > { %v3672_v60 = vadd.f32 %v7315_v29, %v3631_v4 }
 0xa16   : > { %v3713_v8 = vadd.f32 %v7337_v51, %v3672_v60 }
 0xa2b   : > { %v7354_v22 = vpop.f32.mrf.mxu1 }
 0xa2c   : > { %v7376_v37 = vpop.f32.mrf.mxu0 }
 0xa2d   : > { %v7355_v24 = vpop.f32.mrf.mxu1 }
 0xa2e   : > { %v7356_v44 = vadd.f32 %v7355_v24, %v7354_v22  ;;  %v7377_v50 = vpop.f32.mrf.mxu0 }
 0xa2f   : > { %v7357_v20 = vpop.f32.mrf.mxu1  ;;  %v7378_v35 = vadd.f32 %v7377_v50, %v7376_v37 }
 0xa30   : > { %v3751_v42 = vadd.f32 %v7356_v44, %v3710_v17  ;;  %v7379_v32 = vpop.f32.mrf.mxu0 }
 0xa31   : > { %v7358_v38 = vpop.f32.mrf.mxu1 }
 0xa32   : > { %v3792_v59 = vadd.f32 %v7378_v35, %v3751_v42  ;;  %v7359_v63 = vadd.f32 %v7358_v38, %v7357_v20  ;;  %v7380_v39 = vpop.f32.mrf.mxu0 }
 0xa33   : > { %v7381_v61 = vadd.f32 %v7380_v39, %v7379_v32 }
 0xa34   : > { %v3754_v1 = vadd.f32 %v7359_v63, %v3713_v8  ;;  %v3798_v40 = vadd.f32 %v3792_v59, %v8829_v11 }
 0xa36   : > { %v3795_v28 = vadd.f32 %v7381_v61, %v3754_v1  ;;  %v3800_v49 = vsel %vm9838_vm15, %v3798_v40, 0.0 }
 0xa37   : > { %3801 = vadd.xlane.f32.xlu1 %v3800_v49 }
 0xa38   : > { %v3799_v3 = vadd.f32 %v3795_v28, %v8831_v48 }
 0xa3a   : > { %v3803_v27 = vsel %vm9839_vm1, %v3799_v3, 0.0 }
 0xa3b   : > { %3804 = vadd.xlane.f32.xlu1 %v3803_v27 }
 0xac0   : > { %v3802_v16 = vpop.xlane.xlu1 %3801 }
 0xac1   : > { %v3806_v46 = vmul.f32 0.03125, %v3802_v16 }
 0xac3   : > { %v3808_v23 = vsub.f32 %v3798_v40, %v3806_v46 }
 0xac4   : > { %v3805_v47 = vpop.xlane.xlu1 %3804 }
 0xac5   : > { %v3807_v33 = vmul.f32 0.03125, %v3805_v47  ;;  %v3810_v34 = vmul.f32 %v3808_v23, %v3808_v23 }
 0xac7   : > { %v3809_v31 = vsub.f32 %v3799_v3, %v3807_v33  ;;  %v3812_v52 = vsel %vm9840_vm2, %v3810_v34, 0.0 }
 0xac8   : > { %3813 = vadd.xlane.f32.xlu1 %v3812_v52 }
 0xac9   : > { %v3811_v11 = vmul.f32 %v3809_v31, %v3809_v31 }
 0xacb   : > { %v3815_v56 = vsel %vm9841_vm4, %v3811_v11, 0.0 }
 0xacc   : > { %3816 = vadd.xlane.f32.xlu1 %v3815_v56 }
 0xadd   : > { %3826 = vrot.lane.b32.xlu1 %v8803_v10, %s8347_s11 }
 0xb51   : > { %v3814_v48 = vpop.xlane.xlu1 %3813 }
 0xb52   : > { %v3818_v57 = vmul.f32 0.03125, %v3814_v48 }
 0xb54   : > { %v3820_v30 = vadd.f32 1e-05, %v3818_v57 }
 0xb55   : > { %v3817_v55 = vpop.xlane.xlu1 %3816 }
 0xb56   : > { %8097 = vrsqrt.f32 %v3820_v30  ;;  %v3819_v36 = vmul.f32 0.03125, %v3817_v55 }
 0xb58   : > { %v3821_v0 = vadd.f32 1e-05, %v3819_v36 }
 0xb59   : > { %v3827_v12 = vpop.permute.xlu1 %3826 }
 0xb5a   : > { %8099 = vrsqrt.f32 %v3821_v0 }
 0xb63   : > { %v8098_v14 = vpop.eup %8097 }
 0xb64   : > { %v3824_v5 = vmul.f32 %v8098_v14, %v3808_v23 }
 0xb66   : > { %v3829_v9 = vmul.f32 %v3827_v12, %v3824_v5 }
 0xb67   : > { %v8100_v2 = vpop.eup %8099 }
 0xb68   : > { %v3825_v15 = vmul.f32 %v8100_v2, %v3809_v31  ;;  %v3834_v18 = vadd.f32 %v3832_v6, %v3829_v9 }
 0xb6a   : > { %v3830_v54 = vmul.f32 %v3827_v12, %v3825_v15  ;;  %3836 = vst.msk [vmem:[#allocation2] sm:$0xff] %vm9842_vm5, %v3834_v18  ;;  %3841 = sbr.rel (%p7069_p5) target bundleno = 23507 (0x5bd3), region = 64 }
 0xb6c   : > { %v3835_v10 = vadd.f32 %v3832_v6, %v3830_v54 }
 0xb6e   : > { %3837 = vst.msk [vmem:[#allocation2 + $0x8] sm:$0xff] %vm9843_vm3, %v3835_v10 }
 0xb6f   : > { %v8117_v19 = vld [vmem:[%s9809_s2 + $0x10] sm:$0xff]   ;;  %v8364_v43 = vmov 0.0   ;;  %v9116_v7 = vld [vmem:[%s9809_s2 + $0x48] sm:$0xff]   ;;  %vm8365_vm6 = vmmov 0   ;;  %v9128_v62 = vpack.c.bf16 %v3835_v10, %v3834_v18  ;;  %v8366_v58 = vmov 0  }
 0xb70   : > { %7581 = vmatprep.subr.bf16.mxu0 %v8364_v43  ;;  %7589 = vmatprep.subr.bf16.mxu1 %v8364_v43  ;;  %v8119_v41 = vld [vmem:[%s9809_s2 + $0x8] sm:$0xff]   ;;  %vm9844_vm7 = vcmask 261120   ;;  %v9145_v53 = vld [vmem:[%s9810_s3 + $0x1] ss:$0 sm:$0xff]  ;;  %v7070_v21 = vld [vmem:[%s9810_s3] ss:$0 sm:$0xff] }
 0xb71   : > { %7582 = vmatpush3.bf16.msra.mxu0 %v8117_v19  ;;  %7591 = vmatprep.mubr.msk.bf16.mxu1 %vm8365_vm6, %v8364_v43  ;;  %vm4540_vm8 = vcmask 1043456   ;;  %vm9845_vm10 = vcmask 1041408   ;;  %vm4542_vm11 = vcmask 1045504   ;;  %vm9846_vm12 = vmmov %vm9844_vm7 }
 0xb72   : > { %7590 = vmatpush3.bf16.msra.mxu1 %v9116_v7  ;;  %7583 = vmatprep.subr.bf16.mxu0 %v8364_v43  ;;  %vm9847_vm13 = vmmov %vm9845_vm10 }
 0xb73   : > { %7585 = vmatprep.mubr.msk.bf16.mxu0 %vm8365_vm6, %v8364_v43  ;;  %7595 = vmatprep.subr.bf16.mxu1 %v8364_v43  ;;  %vm9848_vm14 = vmmov %vm9845_vm10 }
 0xb74   : > { %vm9849_vm0 = vmmov %vm9845_vm10 }
 0xb75   : > { %7592 = vmatmul.mubr.bf16.vlgmr.msra.gmra.mxu1 %v8366_v58  ;;  %7584 = vmatpush3.bf16.msra.mxu0 %v8119_v41  ;;  %vm9850_vm15 = vmmov %vm9844_vm7 }
 0xb76   : > { %7596 = vmatpush3.bf16.msra.mxu1 %v9116_v7  ;;  %7597 = vmatprep.mubr.msk.bf16.mxu1 %vm8365_vm6, %v8364_v43  ;;  %vm9851_vm1 = vmmov %vm9849_vm0 }
 0xb77   : > { %7601 = vmatprep.subr.bf16.mxu0 %v8364_v43  ;;  %7607 = vmatprep.subr.bf16.mxu1 %v8364_v43  ;;  %vm9852_vm2 = vmmov %vm9844_vm7 }
 0xb78   : > { %7586 = vmatmul.mubr.msk.bf16.vlgmr.msra.gmra.mxu0 %vm9844_vm7, %v9128_v62  ;;  %vm9853_vm4 = vmmov %vm9849_vm0  ;;  %vm6787_vm7 = vcmask 7168  }
 0xb79   : > { %7602 = vmatpush3.bf16.msra.mxu0 %v9116_v7  ;;  %7603 = vmatprep.mubr.msk.bf16.mxu0 %vm8365_vm6, %v8364_v43  ;;  %vm9854_vm5 = vmmov %vm9849_vm0 }
 0xb7a   : > { %7613 = vmatprep.subr.bf16.mxu0 %v8364_v43  ;;  %vm9855_vm3 = vmmov %vm9849_vm0 }
 0xc35   : > { %v3958_v25 = vpop.f32.mrf.mxu1 }
 0xc36   : > { %v3959_v26 = vadd.f32 %v9145_v53, %v3958_v25 }
 0xc37   : > { %v7593_v13 = vpop.f32.mrf.mxu1 }
 0xc38   : > { %3972 = vrot.lane.b32.xlu0 %v3959_v26, %s8367_s23  ;;  %v3904_v29 = vpop.f32.mrf.mxu0 }
 0xc39   : > { %v3961_v45 = vpop.f32.mrf.mxu1  ;;  %v9154_v60 = vadd.f32 %v7070_v21, %v3904_v29 }
 0xc3a   : > { %v7587_v22 = vpop.f32.mrf.mxu0 }
 0xc3b   : > { %v7594_v4 = vpop.f32.mrf.mxu1  ;;  %v3964_v44 = vadd.f32 %v3959_v26, %v9154_v60 }
 0xc3c   : > { %v3907_v37 = vpop.f32.mrf.mxu0 }
 0xc3d   : > { %v9152_v24 = vadd.f32 %v7070_v21, %v3907_v37  ;;  %v7076_v50 = vmul.f32 -1.442695, %v3964_v44 }
 0xc3e   : > { %v7588_v17 = vpop.f32.mrf.mxu0 }
 0xc3f   : > { %8132 = vpow2.f32 %v7076_v50 }
 0xc4c   : > { %v8133_v20 = vpop.eup %8132 }
 0xc4d   : > { %v3968_v51 = vadd.f32 1.0, %v8133_v20 }
 0xc4f   : > { %8134 = vrcp.f32 %v3968_v51 }
 0xc5c   : > { %v8135_v42 = vpop.eup %8134 }
 0xc5d   : > { %v3982_v63 = vsub.f32 1.0, %v8135_v42  ;;  %v3988_v1 = vmul.f32 0.0, %v8135_v42 }
 0xcaa   : > { %v3973_v35 = vpop.permute.xlu0 %3972 }
 0xcab   : > { %v3975_v32 = vmul.f32 %v8135_v42, %v3973_v35 }
 0xcad   : > { %3977 = vrot.lane.b32.xlu0 %v3975_v32, %s8368_s28 }
 0xd1f   : > { %v3978_v38 = vpop.permute.xlu0 %3977 }
 0xd20   : > { %v3980_v8 = vadd.f32 %v3978_v38, %v9154_v60 }
 0xd22   : > { %8136 = vtanh.f32 %v3980_v8 }
 0xd2f   : > { %v8137_v59 = vpop.eup %8136 }
 0xd30   : > { %3984 = vrot.lane.b32.xlu1 %v8137_v59, %s8369_s29 }
 0xda2   : > { %v3985_v39 = vpop.permute.xlu1 %3984 }
 0xda3   : > { %v3987_v61 = vmul.f32 %v3985_v39, %v3982_v63 }
 0xda5   : > { %v9160_v40 = vadd.f32 %v3988_v1, %v3987_v61 }
 0xda7   : > { %v3990_v28 = vpack.c.bf16 %v9160_v40, %v9160_v40  ;;  %v4064_v0 = vrot.slane %v9160_v40, 6 }
 0xda9   : > { %3992 = vrot.lane.b32.xlu1 %v3990_v28, %s8369_s29 }
 0xe1b   : > { %v3993_v49 = vpop.permute.xlu1 %3992 }
 0xe1c   : > { %7598 = vmatmul.mubr.msk.bf16.vlgmr.msra.gmra.mxu1 %vm688_vm9, %v3993_v49 }
 0xe1d   : > { %7608 = vmatpush3.bf16.msra.mxu1 %v9116_v7  ;;  %7609 = vmatprep.mubr.msk.bf16.mxu1 %vm8365_vm6, %v8364_v43 }
 0xe1e   : > { %7619 = vmatprep.subr.bf16.mxu1 %v8364_v43 }
 0xedc   : > { %v4031_v3 = vpop.f32.mrf.mxu1 }
 0xedd   : > { %v4032_v27 = vadd.f32 %v9145_v53, %v4031_v3 }
 0xede   : > { %v7599_v16 = vpop.f32.mrf.mxu1 }
 0xedf   : > { %v4038_v46 = vrot.slane %v4032_v27, 6 }
 0xee0   : > { %v4034_v23 = vpop.f32.mrf.mxu1 }
 0xee1   : > { %4047 = vrot.lane.b32.xlu0 %v4038_v46, %s8367_s23  ;;  %v4040_v33 = vadd.f32 %v4038_v46, %v9154_v60 }
 0xee2   : > { %v7600_v47 = vpop.f32.mrf.mxu1 }
 0xee3   : > { %v7078_v34 = vmul.f32 -1.442695, %v4040_v33 }
 0xee5   : > { %8138 = vpow2.f32 %v7078_v34 }
 0xef2   : > { %v8139_v31 = vpop.eup %8138 }
 0xef3   : > { %v4044_v52 = vadd.f32 1.0, %v8139_v31 }
 0xef5   : > { %8140 = vrcp.f32 %v4044_v52 }
 0xf02   : > { %v8141_v11 = vpop.eup %8140 }
 0xf03   : > { %v4057_v36 = vsub.f32 1.0, %v8141_v11  ;;  %v4066_v12 = vmul.f32 %v8141_v11, %v4064_v0 }
 0xf53   : > { %v4048_v56 = vpop.permute.xlu0 %4047 }
 0xf54   : > { %v4050_v48 = vmul.f32 %v8141_v11, %v4048_v56 }
 0xf56   : > { %4052 = vrot.lane.b32.xlu1 %v4050_v48, %s8368_s28 }
 0xfc8   : > { %v4053_v57 = vpop.permute.xlu1 %4052 }
 0xfc9   : > { %v4055_v30 = vadd.f32 %v4053_v57, %v9154_v60 }
 0xfcb   : > { %8142 = vtanh.f32 %v4055_v30 }
 0xfd8   : > { %v8143_v55 = vpop.eup %8142 }
 0xfd9   : > { %4059 = vrot.lane.b32.xlu0 %v8143_v55, %s8369_s29 }
0x104b   : > { %v4060_v14 = vpop.permute.xlu0 %4059 }
0x104c   : > { %v4062_v5 = vmul.f32 %v4060_v14, %v4057_v36 }
0x104e   : > { %v4067_v6 = vadd.f32 %v4066_v12, %v4062_v5 }
0x1050   : > { %v4068_v9 = vpack.c.bf16 %v4067_v6, %v4067_v6  ;;  %v4143_v20 = vrot.slane %v4067_v6, 6  ;;  %v4539_v38 = vsel %vm9845_vm10, %v9160_v40, %v4067_v6 }
0x1052   : > { %v4070_v2 = vrot.slane %v4068_v9, 1 }
0x1054   : > { %4071 = vrot.lane.b32.xlu1 %v4070_v2, %s8369_s29 }
0x10c6   : > { %v4072_v15 = vpop.permute.xlu1 %4071 }
0x10c7   : > { %7604 = vmatmul.mubr.msk.bf16.vlgmr.msra.gmra.mxu0 %vm688_vm9, %v4072_v15 }
0x10c8   : > { %7614 = vmatpush3.bf16.msra.mxu0 %v9116_v7  ;;  %7615 = vmatprep.mubr.msk.bf16.mxu0 %vm8365_vm6, %v8364_v43 }
0x10c9   : > { %7625 = vmatprep.subr.bf16.mxu0 %v8364_v43 }
0x1187   : > { %v4110_v18 = vpop.f32.mrf.mxu0 }
0x1188   : > { %v4111_v54 = vadd.f32 %v9145_v53, %v4110_v18 }
0x1189   : > { %v7605_v10 = vpop.f32.mrf.mxu0 }
0x118a   : > { %v4117_v19 = vrot.slane %v4111_v54, 4 }
0x118b   : > { %v4113_v41 = vpop.f32.mrf.mxu0 }
0x118c   : > { %4126 = vrot.lane.b32.xlu0 %v4117_v19, %s8367_s23  ;;  %v4119_v26 = vadd.f32 %v4117_v19, %v9154_v60 }
0x118d   : > { %v7606_v25 = vpop.f32.mrf.mxu0 }
0x118e   : > { %v7080_v13 = vmul.f32 -1.442695, %v4119_v26 }
0x1190   : > { %8144 = vpow2.f32 %v7080_v13 }
0x119d   : > { %v8145_v29 = vpop.eup %8144 }
0x119e   : > { %v4123_v45 = vadd.f32 1.0, %v8145_v29 }
0x11a0   : > { %8146 = vrcp.f32 %v4123_v45 }
0x11ad   : > { %v8147_v22 = vpop.eup %8146 }
0x11ae   : > { %v4136_v50 = vsub.f32 1.0, %v8147_v22  ;;  %v4145_v42 = vmul.f32 %v8147_v22, %v4143_v20 }
0x11fe   : > { %v4127_v4 = vpop.permute.xlu0 %4126 }
0x11ff   : > { %v4129_v21 = vmul.f32 %v8147_v22, %v4127_v4 }
0x1201   : > { %4131 = vrot.lane.b32.xlu1 %v4129_v21, %s8368_s28 }
0x1273   : > { %v4132_v37 = vpop.permute.xlu1 %4131 }
0x1274   : > { %v4134_v17 = vadd.f32 %v4132_v37, %v9154_v60 }
0x1276   : > { %8148 = vtanh.f32 %v4134_v17 }
0x1283   : > { %v8149_v44 = vpop.eup %8148 }
0x1284   : > { %4138 = vrot.lane.b32.xlu0 %v8149_v44, %s8369_s29 }
0x12f6   : > { %v4139_v51 = vpop.permute.xlu0 %4138 }
0x12f7   : > { %v4141_v35 = vmul.f32 %v4139_v51, %v4136_v50 }
0x12f9   : > { %v4146_v32 = vadd.f32 %v4145_v42, %v4141_v35 }
0x12fb   : > { %v4147_v8 = vpack.c.bf16 %v4146_v32, %v4146_v32  ;;  %v4541_v59 = vsel %vm4540_vm8, %v4539_v38, %v4146_v32  ;;  %v4222_v48 = vrot.slane %v4146_v32, 6 }
0x12fd   : > { %v4149_v63 = vrot.slane %v4147_v8, 2 }
0x12ff   : > { %4150 = vrot.lane.b32.xlu1 %v4149_v63, %s8369_s29 }
0x1371   : > { %v4151_v39 = vpop.permute.xlu1 %4150 }
0x1372   : > { %7610 = vmatmul.mubr.msk.bf16.vlgmr.msra.gmra.mxu1 %vm688_vm9, %v4151_v39 }
0x1373   : > { %7620 = vmatpush3.bf16.msra.mxu1 %v9116_v7  ;;  %7621 = vmatprep.mubr.msk.bf16.mxu1 %vm8365_vm6, %v8364_v43 }
0x1374   : > { %7631 = vmatprep.subr.bf16.mxu1 %v8364_v43 }
0x1432   : > { %v4189_v1 = vpop.f32.mrf.mxu1 }
0x1433   : > { %v4190_v61 = vadd.f32 %v9145_v53, %v4189_v1 }
0x1434   : > { %v7611_v40 = vpop.f32.mrf.mxu1 }
0x1435   : > { %v4196_v28 = vrot.slane %v4190_v61, 2 }
0x1436   : > { %v4192_v49 = vpop.f32.mrf.mxu1 }
0x1437   : > { %4205 = vrot.lane.b32.xlu0 %v4196_v28, %s8367_s23  ;;  %v4198_v27 = vadd.f32 %v4196_v28, %v9154_v60 }
0x1438   : > { %v7612_v3 = vpop.f32.mrf.mxu1 }
0x1439   : > { %v7082_v16 = vmul.f32 -1.442695, %v4198_v27 }
0x143b   : > { %8150 = vpow2.f32 %v7082_v16 }
0x1448   : > { %v8151_v46 = vpop.eup %8150 }
0x1449   : > { %v4202_v23 = vadd.f32 1.0, %v8151_v46 }
0x144b   : > { %8152 = vrcp.f32 %v4202_v23 }
0x1458   : > { %v8153_v47 = vpop.eup %8152 }
0x1459   : > { %v4215_v56 = vsub.f32 1.0, %v8153_v47  ;;  %v4224_v30 = vmul.f32 %v8153_v47, %v4222_v48 }
0x14a9   : > { %v4206_v33 = vpop.permute.xlu0 %4205 }
0x14aa   : > { %v4208_v34 = vmul.f32 %v8153_v47, %v4206_v33 }
0x14ac   : > { %4210 = vrot.lane.b32.xlu1 %v4208_v34, %s8368_s28 }
0x151e   : > { %v4211_v31 = vpop.permute.xlu1 %4210 }
0x151f   : > { %v4213_v52 = vadd.f32 %v4211_v31, %v9154_v60 }
0x1521   : > { %8154 = vtanh.f32 %v4213_v52 }
0x152e   : > { %v8155_v11 = vpop.eup %8154 }
0x152f   : > { %4217 = vrot.lane.b32.xlu0 %v8155_v11, %s8369_s29 }
0x15a1   : > { %v4218_v57 = vpop.permute.xlu0 %4217 }
0x15a2   : > { %v4220_v55 = vmul.f32 %v4218_v57, %v4215_v56 }
0x15a4   : > { %v4225_v36 = vadd.f32 %v4224_v30, %v4220_v55 }
0x15a6   : > { %v4226_v0 = vpack.c.bf16 %v4225_v36, %v4225_v36  ;;  %v9205_v14 = vsel %vm4542_vm11, %v4541_v59, %v4225_v36  ;;  %v4299_v4 = vrot.slane %v4225_v36, 6 }
0x15a8   : > { %v4228_v12 = vrot.slane %v4226_v0, 3 }
0x15aa   : > { %4229 = vrot.lane.b32.xlu1 %v4228_v12, %s8369_s29 }
0x161c   : > { %v4230_v5 = vpop.permute.xlu1 %4229 }
0x161d   : > { %7616 = vmatmul.mubr.msk.bf16.vlgmr.msra.gmra.mxu0 %vm688_vm9, %v4230_v5 }
0x161e   : > { %7626 = vmatpush3.bf16.msra.mxu0 %v9116_v7  ;;  %7627 = vmatprep.mubr.msk.bf16.mxu0 %vm8365_vm6, %v8364_v43 }
0x161f   : > { %7637 = vmatprep.subr.bf16.mxu0 %v8364_v43 }
0x16dd   : > { %v4268_v60 = vpop.f32.mrf.mxu0 }
0x16de   : > { %v4269_v6 = vadd.f32 %v9145_v53, %v4268_v60 }
0x16df   : > { %v7617_v9 = vpop.f32.mrf.mxu0 }
0x16e0   : > { %4282 = vrot.lane.b32.xlu0 %v4269_v6, %s8367_s23  ;;  %v4274_v18 = vadd.f32 %v4269_v6, %v9152_v24 }
0x16e1   : > { %v4271_v2 = vpop.f32.mrf.mxu0 }
0x16e2   : > { %v7084_v54 = vmul.f32 -1.442695, %v4274_v18 }
0x16e3   : > { %v7618_v15 = vpop.f32.mrf.mxu0 }
0x16e4   : > { %8156 = vpow2.f32 %v7084_v54  ;;  %v8120_v15 = vld [vmem:[%s9809_s2 + $0x20] sm:$0xff]   ;;  %v8122_v54 = vld [vmem:[%s9809_s2 + $0x18] sm:$0xff]  }
0x16f1   : > { %v8157_v10 = vpop.eup %8156 }
0x16f2   : > { %v4278_v19 = vadd.f32 1.0, %v8157_v10 }
0x16f4   : > { %8158 = vrcp.f32 %v4278_v19 }
0x1701   : > { %v8159_v41 = vpop.eup %8158 }
0x1702   : > { %v4292_v22 = vsub.f32 1.0, %v8159_v41  ;;  %v4301_v37 = vmul.f32 %v8159_v41, %v4299_v4 }
0x1752   : > { %v4283_v25 = vpop.permute.xlu0 %4282 }
0x1753   : > { %v4285_v26 = vmul.f32 %v8159_v41, %v4283_v25 }
0x1755   : > { %4287 = vrot.lane.b32.xlu1 %v4285_v26, %s8368_s28 }
0x17c7   : > { %v4288_v13 = vpop.permute.xlu1 %4287 }
0x17c8   : > { %v4290_v29 = vadd.f32 %v4288_v13, %v9152_v24  ;;  %v9257_v13 = vld [vmem:[%s9809_s2 + $0x50] sm:$0xff]  }
0x17ca   : > { %8160 = vtanh.f32 %v4290_v29 }
0x17d7   : > { %v8161_v45 = vpop.eup %8160 }
0x17d8   : > { %4294 = vrot.lane.b32.xlu0 %v8161_v45, %s8369_s29 }
0x184a   : > { %v4295_v21 = vpop.permute.xlu0 %4294 }
0x184b   : > { %v4297_v17 = vmul.f32 %v4295_v21, %v4292_v22 }
0x184d   : > { %v9219_v44 = vadd.f32 %v4301_v37, %v4297_v17 }
0x184f   : > { %v4303_v50 = vpack.c.bf16 %v9219_v44, %v9219_v44  ;;  %v4377_v16 = vrot.slane %v9219_v44, 6 }
0x1851   : > { %4305 = vrot.lane.b32.xlu1 %v4303_v50, %s8369_s29 }
0x18c3   : > { %v4306_v20 = vpop.permute.xlu1 %4305 }
0x18c4   : > { %7622 = vmatmul.mubr.msk.bf16.vlgmr.msra.gmra.mxu1 %vm688_vm9, %v4306_v20  ;;  %v7091_v20 = vld [vmem:[%s9810_s3 + $0x2] ss:$0 sm:$0xff] }
0x18c5   : > { %7632 = vmatpush3.bf16.msra.mxu1 %v9116_v7  ;;  %7633 = vmatprep.mubr.msk.bf16.mxu1 %vm8365_vm6, %v8364_v43 }
0x18c6   : > { %7645 = vmatprep.subr.bf16.mxu1 %v8364_v43 }
0x1984   : > { %v4344_v51 = vpop.f32.mrf.mxu1 }
0x1985   : > { %v4345_v42 = vadd.f32 %v9145_v53, %v4344_v51 }
0x1986   : > { %v7623_v35 = vpop.f32.mrf.mxu1 }
0x1987   : > { %v4351_v32 = vrot.slane %v4345_v42, 6 }
0x1988   : > { %v4347_v38 = vpop.f32.mrf.mxu1 }
0x1989   : > { %4360 = vrot.lane.b32.xlu0 %v4351_v32, %s8367_s23  ;;  %v4353_v59 = vadd.f32 %v4351_v32, %v9152_v24 }
0x198a   : > { %v7624_v8 = vpop.f32.mrf.mxu1 }
0x198b   : > { %v7086_v63 = vmul.f32 -1.442695, %v4353_v59  ;;  %v9296_v8 = vld [vmem:[%s9810_s3 + $0x3] ss:$0 sm:$0xff] }
0x198d   : > { %8162 = vpow2.f32 %v7086_v63 }
0x199a   : > { %v8163_v39 = vpop.eup %8162 }
0x199b   : > { %v4357_v7 = vadd.f32 1.0, %v8163_v39 }
0x199d   : > { %8164 = vrcp.f32 %v4357_v7 }
0x19aa   : > { %v8165_v1 = vpop.eup %8164 }
0x19ab   : > { %v4370_v27 = vsub.f32 1.0, %v8165_v1  ;;  %v4379_v23 = vmul.f32 %v8165_v1, %v4377_v16 }
0x19fb   : > { %v4361_v61 = vpop.permute.xlu0 %4360 }
0x19fc   : > { %v4363_v40 = vmul.f32 %v8165_v1, %v4361_v61 }
0x19fe   : > { %4365 = vrot.lane.b32.xlu1 %v4363_v40, %s8368_s28 }
0x1a70   : > { %v4366_v28 = vpop.permute.xlu1 %4365 }
0x1a71   : > { %v4368_v49 = vadd.f32 %v4366_v28, %v9152_v24 }
0x1a73   : > { %8166 = vtanh.f32 %v4368_v49 }
0x1a80   : > { %v8167_v3 = vpop.eup %8166 }
0x1a81   : > { %4372 = vrot.lane.b32.xlu0 %v8167_v3, %s8369_s29 }
0x1af3   : > { %v4373_v46 = vpop.permute.xlu0 %4372 }
0x1af4   : > { %v4375_v47 = vmul.f32 %v4373_v46, %v4370_v27 }
0x1af6   : > { %v4380_v33 = vadd.f32 %v4379_v23, %v4375_v47 }
0x1af8   : > { %v4381_v34 = vpack.c.bf16 %v4380_v33, %v4380_v33  ;;  %v4456_v19 = vrot.slane %v4380_v33, 6  ;;  %v4544_v45 = vsel %vm9847_vm13, %v9219_v44, %v4380_v33 }
0x1afa   : > { %v4383_v31 = vrot.slane %v4381_v34, 1 }
0x1afc   : > { %4384 = vrot.lane.b32.xlu1 %v4383_v31, %s8369_s29 }
0x1b6e   : > { %v4385_v52 = vpop.permute.xlu1 %4384 }
0x1b6f   : > { %7628 = vmatmul.mubr.msk.bf16.vlgmr.msra.gmra.mxu0 %vm688_vm9, %v4385_v52 }
0x1b70   : > { %7641 = vmatprep.mubr.msk.bf16.mxu0 %vm8365_vm6, %v8364_v43  ;;  %7638 = vmatpush3.bf16.msra.mxu0 %v8120_v15 }
0x1b71   : > { %7639 = vmatprep.subr.bf16.mxu0 %v8364_v43 }
0x1b74   : > { %7640 = vmatpush3.bf16.msra.mxu0 %v8122_v54 }
0x1b75   : > { %7651 = vmatprep.subr.bf16.mxu0 %v8364_v43 }
0x1b77   : > { %7642 = vmatmul.mubr.msk.bf16.vlgmr.msra.gmra.mxu0 %vm9846_vm12, %v9128_v62 }
0x1b78   : > { %7652 = vmatpush3.bf16.msra.mxu0 %v9257_v13  ;;  %7653 = vmatprep.mubr.msk.bf16.mxu0 %vm8365_vm6, %v8364_v43 }
0x1b79   : > { %7663 = vmatprep.subr.bf16.mxu0 %v8364_v43 }
0x1c2f   : > { %v4423_v11 = vpop.f32.mrf.mxu0 }
0x1c30   : > { %v4424_v56 = vadd.f32 %v9145_v53, %v4423_v11 }
0x1c31   : > { %v7629_v48 = vpop.f32.mrf.mxu0 }
0x1c32   : > { %v4430_v57 = vrot.slane %v4424_v56, 4 }
0x1c33   : > { %v4426_v30 = vpop.f32.mrf.mxu0 }
0x1c34   : > { %4439 = vrot.lane.b32.xlu0 %v4430_v57, %s8367_s23  ;;  %v4432_v36 = vadd.f32 %v4430_v57, %v9152_v24 }
0x1c35   : > { %v7630_v55 = vpop.f32.mrf.mxu0 }
0x1c36   : > { %v7088_v0 = vmul.f32 -1.442695, %v4432_v36 }
0x1c37   : > { %v4605_v37 = vpop.f32.mrf.mxu0 }
0x1c38   : > { %8168 = vpow2.f32 %v7088_v0  ;;  %v9289_v51 = vadd.f32 %v7091_v20, %v4605_v37 }
0x1c39   : > { %v7643_v17 = vpop.f32.mrf.mxu0 }
0x1c3b   : > { %v4608_v44 = vpop.f32.mrf.mxu0 }
0x1c3c   : > { %v9300_v40 = vadd.f32 %v7091_v20, %v4608_v44 }
0x1c3d   : > { %v7644_v50 = vpop.f32.mrf.mxu0 }
0x1c45   : > { %v8169_v12 = vpop.eup %8168 }
0x1c46   : > { %v4436_v5 = vadd.f32 1.0, %v8169_v12 }
0x1c48   : > { %8170 = vrcp.f32 %v4436_v5 }
0x1c55   : > { %v8171_v60 = vpop.eup %8170 }
0x1c56   : > { %v4449_v10 = vsub.f32 1.0, %v8171_v60  ;;  %v4458_v25 = vmul.f32 %v8171_v60, %v4456_v19 }
0x1ca6   : > { %v4440_v6 = vpop.permute.xlu0 %4439 }
0x1ca7   : > { %v4442_v9 = vmul.f32 %v8171_v60, %v4440_v6 }
0x1ca9   : > { %4444 = vrot.lane.b32.xlu1 %v4442_v9, %s8368_s28 }
0x1d1b   : > { %v4445_v2 = vpop.permute.xlu1 %4444 }
0x1d1c   : > { %v4447_v53 = vadd.f32 %v4445_v2, %v9152_v24 }
0x1d1e   : > { %8172 = vtanh.f32 %v4447_v53 }
0x1d2b   : > { %v8173_v18 = vpop.eup %8172 }
0x1d2c   : > { %4451 = vrot.lane.b32.xlu0 %v8173_v18, %s8369_s29 }
0x1d9e   : > { %v4452_v41 = vpop.permute.xlu0 %4451 }
0x1d9f   : > { %v4454_v26 = vmul.f32 %v4452_v41, %v4449_v10 }
0x1da1   : > { %v9261_v29 = vadd.f32 %v4458_v25, %v4454_v26 }
0x1da3   : > { %v4460_v22 = vpack.c.bf16 %v9261_v29, %v9261_v29  ;;  %v9273_v4 = vsel %vm4540_vm8, %v4544_v45, %v9261_v29 }
0x1da5   : > { %v4462_v62 = vrot.slane %v4460_v22, 2 }
0x1da7   : > { %4463 = vrot.lane.b32.xlu1 %v4462_v62, %s8369_s29 }
0x1e19   : > { %v4464_v21 = vpop.permute.xlu1 %4463 }
0x1e1a   : > { %7634 = vmatmul.mubr.msk.bf16.vlgmr.msra.gmra.mxu1 %vm688_vm9, %v4464_v21 }
0x1e1b   : > { %7646 = vmatpush3.bf16.msra.mxu1 %v9257_v13  ;;  %7647 = vmatprep.mubr.msk.bf16.mxu1 %vm8365_vm6, %v8364_v43 }
0x1e1c   : > { %7657 = vmatprep.subr.bf16.mxu1 %v8364_v43 }
0x1e22   : > { %7648 = vmatmul.mubr.bf16.vlgmr.msra.gmra.mxu1 %v8366_v58 }
0x1e23   : > { %7658 = vmatpush3.bf16.msra.mxu1 %v9257_v13  ;;  %7659 = vmatprep.mubr.msk.bf16.mxu1 %vm8365_vm6, %v8364_v43 }
0x1e24   : > { %7669 = vmatprep.subr.bf16.mxu1 %v8364_v43 }
0x1eda   : > { %v9291_v42 = vpop.f32.mrf.mxu1 }
0x1edc   : > { %v7635_v35 = vpop.f32.mrf.mxu1 }
0x1ede   : > { %v4505_v32 = vpop.f32.mrf.mxu1 }
0x1ee0   : > { %v7636_v38 = vpop.f32.mrf.mxu1 }
0x1ee2   : > { %v4656_v59 = vpop.f32.mrf.mxu1 }
0x1ee3   : > { %v4657_v63 = vadd.f32 %v9296_v8, %v4656_v59 }
0x1ee4   : > { %v7649_v39 = vpop.f32.mrf.mxu1 }
0x1ee5   : > { %v4663_v7 = vrot.slane %v4657_v63, 2 }
0x1ee6   : > { %v4659_v1 = vpop.f32.mrf.mxu1 }
0x1ee7   : > { %4672 = vrot.lane.b32.xlu0 %v4663_v7, %s8367_s23  ;;  %v4665_v28 = vadd.f32 %v4663_v7, %v9300_v40 }
0x1ee8   : > { %v7650_v61 = vpop.f32.mrf.mxu1 }
0x1ee9   : > { %v7097_v49 = vmul.f32 -1.442695, %v4665_v28 }
0x1eeb   : > { %8174 = vpow2.f32 %v7097_v49 }
0x1ef8   : > { %v8175_v3 = vpop.eup %8174 }
0x1ef9   : > { %v4669_v27 = vadd.f32 1.0, %v8175_v3 }
0x1efb   : > { %8176 = vrcp.f32 %v4669_v27 }
0x1f08   : > { %v8177_v16 = vpop.eup %8176 }
0x1f09   : > { %v4682_v31 = vsub.f32 1.0, %v8177_v16  ;;  %v4688_v11 = vmul.f32 0.0, %v8177_v16 }
0x1f59   : > { %v4673_v46 = vpop.permute.xlu0 %4672 }
0x1f5a   : > { %v4675_v23 = vmul.f32 %v8177_v16, %v4673_v46 }
0x1f5c   : > { %4677 = vrot.lane.b32.xlu1 %v4675_v23, %s8368_s28 }
0x1fce   : > { %v4678_v47 = vpop.permute.xlu1 %4677 }
0x1fcf   : > { %v4680_v33 = vadd.f32 %v4678_v47, %v9300_v40 }
0x1fd1   : > { %8178 = vtanh.f32 %v4680_v33 }
0x1fde   : > { %v8179_v34 = vpop.eup %8178 }
0x1fdf   : > { %4684 = vrot.lane.b32.xlu0 %v8179_v34, %s8369_s29 }
0x2051   : > { %v4685_v52 = vpop.permute.xlu0 %4684 }
0x2052   : > { %v4687_v56 = vmul.f32 %v4685_v52, %v4682_v31 }
0x2054   : > { %v9306_v48 = vadd.f32 %v4688_v11, %v4687_v56 }
0x2056   : > { %v4690_v57 = vpack.c.bf16 %v9306_v48, %v9306_v48  ;;  %v4765_v45 = vrot.slane %v9306_v48, 2 }
0x2058   : > { %v4692_v30 = vrot.slane %v4690_v57, 3 }
0x205a   : > { %4693 = vrot.lane.b32.xlu1 %v4692_v30, %s8369_s29 }
0x20cc   : > { %v4694_v55 = vpop.permute.xlu1 %4693 }
0x20cd   : > { %7654 = vmatmul.mubr.msk.bf16.vlgmr.msra.gmra.mxu0 %vm688_vm9, %v4694_v55 }
0x20ce   : > { %7664 = vmatpush3.bf16.msra.mxu0 %v9257_v13  ;;  %7665 = vmatprep.mubr.msk.bf16.mxu0 %vm8365_vm6, %v8364_v43 }
0x20cf   : > { %7675 = vmatprep.subr.bf16.mxu0 %v8364_v43 }
0x218d   : > { %v4732_v36 = vpop.f32.mrf.mxu0 }
0x218e   : > { %v4733_v0 = vadd.f32 %v9296_v8, %v4732_v36 }
0x218f   : > { %v7655_v12 = vpop.f32.mrf.mxu0 }
0x2190   : > { %v4739_v5 = vrot.slane %v4733_v0, 4 }
0x2191   : > { %v4735_v60 = vpop.f32.mrf.mxu0 }
0x2192   : > { %4748 = vrot.lane.b32.xlu0 %v4739_v5, %s8367_s23  ;;  %v4741_v9 = vadd.f32 %v4739_v5, %v9300_v40 }
0x2193   : > { %v7656_v6 = vpop.f32.mrf.mxu0 }
0x2194   : > { %v7099_v2 = vmul.f32 -1.442695, %v4741_v9 }
0x2196   : > { %8180 = vpow2.f32 %v7099_v2 }
0x21a3   : > { %v8181_v53 = vpop.eup %8180 }
0x21a4   : > { %v4745_v15 = vadd.f32 1.0, %v8181_v53 }
0x21a6   : > { %8182 = vrcp.f32 %v4745_v15 }
0x21b3   : > { %v8183_v18 = vpop.eup %8182 }
0x21b4   : > { %v4758_v26 = vsub.f32 1.0, %v8183_v18  ;;  %v4767_v62 = vmul.f32 %v8183_v18, %v4765_v45 }
0x2204   : > { %v4749_v54 = vpop.permute.xlu0 %4748 }
0x2205   : > { %v4751_v10 = vmul.f32 %v8183_v18, %v4749_v54 }
0x2207   : > { %4753 = vrot.lane.b32.xlu1 %v4751_v10, %s8368_s28 }
0x2279   : > { %v4754_v19 = vpop.permute.xlu1 %4753 }
0x227a   : > { %v4756_v41 = vadd.f32 %v4754_v19, %v9300_v40 }
0x227c   : > { %8184 = vtanh.f32 %v4756_v41 }
0x2289   : > { %v8185_v25 = vpop.eup %8184 }
0x228a   : > { %4760 = vrot.lane.b32.xlu0 %v8185_v25, %s8369_s29 }
0x22fc   : > { %v4761_v22 = vpop.permute.xlu0 %4760 }
0x22fd   : > { %v4763_v21 = vmul.f32 %v4761_v22, %v4758_v26 }
0x22ff   : > { %v9323_v37 = vadd.f32 %v4767_v62, %v4763_v21 }
0x2301   : > { %v4769_v17 = vpack.c.bf16 %v9323_v37, %v9323_v37  ;;  %v4844_v47 = vrot.slane %v9323_v37, 2 }
0x2303   : > { %v4771_v44 = vrot.slane %v4769_v17, 2 }
0x2305   : > { %4772 = vrot.lane.b32.xlu1 %v4771_v44, %s8369_s29 }
0x2377   : > { %v4773_v50 = vpop.permute.xlu1 %4772 }
0x2378   : > { %7660 = vmatmul.mubr.msk.bf16.vlgmr.msra.gmra.mxu1 %vm688_vm9, %v4773_v50 }
0x2379   : > { %7670 = vmatpush3.bf16.msra.mxu1 %v9257_v13  ;;  %7671 = vmatprep.mubr.msk.bf16.mxu1 %vm8365_vm6, %v8364_v43 }
0x237a   : > { %7681 = vmatprep.subr.bf16.mxu1 %v8364_v43 }
0x2438   : > { %v4811_v20 = vpop.f32.mrf.mxu1 }
0x2439   : > { %v4812_v35 = vadd.f32 %v9296_v8, %v4811_v20 }
0x243a   : > { %v7661_v32 = vpop.f32.mrf.mxu1 }
0x243b   : > { %v4818_v38 = vrot.slane %v4812_v35, 6 }
0x243c   : > { %v4814_v59 = vpop.f32.mrf.mxu1 }
0x243d   : > { %4827 = vrot.lane.b32.xlu0 %v4818_v38, %s8367_s23  ;;  %v4820_v39 = vadd.f32 %v4818_v38, %v9300_v40 }
0x243e   : > { %v7662_v63 = vpop.f32.mrf.mxu1 }
0x243f   : > { %v7101_v7 = vmul.f32 -1.442695, %v4820_v39 }
0x2441   : > { %8186 = vpow2.f32 %v7101_v7 }
0x244e   : > { %v8187_v1 = vpop.eup %8186 }
0x244f   : > { %v4824_v61 = vadd.f32 1.0, %v8187_v1 }
0x2451   : > { %8188 = vrcp.f32 %v4824_v61 }
0x245e   : > { %v8189_v28 = vpop.eup %8188 }
0x245f   : > { %v4837_v23 = vsub.f32 1.0, %v8189_v28  ;;  %v4846_v34 = vmul.f32 %v8189_v28, %v4844_v47 }
0x24af   : > { %v4828_v49 = vpop.permute.xlu0 %4827 }
0x24b0   : > { %v4830_v3 = vmul.f32 %v8189_v28, %v4828_v49 }
0x24b2   : > { %4832 = vrot.lane.b32.xlu1 %v4830_v3, %s8368_s28 }
0x2524   : > { %v4833_v27 = vpop.permute.xlu1 %4832 }
0x2525   : > { %v4835_v16 = vadd.f32 %v4833_v27, %v9300_v40 }
0x2527   : > { %8190 = vtanh.f32 %v4835_v16 }
0x2534   : > { %v8191_v46 = vpop.eup %8190 }
0x2535   : > { %4839 = vrot.lane.b32.xlu0 %v8191_v46, %s8369_s29 }
0x25a7   : > { %v4840_v33 = vpop.permute.xlu0 %4839 }
0x25a8   : > { %v4842_v31 = vmul.f32 %v4840_v33, %v4837_v23 }
0x25aa   : > { %v9340_v52 = vadd.f32 %v4846_v34, %v4842_v31 }
0x25ac   : > { %v4848_v11 = vpack.c.bf16 %v9340_v52, %v9340_v52  ;;  %v4921_v41 = vrot.slane %v9340_v52, 2 }
0x25ae   : > { %v4850_v56 = vrot.slane %v4848_v11, 1 }
0x25b0   : > { %4851 = vrot.lane.b32.xlu1 %v4850_v56, %s8369_s29 }
0x2622   : > { %v4852_v57 = vpop.permute.xlu1 %4851 }
0x2623   : > { %7666 = vmatmul.mubr.msk.bf16.vlgmr.msra.gmra.mxu0 %vm688_vm9, %v4852_v57 }
0x2624   : > { %7676 = vmatpush3.bf16.msra.mxu0 %v9257_v13  ;;  %7677 = vmatprep.mubr.msk.bf16.mxu0 %vm8365_vm6, %v8364_v43 }
0x2625   : > { %7687 = vmatprep.subr.bf16.mxu0 %v8364_v43 }
0x26e3   : > { %v4890_v30 = vpop.f32.mrf.mxu0 }
0x26e4   : > { %v4891_v55 = vadd.f32 %v9296_v8, %v4890_v30 }
0x26e5   : > { %v7667_v36 = vpop.f32.mrf.mxu0 }
0x26e6   : > { %4904 = vrot.lane.b32.xlu0 %v4891_v55, %s8367_s23  ;;  %v4896_v5 = vadd.f32 %v4891_v55, %v9300_v40 }
0x26e7   : > { %v4893_v0 = vpop.f32.mrf.mxu0 }
0x26e8   : > { %v7103_v60 = vmul.f32 -1.442695, %v4896_v5 }
0x26e9   : > { %v7668_v12 = vpop.f32.mrf.mxu0 }
0x26ea   : > { %8192 = vpow2.f32 %v7103_v60 }
0x26f7   : > { %v8193_v6 = vpop.eup %8192 }
0x26f8   : > { %v4900_v9 = vadd.f32 1.0, %v8193_v6 }
0x26fa   : > { %8194 = vrcp.f32 %v4900_v9 }
0x2707   : > { %v8195_v2 = vpop.eup %8194 }
0x2708   : > { %v4914_v19 = vsub.f32 1.0, %v8195_v2  ;;  %v4923_v26 = vmul.f32 %v8195_v2, %v4921_v41 }
0x2758   : > { %v4905_v53 = vpop.permute.xlu0 %4904 }
0x2759   : > { %v4907_v15 = vmul.f32 %v8195_v2, %v4905_v53 }
0x275b   : > { %4909 = vrot.lane.b32.xlu1 %v4907_v15, %s8368_s28 }
0x27cd   : > { %v4910_v18 = vpop.permute.xlu1 %4909 }
0x27ce   : > { %v4912_v54 = vadd.f32 %v4910_v18, %v9300_v40 }
0x27d0   : > { %8196 = vtanh.f32 %v4912_v54 }
0x27dd   : > { %v8197_v10 = vpop.eup %8196 }
0x27de   : > { %4916 = vrot.lane.b32.xlu0 %v8197_v10, %s8369_s29 }
0x2850   : > { %v4917_v25 = vpop.permute.xlu0 %4916 }
0x2851   : > { %v4919_v45 = vmul.f32 %v4917_v25, %v4914_v19 }
0x2853   : > { %v9357_v22 = vadd.f32 %v4923_v26, %v4919_v45 }
0x2855   : > { %v4925_v62 = vpack.c.bf16 %v9357_v22, %v9357_v22  ;;  %v4999_v27 = vrot.slane %v9357_v22, 2 }
0x2857   : > { %4927 = vrot.lane.b32.xlu1 %v4925_v62, %s8369_s29 }
0x28c9   : > { %v4928_v21 = vpop.permute.xlu1 %4927 }
0x28ca   : > { %7672 = vmatmul.mubr.msk.bf16.vlgmr.msra.gmra.mxu1 %vm688_vm9, %v4928_v21 }
0x28cb   : > { %7682 = vmatpush3.bf16.msra.mxu1 %v9257_v13  ;;  %7683 = vmatprep.mubr.msk.bf16.mxu1 %vm8365_vm6, %v8364_v43 }
0x28cc   : > { %7693 = vmatprep.subr.bf16.mxu1 %v8364_v43 }
0x298a   : > { %v4966_v40 = vpop.f32.mrf.mxu1 }
0x298b   : > { %v4967_v17 = vadd.f32 %v9296_v8, %v4966_v40 }
0x298c   : > { %v7673_v44 = vpop.f32.mrf.mxu1 }
0x298d   : > { %v4973_v50 = vrot.slane %v4967_v17, 2 }
0x298e   : > { %v4969_v20 = vpop.f32.mrf.mxu1 }
0x298f   : > { %4982 = vrot.lane.b32.xlu0 %v4973_v50, %s8367_s23  ;;  %v4975_v32 = vadd.f32 %v4973_v50, %v9289_v51 }
0x2990   : > { %v7674_v35 = vpop.f32.mrf.mxu1 }
0x2991   : > { %v7105_v38 = vmul.f32 -1.442695, %v4975_v32 }
0x2993   : > { %8198 = vpow2.f32 %v7105_v38 }
0x29a0   : > { %v8199_v59 = vpop.eup %8198 }
0x29a1   : > { %v4979_v63 = vadd.f32 1.0, %v8199_v59 }
0x29a3   : > { %8200 = vrcp.f32 %v4979_v63 }
0x29b0   : > { %v8201_v39 = vpop.eup %8200 }
0x29b1   : > { %v4992_v3 = vsub.f32 1.0, %v8201_v39  ;;  %v5001_v46 = vmul.f32 %v8201_v39, %v4999_v27 }
0x2a01   : > { %v4983_v7 = vpop.permute.xlu0 %4982 }
0x2a02   : > { %v4985_v1 = vmul.f32 %v8201_v39, %v4983_v7 }
0x2a04   : > { %4987 = vrot.lane.b32.xlu1 %v4985_v1, %s8368_s28 }
0x2a76   : > { %v4988_v61 = vpop.permute.xlu1 %4987 }
0x2a77   : > { %v4990_v28 = vadd.f32 %v4988_v61, %v9289_v51 }
0x2a79   : > { %8202 = vtanh.f32 %v4990_v28  ;;  %v8324_v28 = vld [vmem:[%s9810_s3 + $0x1] ss:$0 sm:$0xff] }
0x2a86   : > { %v8203_v49 = vpop.eup %8202 }
0x2a87   : > { %4994 = vrot.lane.b32.xlu0 %v8203_v49, %s8369_s29  ;;  %v4503_v49 = vadd.f32 %v8324_v28, %v9291_v42 }
0x2a89   : > { %v4509_v27 = vrot.slane %v4503_v49, 2 }
0x2af9   : > { %v4995_v16 = vpop.permute.xlu0 %4994 }
0x2afa   : > { %v4997_v23 = vmul.f32 %v4995_v16, %v4992_v3  ;;  %v4511_v16 = vadd.f32 %v4509_v27, %v9152_v24 }
0x2afc   : > { %v9374_v47 = vadd.f32 %v5001_v46, %v4997_v23  ;;  %v7090_v46 = vmul.f32 -1.442695, %v4511_v16 }
0x2afe   : > { %v5003_v33 = vpack.c.bf16 %v9374_v47, %v9374_v47  ;;  %v5078_v54 = vrot.slane %v9374_v47, 2 }
0x2b00   : > { %v5005_v34 = vrot.slane %v5003_v33, 3 }
0x2b02   : > { %5006 = vrot.lane.b32.xlu1 %v5005_v34, %s8369_s29 }
0x2b74   : > { %v5007_v31 = vpop.permute.xlu1 %5006 }
0x2b75   : > { %7678 = vmatmul.mubr.msk.bf16.vlgmr.msra.gmra.mxu0 %vm688_vm9, %v5007_v31 }
0x2b76   : > { %7688 = vmatpush3.bf16.msra.mxu0 %v9257_v13  ;;  %7689 = vmatprep.mubr.msk.bf16.mxu0 %vm8365_vm6, %v8364_v43 }
0x2b77   : > { %7701 = vmatprep.subr.bf16.mxu0 %v8364_v43 }
0x2c35   : > { %v5045_v11 = vpop.f32.mrf.mxu0 }
0x2c36   : > { %v5046_v56 = vadd.f32 %v9296_v8, %v5045_v11 }
0x2c37   : > { %v7679_v57 = vpop.f32.mrf.mxu0 }
0x2c38   : > { %v5052_v30 = vrot.slane %v5046_v56, 4 }
0x2c39   : > { %v5048_v55 = vpop.f32.mrf.mxu0 }
0x2c3a   : > { %5061 = vrot.lane.b32.xlu0 %v5052_v30, %s8367_s23  ;;  %v5054_v0 = vadd.f32 %v5052_v30, %v9289_v51 }
0x2c3b   : > { %v7680_v36 = vpop.f32.mrf.mxu0 }
0x2c3c   : > { %v7107_v12 = vmul.f32 -1.442695, %v5054_v0 }
0x2c3e   : > { %8204 = vpow2.f32 %v7107_v12 }
0x2c4b   : > { %v8205_v5 = vpop.eup %8204 }
0x2c4c   : > { %v5058_v13 = vadd.f32 1.0, %v8205_v5 }
0x2c4e   : > { %8206 = vrcp.f32 %v5058_v13 }
0x2c5b   : > { %v8207_v60 = vpop.eup %8206 }
0x2c5c   : > { %v5071_v18 = vsub.f32 1.0, %v8207_v60  ;;  %v5080_v19 = vmul.f32 %v8207_v60, %v5078_v54 }
0x2cac   : > { %v5062_v6 = vpop.permute.xlu0 %5061 }
0x2cad   : > { %v5064_v9 = vmul.f32 %v8207_v60, %v5062_v6 }
0x2caf   : > { %5066 = vrot.lane.b32.xlu1 %v5064_v9, %s8368_s28 }
0x2d21   : > { %v5067_v2 = vpop.permute.xlu1 %5066 }
0x2d22   : > { %v5069_v53 = vadd.f32 %v5067_v2, %v9289_v51  ;;  %v4535_v2 = vrot.slane %v9261_v29, 6 }
0x2d24   : > { %8208 = vtanh.f32 %v5069_v53 }
0x2d31   : > { %v8209_v15 = vpop.eup %8208 }
0x2d32   : > { %5073 = vrot.lane.b32.xlu0 %v8209_v15, %s8369_s29 }
0x2da4   : > { %v5074_v10 = vpop.permute.xlu0 %5073 }
0x2da5   : > { %v5076_v41 = vmul.f32 %v5074_v10, %v5071_v18 }
0x2da7   : > { %v9391_v25 = vadd.f32 %v5080_v19, %v5076_v41 }
0x2da9   : > { %v5082_v26 = vpack.c.bf16 %v9391_v25, %v9391_v25  ;;  %v5157_v31 = vrot.slane %v9391_v25, 2 }
0x2dab   : > { %v5084_v45 = vrot.slane %v5082_v26, 2 }
0x2dad   : > { %5085 = vrot.lane.b32.xlu1 %v5084_v45, %s8369_s29 }
0x2e1f   : > { %v5086_v62 = vpop.permute.xlu1 %5085 }
0x2e20   : > { %7684 = vmatmul.mubr.msk.bf16.vlgmr.msra.gmra.mxu1 %vm688_vm9, %v5086_v62 }
0x2e21   : > { %7697 = vmatprep.mubr.msk.bf16.mxu1 %vm8365_vm6, %v8364_v43 }
0x2ee0   : > { %v5124_v21 = vpop.f32.mrf.mxu1 }
0x2ee1   : > { %v5125_v40 = vadd.f32 %v9296_v8, %v5124_v21 }
0x2ee2   : > { %v7685_v17 = vpop.f32.mrf.mxu1 }
0x2ee3   : > { %v5131_v44 = vrot.slane %v5125_v40, 6 }
0x2ee4   : > { %v5127_v50 = vpop.f32.mrf.mxu1 }
0x2ee5   : > { %5140 = vrot.lane.b32.xlu0 %v5131_v44, %s8367_s23  ;;  %v5133_v35 = vadd.f32 %v5131_v44, %v9289_v51 }
0x2ee6   : > { %v7686_v20 = vpop.f32.mrf.mxu1 }
0x2ee7   : > { %v7109_v32 = vmul.f32 -1.442695, %v5133_v35  ;;  %v8124_v35 = vld [vmem:[%s9809_s2 + $0x30] sm:$0xff]  }
0x2ee8   : > { %7694 = vmatpush3.bf16.msra.mxu1 %v8124_v35 }
0x2ee9   : > { %8210 = vpow2.f32 %v7109_v32  ;;  %7695 = vmatprep.subr.bf16.mxu1 %v8364_v43  ;;  %v8125_v32 = vld [vmem:[%s9809_s2 + $0x28] sm:$0xff]  }
0x2eec   : > { %7696 = vmatpush3.bf16.msra.mxu1 %v8125_v32 }
0x2eed   : > { %7707 = vmatprep.subr.bf16.mxu1 %v8364_v43 }
0x2ef6   : > { %v8211_v38 = vpop.eup %8210 }
0x2ef7   : > { %v5137_v59 = vadd.f32 1.0, %v8211_v38 }
0x2ef9   : > { %8212 = vrcp.f32 %v5137_v59 }
0x2f06   : > { %v8213_v63 = vpop.eup %8212 }
0x2f07   : > { %v5150_v34 = vsub.f32 1.0, %v8213_v63  ;;  %v5159_v56 = vmul.f32 %v8213_v63, %v5157_v31 }
0x2f57   : > { %v5141_v39 = vpop.permute.xlu0 %5140 }
0x2f58   : > { %v5143_v7 = vmul.f32 %v8213_v63, %v5141_v39 }
0x2f5a   : > { %5145 = vrot.lane.b32.xlu1 %v5143_v7, %s8368_s28 }
0x2fcc   : > { %v5146_v1 = vpop.permute.xlu1 %5145 }
0x2fcd   : > { %v5148_v61 = vadd.f32 %v5146_v1, %v9289_v51 }
0x2fcf   : > { %8214 = vtanh.f32 %v5148_v61 }
0x2fd0   : > { %8216 = vpow2.f32 %v7090_v46 }
0x2fdc   : > { %v8215_v3 = vpop.eup %8214 }
0x2fdd   : > { %5152 = vrot.lane.b32.xlu0 %v8215_v3, %s8369_s29  ;;  %v8217_v23 = vpop.eup %8216  ;;  %v5241_v3 = vsel %vm9848_vm14, %v9357_v22, %v9340_v52 }
0x2fde   : > { %v4515_v33 = vadd.f32 1.0, %v8217_v23 }
0x2fe0   : > { %8218 = vrcp.f32 %v4515_v33  ;;  %v5242_v33 = vsel %vm4540_vm8, %v5241_v3, %v9323_v37 }
0x2fe1   : > { %4518 = vrot.lane.b32.xlu0 %v4509_v27, %s8367_s23 }
0x2fed   : > { %v8219_v30 = vpop.eup %8218 }
0x2fee   : > { %v4528_v9 = vsub.f32 1.0, %v8219_v30  ;;  %v4537_v15 = vmul.f32 %v8219_v30, %v4535_v2 }
0x304f   : > { %v5153_v11 = vpop.permute.xlu0 %5152 }
0x3050   : > { %v5155_v57 = vmul.f32 %v5153_v11, %v5150_v34 }
0x3052   : > { %v9412_v42 = vadd.f32 %v5159_v56, %v5155_v57  ;;  %v5243_v57 = vsel %vm4542_vm11, %v5242_v33, %v9306_v48  ;;  %v7112_v48 = vld [vmem:[%s9810_s3 + $0x4] ss:$0 sm:$0xff] }
0x3053   : > { %v4519_v55 = vpop.permute.xlu0 %4518 }
0x3054   : > { %v4521_v36 = vmul.f32 %v8219_v30, %v4519_v55  ;;  %v5161_v0 = vpack.c.bf16 %v9412_v42, %v9412_v42  ;;  %v5234_v28 = vrot.slane %v9412_v42, 2 }
0x3056   : > { %4523 = vrot.lane.b32.xlu0 %v4521_v36, %s8368_s28  ;;  %v5163_v12 = vrot.slane %v5161_v0, 1 }
0x3058   : > { %5164 = vrot.lane.b32.xlu1 %v5163_v12, %s8369_s29 }
0x30c8   : > { %v4524_v5 = vpop.permute.xlu0 %4523 }
0x30c9   : > { %v4526_v13 = vadd.f32 %v4524_v5, %v9152_v24 }
0x30ca   : > { %v5165_v60 = vpop.permute.xlu1 %5164 }
0x30cb   : > { %8220 = vtanh.f32 %v4526_v13  ;;  %7690 = vmatmul.mubr.msk.bf16.vlgmr.msra.gmra.mxu0 %vm688_vm9, %v5165_v60 }
0x30cc   : > { %7703 = vmatprep.mubr.msk.bf16.mxu0 %vm8365_vm6, %v8364_v43 }
0x30d8   : > { %v8221_v6 = vpop.eup %8220 }
0x30d9   : > { %4530 = vrot.lane.b32.xlu0 %v8221_v6, %s8369_s29 }
0x314b   : > { %v4531_v53 = vpop.permute.xlu0 %4530 }
0x314c   : > { %v4533_v18 = vmul.f32 %v4531_v53, %v4528_v9 }
0x314e   : > { %v4538_v54 = vadd.f32 %v4537_v15, %v4533_v18 }
0x3150   : > { %v4546_v24 = vsel %vm4542_vm11, %v9273_v4, %v4538_v54 }
0x3151   : > { %v8107_v10 = vpack.i.bf16 %v4546_v24, %v9205_v14 }
0x3153   : > { %8108 = vrot.lane.b32.xlu0 %v8107_v10, %s8369_s29 }
0x318b   : > { %v5203_v19 = vpop.f32.mrf.mxu0 }
0x318c   : > { %v5204_v41 = vadd.f32 %v9296_v8, %v5203_v19  ;;  %v9435_v8 = vld [vmem:[%s9809_s2 + $0x58] sm:$0xff]  }
0x318d   : > { %v7691_v26 = vpop.f32.mrf.mxu0  ;;  %7702 = vmatpush3.bf16.msra.mxu0 %v9435_v8 }
0x318e   : > { %5217 = vrot.lane.b32.xlu1 %v5204_v41, %s8367_s23  ;;  %v5209_v29 = vadd.f32 %v5204_v41, %v9289_v51  ;;  %7713 = vmatprep.subr.bf16.mxu0 %v8364_v43 }
0x318f   : > { %v5206_v45 = vpop.f32.mrf.mxu0 }
0x3190   : > { %v7111_v21 = vmul.f32 -1.442695, %v5209_v29  ;;  %7704 = vmatmul.mubr.bf16.vlgmr.msra.gmra.mxu0 %v8366_v58 }
0x3191   : > { %v7692_v62 = vpop.f32.mrf.mxu0  ;;  %7714 = vmatpush3.bf16.msra.mxu0 %v9435_v8  ;;  %7715 = vmatprep.mubr.msk.bf16.mxu0 %vm8365_vm6, %v8364_v43 }
0x3192   : > { %8222 = vpow2.f32 %v7111_v21  ;;  %7725 = vmatprep.subr.bf16.mxu0 %v8364_v43 }
0x319f   : > { %v8223_v40 = vpop.eup %8222 }
0x31a0   : > { %v5213_v17 = vadd.f32 1.0, %v8223_v40 }
0x31a2   : > { %8224 = vrcp.f32 %v5213_v17 }
0x31af   : > { %v8225_v4 = vpop.eup %8224 }
0x31b0   : > { %v5227_v61 = vsub.f32 1.0, %v8225_v4  ;;  %v5236_v16 = vmul.f32 %v8225_v4, %v5234_v28 }
0x31c5   : > { %v8109_v27 = vpop.permute.xlu0 %8108 }
0x31c6   : > { %v8111_v34 = vunpack.i.h.bf16 %v8109_v27  ;;  %v8110_v11 = vunpack.i.l.bf16 %v8109_v27 }
0x31c8   : > { %v5253_v22 = vsel %vm688_vm9, %v8111_v34, %v5243_v57 }
0x3200   : > { %v5218_v44 = vpop.permute.xlu1 %5217 }
0x3201   : > { %v5220_v14 = vmul.f32 %v8225_v4, %v5218_v44 }
0x3203   : > { %5222 = vrot.lane.b32.xlu1 %v5220_v14, %s8368_s28 }
0x3250   : > { %v5367_v59 = vpop.f32.mrf.mxu0 }
0x3252   : > { %v7705_v39 = vpop.f32.mrf.mxu0 }
0x3254   : > { %v5370_v7 = vpop.f32.mrf.mxu0 }
0x3256   : > { %v7706_v1 = vpop.f32.mrf.mxu0 }
0x3275   : > { %v5223_v50 = vpop.permute.xlu1 %5222 }
0x3276   : > { %v5225_v20 = vadd.f32 %v5223_v50, %v9289_v51  ;;  %v9457_v51 = vld [vmem:[%s9810_s3 + $0x5] ss:$0 sm:$0xff] }
0x3277   : > { %v5368_v63 = vadd.f32 %v9457_v51, %v5367_v59 }
0x3278   : > { %8226 = vtanh.f32 %v5225_v20 }
0x3285   : > { %v8227_v38 = vpop.eup %8226 }
0x3286   : > { %5229 = vrot.lane.b32.xlu1 %v8227_v38, %s8369_s29 }
0x328a   : > { %5381 = vrot.lane.b32.xlu1 %v5368_v63, %s8367_s23 }
0x32f8   : > { %v5230_v49 = vpop.permute.xlu1 %5229 }
0x32f9   : > { %v5232_v46 = vmul.f32 %v5230_v49, %v5227_v61 }
0x32fb   : > { %v5237_v23 = vadd.f32 %v5236_v16, %v5232_v46 }
0x32fc   : > { %v5382_v6 = vpop.permute.xlu1 %5381 }
0x32fd   : > { %v5238_v31 = vsel %vm9849_vm0, %v5237_v23, %v9412_v42 }
0x32fe   : > { %v5239_v56 = vsel %vm4540_vm8, %v5238_v31, %v9391_v25 }
0x32ff   : > { %v5240_v52 = vsel %vm4542_vm11, %v5239_v56, %v9374_v47 }
0x3300   : > { %v5252_v30 = vsel %vm688_vm9, %v8110_v11, %v5240_v52 }
0x3301   : > { %v9477_v55 = vpack.c.bf16 %v5253_v22, %v5252_v30 }
0x3303   : > { %7698 = vmatmul.mubr.msk.bf16.vlgmr.msra.gmra.mxu1 %vm9850_vm15, %v9477_v55 }
0x3304   : > { %7708 = vmatpush3.bf16.msra.mxu1 %v9435_v8  ;;  %7709 = vmatprep.mubr.msk.bf16.mxu1 %vm8365_vm6, %v8364_v43 }
0x3305   : > { %7719 = vmatprep.subr.bf16.mxu1 %v8364_v43 }
0x33c3   : > { %v5316_v37 = vpop.f32.mrf.mxu1 }
0x33c4   : > { %v9488_v47 = vadd.f32 %v7112_v48, %v5316_v37 }
0x33c5   : > { %v7699_v25 = vpop.f32.mrf.mxu1 }
0x33c6   : > { %v5373_v42 = vadd.f32 %v5368_v63, %v9488_v47 }
0x33c7   : > { %v5319_v36 = vpop.f32.mrf.mxu1 }
0x33c8   : > { %v7118_v0 = vmul.f32 -1.442695, %v5373_v42  ;;  %v9491_v12 = vadd.f32 %v7112_v48, %v5319_v36 }
0x33c9   : > { %v7700_v5 = vpop.f32.mrf.mxu1 }
0x33ca   : > { %8228 = vpow2.f32 %v7118_v0 }
0x33d7   : > { %v8229_v13 = vpop.eup %8228 }
0x33d8   : > { %v5377_v60 = vadd.f32 1.0, %v8229_v13 }
0x33da   : > { %8230 = vrcp.f32 %v5377_v60 }
0x33e7   : > { %v8231_v9 = vpop.eup %8230 }
0x33e8   : > { %v5384_v2 = vmul.f32 %v8231_v9, %v5382_v6  ;;  %v5391_v54 = vsub.f32 1.0, %v8231_v9  ;;  %v5397_v10 = vmul.f32 0.0, %v8231_v9 }
0x33ea   : > { %5386 = vrot.lane.b32.xlu0 %v5384_v2, %s8368_s28 }
0x345c   : > { %v5387_v53 = vpop.permute.xlu0 %5386 }
0x345d   : > { %v5389_v15 = vadd.f32 %v5387_v53, %v9488_v47 }
0x345f   : > { %8232 = vtanh.f32 %v5389_v15 }
0x346c   : > { %v8233_v18 = vpop.eup %8232 }
0x346d   : > { %5393 = vrot.lane.b32.xlu1 %v8233_v18, %s8369_s29 }
0x34df   : > { %v5394_v24 = vpop.permute.xlu1 %5393 }
0x34e0   : > { %v5396_v19 = vmul.f32 %v5394_v24, %v5391_v54 }
0x34e2   : > { %v9496_v41 = vadd.f32 %v5397_v10, %v5396_v19 }
0x34e4   : > { %v5399_v26 = vpack.c.bf16 %v9496_v41, %v9496_v41  ;;  %v5473_v1 = vrot.slane %v9496_v41, 6 }
0x34e6   : > { %5401 = vrot.lane.b32.xlu0 %v5399_v26, %s8369_s29 }
0x3558   : > { %v5402_v45 = vpop.permute.xlu0 %5401 }
0x3559   : > { %7710 = vmatmul.mubr.msk.bf16.vlgmr.msra.gmra.mxu1 %vm688_vm9, %v5402_v45 }
0x355a   : > { %7720 = vmatpush3.bf16.msra.mxu1 %v9435_v8  ;;  %7721 = vmatprep.mubr.msk.bf16.mxu1 %vm8365_vm6, %v8364_v43 }
0x355b   : > { %7731 = vmatprep.subr.bf16.mxu1 %v8364_v43 }
0x3619   : > { %v5440_v62 = vpop.f32.mrf.mxu1 }
0x361a   : > { %v5441_v29 = vadd.f32 %v9457_v51, %v5440_v62 }
0x361b   : > { %v7711_v21 = vpop.f32.mrf.mxu1 }
0x361c   : > { %v5447_v40 = vrot.slane %v5441_v29, 6 }
0x361d   : > { %v5443_v17 = vpop.f32.mrf.mxu1 }
0x361e   : > { %5456 = vrot.lane.b32.xlu1 %v5447_v40, %s8367_s23  ;;  %v5449_v44 = vadd.f32 %v5447_v40, %v9488_v47 }
0x361f   : > { %v7712_v4 = vpop.f32.mrf.mxu1 }
0x3620   : > { %v7120_v14 = vmul.f32 -1.442695, %v5449_v44 }
0x3622   : > { %8234 = vpow2.f32 %v7120_v14 }
0x362f   : > { %v8235_v50 = vpop.eup %8234 }
0x3630   : > { %v5453_v20 = vadd.f32 1.0, %v8235_v50 }
0x3632   : > { %8236 = vrcp.f32 %v5453_v20 }
0x363f   : > { %v8237_v35 = vpop.eup %8236 }
0x3640   : > { %v5466_v7 = vsub.f32 1.0, %v8237_v35  ;;  %v5475_v28 = vmul.f32 %v8237_v35, %v5473_v1 }
0x3690   : > { %v5457_v32 = vpop.permute.xlu1 %5456 }
0x3691   : > { %v5459_v38 = vmul.f32 %v8237_v35, %v5457_v32 }
0x3693   : > { %5461 = vrot.lane.b32.xlu0 %v5459_v38, %s8368_s28 }
0x3705   : > { %v5462_v59 = vpop.permute.xlu0 %5461 }
0x3706   : > { %v5464_v63 = vadd.f32 %v5462_v59, %v9488_v47 }
0x3708   : > { %8238 = vtanh.f32 %v5464_v63 }
0x3715   : > { %v8239_v39 = vpop.eup %8238 }
0x3716   : > { %5468 = vrot.lane.b32.xlu1 %v8239_v39, %s8369_s29 }
0x3788   : > { %v5469_v61 = vpop.permute.xlu1 %5468 }
0x3789   : > { %v5471_v49 = vmul.f32 %v5469_v61, %v5466_v7 }
0x378b   : > { %v5476_v3 = vadd.f32 %v5475_v28, %v5471_v49 }
0x378d   : > { %v5477_v27 = vpack.c.bf16 %v5476_v3, %v5476_v3  ;;  %v5552_v13 = vrot.slane %v5476_v3, 6  ;;  %v5948_v53 = vsel %vm9851_vm1, %v9496_v41, %v5476_v3 }
0x378f   : > { %v5479_v16 = vrot.slane %v5477_v27, 1 }
0x3791   : > { %5480 = vrot.lane.b32.xlu0 %v5479_v16, %s8369_s29 }
0x3803   : > { %v5481_v46 = vpop.permute.xlu0 %5480 }
0x3804   : > { %7716 = vmatmul.mubr.msk.bf16.vlgmr.msra.gmra.mxu0 %vm688_vm9, %v5481_v46 }
0x3805   : > { %7726 = vmatpush3.bf16.msra.mxu0 %v9435_v8  ;;  %7727 = vmatprep.mubr.msk.bf16.mxu0 %vm8365_vm6, %v8364_v43 }
0x3806   : > { %7737 = vmatprep.subr.bf16.mxu0 %v8364_v43 }
0x38c4   : > { %v5519_v23 = vpop.f32.mrf.mxu0 }
0x38c5   : > { %v5520_v33 = vadd.f32 %v9457_v51, %v5519_v23 }
0x38c6   : > { %v7717_v34 = vpop.f32.mrf.mxu0 }
0x38c7   : > { %v5526_v31 = vrot.slane %v5520_v33, 4 }
0x38c8   : > { %v5522_v11 = vpop.f32.mrf.mxu0 }
0x38c9   : > { %5535 = vrot.lane.b32.xlu1 %v5526_v31, %s8367_s23  ;;  %v5528_v57 = vadd.f32 %v5526_v31, %v9488_v47 }
0x38ca   : > { %v7718_v56 = vpop.f32.mrf.mxu0 }
0x38cb   : > { %v7122_v52 = vmul.f32 -1.442695, %v5528_v57 }
0x38cd   : > { %8240 = vpow2.f32 %v7122_v52 }
0x38da   : > { %v8241_v22 = vpop.eup %8240 }
0x38db   : > { %v5532_v30 = vadd.f32 1.0, %v8241_v22 }
0x38dd   : > { %8242 = vrcp.f32 %v5532_v30 }
0x38ea   : > { %v8243_v48 = vpop.eup %8242 }
0x38eb   : > { %v5545_v5 = vsub.f32 1.0, %v8243_v48  ;;  %v5554_v6 = vmul.f32 %v8243_v48, %v5552_v13 }
0x393b   : > { %v5536_v37 = vpop.permute.xlu1 %5535 }
0x393c   : > { %v5538_v25 = vmul.f32 %v8243_v48, %v5536_v37 }
0x393e   : > { %5540 = vrot.lane.b32.xlu0 %v5538_v25, %s8368_s28 }
0x39b0   : > { %v5541_v42 = vpop.permute.xlu0 %5540 }
0x39b1   : > { %v5543_v36 = vadd.f32 %v5541_v42, %v9488_v47 }
0x39b3   : > { %8244 = vtanh.f32 %v5543_v36 }
0x39c0   : > { %v8245_v0 = vpop.eup %8244 }
0x39c1   : > { %5547 = vrot.lane.b32.xlu1 %v8245_v0, %s8369_s29 }
0x3a33   : > { %v5548_v60 = vpop.permute.xlu1 %5547 }
0x3a34   : > { %v5550_v9 = vmul.f32 %v5548_v60, %v5545_v5 }
0x3a36   : > { %v5555_v2 = vadd.f32 %v5554_v6, %v5550_v9 }
0x3a38   : > { %v5949_v15 = vsel %vm4540_vm8, %v5948_v53, %v5555_v2  ;;  %v5556_v18 = vpack.c.bf16 %v5555_v2, %v5555_v2  ;;  %v5631_v38 = vrot.slane %v5555_v2, 6 }
0x3a3a   : > { %v5558_v54 = vrot.slane %v5556_v18, 2 }
0x3a3c   : > { %5559 = vrot.lane.b32.xlu0 %v5558_v54, %s8369_s29 }
0x3aae   : > { %v5560_v24 = vpop.permute.xlu0 %5559 }
0x3aaf   : > { %7722 = vmatmul.mubr.msk.bf16.vlgmr.msra.gmra.mxu1 %vm688_vm9, %v5560_v24 }
0x3ab0   : > { %7732 = vmatpush3.bf16.msra.mxu1 %v9435_v8  ;;  %7733 = vmatprep.mubr.msk.bf16.mxu1 %vm8365_vm6, %v8364_v43 }
0x3ab1   : > { %7743 = vmatprep.subr.bf16.mxu1 %v8364_v43 }
0x3b6f   : > { %v5598_v10 = vpop.f32.mrf.mxu1 }
0x3b70   : > { %v5599_v19 = vadd.f32 %v9457_v51, %v5598_v10 }
0x3b71   : > { %v7723_v41 = vpop.f32.mrf.mxu1 }
0x3b72   : > { %v5605_v26 = vrot.slane %v5599_v19, 2 }
0x3b73   : > { %v5601_v45 = vpop.f32.mrf.mxu1 }
0x3b74   : > { %5614 = vrot.lane.b32.xlu1 %v5605_v26, %s8367_s23  ;;  %v5607_v29 = vadd.f32 %v5605_v26, %v9488_v47 }
0x3b75   : > { %v7724_v62 = vpop.f32.mrf.mxu1 }
0x3b76   : > { %v7124_v21 = vmul.f32 -1.442695, %v5607_v29 }
0x3b78   : > { %8246 = vpow2.f32 %v7124_v21 }
0x3b85   : > { %v8247_v40 = vpop.eup %8246 }
0x3b86   : > { %v5611_v17 = vadd.f32 1.0, %v8247_v40 }
0x3b88   : > { %8248 = vrcp.f32 %v5611_v17 }
0x3b95   : > { %v8249_v4 = vpop.eup %8248 }
0x3b96   : > { %v5624_v32 = vsub.f32 1.0, %v8249_v4  ;;  %v5633_v63 = vmul.f32 %v8249_v4, %v5631_v38 }
0x3be6   : > { %v5615_v44 = vpop.permute.xlu1 %5614 }
0x3be7   : > { %v5617_v14 = vmul.f32 %v8249_v4, %v5615_v44 }
0x3be9   : > { %5619 = vrot.lane.b32.xlu0 %v5617_v14, %s8368_s28 }
0x3c5b   : > { %v5620_v50 = vpop.permute.xlu0 %5619 }
0x3c5c   : > { %v5622_v20 = vadd.f32 %v5620_v50, %v9488_v47 }
0x3c5e   : > { %8250 = vtanh.f32 %v5622_v20  ;;  %v8126_v20 = vld [vmem:[%s9809_s2 + $0x40] sm:$0xff]  }
0x3c6b   : > { %v8251_v35 = vpop.eup %8250 }
0x3c6c   : > { %5626 = vrot.lane.b32.xlu1 %v8251_v35, %s8369_s29 }
0x3cde   : > { %v5627_v59 = vpop.permute.xlu1 %5626 }
0x3cdf   : > { %v5629_v39 = vmul.f32 %v5627_v59, %v5624_v32  ;;  %v8127_v32 = vld [vmem:[%s9809_s2 + $0x38] sm:$0xff]  }
0x3ce1   : > { %v5634_v7 = vadd.f32 %v5633_v63, %v5629_v39 }
0x3ce3   : > { %v9541_v1 = vsel %vm4542_vm11, %v5949_v15, %v5634_v7  ;;  %v5635_v61 = vpack.c.bf16 %v5634_v7, %v5634_v7  ;;  %v5708_v37 = vrot.slane %v5634_v7, 6 }
0x3ce5   : > { %v5637_v28 = vrot.slane %v5635_v61, 3 }
0x3ce7   : > { %5638 = vrot.lane.b32.xlu0 %v5637_v28, %s8369_s29  ;;  %v7133_v28 = vld [vmem:[%s9810_s3 + $0x6] ss:$0 sm:$0xff] }
0x3d59   : > { %v5639_v49 = vpop.permute.xlu0 %5638 }
0x3d5a   : > { %7728 = vmatmul.mubr.msk.bf16.vlgmr.msra.gmra.mxu0 %vm688_vm9, %v5639_v49 }
0x3d5b   : > { %7738 = vmatpush3.bf16.msra.mxu0 %v9435_v8  ;;  %7739 = vmatprep.mubr.msk.bf16.mxu0 %vm8365_vm6, %v8364_v43 }
0x3d5c   : > { %7749 = vmatprep.subr.bf16.mxu0 %v8364_v43 }
0x3e1a   : > { %v5677_v47 = vpop.f32.mrf.mxu0 }
0x3e1b   : > { %v5678_v3 = vadd.f32 %v9457_v51, %v5677_v47 }
0x3e1c   : > { %v7729_v27 = vpop.f32.mrf.mxu0 }
0x3e1d   : > { %5691 = vrot.lane.b32.xlu1 %v5678_v3, %s8367_s23  ;;  %v5683_v23 = vadd.f32 %v5678_v3, %v9491_v12 }
0x3e1e   : > { %v5680_v16 = vpop.f32.mrf.mxu0 }
0x3e1f   : > { %v7126_v33 = vmul.f32 -1.442695, %v5683_v23 }
0x3e20   : > { %v7730_v46 = vpop.f32.mrf.mxu0 }
0x3e21   : > { %8252 = vpow2.f32 %v7126_v33 }
0x3e2e   : > { %v8253_v34 = vpop.eup %8252 }
0x3e2f   : > { %v5687_v31 = vadd.f32 1.0, %v8253_v34 }
0x3e31   : > { %8254 = vrcp.f32 %v5687_v31 }
0x3e3e   : > { %v8255_v11 = vpop.eup %8254 }
0x3e3f   : > { %v5701_v48 = vsub.f32 1.0, %v8255_v11  ;;  %v5710_v42 = vmul.f32 %v8255_v11, %v5708_v37 }
0x3e8f   : > { %v5692_v56 = vpop.permute.xlu1 %5691 }
0x3e90   : > { %v5694_v57 = vmul.f32 %v8255_v11, %v5692_v56 }
0x3e92   : > { %5696 = vrot.lane.b32.xlu0 %v5694_v57, %s8368_s28 }
0x3f04   : > { %v5697_v52 = vpop.permute.xlu0 %5696 }
0x3f05   : > { %v5699_v22 = vadd.f32 %v5697_v52, %v9491_v12  ;;  %v9602_v52 = vld [vmem:[%s9809_s2 + $0x60] sm:$0xff]  }
0x3f07   : > { %8256 = vtanh.f32 %v5699_v22 }
0x3f14   : > { %v8257_v30 = vpop.eup %8256 }
0x3f15   : > { %5703 = vrot.lane.b32.xlu1 %v8257_v30, %s8369_s29 }
0x3f87   : > { %v5704_v25 = vpop.permute.xlu1 %5703 }
0x3f88   : > { %v5706_v36 = vmul.f32 %v5704_v25, %v5701_v48 }
0x3f8a   : > { %v9555_v0 = vadd.f32 %v5710_v42, %v5706_v36 }
0x3f8c   : > { %v5712_v5 = vpack.c.bf16 %v9555_v0, %v9555_v0  ;;  %v5786_v21 = vrot.slane %v9555_v0, 6 }
0x3f8e   : > { %5714 = vrot.lane.b32.xlu0 %v5712_v5, %s8369_s29 }
0x4000   : > { %v5715_v13 = vpop.permute.xlu0 %5714 }
0x4001   : > { %7734 = vmatmul.mubr.msk.bf16.vlgmr.msra.gmra.mxu1 %vm688_vm9, %v5715_v13 }
0x4002   : > { %7744 = vmatpush3.bf16.msra.mxu1 %v9435_v8  ;;  %7745 = vmatprep.mubr.msk.bf16.mxu1 %vm8365_vm6, %v8364_v43 }
0x4003   : > { %7757 = vmatprep.subr.bf16.mxu1 %v8364_v43 }
0x40c1   : > { %v5753_v60 = vpop.f32.mrf.mxu1 }
0x40c2   : > { %v5754_v6 = vadd.f32 %v9457_v51, %v5753_v60 }
0x40c3   : > { %v7735_v9 = vpop.f32.mrf.mxu1 }
0x40c4   : > { %v5760_v2 = vrot.slane %v5754_v6, 6 }
0x40c5   : > { %v5756_v53 = vpop.f32.mrf.mxu1 }
0x40c6   : > { %5769 = vrot.lane.b32.xlu1 %v5760_v2, %s8367_s23  ;;  %v5762_v18 = vadd.f32 %v5760_v2, %v9491_v12 }
0x40c7   : > { %v7736_v15 = vpop.f32.mrf.mxu1 }
0x40c8   : > { %v7128_v54 = vmul.f32 -1.442695, %v5762_v18  ;;  %v9632_v15 = vld [vmem:[%s9810_s3 + $0x7] ss:$0 sm:$0xff] }
0x40ca   : > { %8258 = vpow2.f32 %v7128_v54 }
0x40d7   : > { %v8259_v24 = vpop.eup %8258 }
0x40d8   : > { %v5766_v8 = vadd.f32 1.0, %v8259_v24 }
0x40da   : > { %8260 = vrcp.f32 %v5766_v8 }
0x40e7   : > { %v8261_v10 = vpop.eup %8260 }
0x40e8   : > { %v5779_v29 = vsub.f32 1.0, %v8261_v10  ;;  %v5788_v17 = vmul.f32 %v8261_v10, %v5786_v21 }
0x4138   : > { %v5770_v19 = vpop.permute.xlu1 %5769 }
0x4139   : > { %v5772_v41 = vmul.f32 %v8261_v10, %v5770_v19 }
0x413b   : > { %5774 = vrot.lane.b32.xlu0 %v5772_v41, %s8368_s28 }
0x41ad   : > { %v5775_v26 = vpop.permute.xlu0 %5774 }
0x41ae   : > { %v5777_v45 = vadd.f32 %v5775_v26, %v9491_v12 }
0x41b0   : > { %8262 = vtanh.f32 %v5777_v45 }
0x41bd   : > { %v8263_v62 = vpop.eup %8262 }
0x41be   : > { %5781 = vrot.lane.b32.xlu1 %v8263_v62, %s8369_s29 }
0x4230   : > { %v5782_v40 = vpop.permute.xlu1 %5781 }
0x4231   : > { %v5784_v4 = vmul.f32 %v5782_v40, %v5779_v29 }
0x4233   : > { %v5789_v44 = vadd.f32 %v5788_v17, %v5784_v4 }
0x4235   : > { %v5790_v14 = vpack.c.bf16 %v5789_v44, %v5789_v44  ;;  %v5865_v30 = vrot.slane %v5789_v44, 6  ;;  %v5951_v36 = vsel %vm9853_vm4, %v9555_v0, %v5789_v44 }
0x4237   : > { %v5792_v50 = vrot.slane %v5790_v14, 1 }
0x4239   : > { %5793 = vrot.lane.b32.xlu0 %v5792_v50, %s8369_s29 }
0x42ab   : > { %v5794_v35 = vpop.permute.xlu0 %5793 }
0x42ac   : > { %7740 = vmatmul.mubr.msk.bf16.vlgmr.msra.gmra.mxu0 %vm688_vm9, %v5794_v35 }
0x42ad   : > { %7750 = vmatpush3.bf16.msra.mxu0 %v8126_v20  ;;  %7753 = vmatprep.mubr.msk.bf16.mxu0 %vm8365_vm6, %v8364_v43 }
0x42ae   : > { %7751 = vmatprep.subr.bf16.mxu0 %v8364_v43 }
0x42b1   : > { %7752 = vmatpush3.bf16.msra.mxu0 %v8127_v32 }
0x42b2   : > { %7763 = vmatprep.subr.bf16.mxu0 %v8364_v43 }
0x42b4   : > { %7754 = vmatmul.mubr.msk.bf16.vlgmr.msra.gmra.mxu0 %vm9852_vm2, %v9477_v55 }
0x42b5   : > { %7765 = vmatprep.mubr.msk.bf16.mxu0 %vm8365_vm6, %v8364_v43  ;;  %7764 = vmatpush3.bf16.msra.mxu0 %v9602_v52 }
0x42b6   : > { %7775 = vmatprep.subr.bf16.mxu0 %v8364_v43 }
0x436c   : > { %v5832_v38 = vpop.f32.mrf.mxu0 }
0x436d   : > { %v5833_v59 = vadd.f32 %v9457_v51, %v5832_v38 }
0x436e   : > { %v7741_v63 = vpop.f32.mrf.mxu0 }
0x436f   : > { %v5839_v39 = vrot.slane %v5833_v59, 4 }
0x4370   : > { %v5835_v7 = vpop.f32.mrf.mxu0 }
0x4371   : > { %5848 = vrot.lane.b32.xlu1 %v5839_v39, %s8367_s23  ;;  %v5841_v16 = vadd.f32 %v5839_v39, %v9491_v12 }
0x4372   : > { %v7742_v61 = vpop.f32.mrf.mxu0 }
0x4373   : > { %v7130_v46 = vmul.f32 -1.442695, %v5841_v16 }
0x4374   : > { %v6012_v49 = vpop.f32.mrf.mxu0 }
0x4375   : > { %v9593_v47 = vadd.f32 %v7133_v28, %v6012_v49  ;;  %8264 = vpow2.f32 %v7130_v46 }
0x4376   : > { %v7755_v55 = vpop.f32.mrf.mxu0 }
0x4378   : > { %v6015_v3 = vpop.f32.mrf.mxu0 }
0x4379   : > { %v9636_v19 = vadd.f32 %v7133_v28, %v6015_v3 }
0x437a   : > { %v7756_v27 = vpop.f32.mrf.mxu0 }
0x4382   : > { %v8265_v51 = vpop.eup %8264 }
0x4383   : > { %v5845_v23 = vadd.f32 1.0, %v8265_v51 }
0x4385   : > { %8266 = vrcp.f32 %v5845_v23 }
0x4392   : > { %v8267_v33 = vpop.eup %8266 }
0x4393   : > { %v5858_v22 = vsub.f32 1.0, %v8267_v33  ;;  %v5867_v37 = vmul.f32 %v8267_v33, %v5865_v30 }
0x43e3   : > { %v5849_v34 = vpop.permute.xlu1 %5848 }
0x43e4   : > { %v5851_v31 = vmul.f32 %v8267_v33, %v5849_v34 }
0x43e6   : > { %5853 = vrot.lane.b32.xlu0 %v5851_v31, %s8368_s28 }
0x4458   : > { %v5854_v11 = vpop.permute.xlu0 %5853 }
0x4459   : > { %v5856_v56 = vadd.f32 %v5854_v11, %v9491_v12 }
0x445b   : > { %8268 = vtanh.f32 %v5856_v56 }
0x4468   : > { %v8269_v57 = vpop.eup %8268 }
0x4469   : > { %5860 = vrot.lane.b32.xlu1 %v8269_v57, %s8369_s29 }
0x44db   : > { %v5861_v48 = vpop.permute.xlu1 %5860 }
0x44dc   : > { %v5863_v25 = vmul.f32 %v5861_v48, %v5858_v22 }
0x44de   : > { %v9606_v42 = vadd.f32 %v5867_v37, %v5863_v25 }
0x44e0   : > { %v9612_v5 = vsel %vm4540_vm8, %v5951_v36, %v9606_v42  ;;  %v5869_v13 = vpack.c.bf16 %v9606_v42, %v9606_v42 }
0x44e2   : > { %v5871_v60 = vrot.slane %v5869_v13, 2 }
0x44e4   : > { %5872 = vrot.lane.b32.xlu0 %v5871_v60, %s8369_s29 }
0x4556   : > { %v5873_v6 = vpop.permute.xlu0 %5872 }
0x4557   : > { %7746 = vmatmul.mubr.msk.bf16.vlgmr.msra.gmra.mxu1 %vm688_vm9, %v5873_v6 }
0x4558   : > { %7758 = vmatpush3.bf16.msra.mxu1 %v9602_v52  ;;  %7759 = vmatprep.mubr.msk.bf16.mxu1 %vm8365_vm6, %v8364_v43 }
0x4559   : > { %7769 = vmatprep.subr.bf16.mxu1 %v8364_v43 }
0x455f   : > { %7760 = vmatmul.mubr.bf16.vlgmr.msra.gmra.mxu1 %v8366_v58 }
0x4560   : > { %7770 = vmatpush3.bf16.msra.mxu1 %v9602_v52  ;;  %7771 = vmatprep.mubr.msk.bf16.mxu1 %vm8365_vm6, %v8364_v43 }
0x4561   : > { %7781 = vmatprep.subr.bf16.mxu1 %v8364_v43 }
0x4617   : > { %v9627_v0 = vpop.f32.mrf.mxu1 }
0x4619   : > { %v7747_v9 = vpop.f32.mrf.mxu1 }
0x461b   : > { %v5914_v2 = vpop.f32.mrf.mxu1 }
0x461d   : > { %v7748_v53 = vpop.f32.mrf.mxu1 }
0x461f   : > { %v6063_v18 = vpop.f32.mrf.mxu1 }
0x4620   : > { %v6064_v58 = vadd.f32 %v9632_v15, %v6063_v18 }
0x4621   : > { %v7761_v54 = vpop.f32.mrf.mxu1 }
0x4622   : > { %v6070_v24 = vrot.slane %v6064_v58, 2 }
0x4623   : > { %v6066_v8 = vpop.f32.mrf.mxu1 }
0x4624   : > { %6079 = vrot.lane.b32.xlu1 %v6070_v24, %s8367_s23  ;;  %v6072_v41 = vadd.f32 %v6070_v24, %v9636_v19 }
0x4625   : > { %v7762_v10 = vpop.f32.mrf.mxu1 }
0x4626   : > { %v7139_v26 = vmul.f32 -1.442695, %v6072_v41 }
0x4628   : > { %8270 = vpow2.f32 %v7139_v26 }
0x4635   : > { %v8271_v45 = vpop.eup %8270 }
0x4636   : > { %v6076_v62 = vadd.f32 1.0, %v8271_v45 }
0x4638   : > { %8272 = vrcp.f32 %v6076_v62 }
0x4645   : > { %v8273_v29 = vpop.eup %8272 }
0x4646   : > { %v6089_v14 = vsub.f32 1.0, %v8273_v29  ;;  %v6095_v20 = vmul.f32 0.0, %v8273_v29 }
0x4696   : > { %v6080_v21 = vpop.permute.xlu1 %6079 }
0x4697   : > { %v6082_v40 = vmul.f32 %v8273_v29, %v6080_v21 }
0x4699   : > { %6084 = vrot.lane.b32.xlu0 %v6082_v40, %s8368_s28 }
0x470b   : > { %v6085_v17 = vpop.permute.xlu0 %6084 }
0x470c   : > { %v6087_v4 = vadd.f32 %v6085_v17, %v9636_v19 }
0x470e   : > { %8274 = vtanh.f32 %v6087_v4 }
0x471b   : > { %v8275_v44 = vpop.eup %8274 }
0x471c   : > { %6091 = vrot.lane.b32.xlu1 %v8275_v44, %s8369_s29 }
0x478e   : > { %v6092_v50 = vpop.permute.xlu1 %6091 }
0x478f   : > { %v6094_v35 = vmul.f32 %v6092_v50, %v6089_v14 }
0x4791   : > { %v9642_v32 = vadd.f32 %v6095_v20, %v6094_v35 }
0x4793   : > { %v6097_v38 = vpack.c.bf16 %v9642_v32, %v9642_v32  ;;  %v6172_v57 = vrot.slane %v9642_v32, 2 }
0x4795   : > { %v6099_v59 = vrot.slane %v6097_v38, 3 }
0x4797   : > { %6100 = vrot.lane.b32.xlu0 %v6099_v59, %s8369_s29 }
0x4809   : > { %v6101_v63 = vpop.permute.xlu0 %6100 }
0x480a   : > { %7766 = vmatmul.mubr.msk.bf16.vlgmr.msra.gmra.mxu0 %vm688_vm9, %v6101_v63 }
0x480b   : > { %7776 = vmatpush3.bf16.msra.mxu0 %v9602_v52  ;;  %7777 = vmatprep.mubr.msk.bf16.mxu0 %vm8365_vm6, %v8364_v43 }
0x480c   : > { %7787 = vmatprep.subr.bf16.mxu0 %v8364_v43 }
0x48ca   : > { %v6139_v39 = vpop.f32.mrf.mxu0 }
0x48cb   : > { %v6140_v7 = vadd.f32 %v9632_v15, %v6139_v39 }
0x48cc   : > { %v7767_v61 = vpop.f32.mrf.mxu0 }
0x48cd   : > { %v6146_v28 = vrot.slane %v6140_v7, 4 }
0x48ce   : > { %v6142_v49 = vpop.f32.mrf.mxu0 }
0x48cf   : > { %6155 = vrot.lane.b32.xlu1 %v6146_v28, %s8367_s23  ;;  %v6148_v3 = vadd.f32 %v6146_v28, %v9636_v19 }
0x48d0   : > { %v7768_v55 = vpop.f32.mrf.mxu0 }
0x48d1   : > { %v7141_v27 = vmul.f32 -1.442695, %v6148_v3 }
0x48d3   : > { %8276 = vpow2.f32 %v7141_v27 }
0x48e0   : > { %v8277_v16 = vpop.eup %8276 }
0x48e1   : > { %v6152_v46 = vadd.f32 1.0, %v8277_v16 }
0x48e3   : > { %8278 = vrcp.f32 %v6152_v46 }
0x48f0   : > { %v8279_v51 = vpop.eup %8278 }
0x48f1   : > { %v6165_v56 = vsub.f32 1.0, %v8279_v51  ;;  %v6174_v30 = vmul.f32 %v8279_v51, %v6172_v57 }
0x4941   : > { %v6156_v23 = vpop.permute.xlu1 %6155 }
0x4942   : > { %v6158_v33 = vmul.f32 %v8279_v51, %v6156_v23 }
0x4944   : > { %6160 = vrot.lane.b32.xlu0 %v6158_v33, %s8368_s28 }
0x49b6   : > { %v6161_v34 = vpop.permute.xlu0 %6160 }
0x49b7   : > { %v6163_v31 = vadd.f32 %v6161_v34, %v9636_v19 }
0x49b9   : > { %8280 = vtanh.f32 %v6163_v31 }
0x49c6   : > { %v8281_v11 = vpop.eup %8280 }
0x49c7   : > { %6167 = vrot.lane.b32.xlu1 %v8281_v11, %s8369_s29 }
0x4a39   : > { %v6168_v22 = vpop.permute.xlu1 %6167 }
0x4a3a   : > { %v6170_v48 = vmul.f32 %v6168_v22, %v6165_v56 }
0x4a3c   : > { %v9659_v37 = vadd.f32 %v6174_v30, %v6170_v48 }
0x4a3e   : > { %v6176_v25 = vpack.c.bf16 %v9659_v37, %v9659_v37  ;;  %v6251_v40 = vrot.slane %v9659_v37, 2 }
0x4a40   : > { %v6178_v36 = vrot.slane %v6176_v25, 2 }
0x4a42   : > { %6179 = vrot.lane.b32.xlu0 %v6178_v36, %s8369_s29 }
0x4ab4   : > { %v6180_v13 = vpop.permute.xlu0 %6179 }
0x4ab5   : > { %7772 = vmatmul.mubr.msk.bf16.vlgmr.msra.gmra.mxu1 %vm688_vm9, %v6180_v13 }
0x4ab6   : > { %7782 = vmatpush3.bf16.msra.mxu1 %v9602_v52  ;;  %7783 = vmatprep.mubr.msk.bf16.mxu1 %vm8365_vm6, %v8364_v43 }
0x4ab7   : > { %7793 = vmatprep.subr.bf16.mxu1 %v8364_v43 }
0x4b75   : > { %v6218_v60 = vpop.f32.mrf.mxu1 }
0x4b76   : > { %v6219_v6 = vadd.f32 %v9632_v15, %v6218_v60 }
0x4b77   : > { %v7773_v9 = vpop.f32.mrf.mxu1 }
0x4b78   : > { %v6225_v2 = vrot.slane %v6219_v6, 6 }
0x4b79   : > { %v6221_v53 = vpop.f32.mrf.mxu1 }
0x4b7a   : > { %6234 = vrot.lane.b32.xlu1 %v6225_v2, %s8367_s23  ;;  %v6227_v58 = vadd.f32 %v6225_v2, %v9636_v19 }
0x4b7b   : > { %v7774_v18 = vpop.f32.mrf.mxu1 }
0x4b7c   : > { %v7143_v54 = vmul.f32 -1.442695, %v6227_v58 }
0x4b7e   : > { %8282 = vpow2.f32 %v7143_v54 }
0x4b8b   : > { %v8283_v24 = vpop.eup %8282 }
0x4b8c   : > { %v6231_v8 = vadd.f32 1.0, %v8283_v24 }
0x4b8e   : > { %8284 = vrcp.f32 %v6231_v8 }
0x4b9b   : > { %v8285_v10 = vpop.eup %8284 }
0x4b9c   : > { %v6244_v21 = vsub.f32 1.0, %v8285_v10  ;;  %v6253_v4 = vmul.f32 %v8285_v10, %v6251_v40 }
0x4bec   : > { %v6235_v41 = vpop.permute.xlu1 %6234 }
0x4bed   : > { %v6237_v26 = vmul.f32 %v8285_v10, %v6235_v41 }
0x4bef   : > { %6239 = vrot.lane.b32.xlu0 %v6237_v26, %s8368_s28 }
0x4c61   : > { %v6240_v45 = vpop.permute.xlu0 %6239 }
0x4c62   : > { %v6242_v62 = vadd.f32 %v6240_v45, %v9636_v19 }
0x4c64   : > { %8286 = vtanh.f32 %v6242_v62 }
0x4c71   : > { %v8287_v29 = vpop.eup %8286 }
0x4c72   : > { %6246 = vrot.lane.b32.xlu1 %v8287_v29, %s8369_s29 }
0x4ce4   : > { %v6247_v17 = vpop.permute.xlu1 %6246 }
0x4ce5   : > { %v6249_v44 = vmul.f32 %v6247_v17, %v6244_v21 }
0x4ce7   : > { %v9676_v14 = vadd.f32 %v6253_v4, %v6249_v44 }
0x4ce9   : > { %v6255_v50 = vpack.c.bf16 %v9676_v14, %v9676_v14  ;;  %v6328_v34 = vrot.slane %v9676_v14, 2 }
0x4ceb   : > { %v6257_v20 = vrot.slane %v6255_v50, 1 }
0x4ced   : > { %6258 = vrot.lane.b32.xlu0 %v6257_v20, %s8369_s29 }
0x4d5f   : > { %v6259_v35 = vpop.permute.xlu0 %6258 }
0x4d60   : > { %7778 = vmatmul.mubr.msk.bf16.vlgmr.msra.gmra.mxu0 %vm688_vm9, %v6259_v35 }
0x4d61   : > { %7788 = vmatpush3.bf16.msra.mxu0 %v9602_v52  ;;  %7789 = vmatprep.mubr.msk.bf16.mxu0 %vm8365_vm6, %v8364_v43 }
0x4d62   : > { %7799 = vmatprep.subr.bf16.mxu0 %v8364_v43 }
0x4e20   : > { %v6297_v38 = vpop.f32.mrf.mxu0 }
0x4e21   : > { %v6298_v59 = vadd.f32 %v9632_v15, %v6297_v38 }
0x4e22   : > { %v7779_v63 = vpop.f32.mrf.mxu0 }
0x4e23   : > { %6311 = vrot.lane.b32.xlu1 %v6298_v59, %s8367_s23  ;;  %v6303_v61 = vadd.f32 %v6298_v59, %v9636_v19 }
0x4e24   : > { %v6300_v39 = vpop.f32.mrf.mxu0 }
0x4e25   : > { %v7145_v28 = vmul.f32 -1.442695, %v6303_v61 }
0x4e26   : > { %v7780_v7 = vpop.f32.mrf.mxu0 }
0x4e27   : > { %8288 = vpow2.f32 %v7145_v28 }
0x4e34   : > { %v8289_v49 = vpop.eup %8288 }
0x4e35   : > { %v6307_v55 = vadd.f32 1.0, %v8289_v49 }
0x4e37   : > { %8290 = vrcp.f32 %v6307_v55 }
0x4e44   : > { %v8291_v3 = vpop.eup %8290 }
0x4e45   : > { %v6321_v33 = vsub.f32 1.0, %v8291_v3  ;;  %v6330_v11 = vmul.f32 %v8291_v3, %v6328_v34 }
0x4e95   : > { %v6312_v27 = vpop.permute.xlu1 %6311 }
0x4e96   : > { %v6314_v16 = vmul.f32 %v8291_v3, %v6312_v27 }
0x4e98   : > { %6316 = vrot.lane.b32.xlu0 %v6314_v16, %s8368_s28 }
0x4f0a   : > { %v6317_v46 = vpop.permute.xlu0 %6316 }
0x4f0b   : > { %v6319_v51 = vadd.f32 %v6317_v46, %v9636_v19 }
0x4f0d   : > { %8292 = vtanh.f32 %v6319_v51 }
0x4f1a   : > { %v8293_v23 = vpop.eup %8292 }
0x4f1b   : > { %6323 = vrot.lane.b32.xlu1 %v8293_v23, %s8369_s29 }
0x4f8d   : > { %v6324_v31 = vpop.permute.xlu1 %6323 }
0x4f8e   : > { %v6326_v56 = vmul.f32 %v6324_v31, %v6321_v33 }
0x4f90   : > { %v9693_v57 = vadd.f32 %v6330_v11, %v6326_v56 }
0x4f92   : > { %v6332_v22 = vpack.c.bf16 %v9693_v57, %v9693_v57  ;;  %v6406_v26 = vrot.slane %v9693_v57, 2 }
0x4f94   : > { %6334 = vrot.lane.b32.xlu0 %v6332_v22, %s8369_s29 }
0x5006   : > { %v6335_v30 = vpop.permute.xlu0 %6334 }
0x5007   : > { %7784 = vmatmul.mubr.msk.bf16.vlgmr.msra.gmra.mxu1 %vm688_vm9, %v6335_v30 }
0x5008   : > { %7794 = vmatpush3.bf16.msra.mxu1 %v9602_v52  ;;  %7795 = vmatprep.mubr.msk.bf16.mxu1 %vm8365_vm6, %v8364_v43 }
0x5009   : > { %7805 = vmatprep.subr.bf16.mxu1 %v8364_v43 }
0x50c7   : > { %v6373_v19 = vpop.f32.mrf.mxu1 }
0x50c8   : > { %v6374_v48 = vadd.f32 %v9632_v15, %v6373_v19 }
0x50c9   : > { %v7785_v25 = vpop.f32.mrf.mxu1 }
0x50ca   : > { %v6380_v36 = vrot.slane %v6374_v48, 2 }
0x50cb   : > { %v6376_v13 = vpop.f32.mrf.mxu1 }
0x50cc   : > { %6389 = vrot.lane.b32.xlu1 %v6380_v36, %s8367_s23  ;;  %v6382_v6 = vadd.f32 %v6380_v36, %v9593_v47 }
0x50cd   : > { %v7786_v60 = vpop.f32.mrf.mxu1 }
0x50ce   : > { %v7147_v9 = vmul.f32 -1.442695, %v6382_v6 }
0x50d0   : > { %8294 = vpow2.f32 %v7147_v9 }
0x50dd   : > { %v8295_v2 = vpop.eup %8294 }
0x50de   : > { %v6386_v53 = vadd.f32 1.0, %v8295_v2 }
0x50e0   : > { %8296 = vrcp.f32 %v6386_v53 }
0x50ed   : > { %v8297_v18 = vpop.eup %8296 }
0x50ee   : > { %v6399_v41 = vsub.f32 1.0, %v8297_v18  ;;  %v6408_v62 = vmul.f32 %v8297_v18, %v6406_v26 }
0x513e   : > { %v6390_v58 = vpop.permute.xlu1 %6389 }
0x513f   : > { %v6392_v54 = vmul.f32 %v8297_v18, %v6390_v58 }
0x5141   : > { %6394 = vrot.lane.b32.xlu0 %v6392_v54, %s8368_s28 }
0x51b3   : > { %v6395_v24 = vpop.permute.xlu0 %6394 }
0x51b4   : > { %v6397_v8 = vadd.f32 %v6395_v24, %v9593_v47  ;;  %v8325_v24 = vld [vmem:[%s9810_s3 + $0x5] ss:$0 sm:$0xff] }
0x51b6   : > { %8298 = vtanh.f32 %v6397_v8  ;;  %v5912_v8 = vadd.f32 %v8325_v24, %v9627_v0 }
0x51c3   : > { %v8299_v10 = vpop.eup %8298 }
0x51c4   : > { %6401 = vrot.lane.b32.xlu1 %v8299_v10, %s8369_s29 }
0x5236   : > { %v6402_v45 = vpop.permute.xlu1 %6401 }
0x5237   : > { %v6404_v29 = vmul.f32 %v6402_v45, %v6399_v41  ;;  %v5918_v41 = vrot.slane %v5912_v8, 2 }
0x5239   : > { %v9710_v21 = vadd.f32 %v6408_v62, %v6404_v29  ;;  %v5920_v26 = vadd.f32 %v5918_v41, %v9491_v12 }
0x523b   : > { %v6410_v40 = vpack.c.bf16 %v9710_v21, %v9710_v21  ;;  %v6485_v46 = vrot.slane %v9710_v21, 2  ;;  %v7132_v45 = vmul.f32 -1.442695, %v5920_v26 }
0x523d   : > { %v6412_v17 = vrot.slane %v6410_v40, 3 }
0x523f   : > { %6413 = vrot.lane.b32.xlu0 %v6412_v17, %s8369_s29 }
0x52b1   : > { %v6414_v4 = vpop.permute.xlu0 %6413 }
0x52b2   : > { %7790 = vmatmul.mubr.msk.bf16.vlgmr.msra.gmra.mxu0 %vm688_vm9, %v6414_v4 }
0x52b3   : > { %7800 = vmatpush3.bf16.msra.mxu0 %v9602_v52  ;;  %7801 = vmatprep.mubr.msk.bf16.mxu0 %vm8365_vm6, %v8364_v43 }
0x52b4   : > { %7813 = vmatprep.subr.bf16.mxu0 %v8364_v43 }
0x5372   : > { %v6452_v44 = vpop.f32.mrf.mxu0 }
0x5373   : > { %v6453_v50 = vadd.f32 %v9632_v15, %v6452_v44 }
0x5374   : > { %v7791_v20 = vpop.f32.mrf.mxu0 }
0x5375   : > { %v6459_v35 = vrot.slane %v6453_v50, 4 }
0x5376   : > { %v6455_v38 = vpop.f32.mrf.mxu0 }
0x5377   : > { %6468 = vrot.lane.b32.xlu1 %v6459_v35, %s8367_s23  ;;  %v6461_v63 = vadd.f32 %v6459_v35, %v9593_v47 }
0x5378   : > { %v7792_v59 = vpop.f32.mrf.mxu0 }
0x5379   : > { %v7149_v39 = vmul.f32 -1.442695, %v6461_v63 }
0x537b   : > { %8300 = vpow2.f32 %v7149_v39 }
0x5388   : > { %v8301_v7 = vpop.eup %8300 }
0x5389   : > { %v6465_v52 = vadd.f32 1.0, %v8301_v7 }
0x538b   : > { %8302 = vrcp.f32 %v6465_v52 }
0x5398   : > { %v8303_v61 = vpop.eup %8302 }
0x5399   : > { %v6478_v16 = vsub.f32 1.0, %v8303_v61  ;;  %v6487_v23 = vmul.f32 %v8303_v61, %v6485_v46 }
0x53e9   : > { %v6469_v28 = vpop.permute.xlu1 %6468 }
0x53ea   : > { %v6471_v49 = vmul.f32 %v8303_v61, %v6469_v28 }
0x53ec   : > { %6473 = vrot.lane.b32.xlu0 %v6471_v49, %s8368_s28  ;;  %v5944_v49 = vrot.slane %v9606_v42, 6 }
0x545e   : > { %v6474_v55 = vpop.permute.xlu0 %6473 }
0x545f   : > { %v6476_v3 = vadd.f32 %v6474_v55, %v9593_v47 }
0x5461   : > { %8304 = vtanh.f32 %v6476_v3 }
0x546e   : > { %v8305_v27 = vpop.eup %8304 }
0x546f   : > { %6480 = vrot.lane.b32.xlu1 %v8305_v27, %s8369_s29 }
0x54e1   : > { %v6481_v51 = vpop.permute.xlu1 %6480 }
0x54e2   : > { %v6483_v33 = vmul.f32 %v6481_v51, %v6478_v16 }
0x54e4   : > { %v9727_v34 = vadd.f32 %v6487_v23, %v6483_v33 }
0x54e6   : > { %v6489_v31 = vpack.c.bf16 %v9727_v34, %v9727_v34  ;;  %v6564_v17 = vrot.slane %v9727_v34, 2 }
0x54e8   : > { %v6491_v11 = vrot.slane %v6489_v31, 2 }
0x54ea   : > { %6492 = vrot.lane.b32.xlu0 %v6491_v11, %s8369_s29 }
0x555c   : > { %v6493_v56 = vpop.permute.xlu0 %6492 }
0x555d   : > { %7796 = vmatmul.mubr.msk.bf16.vlgmr.msra.gmra.mxu1 %vm688_vm9, %v6493_v56 }
0x555e   : > { %7809 = vmatprep.mubr.msk.bf16.mxu1 %vm8365_vm6, %v8364_v43 }
0x561d   : > { %v6531_v22 = vpop.f32.mrf.mxu1 }
0x561e   : > { %v6532_v30 = vadd.f32 %v9632_v15, %v6531_v22 }
0x561f   : > { %v7797_v19 = vpop.f32.mrf.mxu1 }
0x5620   : > { %v6538_v48 = vrot.slane %v6532_v30, 6 }
0x5621   : > { %v6534_v25 = vpop.f32.mrf.mxu1 }
0x5622   : > { %6547 = vrot.lane.b32.xlu1 %v6538_v48, %s8367_s23  ;;  %v6540_v13 = vadd.f32 %v6538_v48, %v9593_v47  ;;  %v8129_v25 = vld [vmem:[%s9809_s2 + $0x70] sm:$0xff]  }
0x5623   : > { %v7798_v36 = vpop.f32.mrf.mxu1  ;;  %7806 = vmatpush3.bf16.msra.mxu1 %v8129_v25 }
0x5624   : > { %v7151_v60 = vmul.f32 -1.442695, %v6540_v13  ;;  %7807 = vmatprep.subr.bf16.mxu1 %v8364_v43  ;;  %v8130_v36 = vld [vmem:[%s9809_s2 + $0x68] sm:$0xff]  }
0x5626   : > { %8306 = vpow2.f32 %v7151_v60 }
0x5627   : > { %7808 = vmatpush3.bf16.msra.mxu1 %v8130_v36 }
0x5633   : > { %v8307_v6 = vpop.eup %8306 }
0x5634   : > { %v6544_v9 = vadd.f32 1.0, %v8307_v6 }
0x5636   : > { %8308 = vrcp.f32 %v6544_v9 }
0x5643   : > { %v8309_v2 = vpop.eup %8308 }
0x5644   : > { %v6557_v40 = vsub.f32 1.0, %v8309_v2  ;;  %v6566_v44 = vmul.f32 %v8309_v2, %v6564_v17 }
0x5694   : > { %v6548_v53 = vpop.permute.xlu1 %6547 }
0x5695   : > { %v6550_v18 = vmul.f32 %v8309_v2, %v6548_v53 }
0x5697   : > { %6552 = vrot.lane.b32.xlu0 %v6550_v18, %s8368_s28 }
0x5709   : > { %v6553_v58 = vpop.permute.xlu0 %6552 }
0x570a   : > { %v6555_v54 = vadd.f32 %v6553_v58, %v9593_v47 }
0x570c   : > { %8310 = vtanh.f32 %v6555_v54 }
0x570d   : > { %8312 = vpow2.f32 %v7132_v45 }
0x5719   : > { %v8311_v10 = vpop.eup %8310 }
0x571a   : > { %6559 = vrot.lane.b32.xlu1 %v8311_v10, %s8369_s29  ;;  %v8313_v62 = vpop.eup %8312 }
0x571b   : > { %v5924_v29 = vadd.f32 1.0, %v8313_v62 }
0x571d   : > { %8314 = vrcp.f32 %v5924_v29 }
0x571e   : > { %5927 = vrot.lane.b32.xlu1 %v5918_v41, %s8367_s23 }
0x572a   : > { %v8315_v20 = vpop.eup %8314 }
0x572b   : > { %v5937_v28 = vsub.f32 1.0, %v8315_v20  ;;  %v5946_v3 = vmul.f32 %v8315_v20, %v5944_v49 }
0x578c   : > { %v6560_v4 = vpop.permute.xlu1 %6559 }
0x578d   : > { %v6562_v50 = vmul.f32 %v6560_v4, %v6557_v40 }
0x578f   : > { %v6567_v0 = vadd.f32 %v6566_v44, %v6562_v50 }
0x5790   : > { %v5928_v35 = vpop.permute.xlu1 %5927 }
0x5791   : > { %v6568_v38 = vpack.c.bf16 %v6567_v0, %v6567_v0  ;;  %v5930_v59 = vmul.f32 %v8315_v20, %v5928_v35  ;;  %v6641_v6 = vrot.slane %v6567_v0, 2 }
0x5793   : > { %5932 = vrot.lane.b32.xlu1 %v5930_v59, %s8368_s28  ;;  %v6570_v63 = vrot.slane %v6568_v38, 1 }
0x5795   : > { %6571 = vrot.lane.b32.xlu0 %v6570_v63, %s8369_s29 }
0x5805   : > { %v5933_v39 = vpop.permute.xlu1 %5932 }
0x5806   : > { %v5935_v7 = vadd.f32 %v5933_v39, %v9491_v12 }
0x5807   : > { %v6572_v52 = vpop.permute.xlu0 %6571 }
0x5808   : > { %8316 = vtanh.f32 %v5935_v7  ;;  %7802 = vmatmul.mubr.msk.bf16.vlgmr.msra.gmra.mxu0 %vm688_vm9, %v6572_v52 }
0x5809   : > { %7815 = vmatprep.mubr.msk.bf16.mxu0 %vm8365_vm6, %v8364_v43  ;;  %vm9856_vm6 = vmmov %vm9852_vm2 }
0x5815   : > { %v8317_v61 = vpop.eup %8316 }
0x5816   : > { %5939 = vrot.lane.b32.xlu1 %v8317_v61, %s8369_s29 }
0x5888   : > { %v5940_v55 = vpop.permute.xlu1 %5939 }
0x5889   : > { %v5942_v27 = vmul.f32 %v5940_v55, %v5937_v28 }
0x588b   : > { %v5947_v16 = vadd.f32 %v5946_v3, %v5942_v27 }
0x588d   : > { %v5953_v12 = vsel %vm4542_vm11, %v9612_v5, %v5947_v16 }
0x588e   : > { %v8112_v46 = vpack.i.bf16 %v5953_v12, %v9541_v1 }
0x5890   : > { %8113 = vrot.lane.b32.xlu1 %v8112_v46, %s8369_s29 }
0x58c8   : > { %v6610_v51 = vpop.f32.mrf.mxu0 }
0x58c9   : > { %v6611_v23 = vadd.f32 %v9632_v15, %v6610_v51 }
0x58ca   : > { %v7803_v33 = vpop.f32.mrf.mxu0 }
0x58cb   : > { %6624 = vrot.lane.b32.xlu0 %v6611_v23, %s8367_s23  ;;  %v6616_v42 = vadd.f32 %v6611_v23, %v9593_v47 }
0x58cc   : > { %v6613_v31 = vpop.f32.mrf.mxu0 }
0x58cd   : > { %v7153_v56 = vmul.f32 -1.442695, %v6616_v42 }
0x58ce   : > { %v7804_v11 = vpop.f32.mrf.mxu0 }
0x58cf   : > { %8318 = vpow2.f32 %v7153_v56 }
0x58dc   : > { %v8319_v22 = vpop.eup %8318 }
0x58dd   : > { %v6620_v30 = vadd.f32 1.0, %v8319_v22 }
0x58df   : > { %8320 = vrcp.f32 %v6620_v30 }
0x58ec   : > { %v8321_v5 = vpop.eup %8320 }
0x58ed   : > { %v6634_v60 = vsub.f32 1.0, %v8321_v5  ;;  %v6643_v53 = vmul.f32 %v8321_v5, %v6641_v6 }
0x5902   : > { %v8114_v2 = vpop.permute.xlu1 %8113 }
0x5903   : > { %v8116_v54 = vunpack.i.h.bf16 %v8114_v2  ;;  %v8115_v8 = vunpack.i.l.bf16 %v8114_v2 }
0x593d   : > { %v6625_v19 = vpop.permute.xlu0 %6624 }
0x593e   : > { %v6627_v1 = vmul.f32 %v8321_v5, %v6625_v19 }
0x5940   : > { %6629 = vrot.lane.b32.xlu0 %v6627_v1, %s8368_s28 }
0x59b2   : > { %v6630_v48 = vpop.permute.xlu0 %6629 }
0x59b3   : > { %v6632_v15 = vadd.f32 %v6630_v48, %v9593_v47  ;;  %v6648_v47 = vsel %vm9854_vm5, %v9693_v57, %v9676_v14 }
0x59b4   : > { %v6649_v43 = vsel %vm4540_vm8, %v6648_v47, %v9659_v37  ;;  %v8131_v37 = vld [vmem:[%s9809_s2 + $0x78] sm:$0xff]  }
0x59b5   : > { %8322 = vtanh.f32 %v6632_v15  ;;  %v6650_v41 = vsel %vm4542_vm11, %v6649_v43, %v9642_v32  ;;  %7814 = vmatpush3.bf16.msra.mxu0 %v8131_v37 }
0x59b6   : > { %v6660_v57 = vsel %vm688_vm9, %v8116_v54, %v6650_v41 }
0x59c2   : > { %v8323_v13 = vpop.eup %8322 }
0x59c3   : > { %6636 = vrot.lane.b32.xlu0 %v8323_v13, %s8369_s29 }
0x5a35   : > { %v6637_v9 = vpop.permute.xlu0 %6636 }
0x5a36   : > { %v6639_v18 = vmul.f32 %v6637_v9, %v6634_v60 }
0x5a38   : > { %v6644_v58 = vadd.f32 %v6643_v53, %v6639_v18 }
0x5a3a   : > { %v6645_v24 = vsel %vm9855_vm3, %v6644_v58, %v6567_v0  ;;  %v7158_v0 = vld [vmem:[%s9810_s3 + $0x9] ss:$0 sm:$0xff] }
0x5a3b   : > { %v6646_v10 = vsel %vm4540_vm8, %v6645_v24, %v9727_v34  ;;  %v7154_v34 = vld [vmem:[%s9810_s3 + $0x8] ss:$0 sm:$0xff] }
0x5a3c   : > { %v6647_v14 = vsel %vm4542_vm11, %v6646_v10, %v9710_v21 }
0x5a3d   : > { %v6659_v26 = vsel %vm688_vm9, %v8115_v8, %v6647_v14 }
0x5a3e   : > { %v6669_v45 = vpack.c.bf16 %v6660_v57, %v6659_v26 }
0x5a40   : > { %7810 = vmatmul.mubr.msk.bf16.vlgmr.msra.gmra.mxu1 %vm9856_vm6, %v6669_v45 }
0x5b00   : > { %v6723_v32 = vpop.f32.mrf.mxu1 }
0x5b01   : > { %v6724_v29 = vadd.f32 %v7154_v34, %v6723_v32 }
0x5b02   : > { %v7811_v62 = vpop.f32.mrf.mxu1 }
0x5b03   : > { %v6730_v4 = vmax.f32 %v6724_v29, 0.0 }
0x5b04   : > { %v6726_v21 = vpop.f32.mrf.mxu1 }
0x5b05   : > { %v6727_v40 = vadd.f32 %v7154_v34, %v6726_v21 }
0x5b06   : > { %v7812_v17 = vpop.f32.mrf.mxu1 }
0x5b07   : > { %v6731_v44 = vmax.f32 %v6727_v40, 0.0 }
0x5b09   : > { %v6732_v50 = vpack.c.bf16 %v6731_v44, %v6730_v4 }
0x5b0b   : > { %7816 = vmatmul.mubr.msk.bf16.vlgmr.msra.gmra.mxu0 %vm688_vm9, %v6732_v50 }
0x5bcb   : > { %v6780_v20 = vpop.f32.mrf.mxu0 }
0x5bcc   : > { %v6781_v35 = vadd.f32 %v7158_v0, %v6780_v20 }
0x5bcd   : > { %v7817_v38 = vpop.f32.mrf.mxu0 }
0x5bce   : > { %6788 = vst.msk [vmem:[%s9816_s9] sm:$0xff] %vm6787_vm7, %v6781_v35 }
0x5bcf   : > { %v6783_v59 = vpop.f32.mrf.mxu0 }
0x5bd0   : > { %v6784_v63 = vadd.f32 %v7158_v0, %v6783_v59 }
0x5bd1   : > { %v7818_v39 = vpop.f32.mrf.mxu0 }
0x5bd2   : > { %6789 = vst.msk [vmem:[%s9816_s9 + $0x8] sm:$0xff] %vm6787_vm7, %v6784_v63 }
0x5bd3 PF: > { %s19_s30 = sadd.s32 1, %s8332_s30  }
0x5bd4   : > { %p16_p6 = scmp.ge.s32.totalorder %s19_s30, 6  }
0x5bd6   :  { %18 = sbr.rel (!%p16_p6) target bundleno = 1 (0x1), region = 102 }

</bundles_post_ra>
